<compile_context>
chip_gen: v6e
topology: v6e:2x2x1
jax: 0.10.0
libtpu: 0.0.40
codegen_flags: <defaults>
</compile_context>

<pallas_src>
import numpy as np
import jax
import jax.numpy as jnp
from jax.experimental import pallas as pl
from jax.experimental.pallas import tpu as pltpu

POOL = 3
IN_HW = 255                              # input spatial size implied by Linear(85*85, 40)
OUT_HW = (IN_HW - POOL) // POOL + 1      # 85
FEATURES = OUT_HW * OUT_HW               # 7225
N_OUT = 40


# ----------------------------------------------------------------------------
# Helpers (wrapper-side, plain numpy / JAX)
# ----------------------------------------------------------------------------
def _avgpool_matrix_t() -> jnp.ndarray:
    """(IN_HW, OUT_HW) matrix M with M[q, j] = 1/3 iff 3j <= q < 3j+3.
    row (255,) @ M == 1-D average pool (kernel 3, stride 3, no padding)."""
    m = np.zeros((IN_HW, OUT_HW), np.float32)
    for j in range(OUT_HW):
        m[j * POOL:(j + 1) * POOL, j] = 1.0 / POOL
    return jnp.asarray(m)


# ----------------------------------------------------------------------------
# Pallas kernel: AvgPool(3,3) + flatten + Linear for one batch tile
# ----------------------------------------------------------------------------
def bounding_linear_kernel(x_ref, poolw_t_ref, poolh_ref, w_ref, b_ref, o_ref):
    # x_ref:       (NB, 255, 255) f32
    # poolw_t_ref: (255, 85)   width pooling (x @ poolw_t)
    # poolh_ref:   (85, 255)   height pooling
    # w_ref:       (7225, 40)  Linear weight, pre-permuted/transposed in the wrapper
    # b_ref:       (1, 40)
    # o_ref:       (NB, 40)
    x = x_ref[...]

    # Width pooling on the MXU: (NB, 255, 255) @ (255, 85) -> (NB, 255, 85).
    xc = jnp.einsum('nhq,qj->nhj', x, poolw_t_ref[...],
                    preferred_element_type=jnp.float32)

    # Height pooling; output kept in dot_general's natural order (n, j, i) to avoid
    # an in-kernel transpose (the Linear weight was permuted to match this order).
    xp = jnp.einsum('nhj,ih->nji', xc, poolh_ref[...],
                    preferred_element_type=jnp.float32)

    # Flatten pooled map -> lane-dense (NB, 7225) and run the Linear as one MXU matmul.
    flat = xp.reshape(xp.shape[0], FEATURES)
    out = jnp.dot(flat, w_ref[...], preferred_element_type=jnp.float32)
    o_ref[...] = (out + b_ref[...]).astype(o_ref.dtype)


# ----------------------------------------------------------------------------
# Wrapper
# ----------------------------------------------------------------------------
def bounding_linear_forward(x, weight, bias, *, batch_tile=8):
    """x: (N, 1, 255, 255) or (N, 255, 255); weight: (40, 7225); bias: (40,).
    Returns (N, 40)."""
    if x.ndim == 4:
        assert x.shape[1] == 1, "channel dim must be 1 for reshape to 85*85"
        x = x.reshape(x.shape[0], x.shape[2], x.shape[3])
    N = x.shape[0]
    assert x.shape[1] == IN_HW and x.shape[2] == IN_HW

    # Whole batch per grid step when small; otherwise tiles of 8 (keeps the (nb, 40)
    # output block legal w.r.t. the (8, 128) tiling rule). Pad batch to a multiple.
    nb = N if N <= batch_tile else batch_tile
    n_pad = pl.cdiv(N, nb) * nb
    x = x.astype(jnp.float32)
    if n_pad != N:
        x = jnp.pad(x, ((0, n_pad - N), (0, 0), (0, 0)))

    poolw_t = _avgpool_matrix_t()            # (255, 85)
    poolh = poolw_t.T                        # (85, 255)

    # Kernel flattens the pooled map in (j, i) order (k = j*85 + i), so permute the
    # Linear weight columns accordingly and pre-transpose to (K, 40). Done once here.
    w2 = weight.astype(jnp.float32).reshape(N_OUT, OUT_HW, OUT_HW)      # [o, i, j]
    w_kernel = jnp.transpose(w2, (2, 1, 0)).reshape(FEATURES, N_OUT)    # [j*85+i, o]
    b_kernel = bias.astype(jnp.float32).reshape(1, N_OUT)

    grid = (n_pad // nb,)
    grid_spec = pltpu.PrefetchScalarGridSpec(
        num_scalar_prefetch=0,
        grid=grid,
        in_specs=[
            pl.BlockSpec((nb, IN_HW, IN_HW), lambda n: (n, 0, 0)),   # x batch tile
            pl.BlockSpec((IN_HW, OUT_HW), lambda n: (0, 0)),         # width-pool matrix
            pl.BlockSpec((OUT_HW, IN_HW), lambda n: (0, 0)),         # height-pool matrix
            pl.BlockSpec((FEATURES, N_OUT), lambda n: (0, 0)),       # linear weight (K, 40)
            pl.BlockSpec((1, N_OUT), lambda n: (0, 0)),              # bias
        ],
        out_specs=pl.BlockSpec((nb, N_OUT), lambda n: (n, 0)),
    )

    flops = 2 * n_pad * (IN_HW * IN_HW * OUT_HW          # width pooling matmul
                         + IN_HW * OUT_HW * OUT_HW       # height pooling matmul
                         + FEATURES * N_OUT)             # linear
    bytes_accessed = 4 * (n_pad * IN_HW * IN_HW + 2 * IN_HW * OUT_HW
                          + FEATURES * N_OUT + N_OUT + n_pad * N_OUT)

    out = pl.pallas_call(
        bounding_linear_kernel,
        out_shape=jax.ShapeDtypeStruct((n_pad, N_OUT), jnp.float32),
        grid_spec=grid_spec,
        compiler_params=pltpu.CompilerParams(
            dimension_semantics=("parallel",)),          # batch tiles across TCs on v7x
        cost_estimate=pl.CostEstimate(flops=flops, transcendentals=0,
                                      bytes_accessed=bytes_accessed),
    )(x, poolw_t, poolh, w_kernel, b_kernel)
    return out[:N]


# ----------------------------------------------------------------------------
# Pure-JAX reference (validation only)
# ----------------------------------------------------------------------------
def bounding_linear_reference(x, weight, bias):
    if x.ndim == 4:
        x = x.reshape(x.shape[0], x.shape[2], x.shape[3])
    N = x.shape[0]
    # 3x3 / stride-3 pooling on 255 covers the full extent exactly.
    pooled = x.reshape(N, OUT_HW, POOL, OUT_HW, POOL).mean(axis=(2, 4))
    flat = pooled.reshape(N, FEATURES)
    return flat @ weight.T + bias[None, :]


# ----------------------------------------------------------------------------
# Main
# ----------------------------------------------------------------------------
if __name__ == "__main__":
    N = 2
    key = jax.random.PRNGKey(0)
    k_x, k_w, k_b = jax.random.split(key, 3)

    # Input spatial size is dictated by the module: Linear(85*85, 40) after AvgPool(3,3).
    x = jax.random.normal(k_x, (N, 1, IN_HW, IN_HW), jnp.float32)
    # Linear(7225, 40) parameters (PyTorch layout: weight (out, in), bias (out,)).
    weight = jax.random.normal(k_w, (N_OUT, FEATURES), jnp.float32) * (1.0 / np.sqrt(FEATURES))
    bias = jax.random.normal(k_b, (N_OUT,), jnp.float32) * 0.1

    out = jax.block_until_ready(bounding_linear_forward(x, weight, bias))
    ref = jax.block_until_ready(bounding_linear_reference(x, weight, bias))

    assert out.shape == (N, N_OUT)
    max_err = float(jnp.max(jnp.abs(out - ref)))
    assert max_err < 2e-2, f"mismatch vs reference: {max_err}"
    print("KERNEL_OK")
</pallas_src>

<mosaic_0001>
module attributes {stable_mosaic.version = 11 : i64} {
  func.func @bounding_linear_kernel(%arg0: i32, %arg1: memref<2x255x255xf32, #tpu.memory_space<vmem>>, %arg2: memref<255x85xf32, #tpu.memory_space<vmem>>, %arg3: memref<85x255xf32, #tpu.memory_space<vmem>>, %arg4: memref<7225x40xf32, #tpu.memory_space<vmem>>, %arg5: memref<1x40xf32, #tpu.memory_space<vmem>>, %arg6: memref<2x40xf32, #tpu.memory_space<vmem>>) attributes {dimension_semantics = [#tpu.dimension_semantics<parallel>], iteration_bounds = array<i64: 1>, scalar_prefetch = 0 : i64, scratch_operands = 0 : i64, tpu.core_type = #tpu.core_type<tc>, window_params = [{transform_indices = @transform_0, window_bounds = array<i64: 2, 255, 255>}, {pipeline_mode = #tpu.pipeline_mode<synchronous>, transform_indices = @transform_1, window_bounds = array<i64: 255, 85>}, {pipeline_mode = #tpu.pipeline_mode<synchronous>, transform_indices = @transform_2, window_bounds = array<i64: 85, 255>}, {pipeline_mode = #tpu.pipeline_mode<synchronous>, transform_indices = @transform_3, window_bounds = array<i64: 7225, 40>}, {pipeline_mode = #tpu.pipeline_mode<synchronous>, transform_indices = @transform_4, window_bounds = array<i64: 1, 40>}, {transform_indices = @transform_5, window_bounds = array<i64: 2, 40>}]} {
    %c0 = arith.constant 0 : index
    %c0_0 = arith.constant 0 : index
    %c0_1 = arith.constant 0 : index
    %0 = vector.load %arg1[%c0, %c0_0, %c0_1] : memref<2x255x255xf32, #tpu.memory_space<vmem>>, vector<2x255x255xf32>
    %c0_2 = arith.constant 0 : index
    %c0_3 = arith.constant 0 : index
    %1 = vector.load %arg2[%c0_2, %c0_3] : memref<255x85xf32, #tpu.memory_space<vmem>>, vector<255x85xf32>
    "tpu.trace_start"() <{level = 10 : i32, message = "nhq,qj->nhj"}> : () -> ()
    %cst = arith.constant dense<0.000000e+00> : vector<2x255x85xf32>
    %2 = tpu.matmul %0, %1, %cst {dimension_numbers = #tpu.dot_dimension_numbers<[2], [0], [0, 1], [1], [0, 0, 0, 1, 1, 1], [], []>} : vector<2x255x255xf32>, vector<255x85xf32>, vector<2x255x85xf32> -> vector<2x255x85xf32>
    "tpu.trace_stop"() : () -> ()
    %c0_4 = arith.constant 0 : index
    %c0_5 = arith.constant 0 : index
    %3 = vector.load %arg3[%c0_4, %c0_5] : memref<85x255xf32, #tpu.memory_space<vmem>>, vector<85x255xf32>
    "tpu.trace_start"() <{level = 10 : i32, message = "nhj,ih->nji"}> : () -> ()
    %cst_6 = arith.constant dense<0.000000e+00> : vector<2x85x85xf32>
    %4 = tpu.matmul %2, %3, %cst_6 {dimension_numbers = #tpu.dot_dimension_numbers<[1], [1], [0, 2], [0], [0, 0, 0, 2, 1, 0], [], []>} : vector<2x255x85xf32>, vector<85x255xf32>, vector<2x85x85xf32> -> vector<2x85x85xf32>
    "tpu.trace_stop"() : () -> ()
    %5 = vector.shape_cast %4 : vector<2x85x85xf32> to vector<2x7225xf32>
    %c0_7 = arith.constant 0 : index
    %c0_8 = arith.constant 0 : index
    %6 = vector.load %arg4[%c0_7, %c0_8] : memref<7225x40xf32, #tpu.memory_space<vmem>>, vector<7225x40xf32>
    %cst_9 = arith.constant dense<0.000000e+00> : vector<2x40xf32>
    %7 = tpu.matmul %5, %6, %cst_9 {dimension_numbers = #tpu.dot_dimension_numbers<[1], [0], [0], [1], [0, 0, 1, 1], [], []>} : vector<2x7225xf32>, vector<7225x40xf32>, vector<2x40xf32> -> vector<2x40xf32>
    %c0_10 = arith.constant 0 : index
    %c0_11 = arith.constant 0 : index
    %8 = vector.load %arg5[%c0_10, %c0_11] : memref<1x40xf32, #tpu.memory_space<vmem>>, vector<1x40xf32>
    %9 = vector.broadcast %8 : vector<1x40xf32> to vector<2x40xf32>
    %10 = arith.addf %7, %9 : vector<2x40xf32>
    %c0_12 = arith.constant 0 : index
    %c0_13 = arith.constant 0 : index
    %11 = vector.load %arg6[%c0_12, %c0_13] : memref<2x40xf32, #tpu.memory_space<vmem>>, vector<2x40xf32>
    tpu.vector_store %arg6[%c0_12, %c0_13], %10 {strides = array<i32>} : memref<2x40xf32, #tpu.memory_space<vmem>>, vector<2x40xf32>,
    return
  }
  func.func @transform_0(%arg0: i32) -> (i32, i32, i32) {
    %c0_i32 = arith.constant 0 : i32
    %c0_i32_0 = arith.constant 0 : i32
    %c0_i32_1 = arith.constant 0 : i32
    return %arg0, %c0_i32, %c0_i32_0 : i32, i32, i32
  }
  func.func @transform_1(%arg0: i32) -> (i32, i32) {
    %c0_i32 = arith.constant 0 : i32
    %c0_i32_0 = arith.constant 0 : i32
    %c0_i32_1 = arith.constant 0 : i32
    return %c0_i32, %c0_i32_0 : i32, i32
  }
  func.func @transform_2(%arg0: i32) -> (i32, i32) {
    %c0_i32 = arith.constant 0 : i32
    %c0_i32_0 = arith.constant 0 : i32
    %c0_i32_1 = arith.constant 0 : i32
    return %c0_i32, %c0_i32_0 : i32, i32
  }
  func.func @transform_3(%arg0: i32) -> (i32, i32) {
    %c0_i32 = arith.constant 0 : i32
    %c0_i32_0 = arith.constant 0 : i32
    %c0_i32_1 = arith.constant 0 : i32
    return %c0_i32, %c0_i32_0 : i32, i32
  }
  func.func @transform_4(%arg0: i32) -> (i32, i32) {
    %c0_i32 = arith.constant 0 : i32
    %c0_i32_0 = arith.constant 0 : i32
    %c0_i32_1 = arith.constant 0 : i32
    return %c0_i32, %c0_i32_0 : i32, i32
  }
  func.func @transform_5(%arg0: i32) -> (i32, i32) {
    %c0_i32 = arith.constant 0 : i32
    %c0_i32_0 = arith.constant 0 : i32
    return %arg0, %c0_i32 : i32, i32
  }
}

</mosaic_0001>

<bundles_post_ra>
// kernel: tpu_custom_call.1
= control target key start
LH: loop header
LB: loop body
LE: loop exit
PB: predicated region body
PF: predicated region fallthrough
CT: control target
= control target key end

     0   :  { %v33931_v1 = vmov 0.0   ;;  %v314_v3 = vlaneseq  ;;  %v24969_v4 = vmov 1966171168   ;;  %vm7786_vm0 = vcmask 1039360   ;;  %s33925_s0 = inlined_call_operand.vmem [shape: f32[2,255,255], index: 0, kind: input, shape index: {}]   ;;  %s33926_s1 = inlined_call_operand.vmem [shape: f32[255,85], index: 1, kind: input, shape index: {}]   ;;  %s33927_s2 = inlined_call_operand.vmem [shape: f32[85,255], index: 2, kind: input, shape index: {}]   ;;  %s33928_s3 = inlined_call_operand.vmem [shape: f32[7225,40], index: 3, kind: input, shape index: {}]   ;;  %s33929_s4 = inlined_call_operand.vmem [shape: f32[1,40], index: 4, kind: input, shape index: {}]   ;;  %s33930_s5 = inlined_call_operand.hbm [shape: f32[2,40], index: 5, kind: output, shape index: {}]  }
   0x1   :  { %v164_v0 = vld [vmem:[%s33926_s1 + $0x78] sm:$0xff]  ;;  %7919 = vmatprep.subr.mxu0 %v33931_v1  ;;  %v163_v2 = vld [vmem:[%s33926_s1 + $0x70] sm:$0xff]  ;;  %v312_v5 = vunpack.c.l.s4 %v24969_v4  ;;  %v162_v6 = vld [vmem:[%s33926_s1 + $0x68] sm:$0xff]  ;;  %vm7915_vm1 = vcmask 1046528  }
   0x2   :  { %7920 = vmatpush1.msra.mxu0 %v164_v0  ;;  %v161_v7 = vld [vmem:[%s33926_s1 + $0x60] sm:$0xff]  ;;  %v315_v9 = vshrl.u32 %v314_v3, 7  ;;  %v160_v10 = vld [vmem:[%s33926_s1 + $0x58] sm:$0xff]  ;;  %v159_v11 = vld [vmem:[%s33926_s1 + $0x50] sm:$0xff] }
   0x3   :  { %7921 = vmatprep.subr.mxu0 %v33931_v1  ;;  %v313_v8 = vunpack.c.0.s8 %v312_v5  ;;  %v158_v13 = vld [vmem:[%s33926_s1 + $0x48] sm:$0xff]  ;;  %v157_v14 = vld [vmem:[%s33926_s1 + $0x40] sm:$0xff]  ;;  %v24757_v17 = vld [vmem:[%s33925_s0 + $0x10] ss:$8 sps:$4 sm:$0xff]  }
   0x4   :  { %7922 = vmatpush1.msra.mxu0 %v163_v2  ;;  %v24754_v15 = vld [vmem:[%s33925_s0] ss:$8 sps:$4 sm:$0xff]   ;;  %v24756_v16 = vld [vmem:[%s33925_s0 + $0x4] ss:$8 sps:$4 sm:$0xff]   ;;  %v24759_v20 = vld [vmem:[%s33925_s0 + $0x14] ss:$8 sps:$4 sm:$0xff]  }
   0x5   :  { %7923 = vmatprep.subr.mxu0 %v33931_v1  ;;  %v25109_v12 = vsub.s32 %v313_v8, %v315_v9  ;;  %v24760_v22 = vld [vmem:[%s33925_s0 + $0x20] ss:$8 sps:$4 sm:$0xff]   ;;  %v24762_v23 = vld [vmem:[%s33925_s0 + $0x24] ss:$8 sps:$4 sm:$0xff]   ;;  %v156_v24 = vld [vmem:[%s33926_s1 + $0x38] sm:$0xff] }
   0x6   :  { %7924 = vmatpush1.msra.mxu0 %v162_v6  ;;  %v24763_v29 = vld [vmem:[%s33925_s0 + $0x30] ss:$8 sps:$4 sm:$0xff]   ;;  %v154_v43 = vld [vmem:[%s33926_s1 + $0x28] sm:$0xff]  ;;  %v153_v52 = vld [vmem:[%s33926_s1 + $0x20] sm:$0xff] }
   0x7   :  { %7925 = vmatprep.subr.mxu0 %v33931_v1  ;;  %v317_v18 = vrot.slane %v24754_v15, %v25109_v12  ;;  %v324_v19 = vrot.slane %v24756_v16, %v25109_v12  ;;  %v367_v21 = vrot.slane %v24757_v17, %v25109_v12  ;;  %v374_v30 = vrot.slane %v24759_v20, %v25109_v12  ;;  %v155_v34 = vld [vmem:[%s33926_s1 + $0x30] sm:$0xff]  ;;  %v152_v61 = vld [vmem:[%s33926_s1 + $0x18] sm:$0xff] }
   0x8   :  { %7926 = vmatpush1.msra.mxu0 %v161_v7  ;;  %v25152_v33 = vrot.slane %v24760_v22, %v25109_v12  ;;  %v25161_v37 = vrot.slane %v24762_v23, %v25109_v12  ;;  %v25164_v38 = vrot.slane %v24763_v29, %v25109_v12  ;;  %v151_v3 = vld [vmem:[%s33926_s1 + $0x10] sm:$0xff] }
   0x9   :  { %7927 = vmatprep.subr.mxu0 %v33931_v1  ;;  %v325_v25 = vcombine.high %v317_v18, %v317_v18  ;;  %v326_v26 = vcombine.high %v324_v19, %v324_v19  ;;  %v333_v27 = vrot.slane %v317_v18, %v25109_v12  ;;  %v340_v28 = vrot.slane %v324_v19, %v25109_v12  ;;  %v150_v18 = vld [vmem:[%s33926_s1 + $0x8] sm:$0xff]  ;;  %v149_v19 = vld [vmem:[%s33926_s1] sm:$0xff] }
   0xa   :  { %7928 = vmatpush1.msra.mxu0 %v160_v10  ;;  %v375_v31 = vcombine.high %v367_v21, %v367_v21  ;;  %v383_v32 = vrot.slane %v367_v21, %v25109_v12  ;;  %v376_v39 = vcombine.high %v374_v30, %v374_v30  ;;  %v390_v40 = vrot.slane %v374_v30, %v25109_v12 }
   0xb   :  { %7929 = vmatprep.subr.mxu0 %v33931_v1  ;;  %v347_v35 = vrot.slane %v325_v25, %v25109_v12  ;;  %v354_v36 = vrot.slane %v326_v26, %v25109_v12  ;;  %v425_v42 = vcombine.high %v25152_v33, %v25152_v33  ;;  %v426_v51 = vcombine.high %v25161_v37, %v25161_v37 }
   0xc   :  { %7930 = vmatpush1.msra.mxu0 %v159_v11  ;;  %v397_v41 = vrot.slane %v375_v31, %v25109_v12  ;;  %v404_v48 = vrot.slane %v376_v39, %v25109_v12  ;;  %v433_v22 = vrot.slane %v25152_v33, %v25109_v12  ;;  %v440_v23 = vrot.slane %v25161_v37, %v25109_v12  ;;  %v180_v37 = vld [vmem:[%s33926_s1 + $0xf8] sm:$0x7f] }
   0xd   :  { %7931 = vmatprep.subr.mxu0 %v33931_v1  ;;  %v3507_v44 = vcombine.low %v333_v27, %v347_v35  ;;  %v23389_v45 = vcombine.high %v333_v27, %v347_v35  ;;  %v3509_v46 = vcombine.low %v340_v28, %v354_v36  ;;  %v23390_v47 = vcombine.high %v340_v28, %v354_v36  ;;  %v24766_v28 = vld [vmem:[%s33925_s0 + $0x40] ss:$8 sps:$4 sm:$0xff]  }
   0xe   :  { %7932 = vmatpush1.msra.mxu0 %v158_v13  ;;  %v3573_v49 = vcombine.low %v383_v32, %v397_v41  ;;  %v23391_v50 = vcombine.high %v383_v32, %v397_v41  ;;  %v3575_v57 = vcombine.low %v390_v40, %v404_v48  ;;  %v23392_v58 = vcombine.high %v390_v40, %v404_v48  ;;  %v24765_v13 = vld [vmem:[%s33925_s0 + $0x34] ss:$8 sps:$4 sm:$0xff]   ;;  %v24768_v32 = vld [vmem:[%s33925_s0 + $0x44] ss:$8 sps:$4 sm:$0xff]  }
   0xf   :  { %7933 = vmatprep.subr.mxu0 %v33931_v1  ;;  %v3517_v53 = vrot.slane %v3507_v44, %v25109_v12  ;;  %v3524_v54 = vrot.slane %v23389_v45, %v25109_v12  ;;  %v3531_v55 = vrot.slane %v3509_v46, %v25109_v12  ;;  %v3538_v56 = vrot.slane %v23390_v47, %v25109_v12  ;;  %v179_v46 = vld [vmem:[%s33926_s1 + $0xf0] sm:$0xff] }
  0x10   :  { %7934 = vmatpush1.msra.mxu0 %v157_v14  ;;  %v3583_v59 = vrot.slane %v3573_v49, %v25109_v12  ;;  %v3590_v60 = vrot.slane %v23391_v50, %v25109_v12  ;;  %v3597_v4 = vrot.slane %v3575_v57, %v25109_v12  ;;  %v3604_v5 = vrot.slane %v23392_v58, %v25109_v12 }
  0x11   :  { %7935 = vmatprep.subr.mxu0 %v33931_v1  ;;  %v3540_v62 = vcombine.high %v3517_v53, %v3524_v54  ;;  %v3542_v63 = vcombine.high %v3531_v55, %v3538_v56  ;;  %v3539_v0 = vcombine.low %v3517_v53, %v3524_v54  ;;  %v3541_v2 = vcombine.low %v3531_v55, %v3538_v56  ;;  %v178_v55 = vld [vmem:[%s33926_s1 + $0xe8] sm:$0xff]  ;;  %v177_v56 = vld [vmem:[%s33926_s1 + $0xe0] sm:$0xff] }
  0x12   :  { %7936 = vmatpush1.msra.mxu0 %v156_v24  ;;  %v3606_v6 = vcombine.high %v3583_v59, %v3590_v60  ;;  %v3605_v7 = vcombine.low %v3583_v59, %v3590_v60  ;;  %v3608_v14 = vcombine.high %v3597_v4, %v3604_v5  ;;  %v3607_v16 = vcombine.low %v3597_v4, %v3604_v5 }
  0x13   :  { %7937 = vmatprep.subr.mxu0 %v33931_v1  ;;  %v3556_v8 = vrot.slane %v3540_v62, %v25109_v12  ;;  %v3570_v9 = vrot.slane %v3542_v63, %v25109_v12  ;;  %v25200_v10 = vrot.slane %v3539_v0, %v25109_v12  ;;  %v25203_v11 = vrot.slane %v3541_v2, %v25109_v12  ;;  %v24769_v2 = vld [vmem:[%s33925_s0 + $0x50] ss:$8 sps:$4 sm:$0xff]  }
  0x14   :  { %7938 = vmatpush1.msra.mxu0 %v155_v34  ;;  %v25209_v15 = vrot.slane %v3606_v6, %v25109_v12  ;;  %v25212_v17 = vrot.slane %v3605_v7, %v25109_v12  ;;  %v25228_v24 = vrot.slane %v3608_v14, %v25109_v12  ;;  %v25231_v25 = vrot.slane %v3607_v16, %v25109_v12  ;;  %v24771_v7 = vld [vmem:[%s33925_s0 + $0x54] ss:$8 sps:$4 sm:$0xff]   ;;  %v24772_v16 = vld [vmem:[%s33925_s0 + $0x60] ss:$8 sps:$4 sm:$0xff]  }
  0x15   :  { %7939 = vmatprep.subr.mxu0 %v33931_v1  ;;  %v3572_v20 = vcombine.low %v3556_v8, %v3570_v9  ;;  %v3571_v21 = vcombine.low %v25200_v10, %v25203_v11  ;;  %v447_v26 = vrot.slane %v425_v42, %v25109_v12  ;;  %v454_v27 = vrot.slane %v426_v51, %v25109_v12 }
  0x16   :  { %7940 = vmatpush1.msra.mxu0 %v154_v43  ;;  %v474_v29 = vrot.slane %v24765_v13, %v25109_v12  ;;  %v475_v30 = vcombine.high %v25164_v38, %v25164_v38  ;;  %v483_v31 = vrot.slane %v25164_v38, %v25109_v12  ;;  %v3638_v33 = vcombine.low %v25209_v15, %v25228_v24  ;;  %v24784_v15 = vld [vmem:[%s33925_s0 + $0xa0] ss:$8 sps:$4 sm:$0xff]   ;;  %v24786_v24 = vld [vmem:[%s33925_s0 + $0xa4] ss:$8 sps:$4 sm:$0xff]  }
  0x17   :  { %7941 = vmatprep.subr.mxu0 %v33931_v1  ;;  %23453 = vmatprep.mubr.msk.f32.mxu0 %vm7786_vm0, %v3572_v20  ;;  %v3637_v34 = vcombine.low %v25212_v17, %v25231_v25  ;;  %v3639_v35 = vcombine.low %v433_v22, %v447_v26  ;;  %v23393_v36 = vcombine.high %v433_v22, %v447_v26 }
  0x18   :  { %7942 = vmatpush1.msra.mxu0 %v153_v52  ;;  %v3641_v38 = vcombine.low %v440_v23, %v454_v27  ;;  %v23394_v39 = vcombine.high %v440_v23, %v454_v27  ;;  %v476_v40 = vcombine.high %v474_v29, %v474_v29  ;;  %v490_v41 = vrot.slane %v474_v29, %v25109_v12 }
  0x19   :  { %7943 = vmatprep.subr.mxu0 %v33931_v1  ;;  %v3649_v42 = vrot.slane %v3639_v35, %v25109_v12  ;;  %v3656_v43 = vrot.slane %v23393_v36, %v25109_v12  ;;  %v497_v44 = vrot.slane %v475_v30, %v25109_v12  ;;  %v517_v45 = vrot.slane %v24766_v28, %v25109_v12 }
  0x1a   :  { %7944 = vmatpush1.msra.mxu0 %v152_v61  ;;  %v3663_v47 = vrot.slane %v3641_v38, %v25109_v12  ;;  %v3670_v48 = vrot.slane %v23394_v39, %v25109_v12  ;;  %v504_v49 = vrot.slane %v476_v40, %v25109_v12  ;;  %v524_v50 = vrot.slane %v24768_v32, %v25109_v12 }
  0x1b   :  { %7945 = vmatprep.subr.mxu0 %v33931_v1  ;;  %v3672_v51 = vcombine.high %v3649_v42, %v3656_v43  ;;  %v3671_v52 = vcombine.low %v3649_v42, %v3656_v43  ;;  %v3705_v53 = vcombine.low %v483_v31, %v497_v44  ;;  %v23395_v54 = vcombine.high %v483_v31, %v497_v44  ;;  %v175_v31 = vld [vmem:[%s33926_s1 + $0xd0] sm:$0xff]  ;;  %v174_v42 = vld [vmem:[%s33926_s1 + $0xc8] sm:$0xff] }
  0x1c   :  { %7946 = vmatpush1.msra.mxu0 %v151_v3  ;;  %v3674_v57 = vcombine.high %v3663_v47, %v3670_v48  ;;  %v3673_v58 = vcombine.low %v3663_v47, %v3670_v48  ;;  %v3707_v59 = vcombine.low %v490_v41, %v504_v49  ;;  %v23396_v60 = vcombine.high %v490_v41, %v504_v49 }
  0x1d   :  { %7947 = vmatprep.subr.mxu0 %v33931_v1  ;;  %v25278_v61 = vrot.slane %v3672_v51, %v25109_v12  ;;  %v25281_v62 = vrot.slane %v3671_v52, %v25109_v12  ;;  %v3715_v63 = vrot.slane %v3705_v53, %v25109_v12  ;;  %v3722_v0 = vrot.slane %v23395_v54, %v25109_v12  ;;  %v173_v51 = vld [vmem:[%s33926_s1 + $0xc0] sm:$0xff] }
  0x1e   :  { %7948 = vmatpush1.msra.mxu0 %v150_v18  ;;  %v25290_v3 = vrot.slane %v3674_v57, %v25109_v12  ;;  %v25293_v4 = vrot.slane %v3673_v58, %v25109_v12  ;;  %v3729_v5 = vrot.slane %v3707_v59, %v25109_v12  ;;  %v3736_v6 = vrot.slane %v23396_v60, %v25109_v12  ;;  %v24774_v18 = vld [vmem:[%s33925_s0 + $0x64] ss:$8 sps:$4 sm:$0xff]   ;;  %v172_v60 = vld [vmem:[%s33926_s1 + $0xb8] sm:$0xff] }
  0x1f   :  { %7949 = vmatprep.subr.mxu0 %v33931_v1  ;;  %v3738_v8 = vcombine.high %v3715_v63, %v3722_v0  ;;  %v3737_v9 = vcombine.low %v3715_v63, %v3722_v0  ;;  %v525_v13 = vcombine.high %v517_v45, %v517_v45  ;;  %v526_v14 = vcombine.high %v524_v50, %v524_v50  ;;  %v171_v63 = vld [vmem:[%s33926_s1 + $0xb0] sm:$0xff] }
  0x20   :  { %7950 = vmatpush1.msra.mxu0 %v149_v19  ;;  %v176_v19 = vld [vmem:[%s33926_s1 + $0xd8] sm:$0xff]  ;;  %v3704_v20 = vcombine.low %v25278_v61, %v25290_v3  ;;  %v3703_v22 = vcombine.low %v25281_v62, %v25293_v4  ;;  %v3740_v23 = vcombine.high %v3729_v5, %v3736_v6  ;;  %v3739_v26 = vcombine.low %v3729_v5, %v3736_v6 }
  0x21   :  { %7951 = vmatprep.subr.mxu0 %v33931_v1  ;;  %v25315_v27 = vrot.slane %v3738_v8, %v25109_v12  ;;  %v25318_v28 = vrot.slane %v3737_v9, %v25109_v12  ;;  %v533_v29 = vrot.slane %v517_v45, %v25109_v12  ;;  %v540_v30 = vrot.slane %v524_v50, %v25109_v12 }
  0x22   :  { %23452 = vmatpush2.msk.msra.mxu0 %vm7915_vm1, %v180_v37  ;;  %v25327_v32 = vrot.slane %v3740_v23, %v25109_v12  ;;  %v25330_v35 = vrot.slane %v3739_v26, %v25109_v12  ;;  %v547_v36 = vrot.slane %v525_v13, %v25109_v12  ;;  %v554_v37 = vrot.slane %v526_v14, %v25109_v12  ;;  %v24775_v14 = vld [vmem:[%s33925_s0 + $0x70] ss:$8 sps:$4 sm:$0xff]  }
  0x23   :  { %7953 = vmatprep.subr.mxu0 %v33931_v1  ;;  %v567_v38 = vrot.slane %v24769_v2, %v25109_v12  ;;  %v574_v39 = vrot.slane %v24771_v7, %v25109_v12  ;;  %v25337_v40 = vrot.slane %v24772_v16, %v25109_v12  ;;  %v25340_v41 = vrot.slane %v24774_v18, %v25109_v12  ;;  %v24777_v16 = vld [vmem:[%s33925_s0 + $0x74] ss:$8 sps:$4 sm:$0xff]   ;;  %v170_v18 = vld [vmem:[%s33926_s1 + $0xa8] sm:$0xff] }
  0x24   :  { %7954 = vmatpush2.msra.mxu0 %v179_v46  ;;  %v3770_v43 = vcombine.low %v25315_v27, %v25327_v32  ;;  %v3769_v44 = vcombine.low %v25318_v28, %v25330_v35  ;;  %v3771_v45 = vcombine.low %v533_v29, %v547_v36  ;;  %v23397_v46 = vcombine.high %v533_v29, %v547_v36 }
  0x25   :  { %7955 = vmatprep.subr.mxu0 %v33931_v1  ;;  %v3773_v47 = vcombine.low %v540_v30, %v554_v37  ;;  %v23398_v48 = vcombine.high %v540_v30, %v554_v37  ;;  %v575_v49 = vcombine.high %v567_v38, %v567_v38  ;;  %v576_v50 = vcombine.high %v574_v39, %v574_v39 }
  0x26   :  { %7956 = vmatpush2.msra.mxu0 %v178_v55  ;;  %v3781_v52 = vrot.slane %v3771_v45, %v25109_v12  ;;  %v3788_v53 = vrot.slane %v23397_v46, %v25109_v12  ;;  %v583_v54 = vrot.slane %v567_v38, %v25109_v12  ;;  %v590_v55 = vrot.slane %v574_v39, %v25109_v12  ;;  %v169_v38 = vld [vmem:[%s33926_s1 + $0xa0] sm:$0xff] }
  0x27   :  { %7957 = vmatprep.subr.mxu0 %v33931_v1  ;;  %v3802_v57 = vrot.slane %v23398_v48, %v25109_v12  ;;  %v597_v58 = vrot.slane %v575_v49, %v25109_v12  ;;  %v604_v59 = vrot.slane %v576_v50, %v25109_v12  ;;  %v625_v5 = vcombine.high %v25337_v40, %v25337_v40 }
  0x28   :  { %7958 = vmatpush2.msra.mxu0 %v177_v56  ;;  %v3795_v56 = vrot.slane %v3773_v47, %v25109_v12  ;;  %v3804_v0 = vcombine.high %v3781_v52, %v3788_v53  ;;  %v3803_v2 = vcombine.low %v3781_v52, %v3788_v53  ;;  %v626_v6 = vcombine.high %v25340_v41, %v25340_v41 }
  0x29   :  { %7959 = vmatprep.subr.mxu0 %v33931_v1  ;;  %v3837_v9 = vcombine.low %v583_v54, %v597_v58  ;;  %v23399_v13 = vcombine.high %v583_v54, %v597_v58  ;;  %v3839_v26 = vcombine.low %v590_v55, %v604_v59  ;;  %v23400_v29 = vcombine.high %v590_v55, %v604_v59  ;;  %v24778_v58 = vld [vmem:[%s33925_s0 + $0x80] ss:$8 sps:$4 sm:$0xff]   ;;  %v24780_v59 = vld [vmem:[%s33925_s0 + $0x84] ss:$8 sps:$4 sm:$0xff]  }
  0x2a   :  { %7960 = vmatpush2.msra.mxu0 %v176_v19  ;;  %v3806_v7 = vcombine.high %v3795_v56, %v3802_v57  ;;  %v3805_v8 = vcombine.low %v3795_v56, %v3802_v57  ;;  %v25384_v19 = vrot.slane %v3804_v0, %v25109_v12  ;;  %v25387_v23 = vrot.slane %v3803_v2, %v25109_v12 }
  0x2b   :  { %7961 = vmatprep.subr.mxu0 %v33931_v1  ;;  %v3847_v36 = vrot.slane %v3837_v9, %v25109_v12  ;;  %v3854_v37 = vrot.slane %v23399_v13, %v25109_v12  ;;  %v3861_v39 = vrot.slane %v3839_v26, %v25109_v12  ;;  %v633_v45 = vrot.slane %v25337_v40, %v25109_v12  ;;  %v166_v13 = vld [vmem:[%s33926_s1 + $0x88] sm:$0xff] }
  0x2c   :  { %7962 = vmatpush2.msra.mxu0 %v175_v31  ;;  %v25390_v30 = vrot.slane %v3806_v7, %v25109_v12  ;;  %v25393_v31 = vrot.slane %v3805_v8, %v25109_v12  ;;  %v640_v46 = vrot.slane %v25340_v41, %v25109_v12  ;;  %v647_v53 = vrot.slane %v625_v5, %v25109_v12 }
  0x2d   :  { %7963 = vmatprep.subr.mxu0 %v33931_v1  ;;  %v3870_v49 = vcombine.high %v3847_v36, %v3854_v37  ;;  %v3869_v50 = vcombine.low %v3847_v36, %v3854_v37  ;;  %v654_v41 = vrot.slane %v626_v6, %v25109_v12  ;;  %v667_v56 = vrot.slane %v24775_v14, %v25109_v12 }
  0x2e   :  { %7964 = vmatpush2.msra.mxu0 %v174_v42  ;;  %v3868_v42 = vrot.slane %v23400_v29, %v25109_v12  ;;  %v3836_v47 = vcombine.low %v25384_v19, %v25390_v30  ;;  %v3835_v48 = vcombine.low %v25387_v23, %v25393_v31  ;;  %v674_v57 = vrot.slane %v24777_v16, %v25109_v12 }
  0x2f   :  { %7965 = vmatprep.subr.mxu0 %v33931_v1  ;;  %v25418_v54 = vrot.slane %v3870_v49, %v25109_v12  ;;  %v25421_v55 = vrot.slane %v3869_v50, %v25109_v12  ;;  %v3903_v2 = vcombine.low %v633_v45, %v647_v53  ;;  %v23401_v5 = vcombine.high %v633_v45, %v647_v53  ;;  %v165_v49 = vld [vmem:[%s33926_s1 + $0x80] sm:$0xff] }
  0x30   :  { %7966 = vmatpush2.msra.mxu0 %v173_v51  ;;  %v168_v51 = vld [vmem:[%s33926_s1 + $0x98] sm:$0xff]  ;;  %v3872_v52 = vcombine.high %v3861_v39, %v3868_v42  ;;  %v3871_v40 = vcombine.low %v3861_v39, %v3868_v42  ;;  %v3905_v6 = vcombine.low %v640_v46, %v654_v41  ;;  %v23402_v7 = vcombine.high %v640_v46, %v654_v41 }
  0x31   :  { %7967 = vmatprep.subr.mxu0 %v33931_v1  ;;  %v675_v8 = vcombine.high %v667_v56, %v667_v56  ;;  %v676_v9 = vcombine.high %v674_v57, %v674_v57  ;;  %v3920_v26 = vrot.slane %v23401_v5, %v25109_v12  ;;  %v683_v37 = vrot.slane %v667_v56, %v25109_v12 }
  0x32   :  { %7968 = vmatpush2.msra.mxu0 %v172_v60  ;;  %v167_v60 = vld [vmem:[%s33926_s1 + $0x90] sm:$0xff]  ;;  %v25439_v0 = vrot.slane %v3871_v40, %v25109_v12  ;;  %v3927_v29 = vrot.slane %v3905_v6, %v25109_v12  ;;  %v3934_v36 = vrot.slane %v23402_v7, %v25109_v12  ;;  %v724_v40 = vrot.slane %v24780_v59, %v25109_v12 }
  0x33   :  { %7969 = vmatprep.subr.mxu0 %v33931_v1  ;;  %v697_v45 = vrot.slane %v675_v8, %v25109_v12  ;;  %v704_v46 = vrot.slane %v676_v9, %v25109_v12 }
  0x34   :  { %7970 = vmatpush2.msra.mxu0 %v171_v63  ;;  %v25436_v63 = vrot.slane %v3872_v52, %v25109_v12  ;;  %v3901_v16 = vcombine.low %v25421_v55, %v25439_v0  ;;  %v3938_v50 = vcombine.high %v3927_v29, %v3934_v36  ;;  %v717_v52 = vrot.slane %v24778_v58, %v25109_v12  ;;  %v24783_v58 = vld [vmem:[%s33925_s0 + $0x94] ss:$8 sps:$4 sm:$0xff]  }
  0x35   :  { %7971 = vmatprep.subr.mxu0 %v33931_v1  ;;  %v3969_v56 = vcombine.low %v683_v37, %v697_v45 }
  0x36   :  { %7972 = vmatpush2.msra.mxu0 %v170_v18  ;;  %v3902_v14 = vcombine.low %v25418_v54, %v25436_v63  ;;  %v3913_v18 = vrot.slane %v3903_v2, %v25109_v12  ;;  %v25477_v59 = vrot.slane %v3938_v50, %v25109_v12  ;;  %v725_v9 = vcombine.high %v717_v52, %v717_v52 }
  0x37   :  { %7973 = vmatprep.subr.mxu0 %v33931_v1  ;;  %v3979_v7 = vrot.slane %v3969_v56, %v25109_v12 }
  0x38   :  { %7974 = vmatpush2.msra.mxu0 %v169_v38  ;;  %v690_v38 = vrot.slane %v674_v57, %v25109_v12  ;;  %v3936_v39 = vcombine.high %v3913_v18, %v3920_v26  ;;  %v3935_v42 = vcombine.low %v3913_v18, %v3920_v26  ;;  %v23403_v57 = vcombine.high %v683_v37, %v697_v45 }
  0x39   :  { %7975 = vmatprep.subr.mxu0 %v33931_v1  ;;  %v726_v18 = vcombine.high %v724_v40, %v724_v40 }
  0x3a   :  { %7976 = vmatpush2.msra.mxu0 %v168_v51  ;;  %v3937_v51 = vcombine.low %v3927_v29, %v3934_v36  ;;  %v25465_v53 = vrot.slane %v3936_v39, %v25109_v12  ;;  %v25468_v41 = vrot.slane %v3935_v42, %v25109_v12  ;;  %v3971_v5 = vcombine.low %v690_v38, %v704_v46 }
  0x3b   :  { %7977 = vmatprep.subr.mxu0 %v33931_v1  ;;  %v23404_v6 = vcombine.high %v690_v38, %v704_v46  ;;  %v3986_v8 = vrot.slane %v23403_v57, %v25109_v12  ;;  %v733_v39 = vrot.slane %v717_v52, %v25109_v12  ;;  %v740_v42 = vrot.slane %v724_v40, %v25109_v12 }
  0x3c   :  { %7978 = vmatpush2.msra.mxu0 %v167_v60  ;;  %v24781_v60 = vld [vmem:[%s33925_s0 + $0x90] ss:$8 sps:$4 sm:$0xff]   ;;  %v25480_v2 = vrot.slane %v3937_v51, %v25109_v12  ;;  %v3993_v29 = vrot.slane %v3971_v5, %v25109_v12  ;;  %v754_v50 = vrot.slane %v726_v18, %v25109_v12  ;;  %v774_v51 = vrot.slane %v24783_v58, %v25109_v12 }
  0x3d   :  { %7979 = vmatprep.subr.mxu0 %v33931_v1  ;;  %v4000_v36 = vrot.slane %v23404_v6, %v25109_v12  ;;  %v4002_v37 = vcombine.high %v3979_v7, %v3986_v8  ;;  %v4001_v38 = vcombine.low %v3979_v7, %v3986_v8 }
  0x3e   :  { %7980 = vmatpush2.msra.mxu0 %v166_v13  ;;  %v3968_v13 = vcombine.low %v25465_v53, %v25477_v59  ;;  %v3967_v26 = vcombine.low %v25468_v41, %v25480_v2  ;;  %v4037_v57 = vcombine.low %v740_v42, %v754_v50  ;;  %v776_v5 = vcombine.high %v774_v51, %v774_v51 }
  0x3f   :  { %7981 = vmatprep.subr.mxu0 %v33931_v1  ;;  %v4004_v45 = vcombine.high %v3993_v29, %v4000_v36  ;;  %v4003_v46 = vcombine.low %v3993_v29, %v4000_v36  ;;  %v25503_v10 = vrot.slane %v4002_v37, %v25109_v12  ;;  %v25506_v11 = vrot.slane %v4001_v38, %v25109_v12 }
  0x40   :  { %7982 = vmatpush2.msra.mxu0 %v165_v49  ;;  %v747_v49 = vrot.slane %v725_v9, %v25109_v12  ;;  %v4059_v25 = vrot.slane %v4037_v57, %v25109_v12  ;;  %v790_v61 = vrot.slane %v774_v51, %v25109_v12  ;;  %v804_v29 = vrot.slane %v776_v5, %v25109_v12 }
  0x41   :  { %7984 = vmatmul.mubr.f32.vlgmr.msra.gmra.mxu0 %v3571_v21  ;;  %v767_v21 = vrot.slane %v24781_v60, %v25109_v12  ;;  %v25520_v52 = vrot.slane %v4003_v46, %v25109_v12  ;;  %v23406_v60 = vcombine.high %v740_v42, %v754_v50  ;;  %v817_v38 = vrot.slane %v24784_v15, %v25109_v12 }
  0x42   :  { %23454 = vmatprep.mubr.msk.f32.mxu0 %vm7786_vm0, %v3638_v33  ;;  %v25517_v33 = vrot.slane %v4004_v45, %v25109_v12  ;;  %v4035_v40 = vcombine.low %v733_v39, %v747_v49  ;;  %v23405_v56 = vcombine.high %v733_v39, %v747_v49  ;;  %v824_v39 = vrot.slane %v24786_v24, %v25109_v12 }
  0x43   :  { %v775_v58 = vcombine.high %v767_v21, %v767_v21  ;;  %v4033_v7 = vcombine.low %v25506_v11, %v25520_v52  ;;  %v783_v9 = vrot.slane %v767_v21, %v25109_v12 }
  0x44   :  { %v4034_v6 = vcombine.low %v25503_v10, %v25517_v33  ;;  %v4045_v8 = vrot.slane %v4035_v40, %v25109_v12  ;;  %v4052_v17 = vrot.slane %v23405_v56, %v25109_v12 }
  0x45   :  { %7989 = vmatmul.mubr.f32.gmra.mxu0 %v3637_v34  ;;  %v4066_v34 = vrot.slane %v23406_v60, %v25109_v12  ;;  %v797_v18 = vrot.slane %v775_v58, %v25109_v12 }
  0x46   :  { %23455 = vmatprep.mubr.msk.f32.mxu0 %vm7786_vm0, %v3704_v20  ;;  %v4068_v3 = vcombine.high %v4045_v8, %v4052_v17  ;;  %v4067_v20 = vcombine.low %v4045_v8, %v4052_v17 }
  0x47   :  { %v4070_v36 = vcombine.high %v4059_v25, %v4066_v34  ;;  %v4069_v37 = vcombine.low %v4059_v25, %v4066_v34  ;;  %v4101_v46 = vcombine.low %v783_v9, %v797_v18  ;;  %v23407_v62 = vcombine.high %v783_v9, %v797_v18 }
  0x48   :  { %v25551_v42 = vrot.slane %v4068_v3, %v25109_v12  ;;  %v25554_v45 = vrot.slane %v4067_v20, %v25109_v12 }
  0x49   :  { %7994 = vmatmul.mubr.f32.gmra.mxu0 %v3703_v22 }
  0x4a   :  { %23456 = vmatprep.mubr.msk.f32.mxu0 %vm7786_vm0, %v3770_v43 }
  0x4b   :  { %10 = vsyncpa [#allocation3], 0  ;;  %v25557_v4 = vrot.slane %v4070_v36, %v25109_v12  ;;  %v25560_v22 = vrot.slane %v4069_v37, %v25109_v12  ;;  %v4103_v49 = vcombine.low %v790_v61, %v804_v29  ;;  %v23408_v50 = vcombine.high %v790_v61, %v804_v29  ;;  %v24787_v51 = vld [vmem:[%s33925_s0 + $0xb0] ss:$8 sps:$4 sm:$0xff]   ;;  %v24789_v15 = vld [vmem:[%s33925_s0 + $0xb4] ss:$8 sps:$4 sm:$0xff]  }
  0x4c   :  { %v4111_v27 = vrot.slane %v4101_v46, %v25109_v12  ;;  %v4118_v32 = vrot.slane %v23407_v62, %v25109_v12  ;;  %v825_v43 = vcombine.high %v817_v38, %v817_v38  ;;  %v826_v21 = vcombine.high %v824_v39, %v824_v39  ;;  %v24790_v23 = vld [vmem:[%s33925_s0 + $0xc0] ss:$8 sps:$4 sm:$0xff]   ;;  %v24792_v31 = vld [vmem:[%s33925_s0 + $0xc4] ss:$8 sps:$4 sm:$0xff]   ;;  %s24970_s22 = smov 85   ;;  %s24971_s23 = smov 42  }
  0x4d   :  { %7999 = vmatmul.mubr.f32.gmra.mxu0 %v3769_v44  ;;  %v4100_v24 = vcombine.low %v25551_v42, %v25557_v4  ;;  %v4099_v40 = vcombine.low %v25554_v45, %v25560_v22  ;;  %v4125_v56 = vrot.slane %v4103_v49, %v25109_v12  ;;  %v4132_v57 = vrot.slane %v23408_v50, %v25109_v12  ;;  %v24798_v42 = vld [vmem:[%s33925_s0 + $0xe4] ss:$8 sps:$4 sm:$0xff]   ;;  %s24972_s26 = smov 127   ;;  %s24973_s27 = smov 126  }
  0x4e   :  { %23457 = vmatprep.mubr.msk.f32.mxu0 %vm7786_vm0, %v3836_v47  ;;  %v4134_v60 = vcombine.high %v4111_v27, %v4118_v32  ;;  %v4133_v58 = vcombine.low %v4111_v27, %v4118_v32  ;;  %v833_v28 = vrot.slane %v817_v38, %v25109_v12  ;;  %v840_v35 = vrot.slane %v824_v39, %v25109_v12  ;;  %s24974_s28 = smov 84   ;;  %s24976_s29 = smov 41  }
  0x4f   :  { %v4136_v44 = vcombine.high %v4125_v56, %v4132_v57  ;;  %v4135_v5 = vcombine.low %v4125_v56, %v4132_v57  ;;  %v847_v8 = vrot.slane %v825_v43, %v25109_v12  ;;  %v854_v17 = vrot.slane %v826_v21, %v25109_v12  ;;  %s24977_s7 = smov 82   ;;  %s24978_s12 = smov 83  }
  0x50   :  { %v25588_v25 = vrot.slane %v4134_v60, %v25109_v12  ;;  %v25591_v34 = vrot.slane %v4133_v58, %v25109_v12  ;;  %v867_v19 = vrot.slane %v24787_v51, %v25109_v12  ;;  %v874_v30 = vrot.slane %v24789_v15, %v25109_v12  ;;  %s24979_s15 = smov 124   ;;  %s24980_s18 = smov 125  }
  0x51   :  { %8004 = vmatmul.mubr.f32.gmra.mxu0 %v3835_v48  ;;  %v25599_v47 = vrot.slane %v4136_v44, %v25109_v12  ;;  %v25602_v9 = vrot.slane %v4135_v5, %v25109_v12  ;;  %v4167_v61 = vcombine.low %v833_v28, %v847_v8  ;;  %v23409_v3 = vcombine.high %v833_v28, %v847_v8  ;;  %v24795_v44 = vld [vmem:[%s33925_s0 + $0xd4] ss:$8 sps:$4 sm:$0xff]   ;;  %s24981_s1 = smov 38   ;;  %s24983_s25 = smov 80  }
  0x52   :  { %23458 = vmatprep.mubr.msk.f32.mxu0 %vm7786_vm0, %v3902_v14  ;;  %v4169_v20 = vcombine.low %v840_v35, %v854_v17  ;;  %v23410_v18 = vcombine.high %v840_v35, %v854_v17  ;;  %v875_v29 = vcombine.high %v867_v19, %v867_v19  ;;  %v876_v36 = vcombine.high %v874_v30, %v874_v30  ;;  %v24793_v35 = vld [vmem:[%s33925_s0 + $0xd0] ss:$8 sps:$4 sm:$0xff]   ;;  %s24985_s30 = smov 122   ;;  %s24986_s8 = smov 123  }
  0x53   :  { %v4166_v48 = vcombine.low %v25588_v25, %v25599_v47  ;;  %v4165_v54 = vcombine.low %v25591_v34, %v25602_v9  ;;  %v4177_v63 = vrot.slane %v4167_v61, %v25109_v12  ;;  %v4184_v14 = vrot.slane %v23409_v3, %v25109_v12  ;;  %v24801_v34 = vld [vmem:[%s33925_s0 + $0xf4] ss:$8 sps:$4 sm:$0xff]   ;;  %s24987_s11 = smov 36   ;;  %s24988_s14 = smov 37  }
  0x54   :  { %v4191_v37 = vrot.slane %v4169_v20, %v25109_v12  ;;  %v4198_v38 = vrot.slane %v23410_v18, %v25109_v12  ;;  %v883_v39 = vrot.slane %v867_v19, %v25109_v12  ;;  %v890_v46 = vrot.slane %v874_v30, %v25109_v12  ;;  %s24989_s17 = smov 78   ;;  %s24991_s21 = smov 120  }
  0x55   :  { %8009 = vmatmul.mubr.f32.gmra.mxu0 %v3901_v16  ;;  %v4200_v62 = vcombine.high %v4177_v63, %v4184_v14  ;;  %v4199_v49 = vcombine.low %v4177_v63, %v4184_v14  ;;  %v897_v50 = vrot.slane %v875_v29, %v25109_v12  ;;  %v904_v27 = vrot.slane %v876_v36, %v25109_v12  ;;  %s24992_s24 = smov 121   ;;  %s24996_s10 = smov 77  }
  0x56   :  { %23459 = vmatprep.mubr.msk.f32.mxu0 %vm7786_vm0, %v3968_v13  ;;  %v4202_v32 = vcombine.high %v4191_v37, %v4198_v38  ;;  %v4201_v43 = vcombine.low %v4191_v37, %v4198_v38  ;;  %v917_v21 = vrot.slane %v24790_v23, %v25109_v12  ;;  %v924_v51 = vrot.slane %v24792_v31, %v25109_v12  ;;  %v24796_v37 = vld [vmem:[%s33925_s0 + $0xe0] ss:$8 sps:$4 sm:$0xff]   ;;  %s24999_s13 = smov 32   ;;  %s25002_s16 = smov 75  }
  0x57   :  { %v25636_v55 = vrot.slane %v4200_v62, %v25109_v12  ;;  %v25639_v0 = vrot.slane %v4199_v49, %v25109_v12  ;;  %v4233_v16 = vcombine.low %v883_v39, %v897_v50  ;;  %v23411_v15 = vcombine.high %v883_v39, %v897_v50  ;;  %s25005_s19 = smov 30   ;;  %s25008_s20 = smov 73  }
  0x58   :  { %v25642_v56 = vrot.slane %v4202_v32, %v25109_v12  ;;  %v25645_v53 = vrot.slane %v4201_v43, %v25109_v12  ;;  %v4235_v59 = vcombine.low %v890_v46, %v904_v27  ;;  %v23412_v13 = vcombine.high %v890_v46, %v904_v27  ;;  %s25020_s6 = smov 69   ;;  %s25023_s9 = smov 24  }
  0x59   :  { %8014 = vmatmul.mubr.f32.gmra.mxu0 %v3967_v26  ;;  %v4243_v57 = vrot.slane %v4233_v16, %v25109_v12  ;;  %v4250_v60 = vrot.slane %v23411_v15, %v25109_v12  ;;  %v925_v58 = vcombine.high %v917_v21, %v917_v21  ;;  %v926_v28 = vcombine.high %v924_v51, %v924_v51 }
  0x5a   :  { %23460 = vmatprep.mubr.msk.f32.mxu0 %vm7786_vm0, %v4034_v6  ;;  %v4232_v41 = vcombine.low %v25636_v55, %v25642_v56  ;;  %v4231_v2 = vcombine.low %v25639_v0, %v25645_v53  ;;  %v4257_v26 = vrot.slane %v4235_v59, %v25109_v12  ;;  %v4264_v5 = vrot.slane %v23412_v13, %v25109_v12 }
  0x5b   :  { %v4266_v8 = vcombine.high %v4243_v57, %v4250_v60  ;;  %v4265_v17 = vcombine.low %v4243_v57, %v4250_v60  ;;  %v933_v19 = vrot.slane %v917_v21, %v25109_v12  ;;  %v940_v30 = vrot.slane %v924_v51, %v25109_v12 }
  0x5c   :  { %v4268_v61 = vcombine.high %v4257_v26, %v4264_v5  ;;  %v4267_v10 = vcombine.low %v4257_v26, %v4264_v5  ;;  %v947_v33 = vrot.slane %v925_v58, %v25109_v12  ;;  %v954_v6 = vrot.slane %v926_v28, %v25109_v12  ;;  %v24799_v28 = vld [vmem:[%s33925_s0 + $0xf0] ss:$8 sps:$4 sm:$0xff]  }
  0x5d   :  { %8019 = vmatmul.mubr.f32.gmra.mxu0 %v4033_v7  ;;  %v25676_v3 = vrot.slane %v4266_v8, %v25109_v12  ;;  %v25679_v20 = vrot.slane %v4265_v17, %v25109_v12  ;;  %v967_v18 = vrot.slane %v24793_v35, %v25109_v12  ;;  %v974_v29 = vrot.slane %v24795_v44, %v25109_v12 }
  0x5e   :  { %23461 = vmatprep.mubr.msk.f32.mxu0 %vm7786_vm0, %v4100_v24  ;;  %v4296_v36 = vrot.slane %v4268_v61, %v25109_v12  ;;  %v25689_v11 = vrot.slane %v4267_v10, %v25109_v12  ;;  %v4299_v52 = vcombine.low %v933_v19, %v947_v33  ;;  %v23413_v7 = vcombine.high %v933_v19, %v947_v33 }
  0x5f   :  { %v4301_v23 = vcombine.low %v940_v30, %v954_v6  ;;  %v23414_v31 = vcombine.high %v940_v30, %v954_v6  ;;  %v975_v63 = vcombine.high %v967_v18, %v967_v18  ;;  %v976_v14 = vcombine.high %v974_v29, %v974_v29 }
  0x60   :  { %v4298_v4 = vcombine.low %v25676_v3, %v4296_v36  ;;  %v4297_v24 = vcombine.low %v25679_v20, %v25689_v11  ;;  %v4309_v38 = vrot.slane %v4299_v52, %v25109_v12  ;;  %v4316_v39 = vrot.slane %v23413_v7, %v25109_v12  ;;  %v24802_v52 = vld [vmem:[%s33925_s0 + $0x100] ss:$8 sps:$4 sm:$0xff]   ;;  %v24804_v7 = vld [vmem:[%s33925_s0 + $0x104] ss:$8 sps:$4 sm:$0xff]  }
  0x61   :  { %8024 = vmatmul.mubr.f32.gmra.mxu0 %v4099_v40  ;;  %v4323_v46 = vrot.slane %v4301_v23, %v25109_v12  ;;  %v4330_v62 = vrot.slane %v23414_v31, %v25109_v12  ;;  %v983_v49 = vrot.slane %v967_v18, %v25109_v12  ;;  %v990_v50 = vrot.slane %v974_v29, %v25109_v12 }
  0x62   :  { %23462 = vmatprep.mubr.msk.f32.mxu0 %vm7786_vm0, %v4166_v48  ;;  %v4332_v27 = vcombine.high %v4309_v38, %v4316_v39  ;;  %v4331_v32 = vcombine.low %v4309_v38, %v4316_v39  ;;  %v997_v43 = vrot.slane %v975_v63, %v25109_v12  ;;  %v1004_v45 = vrot.slane %v976_v14, %v25109_v12 }
  0x63   :  { %v4334_v22 = vcombine.high %v4323_v46, %v4330_v62  ;;  %v4333_v40 = vcombine.low %v4323_v46, %v4330_v62  ;;  %v1017_v21 = vrot.slane %v24796_v37, %v25109_v12  ;;  %v1024_v51 = vrot.slane %v24798_v42, %v25109_v12 }
  0x64   :  { %v4348_v55 = vrot.slane %v4332_v27, %v25109_v12  ;;  %v4341_v16 = vrot.slane %v4331_v32, %v25109_v12  ;;  %v4365_v15 = vcombine.low %v983_v49, %v997_v43  ;;  %v23415_v25 = vcombine.high %v983_v49, %v997_v43 }
  0x65   :  { %8029 = vmatmul.mubr.f32.gmra.mxu0 %v4165_v54  ;;  %v4362_v47 = vrot.slane %v4334_v22, %v25109_v12  ;;  %v4355_v48 = vrot.slane %v4333_v40, %v25109_v12  ;;  %v4367_v56 = vcombine.low %v990_v50, %v1004_v45  ;;  %v23416_v59 = vcombine.high %v990_v50, %v1004_v45 }
  0x66   :  { %23463 = vmatprep.mubr.msk.f32.mxu0 %vm7786_vm0, %v4232_v41  ;;  %v4375_v13 = vrot.slane %v4365_v15, %v25109_v12  ;;  %v4382_v57 = vrot.slane %v23415_v25, %v25109_v12  ;;  %v1025_v60 = vcombine.high %v1017_v21, %v1017_v21  ;;  %v1026_v58 = vcombine.high %v1024_v51, %v1024_v51 }
  0x67   :  { %v4364_v9 = vcombine.low %v4348_v55, %v4362_v47  ;;  %v4363_v54 = vcombine.low %v4341_v16, %v4355_v48  ;;  %v4389_v35 = vrot.slane %v4367_v56, %v25109_v12  ;;  %v4396_v44 = vrot.slane %v23416_v59, %v25109_v12  ;;  %v24805_v56 = vld [vmem:[%s33925_s0 + $0x110] ss:$8 sps:$4 sm:$0xff]   ;;  %v24807_v59 = vld [vmem:[%s33925_s0 + $0x114] ss:$8 sps:$4 sm:$0xff]  }
  0x68   :  { %v4398_v41 = vcombine.high %v4375_v13, %v4382_v57  ;;  %v4397_v26 = vcombine.low %v4375_v13, %v4382_v57  ;;  %v1033_v5 = vrot.slane %v1017_v21, %v25109_v12  ;;  %v1040_v8 = vrot.slane %v1024_v51, %v25109_v12 }
  0x69   :  { %8034 = vmatmul.mubr.f32.gmra.mxu0 %v4231_v2  ;;  %v4400_v17 = vcombine.high %v4389_v35, %v4396_v44  ;;  %v4399_v19 = vcombine.low %v4389_v35, %v4396_v44  ;;  %v1047_v30 = vrot.slane %v1025_v60, %v25109_v12  ;;  %v1054_v61 = vrot.slane %v1026_v58, %v25109_v12 }
  0x6a   :  { %23464 = vmatprep.mubr.msk.f32.mxu0 %vm7786_vm0, %v4298_v4  ;;  %v4414_v10 = vrot.slane %v4398_v41, %v25109_v12  ;;  %v4407_v33 = vrot.slane %v4397_v26, %v25109_v12  ;;  %v1067_v6 = vrot.slane %v24799_v28, %v25109_v12  ;;  %v1074_v3 = vrot.slane %v24801_v34, %v25109_v12 }
  0x6b   :  { %v4428_v20 = vrot.slane %v4400_v17, %v25109_v12  ;;  %v4421_v0 = vrot.slane %v4399_v19, %v25109_v12  ;;  %v4431_v53 = vcombine.low %v1033_v5, %v1047_v30  ;;  %v23417_v2 = vcombine.high %v1033_v5, %v1047_v30 }
  0x6c   :  { %v4433_v18 = vcombine.low %v1040_v8, %v1054_v61  ;;  %v23418_v29 = vcombine.high %v1040_v8, %v1054_v61  ;;  %v1075_v36 = vcombine.high %v1067_v6, %v1067_v6  ;;  %v1076_v11 = vcombine.high %v1074_v3, %v1074_v3 }
  0x6d   :  { %8039 = vmatmul.mubr.f32.gmra.mxu0 %v4297_v24  ;;  %v4430_v23 = vcombine.low %v4414_v10, %v4428_v20  ;;  %v4429_v31 = vcombine.low %v4407_v33, %v4421_v0  ;;  %v4441_v63 = vrot.slane %v4431_v53, %v25109_v12  ;;  %v4448_v14 = vrot.slane %v23417_v2, %v25109_v12  ;;  %v24808_v53 = vld [vmem:[%s33925_s0 + $0x120] ss:$8 sps:$4 sm:$0xff]   ;;  %v24810_v2 = vld [vmem:[%s33925_s0 + $0x124] ss:$8 sps:$4 sm:$0xff]  }
  0x6e   :  { %23465 = vmatprep.mubr.msk.f32.mxu0 %vm7786_vm0, %v4364_v9  ;;  %v4455_v37 = vrot.slane %v4433_v18, %v25109_v12  ;;  %v4462_v42 = vrot.slane %v23418_v29, %v25109_v12  ;;  %v1083_v4 = vrot.slane %v1067_v6, %v25109_v12  ;;  %v1090_v38 = vrot.slane %v1074_v3, %v25109_v12 }
  0x6f   :  { %v4464_v39 = vcombine.high %v4441_v63, %v4448_v14  ;;  %v4463_v46 = vcombine.low %v4441_v63, %v4448_v14  ;;  %v1097_v24 = vrot.slane %v1075_v36, %v25109_v12  ;;  %v1104_v62 = vrot.slane %v1076_v11, %v25109_v12 }
  0x70   :  { %v4466_v49 = vcombine.high %v4455_v37, %v4462_v42  ;;  %v4465_v50 = vcombine.low %v4455_v37, %v4462_v42  ;;  %v1117_v27 = vrot.slane %v24802_v52, %v25109_v12  ;;  %v1124_v32 = vrot.slane %v24804_v7, %v25109_v12 }
  0x71   :  { %8044 = vmatmul.mubr.f32.gmra.mxu0 %v4363_v54  ;;  %v4480_v43 = vrot.slane %v4464_v39, %v25109_v12  ;;  %v4473_v45 = vrot.slane %v4463_v46, %v25109_v12  ;;  %v4497_v22 = vcombine.low %v1083_v4, %v1097_v24  ;;  %v23419_v40 = vcombine.high %v1083_v4, %v1097_v24 }
  0x72   :  { %23466 = vmatprep.mubr.msk.f32.mxu0 %vm7786_vm0, %v4430_v23  ;;  %v4494_v21 = vrot.slane %v4466_v49, %v25109_v12  ;;  %v4487_v51 = vrot.slane %v4465_v50, %v25109_v12  ;;  %v4499_v55 = vcombine.low %v1090_v38, %v1104_v62  ;;  %v23420_v16 = vcombine.high %v1090_v38, %v1104_v62 }
  0x73   :  { %v4507_v15 = vrot.slane %v4497_v22, %v25109_v12  ;;  %v4514_v25 = vrot.slane %v23419_v40, %v25109_v12  ;;  %v1125_v47 = vcombine.high %v1117_v27, %v1117_v27  ;;  %v1126_v48 = vcombine.high %v1124_v32, %v1124_v32 }
  0x74   :  { %v4496_v13 = vcombine.low %v4480_v43, %v4494_v21  ;;  %v4495_v57 = vcombine.low %v4473_v45, %v4487_v51  ;;  %v4521_v60 = vrot.slane %v4499_v55, %v25109_v12  ;;  %v4528_v58 = vrot.slane %v23420_v16, %v25109_v12  ;;  %v24811_v55 = vld [vmem:[%s33925_s0 + $0x130] ss:$8 sps:$4 sm:$0xff]   ;;  %v24813_v16 = vld [vmem:[%s33925_s0 + $0x134] ss:$8 sps:$4 sm:$0xff]  }
  0x75   :  { %8049 = vmatmul.mubr.f32.gmra.mxu0 %v4429_v31  ;;  %v4530_v28 = vcombine.high %v4507_v15, %v4514_v25  ;;  %v4529_v34 = vcombine.low %v4507_v15, %v4514_v25  ;;  %v1133_v9 = vrot.slane %v1117_v27, %v25109_v12  ;;  %v1140_v54 = vrot.slane %v1124_v32, %v25109_v12 }
  0x76   :  { %23467 = vmatprep.mubr.msk.f32.mxu0 %vm7786_vm0, %v4496_v13  ;;  %v4532_v35 = vcombine.high %v4521_v60, %v4528_v58  ;;  %v4531_v44 = vcombine.low %v4521_v60, %v4528_v58  ;;  %v1147_v41 = vrot.slane %v1125_v47, %v25109_v12  ;;  %v1154_v26 = vrot.slane %v1126_v48, %v25109_v12 }
  0x77   :  { %v4546_v5 = vrot.slane %v4530_v28, %v25109_v12  ;;  %v4539_v8 = vrot.slane %v4529_v34, %v25109_v12  ;;  %v1167_v17 = vrot.slane %v24805_v56, %v25109_v12  ;;  %v1174_v19 = vrot.slane %v24807_v59, %v25109_v12 }
  0x78   :  { %v4560_v30 = vrot.slane %v4532_v35, %v25109_v12  ;;  %v4553_v61 = vrot.slane %v4531_v44, %v25109_v12  ;;  %v4563_v10 = vcombine.low %v1133_v9, %v1147_v41  ;;  %v23421_v33 = vcombine.high %v1133_v9, %v1147_v41 }
  0x79   :  { %8054 = vmatmul.mubr.f32.gmra.mxu0 %v4495_v57  ;;  %v4565_v6 = vcombine.low %v1140_v54, %v1154_v26  ;;  %v23422_v3 = vcombine.high %v1140_v54, %v1154_v26  ;;  %v1175_v20 = vcombine.high %v1167_v17, %v1167_v17  ;;  %v1176_v0 = vcombine.high %v1174_v19, %v1174_v19 }
  0x7a   :  { %v4562_v18 = vcombine.low %v4546_v5, %v4560_v30  ;;  %v4561_v29 = vcombine.low %v4539_v8, %v4553_v61  ;;  %v4573_v36 = vrot.slane %v4563_v10, %v25109_v12  ;;  %v4580_v11 = vrot.slane %v23421_v33, %v25109_v12  ;;  %v24814_v10 = vld [vmem:[%s33925_s0 + $0x140] ss:$8 sps:$4 sm:$0xff]   ;;  %v24816_v33 = vld [vmem:[%s33925_s0 + $0x144] ss:$8 sps:$4 sm:$0xff]  }
  0x7b   :  { %v4587_v52 = vrot.slane %v4565_v6, %v25109_v12  ;;  %v4594_v7 = vrot.slane %v23422_v3, %v25109_v12  ;;  %v1183_v23 = vrot.slane %v1167_v17, %v25109_v12  ;;  %v1190_v31 = vrot.slane %v1174_v19, %v25109_v12 }
  0x7c   :  { %23468 = vmatprep.mubr.msk.f32.mxu0 %vm7786_vm0, %v4562_v18  ;;  %v4596_v63 = vcombine.high %v4573_v36, %v4580_v11  ;;  %v4595_v14 = vcombine.low %v4573_v36, %v4580_v11  ;;  %v1197_v37 = vrot.slane %v1175_v20, %v25109_v12  ;;  %v1204_v42 = vrot.slane %v1176_v0, %v25109_v12 }
  0x7d   :  { %8059 = vmatmul.mubr.f32.gmra.mxu0 %v4561_v29  ;;  %v4598_v4 = vcombine.high %v4587_v52, %v4594_v7  ;;  %v4597_v38 = vcombine.low %v4587_v52, %v4594_v7  ;;  %v1217_v39 = vrot.slane %v24808_v53, %v25109_v12  ;;  %v1224_v46 = vrot.slane %v24810_v2, %v25109_v12 }
  0x7e   :  { %v4612_v24 = vrot.slane %v4596_v63, %v25109_v12  ;;  %v4605_v62 = vrot.slane %v4595_v14, %v25109_v12  ;;  %v4629_v49 = vcombine.low %v1183_v23, %v1197_v37  ;;  %v23423_v50 = vcombine.high %v1183_v23, %v1197_v37 }
  0x7f   :  { %v4626_v27 = vrot.slane %v4598_v4, %v25109_v12  ;;  %v4619_v32 = vrot.slane %v4597_v38, %v25109_v12  ;;  %v4631_v43 = vcombine.low %v1190_v31, %v1204_v42  ;;  %v23424_v45 = vcombine.high %v1190_v31, %v1204_v42 }
  0x80   :  { %v4639_v22 = vrot.slane %v4629_v49, %v25109_v12  ;;  %v4646_v40 = vrot.slane %v23423_v50, %v25109_v12  ;;  %v1225_v21 = vcombine.high %v1217_v39, %v1217_v39  ;;  %v1226_v51 = vcombine.high %v1224_v46, %v1224_v46 }
  0x81   :  { %v4628_v15 = vcombine.low %v4612_v24, %v4626_v27  ;;  %v4627_v25 = vcombine.low %v4605_v62, %v4619_v32  ;;  %v4653_v47 = vrot.slane %v4631_v43, %v25109_v12  ;;  %v4660_v48 = vrot.slane %v23424_v45, %v25109_v12  ;;  %v24817_v43 = vld [vmem:[%s33925_s0 + $0x150] ss:$8 sps:$4 sm:$0xff]   ;;  %v24819_v45 = vld [vmem:[%s33925_s0 + $0x154] ss:$8 sps:$4 sm:$0xff]  }
  0x82   :  { %v4662_v56 = vcombine.high %v4639_v22, %v4646_v40  ;;  %v4661_v59 = vcombine.low %v4639_v22, %v4646_v40  ;;  %v1233_v13 = vrot.slane %v1217_v39, %v25109_v12  ;;  %v1240_v57 = vrot.slane %v1224_v46, %v25109_v12 }
  0x83   :  { %23469 = vmatprep.mubr.msk.f32.mxu0 %vm7786_vm0, %v4628_v15  ;;  %v4664_v60 = vcombine.high %v4653_v47, %v4660_v48  ;;  %v4663_v58 = vcombine.low %v4653_v47, %v4660_v48  ;;  %v1247_v28 = vrot.slane %v1225_v21, %v25109_v12  ;;  %v1254_v34 = vrot.slane %v1226_v51, %v25109_v12 }
  0x84   :  { %8064 = vmatmul.mubr.f32.gmra.mxu0 %v4627_v25  ;;  %v4678_v9 = vrot.slane %v4662_v56, %v25109_v12  ;;  %v4671_v54 = vrot.slane %v4661_v59, %v25109_v12  ;;  %v1267_v35 = vrot.slane %v24811_v55, %v25109_v12  ;;  %v1274_v44 = vrot.slane %v24813_v16, %v25109_v12 }
  0x85   :  { %v4692_v41 = vrot.slane %v4664_v60, %v25109_v12  ;;  %v4685_v26 = vrot.slane %v4663_v58, %v25109_v12  ;;  %v4695_v5 = vcombine.low %v1233_v13, %v1247_v28  ;;  %v23425_v8 = vcombine.high %v1233_v13, %v1247_v28 }
  0x86   :  { %v4697_v17 = vcombine.low %v1240_v57, %v1254_v34  ;;  %v23426_v19 = vcombine.high %v1240_v57, %v1254_v34  ;;  %v1275_v30 = vcombine.high %v1267_v35, %v1267_v35  ;;  %v1276_v61 = vcombine.high %v1274_v44, %v1274_v44 }
  0x87   :  { %v4694_v6 = vcombine.low %v4678_v9, %v4692_v41  ;;  %v4693_v3 = vcombine.low %v4671_v54, %v4685_v26  ;;  %v4705_v20 = vrot.slane %v4695_v5, %v25109_v12  ;;  %v4712_v0 = vrot.slane %v23425_v8, %v25109_v12  ;;  %v24820_v5 = vld [vmem:[%s33925_s0 + $0x160] ss:$8 sps:$4 sm:$0xff]   ;;  %v24822_v8 = vld [vmem:[%s33925_s0 + $0x164] ss:$8 sps:$4 sm:$0xff]  }
  0x88   :  { %v4719_v53 = vrot.slane %v4697_v17, %v25109_v12  ;;  %v4726_v2 = vrot.slane %v23426_v19, %v25109_v12  ;;  %v1283_v18 = vrot.slane %v1267_v35, %v25109_v12  ;;  %v1290_v29 = vrot.slane %v1274_v44, %v25109_v12 }
  0x89   :  { %23470 = vmatprep.mubr.msk.f32.mxu0 %vm7786_vm0, %v4694_v6  ;;  %v4728_v36 = vcombine.high %v4705_v20, %v4712_v0  ;;  %v4727_v11 = vcombine.low %v4705_v20, %v4712_v0  ;;  %v1297_v52 = vrot.slane %v1275_v30, %v25109_v12  ;;  %v1304_v7 = vrot.slane %v1276_v61, %v25109_v12 }
  0x8a   :  { %8069 = vmatmul.mubr.f32.gmra.mxu0 %v4693_v3  ;;  %v4730_v23 = vcombine.high %v4719_v53, %v4726_v2  ;;  %v4729_v31 = vcombine.low %v4719_v53, %v4726_v2  ;;  %v1317_v63 = vrot.slane %v24814_v10, %v25109_v12  ;;  %v1324_v14 = vrot.slane %v24816_v33, %v25109_v12 }
  0x8b   :  { %v4744_v37 = vrot.slane %v4728_v36, %v25109_v12  ;;  %v4737_v42 = vrot.slane %v4727_v11, %v25109_v12  ;;  %v4761_v4 = vcombine.low %v1283_v18, %v1297_v52  ;;  %v23427_v38 = vcombine.high %v1283_v18, %v1297_v52 }
  0x8c   :  { %v4758_v39 = vrot.slane %v4730_v23, %v25109_v12  ;;  %v4751_v46 = vrot.slane %v4729_v31, %v25109_v12  ;;  %v4763_v24 = vcombine.low %v1290_v29, %v1304_v7  ;;  %v23428_v62 = vcombine.high %v1290_v29, %v1304_v7 }
  0x8d   :  { %v4771_v49 = vrot.slane %v4761_v4, %v25109_v12  ;;  %v4778_v50 = vrot.slane %v23427_v38, %v25109_v12  ;;  %v1325_v27 = vcombine.high %v1317_v63, %v1317_v63  ;;  %v1326_v32 = vcombine.high %v1324_v14, %v1324_v14 }
  0x8e   :  { %v4760_v22 = vcombine.low %v4744_v37, %v4758_v39  ;;  %v4759_v40 = vcombine.low %v4737_v42, %v4751_v46  ;;  %v4785_v21 = vrot.slane %v4763_v24, %v25109_v12  ;;  %v4792_v51 = vrot.slane %v23428_v62, %v25109_v12  ;;  %v24823_v24 = vld [vmem:[%s33925_s0 + $0x170] ss:$8 sps:$4 sm:$0xff]   ;;  %v24825_v62 = vld [vmem:[%s33925_s0 + $0x174] ss:$8 sps:$4 sm:$0xff]  }
  0x8f   :  { %v4794_v55 = vcombine.high %v4771_v49, %v4778_v50  ;;  %v4793_v16 = vcombine.low %v4771_v49, %v4778_v50  ;;  %v1333_v15 = vrot.slane %v1317_v63, %v25109_v12  ;;  %v1340_v25 = vrot.slane %v1324_v14, %v25109_v12 }
  0x90   :  { %23471 = vmatprep.mubr.msk.f32.mxu0 %vm7786_vm0, %v4760_v22  ;;  %v4796_v47 = vcombine.high %v4785_v21, %v4792_v51  ;;  %v4795_v48 = vcombine.low %v4785_v21, %v4792_v51  ;;  %v1347_v56 = vrot.slane %v1325_v27, %v25109_v12  ;;  %v1354_v59 = vrot.slane %v1326_v32, %v25109_v12 }
  0x91   :  { %8074 = vmatmul.mubr.f32.gmra.mxu0 %v4759_v40  ;;  %v4810_v13 = vrot.slane %v4794_v55, %v25109_v12  ;;  %v4803_v57 = vrot.slane %v4793_v16, %v25109_v12  ;;  %v1367_v60 = vrot.slane %v24817_v43, %v25109_v12  ;;  %v1374_v58 = vrot.slane %v24819_v45, %v25109_v12 }
  0x92   :  { %v4824_v28 = vrot.slane %v4796_v47, %v25109_v12  ;;  %v4817_v34 = vrot.slane %v4795_v48, %v25109_v12  ;;  %v4827_v9 = vcombine.low %v1333_v15, %v1347_v56  ;;  %v23429_v54 = vcombine.high %v1333_v15, %v1347_v56 }
  0x93   :  { %v4829_v35 = vcombine.low %v1340_v25, %v1354_v59  ;;  %v23430_v44 = vcombine.high %v1340_v25, %v1354_v59  ;;  %v1375_v41 = vcombine.high %v1367_v60, %v1367_v60  ;;  %v1376_v26 = vcombine.high %v1374_v58, %v1374_v58 }
  0x94   :  { %v4826_v17 = vcombine.low %v4810_v13, %v4824_v28  ;;  %v4825_v19 = vcombine.low %v4803_v57, %v4817_v34  ;;  %v4837_v30 = vrot.slane %v4827_v9, %v25109_v12  ;;  %v4844_v61 = vrot.slane %v23429_v54, %v25109_v12  ;;  %v24826_v9 = vld [vmem:[%s33925_s0 + $0x180] ss:$8 sps:$4 sm:$0xff]   ;;  %v24828_v54 = vld [vmem:[%s33925_s0 + $0x184] ss:$8 sps:$4 sm:$0xff]  }
  0x95   :  { %v4851_v10 = vrot.slane %v4829_v35, %v25109_v12  ;;  %v4858_v33 = vrot.slane %v23430_v44, %v25109_v12  ;;  %v1383_v6 = vrot.slane %v1367_v60, %v25109_v12  ;;  %v1390_v3 = vrot.slane %v1374_v58, %v25109_v12 }
  0x96   :  { %23472 = vmatprep.mubr.msk.f32.mxu0 %vm7786_vm0, %v4826_v17  ;;  %v4860_v20 = vcombine.high %v4837_v30, %v4844_v61  ;;  %v4859_v0 = vcombine.low %v4837_v30, %v4844_v61  ;;  %v1397_v53 = vrot.slane %v1375_v41, %v25109_v12  ;;  %v1404_v2 = vrot.slane %v1376_v26, %v25109_v12 }
  0x97   :  { %8079 = vmatmul.mubr.f32.gmra.mxu0 %v4825_v19  ;;  %v4862_v18 = vcombine.high %v4851_v10, %v4858_v33  ;;  %v4861_v29 = vcombine.low %v4851_v10, %v4858_v33  ;;  %v1417_v36 = vrot.slane %v24820_v5, %v25109_v12  ;;  %v1424_v11 = vrot.slane %v24822_v8, %v25109_v12 }
  0x98   :  { %v4876_v52 = vrot.slane %v4860_v20, %v25109_v12  ;;  %v4869_v7 = vrot.slane %v4859_v0, %v25109_v12  ;;  %v4893_v23 = vcombine.low %v1383_v6, %v1397_v53  ;;  %v23431_v31 = vcombine.high %v1383_v6, %v1397_v53 }
  0x99   :  { %v4890_v63 = vrot.slane %v4862_v18, %v25109_v12  ;;  %v4883_v14 = vrot.slane %v4861_v29, %v25109_v12  ;;  %v4895_v37 = vcombine.low %v1390_v3, %v1404_v2  ;;  %v23432_v42 = vcombine.high %v1390_v3, %v1404_v2 }
  0x9a   :  { %v4903_v4 = vrot.slane %v4893_v23, %v25109_v12  ;;  %v4910_v38 = vrot.slane %v23431_v31, %v25109_v12  ;;  %v1425_v39 = vcombine.high %v1417_v36, %v1417_v36  ;;  %v1426_v46 = vcombine.high %v1424_v11, %v1424_v11 }
  0x9b   :  { %v4892_v49 = vcombine.low %v4876_v52, %v4890_v63  ;;  %v4891_v50 = vcombine.low %v4869_v7, %v4883_v14  ;;  %v4917_v27 = vrot.slane %v4895_v37, %v25109_v12  ;;  %v4924_v32 = vrot.slane %v23432_v42, %v25109_v12  ;;  %v24829_v37 = vld [vmem:[%s33925_s0 + $0x190] ss:$8 sps:$4 sm:$0xff]   ;;  %v24831_v42 = vld [vmem:[%s33925_s0 + $0x194] ss:$8 sps:$4 sm:$0xff]  }
  0x9c   :  { %v4926_v43 = vcombine.high %v4903_v4, %v4910_v38  ;;  %v4925_v45 = vcombine.low %v4903_v4, %v4910_v38  ;;  %v1433_v22 = vrot.slane %v1417_v36, %v25109_v12  ;;  %v1440_v40 = vrot.slane %v1424_v11, %v25109_v12 }
  0x9d   :  { %23473 = vmatprep.mubr.msk.f32.mxu0 %vm7786_vm0, %v4892_v49  ;;  %v4928_v21 = vcombine.high %v4917_v27, %v4924_v32  ;;  %v4927_v51 = vcombine.low %v4917_v27, %v4924_v32  ;;  %v1447_v55 = vrot.slane %v1425_v39, %v25109_v12  ;;  %v1454_v16 = vrot.slane %v1426_v46, %v25109_v12 }
  0x9e   :  { %8084 = vmatmul.mubr.f32.gmra.mxu0 %v4891_v50  ;;  %v4942_v15 = vrot.slane %v4926_v43, %v25109_v12  ;;  %v4935_v25 = vrot.slane %v4925_v45, %v25109_v12  ;;  %v1467_v47 = vrot.slane %v24823_v24, %v25109_v12  ;;  %v1474_v48 = vrot.slane %v24825_v62, %v25109_v12 }
  0x9f   :  { %v4956_v56 = vrot.slane %v4928_v21, %v25109_v12  ;;  %v4949_v59 = vrot.slane %v4927_v51, %v25109_v12  ;;  %v4959_v13 = vcombine.low %v1433_v22, %v1447_v55  ;;  %v23433_v57 = vcombine.high %v1433_v22, %v1447_v55 }
  0xa0   :  { %v4961_v60 = vcombine.low %v1440_v40, %v1454_v16  ;;  %v23434_v58 = vcombine.high %v1440_v40, %v1454_v16  ;;  %v1475_v28 = vcombine.high %v1467_v47, %v1467_v47  ;;  %v1476_v34 = vcombine.high %v1474_v48, %v1474_v48 }
  0xa1   :  { %v4958_v35 = vcombine.low %v4942_v15, %v4956_v56  ;;  %v4957_v44 = vcombine.low %v4935_v25, %v4949_v59  ;;  %v4969_v41 = vrot.slane %v4959_v13, %v25109_v12  ;;  %v4976_v26 = vrot.slane %v23433_v57, %v25109_v12  ;;  %v24832_v13 = vld [vmem:[%s33925_s0 + $0x1a0] ss:$8 sps:$4 sm:$0xff]   ;;  %v24834_v57 = vld [vmem:[%s33925_s0 + $0x1a4] ss:$8 sps:$4 sm:$0xff]  }
  0xa2   :  { %v4983_v5 = vrot.slane %v4961_v60, %v25109_v12  ;;  %v4990_v8 = vrot.slane %v23434_v58, %v25109_v12  ;;  %v1483_v17 = vrot.slane %v1467_v47, %v25109_v12  ;;  %v1490_v19 = vrot.slane %v1474_v48, %v25109_v12 }
  0xa3   :  { %23474 = vmatprep.mubr.msk.f32.mxu0 %vm7786_vm0, %v4958_v35  ;;  %v4992_v30 = vcombine.high %v4969_v41, %v4976_v26  ;;  %v4991_v61 = vcombine.low %v4969_v41, %v4976_v26  ;;  %v1497_v10 = vrot.slane %v1475_v28, %v25109_v12  ;;  %v1504_v33 = vrot.slane %v1476_v34, %v25109_v12 }
  0xa4   :  { %8089 = vmatmul.mubr.f32.gmra.mxu0 %v4957_v44  ;;  %v4994_v6 = vcombine.high %v4983_v5, %v4990_v8  ;;  %v4993_v3 = vcombine.low %v4983_v5, %v4990_v8  ;;  %v1517_v20 = vrot.slane %v24826_v9, %v25109_v12  ;;  %v1524_v0 = vrot.slane %v24828_v54, %v25109_v12 }
  0xa5   :  { %v5008_v53 = vrot.slane %v4992_v30, %v25109_v12  ;;  %v5001_v2 = vrot.slane %v4991_v61, %v25109_v12  ;;  %v5025_v18 = vcombine.low %v1483_v17, %v1497_v10  ;;  %v23435_v29 = vcombine.high %v1483_v17, %v1497_v10 }
  0xa6   :  { %v5022_v36 = vrot.slane %v4994_v6, %v25109_v12  ;;  %v5015_v11 = vrot.slane %v4993_v3, %v25109_v12  ;;  %v5027_v52 = vcombine.low %v1490_v19, %v1504_v33  ;;  %v23436_v7 = vcombine.high %v1490_v19, %v1504_v33 }
  0xa7   :  { %v5035_v23 = vrot.slane %v5025_v18, %v25109_v12  ;;  %v5042_v31 = vrot.slane %v23435_v29, %v25109_v12  ;;  %v1525_v63 = vcombine.high %v1517_v20, %v1517_v20  ;;  %v1526_v14 = vcombine.high %v1524_v0, %v1524_v0 }
  0xa8   :  { %v5024_v4 = vcombine.low %v5008_v53, %v5022_v36  ;;  %v5023_v38 = vcombine.low %v5001_v2, %v5015_v11  ;;  %v5049_v39 = vrot.slane %v5027_v52, %v25109_v12  ;;  %v5056_v46 = vrot.slane %v23436_v7, %v25109_v12  ;;  %v24835_v52 = vld [vmem:[%s33925_s0 + $0x1b0] ss:$8 sps:$4 sm:$0xff]   ;;  %v24837_v7 = vld [vmem:[%s33925_s0 + $0x1b4] ss:$8 sps:$4 sm:$0xff]  }
  0xa9   :  { %v5058_v24 = vcombine.high %v5035_v23, %v5042_v31  ;;  %v5057_v62 = vcombine.low %v5035_v23, %v5042_v31  ;;  %v1533_v49 = vrot.slane %v1517_v20, %v25109_v12  ;;  %v1540_v50 = vrot.slane %v1524_v0, %v25109_v12 }
  0xaa   :  { %23475 = vmatprep.mubr.msk.f32.mxu0 %vm7786_vm0, %v5024_v4  ;;  %v5060_v27 = vcombine.high %v5049_v39, %v5056_v46  ;;  %v5059_v32 = vcombine.low %v5049_v39, %v5056_v46  ;;  %v1547_v43 = vrot.slane %v1525_v63, %v25109_v12  ;;  %v1554_v45 = vrot.slane %v1526_v14, %v25109_v12 }
  0xab   :  { %8094 = vmatmul.mubr.f32.gmra.mxu0 %v5023_v38  ;;  %v5074_v22 = vrot.slane %v5058_v24, %v25109_v12  ;;  %v5067_v40 = vrot.slane %v5057_v62, %v25109_v12  ;;  %v1567_v21 = vrot.slane %v24829_v37, %v25109_v12  ;;  %v1574_v51 = vrot.slane %v24831_v42, %v25109_v12 }
  0xac   :  { %v5088_v55 = vrot.slane %v5060_v27, %v25109_v12  ;;  %v5081_v16 = vrot.slane %v5059_v32, %v25109_v12  ;;  %v5091_v15 = vcombine.low %v1533_v49, %v1547_v43  ;;  %v23437_v25 = vcombine.high %v1533_v49, %v1547_v43 }
  0xad   :  { %v5093_v47 = vcombine.low %v1540_v50, %v1554_v45  ;;  %v23438_v48 = vcombine.high %v1540_v50, %v1554_v45  ;;  %v1575_v56 = vcombine.high %v1567_v21, %v1567_v21  ;;  %v1576_v59 = vcombine.high %v1574_v51, %v1574_v51 }
  0xae   :  { %v5090_v60 = vcombine.low %v5074_v22, %v5088_v55  ;;  %v5089_v58 = vcombine.low %v5067_v40, %v5081_v16  ;;  %v5101_v28 = vrot.slane %v5091_v15, %v25109_v12  ;;  %v5108_v34 = vrot.slane %v23437_v25, %v25109_v12  ;;  %v24838_v15 = vld [vmem:[%s33925_s0 + $0x1c0] ss:$8 sps:$4 sm:$0xff]   ;;  %v24840_v25 = vld [vmem:[%s33925_s0 + $0x1c4] ss:$8 sps:$4 sm:$0xff]  }
  0xaf   :  { %v5115_v9 = vrot.slane %v5093_v47, %v25109_v12  ;;  %v5122_v54 = vrot.slane %v23438_v48, %v25109_v12  ;;  %v1583_v35 = vrot.slane %v1567_v21, %v25109_v12  ;;  %v1590_v44 = vrot.slane %v1574_v51, %v25109_v12 }
  0xb0   :  { %23476 = vmatprep.mubr.msk.f32.mxu0 %vm7786_vm0, %v5090_v60  ;;  %v5124_v41 = vcombine.high %v5101_v28, %v5108_v34  ;;  %v5123_v26 = vcombine.low %v5101_v28, %v5108_v34  ;;  %v1597_v5 = vrot.slane %v1575_v56, %v25109_v12  ;;  %v1604_v8 = vrot.slane %v1576_v59, %v25109_v12 }
  0xb1   :  { %8099 = vmatmul.mubr.f32.gmra.mxu0 %v5089_v58  ;;  %v5126_v17 = vcombine.high %v5115_v9, %v5122_v54  ;;  %v5125_v19 = vcombine.low %v5115_v9, %v5122_v54  ;;  %v1617_v30 = vrot.slane %v24832_v13, %v25109_v12  ;;  %v1624_v61 = vrot.slane %v24834_v57, %v25109_v12 }
  0xb2   :  { %v5140_v10 = vrot.slane %v5124_v41, %v25109_v12  ;;  %v5133_v33 = vrot.slane %v5123_v26, %v25109_v12  ;;  %v5157_v6 = vcombine.low %v1583_v35, %v1597_v5  ;;  %v23439_v3 = vcombine.high %v1583_v35, %v1597_v5 }
  0xb3   :  { %v5154_v20 = vrot.slane %v5126_v17, %v25109_v12  ;;  %v5147_v0 = vrot.slane %v5125_v19, %v25109_v12  ;;  %v5159_v53 = vcombine.low %v1590_v44, %v1604_v8  ;;  %v23440_v2 = vcombine.high %v1590_v44, %v1604_v8 }
  0xb4   :  { %v5167_v18 = vrot.slane %v5157_v6, %v25109_v12  ;;  %v5174_v29 = vrot.slane %v23439_v3, %v25109_v12  ;;  %v1625_v36 = vcombine.high %v1617_v30, %v1617_v30  ;;  %v1626_v11 = vcombine.high %v1624_v61, %v1624_v61 }
  0xb5   :  { %v5156_v23 = vcombine.low %v5140_v10, %v5154_v20  ;;  %v5155_v31 = vcombine.low %v5133_v33, %v5147_v0  ;;  %v5181_v63 = vrot.slane %v5159_v53, %v25109_v12  ;;  %v5188_v14 = vrot.slane %v23440_v2, %v25109_v12  ;;  %v24841_v53 = vld [vmem:[%s33925_s0 + $0x1d0] ss:$8 sps:$4 sm:$0xff]   ;;  %v24843_v2 = vld [vmem:[%s33925_s0 + $0x1d4] ss:$8 sps:$4 sm:$0xff]  }
  0xb6   :  { %v5190_v37 = vcombine.high %v5167_v18, %v5174_v29  ;;  %v5189_v42 = vcombine.low %v5167_v18, %v5174_v29  ;;  %v1633_v4 = vrot.slane %v1617_v30, %v25109_v12  ;;  %v1640_v38 = vrot.slane %v1624_v61, %v25109_v12 }
  0xb7   :  { %23477 = vmatprep.mubr.msk.f32.mxu0 %vm7786_vm0, %v5156_v23  ;;  %v5192_v39 = vcombine.high %v5181_v63, %v5188_v14  ;;  %v5191_v46 = vcombine.low %v5181_v63, %v5188_v14  ;;  %v1647_v24 = vrot.slane %v1625_v36, %v25109_v12  ;;  %v1654_v62 = vrot.slane %v1626_v11, %v25109_v12 }
  0xb8   :  { %8104 = vmatmul.mubr.f32.gmra.mxu0 %v5155_v31  ;;  %v5206_v49 = vrot.slane %v5190_v37, %v25109_v12  ;;  %v5199_v50 = vrot.slane %v5189_v42, %v25109_v12  ;;  %v1667_v27 = vrot.slane %v24835_v52, %v25109_v12  ;;  %v1674_v32 = vrot.slane %v24837_v7, %v25109_v12 }
  0xb9   :  { %v5220_v43 = vrot.slane %v5192_v39, %v25109_v12  ;;  %v5213_v45 = vrot.slane %v5191_v46, %v25109_v12  ;;  %v5223_v22 = vcombine.low %v1633_v4, %v1647_v24  ;;  %v23441_v40 = vcombine.high %v1633_v4, %v1647_v24 }
  0xba   :  { %v5225_v21 = vcombine.low %v1640_v38, %v1654_v62  ;;  %v23442_v51 = vcombine.high %v1640_v38, %v1654_v62  ;;  %v1675_v55 = vcombine.high %v1667_v27, %v1667_v27  ;;  %v1676_v16 = vcombine.high %v1674_v32, %v1674_v32 }
  0xbb   :  { %v5222_v47 = vcombine.low %v5206_v49, %v5220_v43  ;;  %v5221_v48 = vcombine.low %v5199_v50, %v5213_v45  ;;  %v5233_v56 = vrot.slane %v5223_v22, %v25109_v12  ;;  %v5240_v59 = vrot.slane %v23441_v40, %v25109_v12  ;;  %v24844_v22 = vld [vmem:[%s33925_s0 + $0x1e0] ss:$8 sps:$4 sm:$0xff]   ;;  %v24846_v40 = vld [vmem:[%s33925_s0 + $0x1e4] ss:$8 sps:$4 sm:$0xff]  }
  0xbc   :  { %v5247_v13 = vrot.slane %v5225_v21, %v25109_v12  ;;  %v5254_v57 = vrot.slane %v23442_v51, %v25109_v12  ;;  %v1683_v60 = vrot.slane %v1667_v27, %v25109_v12  ;;  %v1690_v58 = vrot.slane %v1674_v32, %v25109_v12 }
  0xbd   :  { %23478 = vmatprep.mubr.msk.f32.mxu0 %vm7786_vm0, %v5222_v47  ;;  %v5256_v28 = vcombine.high %v5233_v56, %v5240_v59  ;;  %v5255_v34 = vcombine.low %v5233_v56, %v5240_v59  ;;  %v1697_v9 = vrot.slane %v1675_v55, %v25109_v12  ;;  %v1704_v54 = vrot.slane %v1676_v16, %v25109_v12 }
  0xbe   :  { %8109 = vmatmul.mubr.f32.gmra.mxu0 %v5221_v48  ;;  %v5258_v35 = vcombine.high %v5247_v13, %v5254_v57  ;;  %v5257_v44 = vcombine.low %v5247_v13, %v5254_v57  ;;  %v1717_v41 = vrot.slane %v24838_v15, %v25109_v12  ;;  %v1724_v26 = vrot.slane %v24840_v25, %v25109_v12 }
  0xbf   :  { %v5272_v5 = vrot.slane %v5256_v28, %v25109_v12  ;;  %v5265_v8 = vrot.slane %v5255_v34, %v25109_v12  ;;  %v5289_v17 = vcombine.low %v1683_v60, %v1697_v9  ;;  %v23443_v19 = vcombine.high %v1683_v60, %v1697_v9 }
  0xc0   :  { %v5286_v30 = vrot.slane %v5258_v35, %v25109_v12  ;;  %v5279_v61 = vrot.slane %v5257_v44, %v25109_v12  ;;  %v5291_v10 = vcombine.low %v1690_v58, %v1704_v54  ;;  %v23444_v33 = vcombine.high %v1690_v58, %v1704_v54 }
  0xc1   :  { %v5299_v6 = vrot.slane %v5289_v17, %v25109_v12  ;;  %v5306_v3 = vrot.slane %v23443_v19, %v25109_v12  ;;  %v1725_v20 = vcombine.high %v1717_v41, %v1717_v41  ;;  %v1726_v0 = vcombine.high %v1724_v26, %v1724_v26 }
  0xc2   :  { %v5288_v18 = vcombine.low %v5272_v5, %v5286_v30  ;;  %v5287_v29 = vcombine.low %v5265_v8, %v5279_v61  ;;  %v5313_v36 = vrot.slane %v5291_v10, %v25109_v12  ;;  %v5320_v11 = vrot.slane %v23444_v33, %v25109_v12  ;;  %v24847_v10 = vld [vmem:[%s33925_s0 + $0x1f0] ss:$8 sps:$4 sm:$0xff]   ;;  %v24849_v33 = vld [vmem:[%s33925_s0 + $0x1f4] ss:$8 sps:$4 sm:$0x77]  }
  0xc3   :  { %v5322_v52 = vcombine.high %v5299_v6, %v5306_v3  ;;  %v5321_v7 = vcombine.low %v5299_v6, %v5306_v3  ;;  %v1733_v23 = vrot.slane %v1717_v41, %v25109_v12  ;;  %v1740_v31 = vrot.slane %v1724_v26, %v25109_v12 }
  0xc4   :  { %23479 = vmatprep.mubr.msk.f32.mxu0 %vm7786_vm0, %v5288_v18  ;;  %v5324_v63 = vcombine.high %v5313_v36, %v5320_v11  ;;  %v5323_v14 = vcombine.low %v5313_v36, %v5320_v11  ;;  %v1747_v37 = vrot.slane %v1725_v20, %v25109_v12  ;;  %v1754_v42 = vrot.slane %v1726_v0, %v25109_v12 }
  0xc5   :  { %8114 = vmatmul.mubr.f32.gmra.mxu0 %v5287_v29  ;;  %v5338_v4 = vrot.slane %v5322_v52, %v25109_v12  ;;  %v5331_v38 = vrot.slane %v5321_v7, %v25109_v12  ;;  %v1767_v39 = vrot.slane %v24841_v53, %v25109_v12  ;;  %v1774_v46 = vrot.slane %v24843_v2, %v25109_v12 }
  0xc6   :  { %v5352_v24 = vrot.slane %v5324_v63, %v25109_v12  ;;  %v5345_v62 = vrot.slane %v5323_v14, %v25109_v12  ;;  %v5355_v49 = vcombine.low %v1733_v23, %v1747_v37  ;;  %v23445_v50 = vcombine.high %v1733_v23, %v1747_v37 }
  0xc7   :  { %v5357_v27 = vcombine.low %v1740_v31, %v1754_v42  ;;  %v23446_v32 = vcombine.high %v1740_v31, %v1754_v42  ;;  %v1775_v43 = vcombine.high %v1767_v39, %v1767_v39  ;;  %v1776_v45 = vcombine.high %v1774_v46, %v1774_v46 }
  0xc8   :  { %v5354_v21 = vcombine.low %v5338_v4, %v5352_v24  ;;  %v5353_v51 = vcombine.low %v5331_v38, %v5345_v62  ;;  %v5365_v55 = vrot.slane %v5355_v49, %v25109_v12  ;;  %v5372_v16 = vrot.slane %v23445_v50, %v25109_v12  ;;  %v24850_v49 = vld [vmem:[%s33925_s0 + $0x200] ss:$8 sps:$4 sm:$0xff]  }
  0xc9   :  { %v5379_v15 = vrot.slane %v5357_v27, %v25109_v12  ;;  %v5386_v25 = vrot.slane %v23446_v32, %v25109_v12  ;;  %v1783_v47 = vrot.slane %v1767_v39, %v25109_v12  ;;  %v1790_v48 = vrot.slane %v1774_v46, %v25109_v12 }
  0xca   :  { %23480 = vmatprep.mubr.msk.f32.mxu0 %vm7786_vm0, %v5354_v21  ;;  %v5388_v56 = vcombine.high %v5365_v55, %v5372_v16  ;;  %v5387_v59 = vcombine.low %v5365_v55, %v5372_v16  ;;  %v1797_v13 = vrot.slane %v1775_v43, %v25109_v12  ;;  %v1804_v57 = vrot.slane %v1776_v45, %v25109_v12 }
  0xcb   :  { %8119 = vmatmul.mubr.f32.gmra.mxu0 %v5353_v51  ;;  %v5390_v60 = vcombine.high %v5379_v15, %v5386_v25  ;;  %v5389_v58 = vcombine.low %v5379_v15, %v5386_v25  ;;  %v1817_v28 = vrot.slane %v24844_v22, %v25109_v12  ;;  %v1824_v34 = vrot.slane %v24846_v40, %v25109_v12  ;;  %v24852_v25 = vld [vmem:[%s33925_s0 + $0x204] ss:$8 sps:$4 sm:$0xff]  }
  0xcc   :  { %v5404_v9 = vrot.slane %v5388_v56, %v25109_v12  ;;  %v5397_v54 = vrot.slane %v5387_v59, %v25109_v12  ;;  %v5421_v35 = vcombine.low %v1783_v47, %v1797_v13  ;;  %v23447_v44 = vcombine.high %v1783_v47, %v1797_v13 }
  0xcd   :  { %v5418_v41 = vrot.slane %v5390_v60, %v25109_v12  ;;  %v5411_v26 = vrot.slane %v5389_v58, %v25109_v12  ;;  %v5423_v5 = vcombine.low %v1790_v48, %v1804_v57  ;;  %v23448_v8 = vcombine.high %v1790_v48, %v1804_v57 }
  0xce   :  { %v5431_v17 = vrot.slane %v5421_v35, %v25109_v12  ;;  %v5438_v19 = vrot.slane %v23447_v44, %v25109_v12  ;;  %v1825_v30 = vcombine.high %v1817_v28, %v1817_v28  ;;  %v1826_v61 = vcombine.high %v1824_v34, %v1824_v34  ;;  %v24853_v35 = vld [vmem:[%s33925_s0 + $0x210] ss:$8 sps:$4 sm:$0xff]  }
  0xcf   :  { %v5420_v6 = vcombine.low %v5404_v9, %v5418_v41  ;;  %v5419_v3 = vcombine.low %v5397_v54, %v5411_v26  ;;  %v5445_v20 = vrot.slane %v5423_v5, %v25109_v12  ;;  %v5452_v0 = vrot.slane %v23448_v8, %v25109_v12 }
  0xd0   :  { %v5454_v53 = vcombine.high %v5431_v17, %v5438_v19  ;;  %v5453_v2 = vcombine.low %v5431_v17, %v5438_v19  ;;  %v1833_v18 = vrot.slane %v1817_v28, %v25109_v12  ;;  %v1840_v29 = vrot.slane %v1824_v34, %v25109_v12 }
  0xd1   :  { %23481 = vmatprep.mubr.msk.f32.mxu0 %vm7786_vm0, %v5420_v6  ;;  %v5456_v36 = vcombine.high %v5445_v20, %v5452_v0  ;;  %v5455_v11 = vcombine.low %v5445_v20, %v5452_v0  ;;  %v1847_v52 = vrot.slane %v1825_v30, %v25109_v12  ;;  %v1854_v7 = vrot.slane %v1826_v61, %v25109_v12 }
  0xd2   :  { %8124 = vmatmul.mubr.f32.gmra.mxu0 %v5419_v3  ;;  %v5470_v23 = vrot.slane %v5454_v53, %v25109_v12  ;;  %v5463_v31 = vrot.slane %v5453_v2, %v25109_v12  ;;  %v1867_v63 = vrot.slane %v24847_v10, %v25109_v12  ;;  %v1874_v14 = vrot.slane %v24849_v33, %v25109_v12  ;;  %v24855_v3 = vld [vmem:[%s33925_s0 + $0x214] ss:$8 sps:$4 sm:$0xff]  }
  0xd3   :  { %v5484_v37 = vrot.slane %v5456_v36, %v25109_v12  ;;  %v5477_v42 = vrot.slane %v5455_v11, %v25109_v12  ;;  %v5487_v4 = vcombine.low %v1833_v18, %v1847_v52  ;;  %v23449_v38 = vcombine.high %v1833_v18, %v1847_v52 }
  0xd4   :  { %v5489_v39 = vcombine.low %v1840_v29, %v1854_v7  ;;  %v23450_v46 = vcombine.high %v1840_v29, %v1854_v7  ;;  %v1875_v24 = vcombine.high %v1867_v63, %v1867_v63  ;;  %v1876_v62 = vcombine.high %v1874_v14, %v1874_v14 }
  0xd5   :  { %v5486_v50 = vcombine.low %v5470_v23, %v5484_v37  ;;  %v5485_v27 = vcombine.low %v5463_v31, %v5477_v42  ;;  %v5497_v32 = vrot.slane %v5487_v4, %v25109_v12  ;;  %v5504_v43 = vrot.slane %v23449_v38, %v25109_v12 }
  0xd6   :  { %v5511_v45 = vrot.slane %v5489_v39, %v25109_v12  ;;  %v5518_v22 = vrot.slane %v23450_v46, %v25109_v12  ;;  %v1883_v40 = vrot.slane %v1867_v63, %v25109_v12  ;;  %v1890_v21 = vrot.slane %v1874_v14, %v25109_v12 }
  0xd7   :  { %23482 = vmatprep.mubr.msk.f32.mxu0 %vm7786_vm0, %v5486_v50  ;;  %v5520_v51 = vcombine.high %v5497_v32, %v5504_v43  ;;  %v5519_v55 = vcombine.low %v5497_v32, %v5504_v43  ;;  %v1897_v16 = vrot.slane %v1875_v24, %v25109_v12  ;;  %v1904_v15 = vrot.slane %v1876_v62, %v25109_v12  ;;  %v24856_v24 = vld [vmem:[%s33925_s0 + $0x220] ss:$8 sps:$4 sm:$0xff]  }
  0xd8   :  { %8129 = vmatmul.mubr.f32.gmra.mxu0 %v5485_v27  ;;  %v5522_v47 = vcombine.high %v5511_v45, %v5518_v22  ;;  %v5521_v48 = vcombine.low %v5511_v45, %v5518_v22  ;;  %v1906_v56 = vcombine.high %v1890_v21, %v1890_v21  ;;  %v1916_v59 = vrot.slane %v24850_v49, %v25109_v12 }
  0xd9   :  { %v5536_v13 = vrot.slane %v5520_v51, %v25109_v12  ;;  %v5529_v57 = vrot.slane %v5519_v55, %v25109_v12  ;;  %v5553_v60 = vcombine.low %v1883_v40, %v1897_v16  ;;  %v23451_v58 = vcombine.high %v1883_v40, %v1897_v16 }
  0xda   :  { %v5550_v28 = vrot.slane %v5522_v47, %v25109_v12  ;;  %v5543_v34 = vrot.slane %v5521_v48, %v25109_v12  ;;  %v1932_v9 = vrot.slane %v1916_v59, %v25109_v12  ;;  %v5555_v54 = vcombine.low %v1890_v21, %v1904_v15  ;;  %v24858_v48 = vld [vmem:[%s33925_s0 + $0x224] ss:$8 sps:$4 sm:$0xff]  }
  0xdb   :  { %v5563_v44 = vrot.slane %v5553_v60, %v25109_v12  ;;  %v5570_v41 = vrot.slane %v23451_v58, %v25109_v12  ;;  %v1923_v26 = vrot.slane %v24852_v25, %v25109_v12  ;;  %v1924_v5 = vcombine.high %v1916_v59, %v1916_v59 }
  0xdc   :  { %v5552_v8 = vcombine.low %v5536_v13, %v5550_v28  ;;  %v5551_v17 = vcombine.low %v5529_v57, %v5543_v34  ;;  %v5556_v19 = vcombine.low %v1906_v56, %v1932_v9  ;;  %v5577_v30 = vrot.slane %v5555_v54, %v25109_v12 }
  0xdd   :  { %v5586_v61 = vcombine.high %v5563_v44, %v5570_v41  ;;  %v5585_v10 = vcombine.low %v5563_v44, %v5570_v41  ;;  %v1925_v33 = vcombine.high %v1923_v26, %v1923_v26  ;;  %v1939_v6 = vrot.slane %v1923_v26, %v25109_v12  ;;  %v24859_v41 = vld [vmem:[%s33925_s0 + $0x230] ss:$8 sps:$4 sm:$0xff]  }
  0xde   :  { %23483 = vmatprep.mubr.msk.f32.mxu0 %vm7786_vm0, %v5552_v8  ;;  %v5584_v20 = vrot.slane %v5556_v19, %v25109_v12  ;;  %v1946_v0 = vrot.slane %v1924_v5, %v25109_v12  ;;  %v1954_v53 = vcombine.high %v1932_v9, %v1932_v9  ;;  %v1966_v2 = vrot.slane %v24853_v35, %v25109_v12 }
  0xdf   :  { %8134 = vmatmul.mubr.f32.gmra.mxu0 %v5551_v17  ;;  %v5602_v18 = vrot.slane %v5586_v61, %v25109_v12  ;;  %v5595_v29 = vrot.slane %v5585_v10, %v25109_v12  ;;  %v1953_v36 = vrot.slane %v1925_v33, %v25109_v12  ;;  %v1955_v11 = vcombine.high %v1939_v6, %v1939_v6 }
  0xe0   :  { %v5588_v52 = vcombine.high %v5577_v30, %v5584_v20  ;;  %v5587_v7 = vcombine.low %v5577_v30, %v5584_v20  ;;  %v1956_v23 = vcombine.high %v1946_v0, %v1946_v0  ;;  %v1982_v31 = vrot.slane %v1966_v2, %v25109_v12 }
  0xe1   :  { %v1957_v63 = vcombine.high %v1953_v36, %v1953_v36  ;;  %v5619_v14 = vcombine.low %v1946_v0, %v1954_v53  ;;  %v5621_v37 = vcombine.low %v1953_v36, %v1955_v11  ;;  %v1973_v42 = vrot.slane %v24855_v3, %v25109_v12 }
  0xe2   :  { %v5616_v4 = vrot.slane %v5588_v52, %v25109_v12  ;;  %v5609_v38 = vrot.slane %v5587_v7, %v25109_v12  ;;  %v5620_v39 = vcombine.low %v1956_v23, %v1939_v6  ;;  %v1974_v46 = vcombine.high %v1966_v2, %v1966_v2 }
  0xe3   :  { %v5622_v62 = vcombine.low %v1957_v63, %v1982_v31  ;;  %v5629_v49 = vrot.slane %v5619_v14, %v25109_v12  ;;  %v5643_v50 = vrot.slane %v5621_v37, %v25109_v12  ;;  %v1975_v27 = vcombine.high %v1973_v42, %v1973_v42 }
  0xe4   :  { %v5618_v32 = vcombine.low %v5602_v18, %v5616_v4  ;;  %v5617_v43 = vcombine.low %v5595_v29, %v5609_v38  ;;  %v5636_v45 = vrot.slane %v5620_v39, %v25109_v12  ;;  %v1989_v22 = vrot.slane %v1973_v42, %v25109_v12  ;;  %v24861_v29 = vld [vmem:[%s33925_s0 + $0x234] ss:$8 sps:$4 sm:$0xff]   ;;  %v24862_v39 = vld [vmem:[%s33925_s0 + $0x240] ss:$8 sps:$4 sm:$0xff]  }
  0xe5   :  { %v5650_v40 = vrot.slane %v5622_v62, %v25109_v12  ;;  %v1996_v21 = vrot.slane %v1974_v46, %v25109_v12  ;;  %v2003_v51 = vrot.slane %v1975_v27, %v25109_v12  ;;  %v2004_v55 = vcombine.high %v1982_v31, %v1982_v31 }
  0xe6   :  { %23484 = vmatprep.mubr.msk.f32.mxu0 %vm7786_vm0, %v5618_v32  ;;  %v5652_v16 = vcombine.high %v5629_v49, %v5636_v45  ;;  %v5651_v15 = vcombine.low %v5629_v49, %v5636_v45  ;;  %v2005_v25 = vcombine.high %v1989_v22, %v1989_v22  ;;  %v2016_v47 = vrot.slane %v24856_v24, %v25109_v12 }
  0xe7   :  { %8139 = vmatmul.mubr.f32.gmra.mxu0 %v5617_v43  ;;  %v5654_v56 = vcombine.high %v5643_v50, %v5650_v40  ;;  %v5653_v59 = vcombine.low %v5643_v50, %v5650_v40  ;;  %v2006_v13 = vcombine.high %v1996_v21, %v1996_v21  ;;  %v2007_v57 = vcombine.high %v2003_v51, %v2003_v51 }
  0xe8   :  { %v5668_v60 = vrot.slane %v5652_v16, %v25109_v12  ;;  %v5661_v58 = vrot.slane %v5651_v15, %v25109_v12  ;;  %v2032_v28 = vrot.slane %v2016_v47, %v25109_v12  ;;  %v5685_v34 = vcombine.low %v1996_v21, %v2004_v55 }
  0xe9   :  { %v5682_v9 = vrot.slane %v5654_v56, %v25109_v12  ;;  %v5675_v54 = vrot.slane %v5653_v59, %v25109_v12  ;;  %v5686_v35 = vcombine.low %v2006_v13, %v1989_v22  ;;  %v5687_v44 = vcombine.low %v2003_v51, %v2005_v25  ;;  %v24864_v59 = vld [vmem:[%s33925_s0 + $0x244] ss:$8 sps:$4 sm:$0xff]  }
  0xea   :  { %v5688_v26 = vcombine.low %v2007_v57, %v2032_v28  ;;  %v5695_v5 = vrot.slane %v5685_v34, %v25109_v12  ;;  %v2023_v8 = vrot.slane %v24858_v48, %v25109_v12  ;;  %v2024_v17 = vcombine.high %v2016_v47, %v2016_v47 }
  0xeb   :  { %v5684_v19 = vcombine.low %v5668_v60, %v5682_v9  ;;  %v5683_v30 = vcombine.low %v5661_v58, %v5675_v54  ;;  %v5702_v61 = vrot.slane %v5686_v35, %v25109_v12  ;;  %v5709_v10 = vrot.slane %v5687_v44, %v25109_v12 }
  0xec   :  { %v5716_v33 = vrot.slane %v5688_v26, %v25109_v12  ;;  %v2025_v6 = vcombine.high %v2023_v8, %v2023_v8  ;;  %v2039_v3 = vrot.slane %v2023_v8, %v25109_v12  ;;  %v2046_v20 = vrot.slane %v2024_v17, %v25109_v12 }
  0xed   :  { %23485 = vmatprep.mubr.msk.f32.mxu0 %vm7786_vm0, %v5684_v19  ;;  %v5718_v0 = vcombine.high %v5695_v5, %v5702_v61  ;;  %v5717_v53 = vcombine.low %v5695_v5, %v5702_v61  ;;  %v2054_v2 = vcombine.high %v2032_v28, %v2032_v28  ;;  %v2066_v18 = vrot.slane %v24859_v41, %v25109_v12  ;;  %v24865_v5 = vld [vmem:[%s33925_s0 + $0x250] ss:$8 sps:$4 sm:$0xff]  }
  0xee   :  { %8144 = vmatmul.mubr.f32.gmra.mxu0 %v5683_v30  ;;  %v5720_v36 = vcombine.high %v5709_v10, %v5716_v33  ;;  %v5719_v11 = vcombine.low %v5709_v10, %v5716_v33  ;;  %v2053_v52 = vrot.slane %v2025_v6, %v25109_v12  ;;  %v2055_v7 = vcombine.high %v2039_v3, %v2039_v3 }
  0xef   :  { %v5734_v23 = vrot.slane %v5718_v0, %v25109_v12  ;;  %v5727_v31 = vrot.slane %v5717_v53, %v25109_v12  ;;  %v2056_v63 = vcombine.high %v2046_v20, %v2046_v20  ;;  %v2082_v14 = vrot.slane %v2066_v18, %v25109_v12 }
  0xf0   :  { %v5748_v37 = vrot.slane %v5720_v36, %v25109_v12  ;;  %v5741_v42 = vrot.slane %v5719_v11, %v25109_v12  ;;  %v2057_v4 = vcombine.high %v2053_v52, %v2053_v52  ;;  %v5751_v38 = vcombine.low %v2046_v20, %v2054_v2  ;;  %v24867_v11 = vld [vmem:[%s33925_s0 + $0x254] ss:$8 sps:$4 sm:$0xff]  }
  0xf1   :  { %v5752_v46 = vcombine.low %v2056_v63, %v2039_v3  ;;  %v5753_v24 = vcombine.low %v2053_v52, %v2055_v7  ;;  %v2073_v62 = vrot.slane %v24861_v29, %v25109_v12  ;;  %v2074_v49 = vcombine.high %v2066_v18, %v2066_v18 }
  0xf2   :  { %v5750_v50 = vcombine.low %v5734_v23, %v5748_v37  ;;  %v5749_v27 = vcombine.low %v5727_v31, %v5741_v42  ;;  %v5754_v32 = vcombine.low %v2057_v4, %v2082_v14  ;;  %v5761_v43 = vrot.slane %v5751_v38, %v25109_v12 }
  0xf3   :  { %v5768_v45 = vrot.slane %v5752_v46, %v25109_v12  ;;  %v5775_v22 = vrot.slane %v5753_v24, %v25109_v12  ;;  %v2075_v40 = vcombine.high %v2073_v62, %v2073_v62  ;;  %v2089_v21 = vrot.slane %v2073_v62, %v25109_v12  ;;  %v24868_v24 = vld [vmem:[%s33925_s0 + $0x260] ss:$8 sps:$4 sm:$0xff]  }
  0xf4   :  { %23486 = vmatprep.mubr.msk.f32.mxu0 %vm7786_vm0, %v5750_v50  ;;  %v5782_v51 = vrot.slane %v5754_v32, %v25109_v12  ;;  %v2096_v55 = vrot.slane %v2074_v49, %v25109_v12  ;;  %v2104_v16 = vcombine.high %v2082_v14, %v2082_v14  ;;  %v2116_v15 = vrot.slane %v24862_v39, %v25109_v12 }
  0xf5   :  { %8149 = vmatmul.mubr.f32.gmra.mxu0 %v5749_v27  ;;  %v5784_v25 = vcombine.high %v5761_v43, %v5768_v45  ;;  %v5783_v47 = vcombine.low %v5761_v43, %v5768_v45  ;;  %v2103_v48 = vrot.slane %v2075_v40, %v25109_v12  ;;  %v2105_v56 = vcombine.high %v2089_v21, %v2089_v21 }
  0xf6   :  { %v5786_v13 = vcombine.high %v5775_v22, %v5782_v51  ;;  %v5785_v57 = vcombine.low %v5775_v22, %v5782_v51  ;;  %v2106_v60 = vcombine.high %v2096_v55, %v2096_v55  ;;  %v2132_v58 = vrot.slane %v2116_v15, %v25109_v12 }
  0xf7   :  { %v5800_v28 = vrot.slane %v5784_v25, %v25109_v12  ;;  %v5793_v34 = vrot.slane %v5783_v47, %v25109_v12  ;;  %v2107_v9 = vcombine.high %v2103_v48, %v2103_v48  ;;  %v5817_v54 = vcombine.low %v2096_v55, %v2104_v16 }
  0xf8   :  { %v5814_v35 = vrot.slane %v5786_v13, %v25109_v12  ;;  %v5807_v44 = vrot.slane %v5785_v57, %v25109_v12  ;;  %v5818_v41 = vcombine.low %v2106_v60, %v2089_v21  ;;  %v5819_v26 = vcombine.low %v2103_v48, %v2105_v56 }
  0xf9   :  { %v5820_v8 = vcombine.low %v2107_v9, %v2132_v58  ;;  %v5827_v17 = vrot.slane %v5817_v54, %v25109_v12  ;;  %v2123_v19 = vrot.slane %v24864_v59, %v25109_v12  ;;  %v2124_v30 = vcombine.high %v2116_v15, %v2116_v15 }
  0xfa   :  { %v5816_v61 = vcombine.low %v5800_v28, %v5814_v35  ;;  %v5815_v10 = vcombine.low %v5793_v34, %v5807_v44  ;;  %v5834_v33 = vrot.slane %v5818_v41, %v25109_v12  ;;  %v5841_v6 = vrot.slane %v5819_v26, %v25109_v12 }
  0xfb   :  { %v5848_v3 = vrot.slane %v5820_v8, %v25109_v12  ;;  %v2125_v20 = vcombine.high %v2123_v19, %v2123_v19  ;;  %v2139_v0 = vrot.slane %v2123_v19, %v25109_v12  ;;  %v2146_v53 = vrot.slane %v2124_v30, %v25109_v12 }
  0xfc   :  { %23487 = vmatprep.mubr.msk.f32.mxu0 %vm7786_vm0, %v5816_v61  ;;  %v5850_v2 = vcombine.high %v5827_v17, %v5834_v33  ;;  %v5849_v18 = vcombine.low %v5827_v17, %v5834_v33  ;;  %v2154_v29 = vcombine.high %v2132_v58, %v2132_v58  ;;  %v2166_v36 = vrot.slane %v24865_v5, %v25109_v12  ;;  %v24870_v58 = vld [vmem:[%s33925_s0 + $0x264] ss:$8 sps:$4 sm:$0xff]   ;;  %v24871_v61 = vld [vmem:[%s33925_s0 + $0x270] ss:$8 sps:$4 sm:$0xff]  }
  0xfd   :  { %8154 = vmatmul.mubr.f32.gmra.mxu0 %v5815_v10  ;;  %v5852_v52 = vcombine.high %v5841_v6, %v5848_v3  ;;  %v5851_v7 = vcombine.low %v5841_v6, %v5848_v3  ;;  %v2153_v23 = vrot.slane %v2125_v20, %v25109_v12  ;;  %v2155_v31 = vcombine.high %v2139_v0, %v2139_v0 }
  0xfe   :  { %v5866_v63 = vrot.slane %v5850_v2, %v25109_v12  ;;  %v5859_v14 = vrot.slane %v5849_v18, %v25109_v12  ;;  %v2156_v37 = vcombine.high %v2146_v53, %v2146_v53  ;;  %v2182_v42 = vrot.slane %v2166_v36, %v25109_v12 }
  0xff   :  { %v5880_v4 = vrot.slane %v5852_v52, %v25109_v12  ;;  %v5873_v38 = vrot.slane %v5851_v7, %v25109_v12  ;;  %v2157_v39 = vcombine.high %v2153_v23, %v2153_v23  ;;  %v5883_v46 = vcombine.low %v2146_v53, %v2154_v29 }
 0x100   :  { %v5884_v62 = vcombine.low %v2156_v37, %v2139_v0  ;;  %v5885_v49 = vcombine.low %v2153_v23, %v2155_v31  ;;  %v2173_v50 = vrot.slane %v24867_v11, %v25109_v12  ;;  %v2174_v27 = vcombine.high %v2166_v36, %v2166_v36  ;;  %v24873_v37 = vld [vmem:[%s33925_s0 + $0x274] ss:$8 sps:$4 sm:$0xff]  }
 0x101   :  { %v5882_v32 = vcombine.low %v5866_v63, %v5880_v4  ;;  %v5881_v43 = vcombine.low %v5859_v14, %v5873_v38  ;;  %v5886_v45 = vcombine.low %v2157_v39, %v2182_v42  ;;  %v5893_v22 = vrot.slane %v5883_v46, %v25109_v12  ;;  %v26217_v40 = vpop.f32.mrf.mxu0 }
 0x102   :  { %v5900_v21 = vrot.slane %v5884_v62, %v25109_v12  ;;  %v5907_v51 = vrot.slane %v5885_v49, %v25109_v12  ;;  %v2175_v55 = vcombine.high %v2173_v50, %v2173_v50  ;;  %v2189_v16 = vrot.slane %v2173_v50, %v25109_v12 }
 0x103   :  { %23488 = vmatprep.mubr.msk.f32.mxu0 %vm7786_vm0, %v5882_v32  ;;  %v5914_v15 = vrot.slane %v5886_v45, %v25109_v12  ;;  %v2196_v25 = vrot.slane %v2174_v27, %v25109_v12  ;;  %v2204_v47 = vcombine.high %v2182_v42, %v2182_v42  ;;  %v2216_v48 = vrot.slane %v24868_v24, %v25109_v12  ;;  %v7987_v56 = vpop.f32.mrf.mxu0 }
 0x104   :  { %8159 = vmatmul.mubr.f32.gmra.mxu0 %v5881_v43  ;;  %v5916_v59 = vcombine.high %v5893_v22, %v5900_v21  ;;  %v5915_v13 = vcombine.low %v5893_v22, %v5900_v21  ;;  %v2203_v57 = vrot.slane %v2175_v55, %v25109_v12  ;;  %v2205_v60 = vcombine.high %v2189_v16, %v2189_v16  ;;  %v24874_v21 = vld [vmem:[%s33925_s0 + $0x280] ss:$8 sps:$4 sm:$0xff]  }
 0x105   :  { %v5918_v28 = vcombine.high %v5907_v51, %v5914_v15  ;;  %v5917_v34 = vcombine.low %v5907_v51, %v5914_v15  ;;  %v2206_v9 = vcombine.high %v2196_v25, %v2196_v25  ;;  %v2232_v54 = vrot.slane %v2216_v48, %v25109_v12  ;;  %v26231_v35 = vpop.f32.mrf.mxu0 }
 0x106   :  { %v5932_v44 = vrot.slane %v5916_v59, %v25109_v12  ;;  %v5925_v41 = vrot.slane %v5915_v13, %v25109_v12  ;;  %v2207_v26 = vcombine.high %v2203_v57, %v2203_v57  ;;  %v5949_v5 = vcombine.low %v2196_v25, %v2204_v47 }
 0x107   :  { %v5946_v8 = vrot.slane %v5918_v28, %v25109_v12  ;;  %v5939_v17 = vrot.slane %v5917_v34, %v25109_v12  ;;  %v5950_v19 = vcombine.low %v2206_v9, %v2189_v16  ;;  %v5951_v30 = vcombine.low %v2203_v57, %v2205_v60  ;;  %v7992_v10 = vpop.f32.mrf.mxu0 }
 0x108   :  { %v5952_v33 = vcombine.low %v2207_v26, %v2232_v54  ;;  %v5959_v6 = vrot.slane %v5949_v5, %v25109_v12  ;;  %v2223_v3 = vrot.slane %v24870_v58, %v25109_v12  ;;  %v2224_v20 = vcombine.high %v2216_v48, %v2216_v48 }
 0x109   :  { %v5948_v0 = vcombine.low %v5932_v44, %v5946_v8  ;;  %v5947_v53 = vcombine.low %v5925_v41, %v5939_v17  ;;  %v5966_v2 = vrot.slane %v5950_v19, %v25109_v12  ;;  %v5973_v18 = vrot.slane %v5951_v30, %v25109_v12  ;;  %v26244_v29 = vpop.f32.mrf.mxu0  ;;  %v24876_v17 = vld [vmem:[%s33925_s0 + $0x284] ss:$8 sps:$4 sm:$0xff]  }
 0x10a   :  { %v5980_v36 = vrot.slane %v5952_v33, %v25109_v12  ;;  %v2225_v11 = vcombine.high %v2223_v3, %v2223_v3  ;;  %v2239_v52 = vrot.slane %v2223_v3, %v25109_v12  ;;  %v2246_v7 = vrot.slane %v2224_v20, %v25109_v12 }
 0x10b   :  { %23489 = vmatprep.mubr.msk.f32.mxu0 %vm7786_vm0, %v5948_v0  ;;  %v5982_v23 = vcombine.high %v5959_v6, %v5966_v2  ;;  %v5981_v31 = vcombine.low %v5959_v6, %v5966_v2  ;;  %v2254_v63 = vcombine.high %v2232_v54, %v2232_v54  ;;  %v2266_v14 = vrot.slane %v24871_v61, %v25109_v12  ;;  %v7997_v42 = vpop.f32.mrf.mxu0 }
 0x10c   :  { %8164 = vmatmul.mubr.f32.gmra.mxu0 %v5947_v53  ;;  %v5984_v4 = vcombine.high %v5973_v18, %v5980_v36  ;;  %v5983_v38 = vcombine.low %v5973_v18, %v5980_v36  ;;  %v2253_v39 = vrot.slane %v2225_v11, %v25109_v12  ;;  %v2255_v46 = vcombine.high %v2239_v52, %v2239_v52  ;;  %v24877_v11 = vld [vmem:[%s33925_s0 + $0x290] ss:$8 sps:$4 sm:$0xff]  }
 0x10d   :  { %v5998_v24 = vrot.slane %v5982_v23, %v25109_v12  ;;  %v5991_v62 = vrot.slane %v5981_v31, %v25109_v12  ;;  %v2256_v49 = vcombine.high %v2246_v7, %v2246_v7  ;;  %v2282_v50 = vrot.slane %v2266_v14, %v25109_v12  ;;  %v26258_v27 = vpop.f32.mrf.mxu0 }
 0x10e   :  { %v6012_v32 = vrot.slane %v5984_v4, %v25109_v12  ;;  %v6005_v43 = vrot.slane %v5983_v38, %v25109_v12  ;;  %v2257_v45 = vcombine.high %v2253_v39, %v2253_v39  ;;  %v6015_v22 = vcombine.low %v2246_v7, %v2254_v63 }
 0x10f   :  { %v6016_v51 = vcombine.low %v2256_v49, %v2239_v52  ;;  %v6017_v55 = vcombine.low %v2253_v39, %v2255_v46  ;;  %v2273_v16 = vrot.slane %v24873_v37, %v25109_v12  ;;  %v2274_v15 = vcombine.high %v2266_v14, %v2266_v14  ;;  %v8002_v25 = vpop.f32.mrf.mxu0 }
 0x110   :  { %v6014_v47 = vcombine.low %v5998_v24, %v6012_v32  ;;  %v6013_v48 = vcombine.low %v5991_v62, %v6005_v43  ;;  %v6018_v56 = vcombine.low %v2257_v45, %v2282_v50  ;;  %v6025_v59 = vrot.slane %v6015_v22, %v25109_v12  ;;  %v24879_v32 = vld [vmem:[%s33925_s0 + $0x294] ss:$8 sps:$4 sm:$0xff]  }
 0x111   :  { %v6032_v13 = vrot.slane %v6016_v51, %v25109_v12  ;;  %v6039_v57 = vrot.slane %v6017_v55, %v25109_v12  ;;  %v2275_v60 = vcombine.high %v2273_v16, %v2273_v16  ;;  %v2289_v58 = vrot.slane %v2273_v16, %v25109_v12  ;;  %v26274_v44 = vpop.f32.mrf.mxu0 }
 0x112   :  { %23490 = vmatprep.mubr.msk.f32.mxu0 %vm7786_vm0, %v6014_v47  ;;  %v6046_v28 = vrot.slane %v6018_v56, %v25109_v12  ;;  %v2296_v34 = vrot.slane %v2274_v15, %v25109_v12  ;;  %v2304_v9 = vcombine.high %v2282_v50, %v2282_v50  ;;  %v2316_v54 = vrot.slane %v24874_v21, %v25109_v12 }
 0x113   :  { %8169 = vmatmul.mubr.f32.gmra.mxu0 %v6013_v48  ;;  %v6048_v41 = vcombine.high %v6025_v59, %v6032_v13  ;;  %v6047_v26 = vcombine.low %v6025_v59, %v6032_v13  ;;  %v2303_v5 = vrot.slane %v2275_v60, %v25109_v12  ;;  %v2305_v8 = vcombine.high %v2289_v58, %v2289_v58  ;;  %v8007_v33 = vpop.f32.mrf.mxu0  ;;  %v24880_v13 = vld [vmem:[%s33925_s0 + $0x2a0] ss:$8 sps:$4 sm:$0xff]  }
 0x114   :  { %v6050_v19 = vcombine.high %v6039_v57, %v6046_v28  ;;  %v6049_v30 = vcombine.low %v6039_v57, %v6046_v28  ;;  %v2306_v61 = vcombine.high %v2296_v34, %v2296_v34  ;;  %v2332_v10 = vrot.slane %v2316_v54, %v25109_v12 }
 0x115   :  { %v6064_v6 = vrot.slane %v6048_v41, %v25109_v12  ;;  %v6057_v3 = vrot.slane %v6047_v26, %v25109_v12  ;;  %v2307_v20 = vcombine.high %v2303_v5, %v2303_v5  ;;  %v6081_v0 = vcombine.low %v2296_v34, %v2304_v9  ;;  %v26304_v25 = vpop.f32.mrf.mxu0 }
 0x116   :  { %v6078_v53 = vrot.slane %v6050_v19, %v25109_v12  ;;  %v6071_v2 = vrot.slane %v6049_v30, %v25109_v12  ;;  %v6082_v18 = vcombine.low %v2306_v61, %v2289_v58  ;;  %v6083_v36 = vcombine.low %v2303_v5, %v2305_v8 }
 0x117   :  { %v6084_v52 = vcombine.low %v2307_v20, %v2332_v10  ;;  %v6091_v7 = vrot.slane %v6081_v0, %v25109_v12  ;;  %v2323_v23 = vrot.slane %v24876_v17, %v25109_v12  ;;  %v2324_v31 = vcombine.high %v2316_v54, %v2316_v54  ;;  %v8012_v34 = vpop.f32.mrf.mxu0 }
 0x118   :  { %v6080_v63 = vcombine.low %v6064_v6, %v6078_v53  ;;  %v6079_v14 = vcombine.low %v6057_v3, %v6071_v2  ;;  %v6098_v37 = vrot.slane %v6082_v18, %v25109_v12  ;;  %v6105_v42 = vrot.slane %v6083_v36, %v25109_v12  ;;  %v24882_v53 = vld [vmem:[%s33925_s0 + $0x2a4] ss:$8 sps:$4 sm:$0xff]  }
 0x119   :  { %v6112_v4 = vrot.slane %v6084_v52, %v25109_v12  ;;  %v2325_v38 = vcombine.high %v2323_v23, %v2323_v23  ;;  %v2339_v39 = vrot.slane %v2323_v23, %v25109_v12  ;;  %v2346_v46 = vrot.slane %v2324_v31, %v25109_v12 }
 0x11a   :  { %23491 = vmatprep.mubr.msk.f32.mxu0 %vm7786_vm0, %v6080_v63  ;;  %v6114_v24 = vcombine.high %v6091_v7, %v6098_v37  ;;  %v6113_v62 = vcombine.low %v6091_v7, %v6098_v37  ;;  %v2354_v49 = vcombine.high %v2332_v10, %v2332_v10  ;;  %v2366_v50 = vrot.slane %v24877_v11, %v25109_v12 }
 0x11b   :  { %8174 = vmatmul.mubr.f32.gmra.mxu0 %v6079_v14  ;;  %v6116_v43 = vcombine.high %v6105_v42, %v6112_v4  ;;  %v6115_v45 = vcombine.low %v6105_v42, %v6112_v4  ;;  %v2353_v22 = vrot.slane %v2325_v38, %v25109_v12  ;;  %v2355_v21 = vcombine.high %v2339_v39, %v2339_v39  ;;  %v24883_v4 = vld [vmem:[%s33925_s0 + $0x2b0] ss:$8 sps:$4 sm:$0xff]  }
 0x11c   :  { %v6130_v51 = vrot.slane %v6114_v24, %v25109_v12  ;;  %v6123_v55 = vrot.slane %v6113_v62, %v25109_v12  ;;  %v2356_v16 = vcombine.high %v2346_v46, %v2346_v46  ;;  %v2382_v15 = vrot.slane %v2366_v50, %v25109_v12 }
 0x11d   :  { %v6144_v47 = vrot.slane %v6116_v43, %v25109_v12  ;;  %v6137_v48 = vrot.slane %v6115_v45, %v25109_v12  ;;  %v2357_v56 = vcombine.high %v2353_v22, %v2353_v22  ;;  %v6147_v59 = vcombine.low %v2346_v46, %v2354_v49 }
 0x11e   :  { %v6148_v57 = vcombine.low %v2356_v16, %v2339_v39  ;;  %v6149_v60 = vcombine.low %v2353_v22, %v2355_v21  ;;  %v2373_v58 = vrot.slane %v24879_v32, %v25109_v12  ;;  %v2374_v28 = vcombine.high %v2366_v50, %v2366_v50 }
 0x11f   :  { %v6146_v9 = vcombine.low %v6130_v51, %v6144_v47  ;;  %v6145_v54 = vcombine.low %v6123_v55, %v6137_v48  ;;  %v6150_v41 = vcombine.low %v2357_v56, %v2382_v15  ;;  %v6157_v26 = vrot.slane %v6147_v59, %v25109_v12  ;;  %v24885_v47 = vld [vmem:[%s33925_s0 + $0x2b4] ss:$8 sps:$4 sm:$0xff]  }
 0x120   :  { %v6164_v5 = vrot.slane %v6148_v57, %v25109_v12  ;;  %v6171_v8 = vrot.slane %v6149_v60, %v25109_v12  ;;  %v2375_v17 = vcombine.high %v2373_v58, %v2373_v58  ;;  %v2389_v19 = vrot.slane %v2373_v58, %v25109_v12  ;;  %v26345_v57 = vpop.f32.mrf.mxu0 }
 0x121   :  { %23492 = vmatprep.mubr.msk.f32.mxu0 %vm7786_vm0, %v6146_v9  ;;  %v6178_v30 = vrot.slane %v6150_v41, %v25109_v12  ;;  %v2396_v61 = vrot.slane %v2374_v28, %v25109_v12  ;;  %v2404_v10 = vcombine.high %v2382_v15, %v2382_v15  ;;  %v2416_v33 = vrot.slane %v24880_v13, %v25109_v12 }
 0x122   :  { %8179 = vmatmul.mubr.f32.gmra.mxu0 %v6145_v54  ;;  %v6180_v6 = vcombine.high %v6157_v26, %v6164_v5  ;;  %v6179_v3 = vcombine.low %v6157_v26, %v6164_v5  ;;  %v2403_v20 = vrot.slane %v2375_v17, %v25109_v12  ;;  %v2405_v0 = vcombine.high %v2389_v19, %v2389_v19  ;;  %v24886_v5 = vld [vmem:[%s33925_s0 + $0x2c0] ss:$8 sps:$4 sm:$0xff]  }
 0x123   :  { %v6182_v2 = vcombine.high %v6171_v8, %v6178_v30  ;;  %v6181_v18 = vcombine.low %v6171_v8, %v6178_v30  ;;  %v2406_v36 = vcombine.high %v2396_v61, %v2396_v61  ;;  %v2432_v11 = vrot.slane %v2416_v33, %v25109_v12  ;;  %v8017_v8 = vpop.f32.mrf.mxu0 }
 0x124   :  { %v6196_v52 = vrot.slane %v6180_v6, %v25109_v12  ;;  %v6189_v7 = vrot.slane %v6179_v3, %v25109_v12  ;;  %v2407_v23 = vcombine.high %v2403_v20, %v2403_v20  ;;  %v6213_v31 = vcombine.low %v2396_v61, %v2404_v10 }
 0x125   :  { %v6210_v63 = vrot.slane %v6182_v2, %v25109_v12  ;;  %v6203_v14 = vrot.slane %v6181_v18, %v25109_v12  ;;  %v6214_v37 = vcombine.low %v2406_v36, %v2389_v19  ;;  %v6215_v42 = vcombine.low %v2403_v20, %v2405_v0 }
 0x126   :  { %v6216_v38 = vcombine.low %v2407_v23, %v2432_v11  ;;  %v6223_v39 = vrot.slane %v6213_v31, %v25109_v12  ;;  %v2423_v46 = vrot.slane %v24882_v53, %v25109_v12  ;;  %v2424_v24 = vcombine.high %v2416_v33, %v2416_v33 }
 0x127   :  { %v6212_v62 = vcombine.low %v6196_v52, %v6210_v63  ;;  %v6211_v49 = vcombine.low %v6189_v7, %v6203_v14  ;;  %v6230_v50 = vrot.slane %v6214_v37, %v25109_v12  ;;  %v6237_v32 = vrot.slane %v6215_v42, %v25109_v12  ;;  %v24888_v14 = vld [vmem:[%s33925_s0 + $0x2c4] ss:$8 sps:$4 sm:$0xff]  }
 0x128   :  { %v6244_v43 = vrot.slane %v6216_v38, %v25109_v12  ;;  %v2425_v45 = vcombine.high %v2423_v46, %v2423_v46  ;;  %v2439_v22 = vrot.slane %v2423_v46, %v25109_v12  ;;  %v2446_v21 = vrot.slane %v2424_v24, %v25109_v12 }
 0x129   :  { %23493 = vmatprep.mubr.msk.f32.mxu0 %vm7786_vm0, %v6212_v62  ;;  %v6246_v51 = vcombine.high %v6223_v39, %v6230_v50  ;;  %v6245_v55 = vcombine.low %v6223_v39, %v6230_v50  ;;  %v2454_v16 = vcombine.high %v2432_v11, %v2432_v11  ;;  %v2466_v15 = vrot.slane %v24883_v4, %v25109_v12 }
 0x12a   :  { %8184 = vmatmul.mubr.f32.gmra.mxu0 %v6211_v49  ;;  %v6248_v48 = vcombine.high %v6237_v32, %v6244_v43  ;;  %v6247_v56 = vcombine.low %v6237_v32, %v6244_v43  ;;  %v2453_v59 = vrot.slane %v2425_v45, %v25109_v12  ;;  %v2455_v13 = vcombine.high %v2439_v22, %v2439_v22  ;;  %v24889_v45 = vld [vmem:[%s33925_s0 + $0x2d0] ss:$8 sps:$4 sm:$0xff]  }
 0x12b   :  { %v6262_v60 = vrot.slane %v6246_v51, %v25109_v12  ;;  %v6255_v58 = vrot.slane %v6245_v55, %v25109_v12  ;;  %v2456_v28 = vcombine.high %v2446_v21, %v2446_v21  ;;  %v2482_v34 = vrot.slane %v2466_v15, %v25109_v12 }
 0x12c   :  { %v6276_v9 = vrot.slane %v6248_v48, %v25109_v12  ;;  %v6269_v54 = vrot.slane %v6247_v56, %v25109_v12  ;;  %v2457_v41 = vcombine.high %v2453_v59, %v2453_v59  ;;  %v6279_v26 = vcombine.low %v2446_v21, %v2454_v16 }
 0x12d   :  { %v6280_v17 = vcombine.low %v2456_v28, %v2439_v22  ;;  %v6281_v19 = vcombine.low %v2453_v59, %v2455_v13  ;;  %v2473_v30 = vrot.slane %v24885_v47, %v25109_v12  ;;  %v2474_v61 = vcombine.high %v2466_v15, %v2466_v15 }
 0x12e   :  { %v6278_v10 = vcombine.low %v6262_v60, %v6276_v9  ;;  %v6277_v33 = vcombine.low %v6255_v58, %v6269_v54  ;;  %v6282_v6 = vcombine.low %v2457_v41, %v2482_v34  ;;  %v6289_v3 = vrot.slane %v6279_v26, %v25109_v12  ;;  %v26383_v58 = vpop.f32.mrf.mxu0  ;;  %v24891_v41 = vld [vmem:[%s33925_s0 + $0x2d4] ss:$8 sps:$4 sm:$0xff]  }
 0x12f   :  { %v6296_v20 = vrot.slane %v6280_v17, %v25109_v12  ;;  %v6303_v0 = vrot.slane %v6281_v19, %v25109_v12  ;;  %v2475_v53 = vcombine.high %v2473_v30, %v2473_v30  ;;  %v2489_v2 = vrot.slane %v2473_v30, %v25109_v12 }
 0x130   :  { %23494 = vmatprep.mubr.msk.f32.mxu0 %vm7786_vm0, %v6278_v10  ;;  %v6310_v18 = vrot.slane %v6282_v6, %v25109_v12  ;;  %v2496_v36 = vrot.slane %v2474_v61, %v25109_v12  ;;  %v2504_v11 = vcombine.high %v2482_v34, %v2482_v34  ;;  %v2516_v52 = vrot.slane %v24886_v5, %v25109_v12  ;;  %v8022_v19 = vpop.f32.mrf.mxu0 }
 0x131   :  { %8189 = vmatmul.mubr.f32.gmra.mxu0 %v6277_v33  ;;  %v6312_v7 = vcombine.high %v6289_v3, %v6296_v20  ;;  %v6311_v23 = vcombine.low %v6289_v3, %v6296_v20  ;;  %v2503_v31 = vrot.slane %v2475_v53, %v25109_v12  ;;  %v2505_v63 = vcombine.high %v2489_v2, %v2489_v2  ;;  %v24892_v53 = vld [vmem:[%s33925_s0 + $0x2e0] ss:$8 sps:$4 sm:$0xff]  }
 0x132   :  { %v6314_v37 = vcombine.high %v6303_v0, %v6310_v18  ;;  %v6313_v42 = vcombine.low %v6303_v0, %v6310_v18  ;;  %v2506_v4 = vcombine.high %v2496_v36, %v2496_v36  ;;  %v2532_v38 = vrot.slane %v2516_v52, %v25109_v12 }
 0x133   :  { %v6328_v39 = vrot.slane %v6312_v7, %v25109_v12  ;;  %v6321_v46 = vrot.slane %v6311_v23, %v25109_v12  ;;  %v2507_v24 = vcombine.high %v2503_v31, %v2503_v31  ;;  %v6345_v62 = vcombine.low %v2496_v36, %v2504_v11 }
 0x134   :  { %v6342_v49 = vrot.slane %v6314_v37, %v25109_v12  ;;  %v6335_v50 = vrot.slane %v6313_v42, %v25109_v12  ;;  %v6346_v32 = vcombine.low %v2506_v4, %v2489_v2  ;;  %v6347_v43 = vcombine.low %v2503_v31, %v2505_v63 }
 0x135   :  { %v6348_v22 = vcombine.low %v2507_v24, %v2532_v38  ;;  %v6355_v21 = vrot.slane %v6345_v62, %v25109_v12  ;;  %v2523_v51 = vrot.slane %v24888_v14, %v25109_v12  ;;  %v2524_v55 = vcombine.high %v2516_v52, %v2516_v52 }
 0x136   :  { %v6344_v16 = vcombine.low %v6328_v39, %v6342_v49  ;;  %v6343_v15 = vcombine.low %v6321_v46, %v6335_v50  ;;  %v6362_v47 = vrot.slane %v6346_v32, %v25109_v12  ;;  %v6369_v48 = vrot.slane %v6347_v43, %v25109_v12  ;;  %v24894_v32 = vld [vmem:[%s33925_s0 + $0x2e4] ss:$8 sps:$4 sm:$0xff]  }
 0x137   :  { %v6376_v56 = vrot.slane %v6348_v22, %v25109_v12  ;;  %v2525_v59 = vcombine.high %v2523_v51, %v2523_v51  ;;  %v2539_v13 = vrot.slane %v2523_v51, %v25109_v12  ;;  %v2546_v60 = vrot.slane %v2524_v55, %v25109_v12 }
 0x138   :  { %23495 = vmatprep.mubr.msk.f32.mxu0 %vm7786_vm0, %v6344_v16  ;;  %v6378_v28 = vcombine.high %v6355_v21, %v6362_v47  ;;  %v6377_v34 = vcombine.low %v6355_v21, %v6362_v47  ;;  %v2554_v9 = vcombine.high %v2532_v38, %v2532_v38  ;;  %v2566_v54 = vrot.slane %v24889_v45, %v25109_v12 }
 0x139   :  { %8194 = vmatmul.mubr.f32.gmra.mxu0 %v6343_v15  ;;  %v6380_v26 = vcombine.high %v6369_v48, %v6376_v56  ;;  %v6379_v5 = vcombine.low %v6369_v48, %v6376_v56  ;;  %v2553_v8 = vrot.slane %v2525_v59, %v25109_v12  ;;  %v2555_v17 = vcombine.high %v2539_v13, %v2539_v13 }
 0x13a   :  { %v6394_v30 = vrot.slane %v6378_v28, %v25109_v12  ;;  %v6387_v61 = vrot.slane %v6377_v34, %v25109_v12  ;;  %v2556_v10 = vcombine.high %v2546_v60, %v2546_v60  ;;  %v2582_v33 = vrot.slane %v2566_v54, %v25109_v12 }
 0x13b   :  { %v6408_v6 = vrot.slane %v6380_v26, %v25109_v12  ;;  %v6401_v3 = vrot.slane %v6379_v5, %v25109_v12  ;;  %v2557_v20 = vcombine.high %v2553_v8, %v2553_v8  ;;  %v6411_v0 = vcombine.low %v2546_v60, %v2554_v9 }
 0x13c   :  { %v6412_v2 = vcombine.low %v2556_v10, %v2539_v13  ;;  %v6413_v18 = vcombine.low %v2553_v8, %v2555_v17  ;;  %v2573_v36 = vrot.slane %v24891_v41, %v25109_v12  ;;  %v2574_v11 = vcombine.high %v2566_v54, %v2566_v54  ;;  %v24895_v13 = vld [vmem:[%s33925_s0 + $0x2f0] ss:$8 sps:$4 sm:$0xff]   ;;  %v26422_v54 = vpop.f32.mrf.mxu0 }
 0x13d   :  { %v6410_v52 = vcombine.low %v6394_v30, %v6408_v6  ;;  %v6409_v7 = vcombine.low %v6387_v61, %v6401_v3  ;;  %v6414_v23 = vcombine.low %v2557_v20, %v2582_v33  ;;  %v6421_v31 = vrot.slane %v6411_v0, %v25109_v12  ;;  %v24897_v0 = vld [vmem:[%s33925_s0 + $0x2f4] ss:$8 sps:$4 sm:$0xff]  }
 0x13e   :  { %v6428_v63 = vrot.slane %v6412_v2, %v25109_v12  ;;  %v6435_v14 = vrot.slane %v6413_v18, %v25109_v12  ;;  %v2575_v37 = vcombine.high %v2573_v36, %v2573_v36  ;;  %v2589_v42 = vrot.slane %v2573_v36, %v25109_v12  ;;  %v8027_v10 = vpop.f32.mrf.mxu0 }
 0x13f   :  { %23496 = vmatprep.mubr.msk.f32.mxu0 %vm7786_vm0, %v6410_v52  ;;  %v6442_v4 = vrot.slane %v6414_v23, %v25109_v12  ;;  %v2596_v38 = vrot.slane %v2574_v11, %v25109_v12  ;;  %v2604_v39 = vcombine.high %v2582_v33, %v2582_v33  ;;  %v2616_v46 = vrot.slane %v24892_v53, %v25109_v12  ;;  %v24901_v10 = vld [vmem:[%s33925_s0 + $0x310] ss:$8 sps:$4 sm:$0xff]  }
 0x140   :  { %8199 = vmatmul.mubr.f32.gmra.mxu0 %v6409_v7  ;;  %v6444_v24 = vcombine.high %v6421_v31, %v6428_v63  ;;  %v6443_v62 = vcombine.low %v6421_v31, %v6428_v63  ;;  %v2603_v49 = vrot.slane %v2575_v37, %v25109_v12  ;;  %v2605_v50 = vcombine.high %v2589_v42, %v2589_v42 }
 0x141   :  { %v6446_v43 = vcombine.high %v6435_v14, %v6442_v4  ;;  %v6445_v45 = vcombine.low %v6435_v14, %v6442_v4  ;;  %v2606_v22 = vcombine.high %v2596_v38, %v2596_v38  ;;  %v2632_v21 = vrot.slane %v2616_v46, %v25109_v12 }
 0x142   :  { %v6460_v51 = vrot.slane %v6444_v24, %v25109_v12  ;;  %v6453_v55 = vrot.slane %v6443_v62, %v25109_v12  ;;  %v2607_v16 = vcombine.high %v2603_v49, %v2603_v49  ;;  %v6477_v15 = vcombine.low %v2596_v38, %v2604_v39 }
 0x143   :  { %v6474_v47 = vrot.slane %v6446_v43, %v25109_v12  ;;  %v6467_v48 = vrot.slane %v6445_v45, %v25109_v12  ;;  %v6478_v56 = vcombine.low %v2606_v22, %v2589_v42  ;;  %v6479_v59 = vcombine.low %v2603_v49, %v2605_v50  ;;  %v24898_v42 = vld [vmem:[%s33925_s0 + $0x300] ss:$8 sps:$4 sm:$0xff]  }
 0x144   :  { %v6480_v60 = vcombine.low %v2607_v16, %v2632_v21  ;;  %v6487_v28 = vrot.slane %v6477_v15, %v25109_v12  ;;  %v2623_v34 = vrot.slane %v24894_v32, %v25109_v12  ;;  %v2624_v9 = vcombine.high %v2616_v46, %v2616_v46 }
 0x145   :  { %v6476_v41 = vcombine.low %v6460_v51, %v6474_v47  ;;  %v6475_v26 = vcombine.low %v6453_v55, %v6467_v48  ;;  %v6494_v5 = vrot.slane %v6478_v56, %v25109_v12  ;;  %v6501_v8 = vrot.slane %v6479_v59, %v25109_v12  ;;  %v24900_v59 = vld [vmem:[%s33925_s0 + $0x304] ss:$8 sps:$4 sm:$0xff]  }
 0x146   :  { %v6508_v17 = vrot.slane %v6480_v60, %v25109_v12  ;;  %v2625_v19 = vcombine.high %v2623_v34, %v2623_v34  ;;  %v2639_v30 = vrot.slane %v2623_v34, %v25109_v12  ;;  %v2646_v61 = vrot.slane %v2624_v9, %v25109_v12 }
 0x147   :  { %23497 = vmatprep.mubr.msk.f32.mxu0 %vm7786_vm0, %v6476_v41  ;;  %v6510_v33 = vcombine.high %v6487_v28, %v6494_v5  ;;  %v6509_v6 = vcombine.low %v6487_v28, %v6494_v5  ;;  %v2654_v3 = vcombine.high %v2632_v21, %v2632_v21  ;;  %v2666_v20 = vrot.slane %v24895_v13, %v25109_v12 }
 0x148   :  { %8204 = vmatmul.mubr.f32.gmra.mxu0 %v6475_v26  ;;  %v6512_v53 = vcombine.high %v6501_v8, %v6508_v17  ;;  %v6511_v2 = vcombine.low %v6501_v8, %v6508_v17  ;;  %v2653_v18 = vrot.slane %v2625_v19, %v25109_v12  ;;  %v2655_v36 = vcombine.high %v2639_v30, %v2639_v30  ;;  %v26459_v8 = vpop.f32.mrf.mxu0 }
 0x149   :  { %v6526_v11 = vrot.slane %v6510_v33, %v25109_v12  ;;  %v6519_v52 = vrot.slane %v6509_v6, %v25109_v12  ;;  %v2656_v7 = vcombine.high %v2646_v61, %v2646_v61  ;;  %v2682_v23 = vrot.slane %v2666_v20, %v25109_v12 }
 0x14a   :  { %v6540_v31 = vrot.slane %v6512_v53, %v25109_v12  ;;  %v6533_v63 = vrot.slane %v6511_v2, %v25109_v12  ;;  %v2657_v14 = vcombine.high %v2653_v18, %v2653_v18  ;;  %v6543_v37 = vcombine.low %v2646_v61, %v2654_v3 }
 0x14b   :  { %v6544_v4 = vcombine.low %v2656_v7, %v2639_v30  ;;  %v6545_v38 = vcombine.low %v2653_v18, %v2655_v36  ;;  %v2673_v39 = vrot.slane %v24897_v0, %v25109_v12  ;;  %v2674_v46 = vcombine.high %v2666_v20, %v2666_v20  ;;  %v8032_v0 = vpop.f32.mrf.mxu0 }
 0x14c   :  { %v6542_v24 = vcombine.low %v6526_v11, %v6540_v31  ;;  %v6541_v62 = vcombine.low %v6519_v52, %v6533_v63  ;;  %v6546_v49 = vcombine.low %v2657_v14, %v2682_v23  ;;  %v6553_v50 = vrot.slane %v6543_v37, %v25109_v12 }
 0x14d   :  { %v6560_v32 = vrot.slane %v6544_v4, %v25109_v12  ;;  %v6567_v43 = vrot.slane %v6545_v38, %v25109_v12  ;;  %v2675_v45 = vcombine.high %v2673_v39, %v2673_v39  ;;  %v2689_v22 = vrot.slane %v2673_v39, %v25109_v12 }
 0x14e   :  { %23498 = vmatprep.mubr.msk.f32.mxu0 %vm7786_vm0, %v6542_v24  ;;  %v6574_v21 = vrot.slane %v6546_v49, %v25109_v12  ;;  %v2696_v51 = vrot.slane %v2674_v46, %v25109_v12  ;;  %v2704_v55 = vcombine.high %v2682_v23, %v2682_v23  ;;  %v2716_v16 = vrot.slane %v24898_v42, %v25109_v12 }
 0x14f   :  { %8209 = vmatmul.mubr.f32.gmra.mxu0 %v6541_v62  ;;  %v6576_v15 = vcombine.high %v6553_v50, %v6560_v32  ;;  %v6575_v47 = vcombine.low %v6553_v50, %v6560_v32  ;;  %v2703_v48 = vrot.slane %v2675_v45, %v25109_v12  ;;  %v2705_v56 = vcombine.high %v2689_v22, %v2689_v22 }
 0x150   :  { %v6578_v13 = vcombine.high %v6567_v43, %v6574_v21  ;;  %v6577_v60 = vcombine.low %v6567_v43, %v6574_v21  ;;  %v2706_v28 = vcombine.high %v2696_v51, %v2696_v51  ;;  %v2732_v34 = vrot.slane %v2716_v16, %v25109_v12 }
 0x151   :  { %v6592_v9 = vrot.slane %v6576_v15, %v25109_v12  ;;  %v6585_v41 = vrot.slane %v6575_v47, %v25109_v12  ;;  %v2707_v26 = vcombine.high %v2703_v48, %v2703_v48  ;;  %v6609_v5 = vcombine.low %v2696_v51, %v2704_v55 }
 0x152   :  { %v6606_v17 = vrot.slane %v6578_v13, %v25109_v12  ;;  %v6599_v19 = vrot.slane %v6577_v60, %v25109_v12  ;;  %v6610_v30 = vcombine.low %v2706_v28, %v2689_v22  ;;  %v6611_v61 = vcombine.low %v2703_v48, %v2705_v56  ;;  %v24903_v22 = vld [vmem:[%s33925_s0 + $0x314] ss:$8 sps:$4 sm:$0xff]  }
 0x153   :  { %v6612_v33 = vcombine.low %v2707_v26, %v2732_v34  ;;  %v6619_v6 = vrot.slane %v6609_v5, %v25109_v12  ;;  %v2723_v3 = vrot.slane %v24900_v59, %v25109_v12  ;;  %v2724_v20 = vcombine.high %v2716_v16, %v2716_v16 }
 0x154   :  { %v6608_v53 = vcombine.low %v6592_v9, %v6606_v17  ;;  %v6607_v2 = vcombine.low %v6585_v41, %v6599_v19  ;;  %v6626_v18 = vrot.slane %v6610_v30, %v25109_v12  ;;  %v6633_v36 = vrot.slane %v6611_v61, %v25109_v12  ;;  %v26501_v19 = vpop.f32.mrf.mxu0 }
 0x155   :  { %v6640_v11 = vrot.slane %v6612_v33, %v25109_v12  ;;  %v2725_v52 = vcombine.high %v2723_v3, %v2723_v3  ;;  %v2739_v7 = vrot.slane %v2723_v3, %v25109_v12  ;;  %v2746_v23 = vrot.slane %v2724_v20, %v25109_v12 }
 0x156   :  { %23499 = vmatprep.mubr.msk.f32.mxu0 %vm7786_vm0, %v6608_v53  ;;  %v6642_v31 = vcombine.high %v6619_v6, %v6626_v18  ;;  %v6641_v63 = vcombine.low %v6619_v6, %v6626_v18  ;;  %v2754_v14 = vcombine.high %v2732_v34, %v2732_v34  ;;  %v2766_v37 = vrot.slane %v24901_v10, %v25109_v12  ;;  %v24904_v53 = vld [vmem:[%s33925_s0 + $0x320] ss:$8 sps:$4 sm:$0xff]  }
 0x157   :  { %8214 = vmatmul.mubr.f32.gmra.mxu0 %v6607_v2  ;;  %v6644_v42 = vcombine.high %v6633_v36, %v6640_v11  ;;  %v6643_v4 = vcombine.low %v6633_v36, %v6640_v11  ;;  %v2753_v38 = vrot.slane %v2725_v52, %v25109_v12  ;;  %v2755_v39 = vcombine.high %v2739_v7, %v2739_v7  ;;  %v8037_v2 = vpop.f32.mrf.mxu0 }
 0x158   :  { %v6658_v46 = vrot.slane %v6642_v31, %v25109_v12  ;;  %v6651_v24 = vrot.slane %v6641_v63, %v25109_v12  ;;  %v2756_v62 = vcombine.high %v2746_v23, %v2746_v23  ;;  %v2782_v49 = vrot.slane %v2766_v37, %v25109_v12 }
 0x159   :  { %v6672_v50 = vrot.slane %v6644_v42, %v25109_v12  ;;  %v6665_v32 = vrot.slane %v6643_v4, %v25109_v12  ;;  %v2757_v43 = vcombine.high %v2753_v38, %v2753_v38  ;;  %v6675_v45 = vcombine.low %v2746_v23, %v2754_v14 }
 0x15a   :  { %v6676_v21 = vcombine.low %v2756_v62, %v2739_v7  ;;  %v6677_v51 = vcombine.low %v2753_v38, %v2755_v39  ;;  %v8368_v55 = vcombine.high %v26217_v40, %v26217_v40  ;;  %v8375_v16 = vrot.slane %v26217_v40, %v25109_v12  ;;  %v24906_v7 = vld [vmem:[%s33925_s0 + $0x324] ss:$8 sps:$4 sm:$0xff]  }
 0x15b   :  { %v6674_v15 = vcombine.low %v6658_v46, %v6672_v50  ;;  %v6673_v47 = vcombine.low %v6651_v24, %v6665_v32  ;;  %v6678_v48 = vcombine.low %v2757_v43, %v2782_v49  ;;  %v6685_v56 = vrot.slane %v6675_v45, %v25109_v12 }
 0x15c   :  { %v6692_v59 = vrot.slane %v6676_v21, %v25109_v12  ;;  %v6699_v13 = vrot.slane %v6677_v51, %v25109_v12  ;;  %v8382_v60 = vrot.slane %v8368_v55, %v25109_v12  ;;  %v8383_v28 = vcombine.high %v8375_v16, %v8375_v16 }
 0x15d   :  { %23500 = vmatprep.mubr.msk.f32.mxu0 %vm7786_vm0, %v6674_v15  ;;  %v6706_v34 = vrot.slane %v6678_v48, %v25109_v12  ;;  %v26495_v9 = vrot.slane %v8375_v16, %v25109_v12  ;;  %v2773_v40 = vrot.slane %v24903_v22, %v25109_v12  ;;  %v2774_v17 = vcombine.high %v2766_v37, %v2766_v37 }
 0x15e   :  { %8219 = vmatmul.mubr.f32.gmra.mxu0 %v6673_v47  ;;  %v6708_v41 = vcombine.high %v6685_v56, %v6692_v59  ;;  %v8384_v26 = vcombine.high %v8382_v60, %v8382_v60  ;;  %v26499_v5 = vrot.slane %v8383_v28, %v25109_v12  ;;  %v6707_v61 = vcombine.low %v6685_v56, %v6692_v59 }
 0x15f   :  { %v6710_v30 = vcombine.high %v6699_v13, %v6706_v34  ;;  %v6709_v10 = vcombine.low %v6699_v13, %v6706_v34  ;;  %v2775_v33 = vcombine.high %v2773_v40, %v2773_v40  ;;  %v26505_v3 = vrot.slane %v8382_v60, %v25109_v12 }
 0x160   :  { %v6724_v6 = vrot.slane %v6708_v41, %v25109_v12  ;;  %v26508_v20 = vrot.slane %v8384_v26, %v25109_v12  ;;  %v11524_v0 = vcombine.low %v26495_v9, %v26499_v5  ;;  %v6717_v36 = vrot.slane %v6707_v61, %v25109_v12 }
 0x161   :  { %v6738_v18 = vrot.slane %v6710_v30, %v25109_v12  ;;  %v6731_v11 = vrot.slane %v6709_v10, %v25109_v12  ;;  %v2789_v52 = vrot.slane %v2773_v40, %v25109_v12  ;;  %v23517_v23 = vcombine.high %v26495_v9, %v26499_v5  ;;  %v24907_v30 = vld [vmem:[%s33925_s0 + $0x330] ss:$8 sps:$4 sm:$0xff]  }
 0x162   :  { %v11526_v31 = vcombine.low %v26505_v3, %v26508_v20  ;;  %v2796_v63 = vrot.slane %v2774_v17, %v25109_v12  ;;  %v2803_v14 = vrot.slane %v2775_v33, %v25109_v12  ;;  %v2804_v4 = vcombine.high %v2782_v49, %v2782_v49 }
 0x163   :  { %v6740_v37 = vcombine.low %v6724_v6, %v6738_v18  ;;  %v6739_v42 = vcombine.low %v6717_v36, %v6731_v11  ;;  %v2805_v38 = vcombine.high %v2789_v52, %v2789_v52  ;;  %v2816_v24 = vrot.slane %v24904_v53, %v25109_v12  ;;  %v26563_v53 = vpop.f32.mrf.mxu0 }
 0x164   :  { %v2806_v39 = vcombine.high %v2796_v63, %v2796_v63  ;;  %v2807_v46 = vcombine.high %v2803_v14, %v2803_v14  ;;  %v8417_v62 = vcombine.high %v26231_v35, %v26231_v35  ;;  %v6741_v50 = vcombine.low %v2796_v63, %v2804_v4 }
 0x165   :  { %23501 = vmatprep.mubr.msk.f32.mxu0 %vm7786_vm0, %v6740_v37  ;;  %v6743_v32 = vcombine.low %v2803_v14, %v2805_v38  ;;  %v8424_v43 = vrot.slane %v26231_v35, %v25109_v12  ;;  %v2823_v45 = vrot.slane %v24906_v7, %v25109_v12  ;;  %v2832_v49 = vrot.slane %v2816_v24, %v25109_v12  ;;  %v8042_v37 = vpop.f32.mrf.mxu0 }
 0x166   :  { %8224 = vmatmul.mubr.f32.gmra.mxu0 %v6739_v42  ;;  %v6742_v22 = vcombine.low %v2806_v39, %v2789_v52  ;;  %v8431_v21 = vrot.slane %v8417_v62, %v25109_v12  ;;  %v2824_v51 = vcombine.high %v2816_v24, %v2816_v24  ;;  %v6751_v55 = vrot.slane %v6741_v50, %v25109_v12 }
 0x167   :  { %v6765_v16 = vrot.slane %v6743_v32, %v25109_v12  ;;  %v8432_v15 = vcombine.high %v8424_v43, %v8424_v43  ;;  %v26540_v47 = vrot.slane %v8424_v43, %v25109_v12  ;;  %v6744_v48 = vcombine.low %v2807_v46, %v2832_v49  ;;  %v24909_v46 = vld [vmem:[%s33925_s0 + $0x334] ss:$8 sps:$4 sm:$0xff]  }
 0x168   :  { %v6758_v35 = vrot.slane %v6742_v22, %v25109_v12  ;;  %v8433_v56 = vcombine.high %v8431_v21, %v8431_v21  ;;  %v26544_v59 = vrot.slane %v8431_v21, %v25109_v12  ;;  %v2825_v60 = vcombine.high %v2823_v45, %v2823_v45 }
 0x169   :  { %v26547_v13 = vrot.slane %v8432_v15, %v25109_v12  ;;  %v2839_v28 = vrot.slane %v2823_v45, %v25109_v12  ;;  %v2846_v34 = vrot.slane %v2824_v51, %v25109_v12  ;;  %v6772_v40 = vrot.slane %v6744_v48, %v25109_v12 }
 0x16a   :  { %v6774_v41 = vcombine.high %v6751_v55, %v6758_v35  ;;  %v26553_v26 = vrot.slane %v8433_v56, %v25109_v12  ;;  %v6773_v17 = vcombine.low %v6751_v55, %v6758_v35  ;;  %v23518_v61 = vcombine.high %v26505_v3, %v26508_v20 }
 0x16b   :  { %v11573_v10 = vcombine.low %v26540_v47, %v26547_v13  ;;  %v2853_v33 = vrot.slane %v2825_v60, %v25109_v12  ;;  %v2854_v6 = vcombine.high %v2832_v49, %v2832_v49  ;;  %v6776_v2 = vcombine.high %v6765_v16, %v6772_v40 }
 0x16c   :  { %v6790_v18 = vrot.slane %v6774_v41, %v25109_v12  ;;  %v23519_v36 = vcombine.high %v26540_v47, %v26547_v13  ;;  %v11575_v11 = vcombine.low %v26544_v59, %v26553_v26  ;;  %v6775_v52 = vcombine.low %v6765_v16, %v6772_v40 }
 0x16d   :  { %v6783_v7 = vrot.slane %v6773_v17, %v25109_v12  ;;  %v2855_v63 = vcombine.high %v2839_v28, %v2839_v28  ;;  %v2856_v14 = vcombine.high %v2846_v34, %v2846_v34  ;;  %v6804_v42 = vrot.slane %v6776_v2, %v25109_v12 }
 0x16e   :  { %v2857_v4 = vcombine.high %v2853_v33, %v2853_v33  ;;  %v2866_v38 = vrot.slane %v24907_v30, %v25109_v12  ;;  %v6807_v39 = vcombine.low %v2846_v34, %v2854_v6  ;;  %v6797_v24 = vrot.slane %v6775_v52, %v25109_v12  ;;  %v24910_v52 = vld [vmem:[%s33925_s0 + $0x340] ss:$8 sps:$4 sm:$0xff]  }
 0x16f   :  { %v6808_v62 = vcombine.low %v2856_v14, %v2839_v28  ;;  %v6809_v50 = vcombine.low %v2853_v33, %v2855_v63  ;;  %v8466_v32 = vcombine.high %v26244_v29, %v26244_v29  ;;  %v6806_v43 = vcombine.low %v6790_v18, %v6804_v42 }
 0x170   :  { %v2882_v45 = vrot.slane %v2866_v38, %v25109_v12  ;;  %v6817_v49 = vrot.slane %v6807_v39, %v25109_v12  ;;  %v8473_v22 = vrot.slane %v26244_v29, %v25109_v12  ;;  %v23520_v21 = vcombine.high %v26544_v59, %v26553_v26 }
 0x171   :  { %v6805_v51 = vcombine.low %v6783_v7, %v6797_v24  ;;  %v6824_v55 = vrot.slane %v6808_v62, %v25109_v12  ;;  %v8480_v16 = vrot.slane %v8466_v32, %v25109_v12  ;;  %23502 = vmatprep.mubr.msk.f32.mxu0 %vm7786_vm0, %v6806_v43  ;;  %v6831_v48 = vrot.slane %v6809_v50, %v25109_v12  ;;  %v24912_v32 = vld [vmem:[%s33925_s0 + $0x344] ss:$8 sps:$4 sm:$0xff]   ;;  %v26622_v43 = vpop.f32.mrf.mxu0 }
 0x172   :  { %v6810_v15 = vcombine.low %v2857_v4, %v2882_v45  ;;  %v8481_v35 = vcombine.high %v8473_v22, %v8473_v22  ;;  %v2873_v56 = vrot.slane %v24909_v46, %v25109_v12  ;;  %v26591_v29 = vrot.slane %v8473_v22, %v25109_v12 }
 0x173   :  { %8229 = vmatmul.mubr.f32.gmra.mxu0 %v6805_v51  ;;  %v6840_v60 = vcombine.high %v6817_v49, %v6824_v55  ;;  %v8482_v28 = vcombine.high %v8480_v16, %v8480_v16  ;;  %v6839_v34 = vcombine.low %v6817_v49, %v6824_v55  ;;  %v2874_v17 = vcombine.high %v2866_v38, %v2866_v38 }
 0x174   :  { %v6838_v40 = vrot.slane %v6810_v15, %v25109_v12  ;;  %v26595_v41 = vrot.slane %v8481_v35, %v25109_v12  ;;  %v2875_v30 = vcombine.high %v2873_v56, %v2873_v56  ;;  %v26599_v6 = vrot.slane %v8480_v16, %v25109_v12 }
 0x175   :  { %v6856_v33 = vrot.slane %v6840_v60, %v25109_v12  ;;  %v26602_v2 = vrot.slane %v8482_v28, %v25109_v12  ;;  %v2889_v18 = vrot.slane %v2873_v56, %v25109_v12  ;;  %v6849_v37 = vrot.slane %v6839_v34, %v25109_v12  ;;  %v8047_v56 = vpop.f32.mrf.mxu0 }
 0x176   :  { %v6842_v7 = vcombine.high %v6831_v48, %v6838_v40  ;;  %v11622_v63 = vcombine.low %v26591_v29, %v26595_v41  ;;  %v6841_v14 = vcombine.low %v6831_v48, %v6838_v40  ;;  %v23521_v42 = vcombine.high %v26591_v29, %v26595_v41 }
 0x177   :  { %v11624_v4 = vcombine.low %v26599_v6, %v26602_v2  ;;  %v2896_v38 = vrot.slane %v2874_v17, %v25109_v12  ;;  %v2903_v39 = vrot.slane %v2875_v30, %v25109_v12  ;;  %v2904_v62 = vcombine.high %v2882_v45, %v2882_v45 }
 0x178   :  { %v6870_v46 = vrot.slane %v6842_v7, %v25109_v12  ;;  %v6863_v24 = vrot.slane %v6841_v14, %v25109_v12  ;;  %v2905_v50 = vcombine.high %v2889_v18, %v2889_v18  ;;  %v2916_v51 = vrot.slane %v24910_v52, %v25109_v12 }
 0x179   :  { %v2906_v49 = vcombine.high %v2896_v38, %v2896_v38  ;;  %v2907_v22 = vcombine.high %v2903_v39, %v2903_v39  ;;  %v8515_v55 = vcombine.high %v26258_v27, %v26258_v27  ;;  %v6873_v48 = vcombine.low %v2896_v38, %v2904_v62 }
 0x17a   :  { %v6872_v16 = vcombine.low %v6856_v33, %v6870_v46  ;;  %v6871_v15 = vcombine.low %v6849_v37, %v6863_v24  ;;  %v6875_v35 = vcombine.low %v2903_v39, %v2905_v50  ;;  %v2932_v45 = vrot.slane %v2916_v51, %v25109_v12 }
 0x17b   :  { %v6874_v60 = vcombine.low %v2906_v49, %v2889_v18  ;;  %v8522_v28 = vrot.slane %v26258_v27, %v25109_v12  ;;  %v8529_v34 = vrot.slane %v8515_v55, %v25109_v12  ;;  %v6883_v40 = vrot.slane %v6873_v48, %v25109_v12  ;;  %v24913_v55 = vld [vmem:[%s33925_s0 + $0x350] ss:$8 sps:$4 sm:$0xff]  }
 0x17c   :  { %23503 = vmatprep.mubr.msk.f32.mxu0 %vm7786_vm0, %v6872_v16  ;;  %v6897_v17 = vrot.slane %v6875_v35, %v25109_v12  ;;  %v2923_v30 = vrot.slane %v24912_v32, %v25109_v12  ;;  %v2924_v33 = vcombine.high %v2916_v51, %v2916_v51  ;;  %v6876_v52 = vcombine.low %v2907_v22, %v2932_v45 }
 0x17d   :  { %8234 = vmatmul.mubr.f32.gmra.mxu0 %v6871_v15  ;;  %v6890_v7 = vrot.slane %v6874_v60, %v25109_v12  ;;  %v8530_v14 = vcombine.high %v8522_v28, %v8522_v28  ;;  %v8531_v18 = vcombine.high %v8529_v34, %v8529_v34  ;;  %v26637_v37 = vrot.slane %v8522_v28, %v25109_v12 }
 0x17e   :  { %v26640_v27 = vrot.slane %v8529_v34, %v25109_v12  ;;  %v2925_v38 = vcombine.high %v2923_v30, %v2923_v30  ;;  %v2939_v39 = vrot.slane %v2923_v30, %v25109_v12  ;;  %v6904_v46 = vrot.slane %v6876_v52, %v25109_v12 }
 0x17f   :  { %v6906_v24 = vcombine.high %v6883_v40, %v6890_v7  ;;  %v26645_v62 = vrot.slane %v8530_v14, %v25109_v12  ;;  %v26648_v50 = vrot.slane %v8531_v18, %v25109_v12  ;;  %v6905_v32 = vcombine.low %v6883_v40, %v6890_v7 }
 0x180   :  { %v2946_v49 = vrot.slane %v2924_v33, %v25109_v12  ;;  %v2953_v22 = vrot.slane %v2925_v38, %v25109_v12  ;;  %v2954_v51 = vcombine.high %v2932_v45, %v2932_v45  ;;  %v23522_v16 = vcombine.high %v26599_v6, %v26602_v2  ;;  %v24915_v38 = vld [vmem:[%s33925_s0 + $0x354] ss:$8 sps:$4 sm:$0xff]  }
 0x181   :  { %v6908_v15 = vcombine.high %v6897_v17, %v6904_v46  ;;  %v6922_v48 = vrot.slane %v6906_v24, %v25109_v12  ;;  %v6907_v45 = vcombine.low %v6897_v17, %v6904_v46  ;;  %v6915_v28 = vrot.slane %v6905_v32, %v25109_v12 }
 0x182   :  { %v2955_v40 = vcombine.high %v2939_v39, %v2939_v39  ;;  %v2956_v30 = vcombine.high %v2946_v49, %v2946_v49  ;;  %v2957_v33 = vcombine.high %v2953_v22, %v2953_v22  ;;  %v2966_v7 = vrot.slane %v24913_v55, %v25109_v12 }
 0x183   :  { %v6936_v34 = vrot.slane %v6908_v15, %v25109_v12  ;;  %v6929_v52 = vrot.slane %v6907_v45, %v25109_v12  ;;  %v6939_v14 = vcombine.low %v2946_v49, %v2954_v51  ;;  %v8564_v18 = vcombine.high %v26274_v44, %v26274_v44  ;;  %v26675_v15 = vpop.f32.mrf.mxu0 }
 0x184   :  { %v6940_v46 = vcombine.low %v2956_v30, %v2939_v39  ;;  %v6941_v24 = vcombine.low %v2953_v22, %v2955_v40  ;;  %v8571_v32 = vrot.slane %v26274_v44, %v25109_v12  ;;  %v2982_v45 = vrot.slane %v2966_v7, %v25109_v12 }
 0x185   :  { %v6938_v17 = vcombine.low %v6922_v48, %v6936_v34  ;;  %v6937_v1 = vcombine.low %v6915_v28, %v6929_v52  ;;  %v6949_v49 = vrot.slane %v6939_v14, %v25109_v12  ;;  %v8578_v51 = vrot.slane %v8564_v18, %v25109_v12  ;;  %v8052_v44 = vpop.f32.mrf.mxu0 }
 0x186   :  { %v6956_v55 = vrot.slane %v6940_v46, %v25109_v12  ;;  %v6963_v48 = vrot.slane %v6941_v24, %v25109_v12  ;;  %v8579_v39 = vcombine.high %v8571_v32, %v8571_v32  ;;  %v26684_v22 = vrot.slane %v8571_v32, %v25109_v12 }
 0x187   :  { %23504 = vmatprep.mubr.msk.f32.mxu0 %vm7786_vm0, %v6938_v17  ;;  %v6942_v34 = vcombine.low %v2957_v33, %v2982_v45  ;;  %v8580_v28 = vcombine.high %v8578_v51, %v8578_v51  ;;  %v26687_v40 = vrot.slane %v8578_v51, %v25109_v12  ;;  %v2973_v30 = vrot.slane %v24915_v38, %v25109_v12  ;;  %v24916_v33 = vld [vmem:[%s33925_s0 + $0x360] ss:$8 sps:$4 sm:$0xff]  }
 0x188   :  { %8239 = vmatmul.mubr.f32.gmra.mxu0 %v6937_v1  ;;  %v6972_v52 = vcombine.high %v6949_v49, %v6956_v55  ;;  %v26691_v14 = vrot.slane %v8579_v39, %v25109_v12  ;;  %v6971_v18 = vcombine.low %v6949_v49, %v6956_v55  ;;  %v2974_v17 = vcombine.high %v2966_v7, %v2966_v7 }
 0x189   :  { %v6970_v46 = vrot.slane %v6942_v34, %v25109_v12  ;;  %v26695_v24 = vrot.slane %v8580_v28, %v25109_v12  ;;  %v2975_v32 = vcombine.high %v2973_v30, %v2973_v30  ;;  %v2989_v1 = vrot.slane %v2973_v30, %v25109_v12 }
 0x18a   :  { %v6988_v51 = vrot.slane %v6972_v52, %v25109_v12  ;;  %v6981_v34 = vrot.slane %v6971_v18, %v25109_v12  ;;  %v2996_v28 = vrot.slane %v2974_v17, %v25109_v12  ;;  %v3004_v38 = vcombine.high %v2982_v45, %v2982_v45  ;;  %v24918_v45 = vld [vmem:[%s33925_s0 + $0x364] ss:$8 sps:$4 sm:$0xff]  }
 0x18b   :  { %v6974_v55 = vcombine.high %v6963_v48, %v6970_v46  ;;  %v6973_v44 = vcombine.low %v6963_v48, %v6970_v46  ;;  %v3003_v30 = vrot.slane %v2975_v32, %v25109_v12  ;;  %v3005_v60 = vcombine.high %v2989_v1, %v2989_v1 }
 0x18c   :  { %v3016_v56 = vrot.slane %v24916_v33, %v25109_v12  ;;  %v11534_v39 = vrot.slane %v11524_v0, %v25109_v12  ;;  %v3006_v48 = vcombine.high %v2996_v28, %v2996_v28  ;;  %v7005_v18 = vcombine.low %v2996_v28, %v3004_v38 }
 0x18d   :  { %v7002_v52 = vrot.slane %v6974_v55, %v25109_v12  ;;  %v6995_v7 = vrot.slane %v6973_v44, %v25109_v12  ;;  %v3007_v46 = vcombine.high %v3003_v30, %v3003_v30  ;;  %v7007_v49 = vcombine.low %v3003_v30, %v3005_v60 }
 0x18e   :  { %v3032_v55 = vrot.slane %v3016_v56, %v25109_v12  ;;  %v11541_v33 = vrot.slane %v23517_v23, %v25109_v12  ;;  %v7006_v44 = vcombine.low %v3006_v48, %v2989_v1  ;;  %v7015_v0 = vrot.slane %v7005_v18, %v25109_v12  ;;  %v26741_v23 = vpop.f32.mrf.mxu0 }
 0x18f   :  { %v7004_v17 = vcombine.low %v6988_v51, %v7002_v52  ;;  %v7003_v32 = vcombine.low %v6981_v34, %v6995_v7  ;;  %v7029_v35 = vrot.slane %v7007_v49, %v25109_v12  ;;  %v11548_v60 = vrot.slane %v11526_v31, %v25109_v12 }
 0x190   :  { %v7008_v38 = vcombine.low %v3007_v46, %v3032_v55  ;;  %v11555_v51 = vrot.slane %v23518_v61, %v25109_v12  ;;  %v11556_v9 = vcombine.low %v11534_v39, %v11541_v33  ;;  %v8613_v5 = vcombine.high %v26304_v25, %v26304_v25  ;;  %v8057_v61 = vpop.f32.mrf.mxu0 }
 0x191   :  { %23505 = vmatprep.mubr.msk.f32.mxu0 %vm7786_vm0, %v7004_v17  ;;  %v7022_v1 = vrot.slane %v7006_v44, %v25109_v12  ;;  %v8620_v31 = vrot.slane %v26304_v25, %v25109_v12  ;;  %v3023_v7 = vrot.slane %v24918_v45, %v25109_v12  ;;  %v3024_v49 = vcombine.high %v3016_v56, %v3016_v56 }
 0x192   :  { %8244 = vmatmul.mubr.f32.gmra.mxu0 %v7003_v32  ;;  %v7036_v34 = vrot.slane %v7008_v38, %v25109_v12  ;;  %v11557_v28 = vcombine.low %v11548_v60, %v11555_v51  ;;  %v11564_v3 = vrot.slane %v11556_v9, %v25109_v12  ;;  %v8627_v20 = vrot.slane %v8613_v5, %v25109_v12  ;;  %v24919_v51 = vld [vmem:[%s33925_s0 + $0x370] ss:$8 sps:$4 sm:$0xff]  }
 0x193   :  { %v7038_v39 = vcombine.high %v7015_v0, %v7022_v1  ;;  %v8628_v30 = vcombine.high %v8620_v31, %v8620_v31  ;;  %v26751_v52 = vrot.slane %v8620_v31, %v25109_v12  ;;  %v7037_v48 = vcombine.low %v7015_v0, %v7022_v1 }
 0x194   :  { %v7040_v46 = vcombine.high %v7029_v35, %v7036_v34  ;;  %v11571_v25 = vrot.slane %v11557_v28, %v25109_v12  ;;  %v8629_v18 = vcombine.high %v8627_v20, %v8627_v20  ;;  %v26755_v56 = vrot.slane %v8627_v20, %v25109_v12 }
 0x195   :  { %v7054_v45 = vrot.slane %v7038_v39, %v25109_v12  ;;  %v26759_v17 = vrot.slane %v8628_v30, %v25109_v12  ;;  %v7039_v32 = vcombine.low %v7029_v35, %v7036_v34  ;;  %v7047_v33 = vrot.slane %v7037_v48, %v25109_v12 }
 0x196   :  { %v7068_v44 = vrot.slane %v7040_v46, %v25109_v12  ;;  %v11572_v60 = vcombine.low %v11564_v3, %v11571_v25  ;;  %v26764_v0 = vrot.slane %v8629_v18, %v25109_v12  ;;  %v3025_v38 = vcombine.high %v3023_v7, %v3023_v7 }
 0x197   :  { %v23526_v9 = vcombine.high %v26687_v40, %v26695_v24  ;;  %v11769_v5 = vcombine.low %v26751_v52, %v26759_v17  ;;  %v7061_v35 = vrot.slane %v7039_v32, %v25109_v12  ;;  %v3039_v1 = vrot.slane %v3023_v7, %v25109_v12  ;;  %v24921_v32 = vld [vmem:[%s33925_s0 + $0x374] ss:$8 sps:$4 sm:$0xff]  }
 0x198   :  { %v7070_v31 = vcombine.low %v7054_v45, %v7068_v44  ;;  %14722 = vxpose.xlu0.b32.start [1/16] (narrow) %v11572_v60, 88  ;;  %v23527_v34 = vcombine.high %v26751_v52, %v26759_v17  ;;  %v11771_v28 = vcombine.low %v26755_v56, %v26764_v0  ;;  %v3046_v3 = vrot.slane %v3024_v49, %v25109_v12 }
 0x199   :  { %v7069_v20 = vcombine.low %v7047_v33, %v7061_v35  ;;  %v3053_v61 = vrot.slane %v3025_v38, %v25109_v12  ;;  %v3054_v39 = vcombine.high %v3032_v55, %v3032_v55  ;;  %v3055_v30 = vcombine.high %v3039_v1, %v3039_v1  ;;  %v26798_v33 = vpop.f32.mrf.mxu0 }
 0x19a   :  { %23506 = vmatprep.mubr.msk.f32.mxu0 %vm7786_vm0, %v7070_v31  ;;  %v3056_v48 = vcombine.high %v3046_v3, %v3046_v3  ;;  %v3066_v7 = vrot.slane %v24919_v51, %v25109_v12  ;;  %v11583_v46 = vrot.slane %v11573_v10, %v25109_v12  ;;  %v11590_v49 = vrot.slane %v23519_v36, %v25109_v12 }
 0x19b   :  { %8249 = vmatmul.mubr.f32.gmra.mxu0 %v7069_v20  ;;  %v3057_v25 = vcombine.high %v3053_v61, %v3053_v61  ;;  %v7071_v18 = vcombine.low %v3046_v3, %v3054_v39  ;;  %v7073_v55 = vcombine.low %v3053_v61, %v3055_v30  ;;  %v11597_v45 = vrot.slane %v11575_v11, %v25109_v12  ;;  %v8062_v51 = vpop.f32.mrf.mxu0 }
 0x19c   :  { %v3082_v10 = vrot.slane %v3066_v7, %v25109_v12  ;;  %v7072_v44 = vcombine.low %v3056_v48, %v3039_v1  ;;  %v11604_v47 = vrot.slane %v23520_v21, %v25109_v12  ;;  %v11605_v13 = vcombine.low %v11583_v46, %v11590_v49 }
 0x19d   :  { %v23528_v36 = vcombine.high %v26755_v56, %v26764_v0  ;;  %v7081_v11 = vrot.slane %v7071_v18, %v25109_v12  ;;  %v8662_v60 = vcombine.high %v26345_v57, %v26345_v57  ;;  %v8669_v38 = vrot.slane %v26345_v57, %v25109_v12  ;;  %v26819_v48 = vpop.f32.mrf.mxu0 }
 0x19e   :  { %v7074_v35 = vcombine.low %v3057_v25, %v3082_v10  ;;  %v7088_v1 = vrot.slane %v7072_v44, %v25109_v12  ;;  %v7095_v31 = vrot.slane %v7073_v55, %v25109_v12  ;;  %v11606_v59 = vcombine.low %v11597_v45, %v11604_v47 }
 0x19f   :  { %v11613_v26 = vrot.slane %v11605_v13, %v25109_v12  ;;  %v8676_v21 = vrot.slane %v8662_v60, %v25109_v12  ;;  %v8677_v3 = vcombine.high %v8669_v38, %v8669_v38  ;;  %v3073_v20 = vrot.slane %v24921_v32, %v25109_v12  ;;  %v8067_v47 = vpop.f32.mrf.mxu0 }
 0x1a0   :  { %v7102_v61 = vrot.slane %v7074_v35, %v25109_v12  ;;  %v7104_v39 = vcombine.high %v7081_v11, %v7088_v1  ;;  %v11620_v30 = vrot.slane %v11606_v59, %v25109_v12  ;;  %v7103_v57 = vcombine.low %v7081_v11, %v7088_v1 }
 0x1a1   :  { %v8678_v46 = vcombine.high %v8676_v21, %v8676_v21  ;;  %v26822_v49 = vrot.slane %v8669_v38, %v25109_v12  ;;  %v26825_v25 = vrot.slane %v8677_v3, %v25109_v12  ;;  %v3074_v18 = vcombine.high %v3066_v7, %v3066_v7  ;;  %v24922_v7 = vld [vmem:[%s33925_s0 + $0x380] ss:$8 sps:$4 sm:$0xff]   ;;  %v26843_v59 = vpop.f32.mrf.mxu0 }
 0x1a2   :  { %v7106_v55 = vcombine.high %v7095_v31, %v7102_v61  ;;  %v7120_v45 = vrot.slane %v7104_v39, %v25109_v12  ;;  %v11621_v32 = vcombine.low %v11613_v26, %v11620_v30  ;;  %v7105_v44 = vcombine.low %v7095_v31, %v7102_v61 }
 0x1a3   :  { %v26829_v13 = vrot.slane %v8676_v21, %v25109_v12  ;;  %v26832_v11 = vrot.slane %v8678_v46, %v25109_v12  ;;  %v11818_v60 = vcombine.low %v26822_v49, %v26825_v25  ;;  %v7113_v38 = vrot.slane %v7103_v57, %v25109_v12 }
 0x1a4   :  { %v7134_v51 = vrot.slane %v7106_v55, %v25109_v12  ;;  %14723 = vxpose.xlu0.b32.cont [2/16] (narrow) %v11621_v32, 88  ;;  %v7127_v35 = vrot.slane %v7105_v44, %v25109_v12  ;;  %v3075_v1 = vcombine.high %v3073_v20, %v3073_v20  ;;  %v3089_v31 = vrot.slane %v3073_v20, %v25109_v12  ;;  %v8072_v55 = vpop.f32.mrf.mxu0 }
 0x1a5   :  { %v23529_v26 = vcombine.high %v26822_v49, %v26825_v25  ;;  %v3096_v3 = vrot.slane %v3074_v18, %v25109_v12  ;;  %v3104_v61 = vcombine.high %v3082_v10, %v3082_v10  ;;  %v3116_v20 = vrot.slane %v24922_v7, %v25109_v12 }
 0x1a6   :  { %v7136_v39 = vcombine.low %v7120_v45, %v7134_v51  ;;  %v7135_v30 = vcombine.low %v7113_v38, %v7127_v35  ;;  %v3103_v57 = vrot.slane %v3075_v1, %v25109_v12  ;;  %v3105_v46 = vcombine.high %v3089_v31, %v3089_v31  ;;  %v24924_v38 = vld [vmem:[%s33925_s0 + $0x384] ss:$8 sps:$4 sm:$0xff]  }
 0x1a7   :  { %v3106_v32 = vcombine.high %v3096_v3, %v3096_v3  ;;  %v7137_v44 = vcombine.low %v3096_v3, %v3104_v61  ;;  %v11632_v47 = vrot.slane %v11622_v63, %v25109_v12  ;;  %v11639_v10 = vrot.slane %v23521_v42, %v25109_v12 }
 0x1a8   :  { %23507 = vmatprep.mubr.msk.f32.mxu0 %vm7786_vm0, %v7136_v39  ;;  %v3107_v21 = vcombine.high %v3103_v57, %v3103_v57  ;;  %v7139_v18 = vcombine.low %v3103_v57, %v3105_v46  ;;  %v11646_v45 = vrot.slane %v11624_v4, %v25109_v12  ;;  %v3132_v63 = vrot.slane %v3116_v20, %v25109_v12  ;;  %v26882_v39 = vpop.f32.mrf.mxu0 }
 0x1a9   :  { %8254 = vmatmul.mubr.f32.gmra.mxu0 %v7135_v30  ;;  %v7138_v7 = vcombine.low %v3106_v32, %v3089_v31  ;;  %v7147_v51 = vrot.slane %v7137_v44, %v25109_v12  ;;  %v11653_v29 = vrot.slane %v23522_v16, %v25109_v12  ;;  %v23530_v41 = vcombine.high %v26829_v13, %v26832_v11 }
 0x1aa   :  { %v11654_v42 = vcombine.low %v11632_v47, %v11639_v10  ;;  %v8711_v4 = vcombine.high %v26383_v58, %v26383_v58  ;;  %v8718_v35 = vrot.slane %v26383_v58, %v25109_v12  ;;  %v7140_v1 = vcombine.low %v3107_v21, %v3132_v63  ;;  %v8077_v55 = vpop.f32.mrf.mxu0 }
 0x1ab   :  { %v7154_v31 = vrot.slane %v7138_v7, %v25109_v12  ;;  %v7161_v3 = vrot.slane %v7139_v18, %v25109_v12  ;;  %v11655_v61 = vcombine.low %v11646_v45, %v11653_v29  ;;  %v3123_v30 = vrot.slane %v24924_v38, %v25109_v12 }
 0x1ac   :  { %v11662_v6 = vrot.slane %v11654_v42, %v25109_v12  ;;  %v8725_v2 = vrot.slane %v8711_v4, %v25109_v12  ;;  %v8726_v16 = vcombine.high %v8718_v35, %v8718_v35  ;;  %v7168_v57 = vrot.slane %v7140_v1, %v25109_v12 }
 0x1ad   :  { %v7170_v46 = vcombine.high %v7147_v51, %v7154_v31  ;;  %v11669_v58 = vrot.slane %v11655_v61, %v25109_v12  ;;  %v7169_v21 = vcombine.low %v7147_v51, %v7154_v31  ;;  %v26890_v44 = vrot.slane %v8718_v35, %v25109_v12  ;;  %v26908_v35 = vpop.f32.mrf.mxu0 }
 0x1ae   :  { %v8727_v32 = vcombine.high %v8725_v2, %v8725_v2  ;;  %v26893_v47 = vrot.slane %v8726_v16, %v25109_v12  ;;  %v3124_v18 = vcombine.high %v3116_v20, %v3116_v20  ;;  %v7172_v10 = vcombine.high %v7161_v3, %v7168_v57  ;;  %v24925_v20 = vld [vmem:[%s33925_s0 + $0x390] ss:$8 sps:$4 sm:$0xff]  }
 0x1af   :  { %v7186_v45 = vrot.slane %v7170_v46, %v25109_v12  ;;  %v11670_v7 = vcombine.low %v11662_v6, %v11669_v58  ;;  %v7171_v38 = vcombine.low %v7161_v3, %v7168_v57  ;;  %v26897_v29 = vrot.slane %v8725_v2, %v25109_v12  ;;  %v8082_v46 = vpop.f32.mrf.mxu0 }
 0x1b0   :  { %v26900_v42 = vrot.slane %v8727_v32, %v25109_v12  ;;  %v7179_v4 = vrot.slane %v7169_v21, %v25109_v12  ;;  %v7200_v1 = vrot.slane %v7172_v10, %v25109_v12  ;;  %v3125_v3 = vcombine.high %v3123_v30, %v3123_v30 }
 0x1b1   :  { %14724 = vxpose.xlu0.b32.cont [3/16] (narrow) %v11670_v7, 88  ;;  %v7193_v31 = vrot.slane %v7171_v38, %v25109_v12  ;;  %v3139_v61 = vrot.slane %v3123_v30, %v25109_v12  ;;  %v3146_v16 = vrot.slane %v3124_v18, %v25109_v12  ;;  %v3154_v57 = vcombine.high %v3132_v63, %v3132_v63 }
 0x1b2   :  { %v7202_v58 = vcombine.low %v7186_v45, %v7200_v1  ;;  %v3153_v55 = vrot.slane %v3125_v3, %v25109_v12  ;;  %v3166_v7 = vrot.slane %v24925_v20, %v25109_v12  ;;  %v33933_v30 = vcombine.low %v26637_v37, %v26645_v62  ;;  %v24927_v1 = vld [vmem:[%s33925_s0 + $0x394] ss:$8 sps:$4 sm:$0xff]  }
 0x1b3   :  { %v7201_v21 = vcombine.low %v7179_v4, %v7193_v31  ;;  %v3155_v32 = vcombine.high %v3139_v61, %v3139_v61  ;;  %v3156_v10 = vcombine.high %v3146_v16, %v3146_v16  ;;  %v7203_v38 = vcombine.low %v3146_v16, %v3154_v57  ;;  %v26936_v31 = vpop.f32.mrf.mxu0 }
 0x1b4   :  { %v11681_v6 = vrot.slane %v33933_v30, %v25109_v12  ;;  %23508 = vmatprep.mubr.msk.f32.mxu0 %vm7786_vm0, %v7202_v58  ;;  %v3157_v2 = vcombine.high %v3153_v55, %v3153_v55  ;;  %v33934_v63 = vcombine.high %v26637_v37, %v26645_v62  ;;  %v33935_v4 = vcombine.low %v26640_v27, %v26648_v50 }
 0x1b5   :  { %v7205_v18 = vcombine.low %v3153_v55, %v3155_v32  ;;  %8259 = vmatmul.mubr.f32.gmra.mxu0 %v7201_v21  ;;  %v3182_v3 = vrot.slane %v3166_v7, %v25109_v12  ;;  %v7204_v16 = vcombine.low %v3156_v10, %v3139_v61  ;;  %v7213_v57 = vrot.slane %v7203_v38, %v25109_v12  ;;  %v8087_v32 = vpop.f32.mrf.mxu0 }
 0x1b6   :  { %v11688_v45 = vrot.slane %v33934_v63, %v25109_v12  ;;  %v11695_v20 = vrot.slane %v33935_v4, %v25109_v12  ;;  %v33936_v37 = vcombine.high %v26640_v27, %v26648_v50  ;;  %v8760_v55 = vcombine.high %v26422_v54, %v26422_v54 }
 0x1b7   :  { %v8767_v21 = vrot.slane %v26422_v54, %v25109_v12  ;;  %v7206_v30 = vcombine.low %v3157_v2, %v3182_v3  ;;  %v7220_v61 = vrot.slane %v7204_v16, %v25109_v12  ;;  %v7227_v10 = vrot.slane %v7205_v18, %v25109_v12  ;;  %v26963_v16 = vpop.f32.mrf.mxu0 }
 0x1b8   :  { %v11702_v62 = vrot.slane %v33936_v37, %v25109_v12  ;;  %v11703_v58 = vcombine.low %v11681_v6, %v11688_v45  ;;  %v8774_v50 = vrot.slane %v8760_v55, %v25109_v12  ;;  %v3173_v6 = vrot.slane %v24927_v1, %v25109_v12 }
 0x1b9   :  { %v8775_v63 = vcombine.high %v8767_v21, %v8767_v21  ;;  %v7234_v45 = vrot.slane %v7206_v30, %v25109_v12  ;;  %v7236_v4 = vcombine.high %v7213_v57, %v7220_v61  ;;  %v7235_v54 = vcombine.low %v7213_v57, %v7220_v61 }
 0x1ba   :  { %v11704_v38 = vcombine.low %v11695_v20, %v11702_v62  ;;  %v11711_v27 = vrot.slane %v11703_v58, %v25109_v12  ;;  %v8776_v32 = vcombine.high %v8774_v50, %v8774_v50  ;;  %v26958_v2 = vrot.slane %v8767_v21, %v25109_v12 }
 0x1bb   :  { %v26961_v18 = vrot.slane %v8775_v63, %v25109_v12  ;;  %v3174_v20 = vcombine.high %v3166_v7, %v3166_v7  ;;  %v7238_v62 = vcombine.high %v7227_v10, %v7234_v45  ;;  %v7252_v58 = vrot.slane %v7236_v4, %v25109_v12  ;;  %v24928_v7 = vld [vmem:[%s33925_s0 + $0x3a0] ss:$8 sps:$4 sm:$0xff]  }
 0x1bc   :  { %v11718_v37 = vrot.slane %v11704_v38, %v25109_v12  ;;  %v7237_v55 = vcombine.low %v7227_v10, %v7234_v45  ;;  %v26967_v30 = vrot.slane %v8774_v50, %v25109_v12  ;;  %v26970_v57 = vrot.slane %v8776_v32, %v25109_v12  ;;  %v8092_v38 = vpop.f32.mrf.mxu0 }
 0x1bd   :  { %v7245_v61 = vrot.slane %v7235_v54, %v25109_v12  ;;  %v7266_v63 = vrot.slane %v7238_v62, %v25109_v12  ;;  %v3189_v50 = vrot.slane %v3173_v6, %v25109_v12  ;;  %v3204_v54 = vcombine.high %v3182_v3, %v3182_v3 }
 0x1be   :  { %v11719_v1 = vcombine.low %v11711_v27, %v11718_v37  ;;  %v7259_v10 = vrot.slane %v7237_v55, %v25109_v12  ;;  %v3175_v27 = vcombine.high %v3173_v6, %v3173_v6  ;;  %v11918_v4 = vcombine.low %v26967_v30, %v26970_v57 }
 0x1bf   :  { %v3196_v37 = vrot.slane %v3174_v20, %v25109_v12  ;;  %v7268_v32 = vcombine.low %v7252_v58, %v7266_v63  ;;  %v3205_v62 = vcombine.high %v3189_v50, %v3189_v50  ;;  %v3216_v46 = vrot.slane %v24928_v7, %v25109_v12 }
 0x1c0   :  { %14725 = vxpose.xlu0.b32.cont [4/16] (narrow) %v11719_v1, 88  ;;  %v7267_v21 = vcombine.low %v7245_v61, %v7259_v10  ;;  %v3203_v38 = vrot.slane %v3175_v27, %v25109_v12  ;;  %v26987_v1 = vpop.f32.mrf.mxu0  ;;  %v33937_v45 = vcombine.low %v26684_v22, %v26691_v14  ;;  %v33938_v58 = vcombine.high %v26684_v22, %v26691_v14  ;;  %v24930_v10 = vld [vmem:[%s33925_s0 + $0x3a4] ss:$8 sps:$4 sm:$0xff]  }
 0x1c1   :  { %v3206_v55 = vcombine.high %v3196_v37, %v3196_v37  ;;  %v7269_v6 = vcombine.low %v3196_v37, %v3204_v54  ;;  %23509 = vmatprep.mubr.msk.f32.mxu0 %vm7786_vm0, %v7268_v32  ;;  %v33939_v63 = vcombine.low %v26687_v40, %v26695_v24  ;;  %v11751_v22 = vrot.slane %v23526_v9, %v25109_v12 }
 0x1c2   :  { %v11730_v51 = vrot.slane %v33937_v45, %v25109_v12  ;;  %v3207_v20 = vcombine.high %v3203_v38, %v3203_v38  ;;  %v7271_v3 = vcombine.low %v3203_v38, %v3205_v62  ;;  %v11737_v61 = vrot.slane %v33938_v58, %v25109_v12  ;;  %v8097_v27 = vpop.f32.mrf.mxu0  ;;  %8264 = vmatmul.mubr.f32.gmra.mxu0 %v7267_v21 }
 0x1c3   :  { %v11744_v7 = vrot.slane %v33939_v63, %v25109_v12  ;;  %v3232_v45 = vrot.slane %v3216_v46, %v25109_v12  ;;  %v7270_v37 = vcombine.low %v3206_v55, %v3189_v50  ;;  %v7279_v54 = vrot.slane %v7269_v6, %v25109_v12 }
 0x1c4   :  { %v11752_v32 = vcombine.low %v11730_v51, %v11737_v61  ;;  %v8809_v38 = vcombine.high %v26459_v8, %v26459_v8  ;;  %v8816_v21 = vrot.slane %v26459_v8, %v25109_v12  ;;  %v7293_v55 = vrot.slane %v7271_v3, %v25109_v12  ;;  %v27020_v58 = vpop.f32.mrf.mxu0 }
 0x1c5   :  { %v7272_v62 = vcombine.low %v3207_v20, %v3232_v45  ;;  %v7286_v50 = vrot.slane %v7270_v37, %v25109_v12  ;;  %v11753_v6 = vcombine.low %v11744_v7, %v11751_v22  ;;  %v3223_v51 = vrot.slane %v24930_v10, %v25109_v12 }
 0x1c6   :  { %v11760_v40 = vrot.slane %v11752_v32, %v25109_v12  ;;  %v8823_v24 = vrot.slane %v8809_v38, %v25109_v12  ;;  %v8824_v9 = vcombine.high %v8816_v21, %v8816_v21  ;;  %v8102_v27 = vpop.f32.mrf.mxu0  ;;  %v27028_v3 = vrot.slane %v8816_v21, %v25109_v12 }
 0x1c7   :  { %v7300_v61 = vrot.slane %v7272_v62, %v25109_v12  ;;  %v7302_v63 = vcombine.high %v7279_v54, %v7286_v50  ;;  %v11767_v8 = vrot.slane %v11753_v6, %v25109_v12  ;;  %v7301_v20 = vcombine.low %v7279_v54, %v7286_v50 }
 0x1c8   :  { %v8825_v37 = vcombine.high %v8823_v24, %v8823_v24  ;;  %v27031_v7 = vrot.slane %v8824_v9, %v25109_v12  ;;  %v3224_v22 = vcombine.high %v3216_v46, %v3216_v46  ;;  %v27035_v62 = vrot.slane %v8823_v24, %v25109_v12  ;;  %v24931_v46 = vld [vmem:[%s33925_s0 + $0x3b0] ss:$8 sps:$4 sm:$0xff]  }
 0x1c9   :  { %v7304_v32 = vcombine.high %v7293_v55, %v7300_v61  ;;  %v7318_v38 = vrot.slane %v7302_v63, %v25109_v12  ;;  %v11768_v14 = vcombine.low %v11760_v40, %v11767_v8  ;;  %v7303_v10 = vcombine.low %v7293_v55, %v7300_v61 }
 0x1ca   :  { %v27038_v6 = vrot.slane %v8825_v37, %v25109_v12  ;;  %v7311_v21 = vrot.slane %v7301_v20, %v25109_v12  ;;  %v3225_v40 = vcombine.high %v3223_v51, %v3223_v51  ;;  %v3239_v24 = vrot.slane %v3223_v51, %v25109_v12  ;;  %v27054_v20 = vpop.f32.mrf.mxu0 }
 0x1cb   :  { %v7332_v50 = vrot.slane %v7304_v32, %v25109_v12  ;;  %14726 = vxpose.xlu0.b32.cont [5/16] (narrow) %v11768_v14, 88  ;;  %v7325_v55 = vrot.slane %v7303_v10, %v25109_v12  ;;  %v3246_v63 = vrot.slane %v3224_v22, %v25109_v12  ;;  %v3254_v8 = vcombine.high %v3232_v45, %v3232_v45 }
 0x1cc   :  { %v3253_v14 = vrot.slane %v3225_v40, %v25109_v12  ;;  %v3255_v32 = vcombine.high %v3239_v24, %v3239_v24  ;;  %v3266_v54 = vrot.slane %v24931_v46, %v25109_v12  ;;  %v11779_v9 = vrot.slane %v11769_v5, %v25109_v12  ;;  %v8107_v61 = vpop.f32.mrf.mxu0  ;;  %v24933_v46 = vld [vmem:[%s33925_s0 + $0x3b4] ss:$8 sps:$4 sm:$0xff]  }
 0x1cd   :  { %v7334_v27 = vcombine.low %v7318_v38, %v7332_v50  ;;  %v7333_v37 = vcombine.low %v7311_v21, %v7325_v55  ;;  %v3256_v10 = vcombine.high %v3246_v63, %v3246_v63  ;;  %v7335_v51 = vcombine.low %v3246_v63, %v3254_v8 }
 0x1ce   :  { %v3257_v45 = vcombine.high %v3253_v14, %v3253_v14  ;;  %v7337_v22 = vcombine.low %v3253_v14, %v3255_v32  ;;  %v11786_v38 = vrot.slane %v23527_v34, %v25109_v12  ;;  %v11793_v21 = vrot.slane %v11771_v28, %v25109_v12  ;;  %v27086_v61 = vpop.f32.mrf.mxu0 }
 0x1cf   :  { %23510 = vmatprep.mubr.msk.f32.mxu0 %vm7786_vm0, %v7334_v27  ;;  %v3282_v5 = vrot.slane %v3266_v54, %v25109_v12  ;;  %v7336_v50 = vcombine.low %v3256_v10, %v3239_v24  ;;  %v7345_v55 = vrot.slane %v7335_v51, %v25109_v12  ;;  %v11800_v52 = vrot.slane %v23528_v36, %v25109_v12 }
 0x1d0   :  { %8269 = vmatmul.mubr.f32.gmra.mxu0 %v7333_v37  ;;  %v23536_v17 = vcombine.high %v27035_v62, %v27038_v6  ;;  %v11801_v34 = vcombine.low %v11779_v9, %v11786_v38  ;;  %v8858_v28 = vcombine.high %v26501_v19, %v26501_v19  ;;  %v8865_v40 = vrot.slane %v26501_v19, %v25109_v12  ;;  %v8112_v37 = vpop.f32.mrf.mxu0 }
 0x1d1   :  { %v7338_v24 = vcombine.low %v3257_v45, %v3282_v5  ;;  %v7352_v63 = vrot.slane %v7336_v50, %v25109_v12  ;;  %v7359_v8 = vrot.slane %v7337_v22, %v25109_v12  ;;  %v11802_v27 = vcombine.low %v11793_v21, %v11800_v52 }
 0x1d2   :  { %v11809_v56 = vrot.slane %v11801_v34, %v25109_v12  ;;  %v8872_v0 = vrot.slane %v8858_v28, %v25109_v12  ;;  %v8873_v36 = vcombine.high %v8865_v40, %v8865_v40  ;;  %v3273_v9 = vrot.slane %v24933_v46, %v25109_v12  ;;  %v27102_v34 = vpop.f32.mrf.mxu0 }
 0x1d3   :  { %v7366_v14 = vrot.slane %v7338_v24, %v25109_v12  ;;  %v7368_v32 = vcombine.high %v7345_v55, %v7352_v63  ;;  %v11816_v19 = vrot.slane %v11802_v27, %v25109_v12  ;;  %v7367_v10 = vcombine.low %v7345_v55, %v7352_v63 }
 0x1d4   :  { %v8874_v51 = vcombine.high %v8872_v0, %v8872_v0  ;;  %v27096_v45 = vrot.slane %v8865_v40, %v25109_v12  ;;  %v27099_v22 = vrot.slane %v8873_v36, %v25109_v12  ;;  %v3274_v38 = vcombine.high %v3266_v54, %v3266_v54  ;;  %v24934_v54 = vld [vmem:[%s33925_s0 + $0x3c0] ss:$8 sps:$4 sm:$0xff]  }
 0x1d5   :  { %v7370_v21 = vcombine.high %v7359_v8, %v7366_v14  ;;  %v7384_v50 = vrot.slane %v7368_v32, %v25109_v12  ;;  %v11817_v52 = vcombine.low %v11809_v56, %v11816_v19  ;;  %v7369_v46 = vcombine.low %v7359_v8, %v7366_v14 }
 0x1d6   :  { %v27105_v28 = vrot.slane %v8872_v0, %v25109_v12  ;;  %v27108_v55 = vrot.slane %v8874_v51, %v25109_v12  ;;  %v7377_v24 = vrot.slane %v7367_v10, %v25109_v12  ;;  %v3275_v27 = vcombine.high %v3273_v9, %v3273_v9  ;;  %v8117_v0 = vpop.f32.mrf.mxu0 }
 0x1d7   :  { %v7398_v63 = vrot.slane %v7370_v21, %v25109_v12  ;;  %14727 = vxpose.xlu0.b32.cont [6/16] (narrow) %v11817_v52, 88  ;;  %v7391_v8 = vrot.slane %v7369_v46, %v25109_v12  ;;  %v3289_v56 = vrot.slane %v3273_v9, %v25109_v12  ;;  %v3296_v14 = vrot.slane %v3274_v38, %v25109_v12 }
 0x1d8   :  { %v3304_v32 = vcombine.high %v3282_v5, %v3282_v5  ;;  %v3303_v51 = vrot.slane %v3275_v27, %v25109_v12  ;;  %v3316_v46 = vrot.slane %v24934_v54, %v25109_v12  ;;  %v11828_v9 = vrot.slane %v11818_v60, %v25109_v12  ;;  %v27142_v54 = vpop.f32.mrf.mxu0 }
 0x1d9   :  { %v7400_v19 = vcombine.low %v7384_v50, %v7398_v63  ;;  %v7399_v10 = vcombine.low %v7377_v24, %v7391_v8  ;;  %v3305_v21 = vcombine.high %v3289_v56, %v3289_v56  ;;  %v3306_v52 = vcombine.high %v3296_v14, %v3296_v14  ;;  %v24936_v24 = vld [vmem:[%s33925_s0 + $0x3c4] ss:$8 sps:$4 sm:$0xff]  }
 0x1da   :  { %v7401_v40 = vcombine.low %v3296_v14, %v3304_v32  ;;  %v3307_v0 = vcombine.high %v3303_v51, %v3303_v51  ;;  %v11835_v5 = vrot.slane %v23529_v26, %v25109_v12  ;;  %v33940_v38 = vcombine.low %v26829_v13, %v26832_v11  ;;  %v8122_v32 = vpop.f32.mrf.mxu0 }
 0x1db   :  { %23511 = vmatprep.mubr.msk.f32.mxu0 %vm7786_vm0, %v7400_v19  ;;  %v7403_v37 = vcombine.low %v3303_v51, %v3305_v21  ;;  %v3332_v60 = vrot.slane %v3316_v46, %v25109_v12  ;;  %v7402_v63 = vcombine.low %v3306_v52, %v3289_v56  ;;  %v11849_v49 = vrot.slane %v23530_v41, %v25109_v12 }
 0x1dc   :  { %v11842_v50 = vrot.slane %v33940_v38, %v25109_v12  ;;  %8274 = vmatmul.mubr.f32.gmra.mxu0 %v7399_v10  ;;  %v7411_v8 = vrot.slane %v7401_v40, %v25109_v12  ;;  %v11850_v26 = vcombine.low %v11828_v9, %v11835_v5  ;;  %v8907_v27 = vcombine.high %v26563_v53, %v26563_v53  ;;  %v27163_v5 = vpop.f32.mrf.mxu0 }
 0x1dd   :  { %v8914_v14 = vrot.slane %v26563_v53, %v25109_v12  ;;  %v7404_v19 = vcombine.low %v3307_v0, %v3332_v60  ;;  %v7418_v56 = vrot.slane %v7402_v63, %v25109_v12  ;;  %v7425_v40 = vrot.slane %v7403_v37, %v25109_v12 }
 0x1de   :  { %v11851_v10 = vcombine.low %v11842_v50, %v11849_v49  ;;  %v11858_v13 = vrot.slane %v11850_v26, %v25109_v12  ;;  %v8921_v11 = vrot.slane %v8907_v27, %v25109_v12  ;;  %v3323_v51 = vrot.slane %v24936_v24, %v25109_v12  ;;  %v8127_v27 = vpop.f32.mrf.mxu0 }
 0x1df   :  { %v8922_v41 = vcombine.high %v8914_v14, %v8914_v14  ;;  %v7432_v21 = vrot.slane %v7404_v19, %v25109_v12  ;;  %v7434_v52 = vcombine.high %v7411_v8, %v7418_v56  ;;  %v7433_v53 = vcombine.low %v7411_v8, %v7418_v56 }
 0x1e0   :  { %v11865_v9 = vrot.slane %v11851_v10, %v25109_v12  ;;  %v8923_v0 = vcombine.high %v8921_v11, %v8921_v11  ;;  %v27166_v38 = vrot.slane %v8914_v14, %v25109_v12  ;;  %v3324_v50 = vcombine.high %v3316_v46, %v3316_v46  ;;  %v24937_v46 = vld [vmem:[%s33925_s0 + $0x3d0] ss:$8 sps:$4 sm:$0xff]  }
 0x1e1   :  { %v27169_v37 = vrot.slane %v8922_v41, %v25109_v12  ;;  %v7436_v63 = vcombine.high %v7425_v40, %v7432_v21  ;;  %v7450_v49 = vrot.slane %v7434_v52, %v25109_v12  ;;  %v7435_v26 = vcombine.low %v7425_v40, %v7432_v21 }
 0x1e2   :  { %v11866_v24 = vcombine.low %v11858_v13, %v11865_v9  ;;  %v27173_v32 = vrot.slane %v8921_v11, %v25109_v12  ;;  %v27176_v8 = vrot.slane %v8923_v0, %v25109_v12  ;;  %v7443_v19 = vrot.slane %v7433_v53, %v25109_v12  ;;  %v27192_v9 = vpop.f32.mrf.mxu0 }
 0x1e3   :  { %v7464_v56 = vrot.slane %v7436_v63, %v25109_v12  ;;  %v7457_v40 = vrot.slane %v7435_v26, %v25109_v12  ;;  %v3325_v10 = vcombine.high %v3323_v51, %v3323_v51  ;;  %v3339_v13 = vrot.slane %v3323_v51, %v25109_v12 }
 0x1e4   :  { %14728 = vxpose.xlu0.b32.cont [7/16] (narrow) %v11866_v24, 88  ;;  %v3346_v21 = vrot.slane %v3324_v50, %v25109_v12  ;;  %v3354_v52 = vcombine.high %v3332_v60, %v3332_v60  ;;  %v3366_v27 = vrot.slane %v24937_v46, %v25109_v12  ;;  %v33941_v11 = vcombine.low %v26890_v44, %v26893_v47  ;;  %v8132_v41 = vpop.f32.mrf.mxu0 }
 0x1e5   :  { %v7466_v53 = vcombine.low %v7450_v49, %v7464_v56  ;;  %v7465_v0 = vcombine.low %v7443_v19, %v7457_v40  ;;  %v3353_v63 = vrot.slane %v3325_v10, %v25109_v12  ;;  %v3355_v24 = vcombine.high %v3339_v13, %v3339_v13  ;;  %v24939_v40 = vld [vmem:[%s33925_s0 + $0x3d4] ss:$8 sps:$4 sm:$0xff]  }
 0x1e6   :  { %v3356_v26 = vcombine.high %v3346_v21, %v3346_v21  ;;  %v7467_v51 = vcombine.low %v3346_v21, %v3354_v52  ;;  %v11877_v14 = vrot.slane %v33941_v11, %v25109_v12  ;;  %v33942_v49 = vcombine.high %v26890_v44, %v26893_v47 }
 0x1e7   :  { %23512 = vmatprep.mubr.msk.f32.mxu0 %vm7786_vm0, %v7466_v53  ;;  %v3357_v60 = vcombine.high %v3353_v63, %v3353_v63  ;;  %v7469_v50 = vcombine.low %v3353_v63, %v3355_v24  ;;  %v33943_v46 = vcombine.low %v26897_v29, %v26900_v42  ;;  %v3382_v10 = vrot.slane %v3366_v27, %v25109_v12 }
 0x1e8   :  { %v11884_v19 = vrot.slane %v33942_v49, %v25109_v12  ;;  %8279 = vmatmul.mubr.f32.gmra.mxu0 %v7465_v0  ;;  %v7468_v11 = vcombine.low %v3356_v26, %v3339_v13  ;;  %v7477_v41 = vrot.slane %v7467_v51, %v25109_v12  ;;  %v33944_v44 = vcombine.high %v26897_v29, %v26900_v42 }
 0x1e9   :  { %v11891_v56 = vrot.slane %v33943_v46, %v25109_v12  ;;  %v8956_v53 = vcombine.high %v26622_v43, %v26622_v43  ;;  %v8963_v0 = vrot.slane %v26622_v43, %v25109_v12  ;;  %v7470_v63 = vcombine.low %v3357_v60, %v3382_v10 }
 0x1ea   :  { %v11898_v47 = vrot.slane %v33944_v44, %v25109_v12  ;;  %v11899_v52 = vcombine.low %v11877_v14, %v11884_v19  ;;  %v7484_v13 = vrot.slane %v7468_v11, %v25109_v12  ;;  %v7491_v24 = vrot.slane %v7469_v50, %v25109_v12  ;;  %v27229_v14 = vpop.f32.mrf.mxu0 }
 0x1eb   :  { %v8970_v29 = vrot.slane %v8956_v53, %v25109_v12  ;;  %v8971_v42 = vcombine.high %v8963_v0, %v8963_v0  ;;  %v3373_v49 = vrot.slane %v24939_v40, %v25109_v12  ;;  %v7498_v19 = vrot.slane %v7470_v63, %v25109_v12 }
 0x1ec   :  { %v11900_v26 = vcombine.low %v11891_v56, %v11898_v47  ;;  %v11907_v51 = vrot.slane %v11899_v52, %v25109_v12  ;;  %v7500_v46 = vcombine.high %v7477_v41, %v7484_v13  ;;  %v7499_v60 = vcombine.low %v7477_v41, %v7484_v13  ;;  %v8137_v47 = vpop.f32.mrf.mxu0 }
 0x1ed   :  { %v8972_v44 = vcombine.high %v8970_v29, %v8970_v29  ;;  %v27234_v11 = vrot.slane %v8963_v0, %v25109_v12  ;;  %v27237_v50 = vrot.slane %v8971_v42, %v25109_v12  ;;  %v3374_v56 = vcombine.high %v3366_v27, %v3366_v27  ;;  %v24940_v27 = vld [vmem:[%s33925_s0 + $0x3e0] ss:$8 sps:$4 sm:$0xff]  }
 0x1ee   :  { %v11914_v43 = vrot.slane %v11900_v26, %v25109_v12  ;;  %v7502_v52 = vcombine.high %v7491_v24, %v7498_v19  ;;  %v7516_v40 = vrot.slane %v7500_v46, %v25109_v12  ;;  %v7501_v21 = vcombine.low %v7491_v24, %v7498_v19  ;;  %v27255_v42 = vpop.f32.mrf.mxu0 }
 0x1ef   :  { %v27241_v63 = vrot.slane %v8970_v29, %v25109_v12  ;;  %v27244_v26 = vrot.slane %v8972_v44, %v25109_v12  ;;  %v7509_v0 = vrot.slane %v7499_v60, %v25109_v12  ;;  %v3389_v29 = vrot.slane %v3373_v49, %v25109_v12 }
 0x1f0   :  { %v11915_v53 = vcombine.low %v11907_v51, %v11914_v43  ;;  %v7530_v13 = vrot.slane %v7502_v52, %v25109_v12  ;;  %v7523_v24 = vrot.slane %v7501_v21, %v25109_v12  ;;  %v3375_v51 = vcombine.high %v3373_v49, %v3373_v49  ;;  %v8142_v21 = vpop.f32.mrf.mxu0 }
 0x1f1   :  { %v3396_v43 = vrot.slane %v3374_v56, %v25109_v12  ;;  %v3404_v60 = vcombine.high %v3382_v10, %v3382_v10  ;;  %v3416_v49 = vrot.slane %v24940_v27, %v25109_v12  ;;  %v33945_v19 = vcombine.low %v26958_v2, %v26961_v18  ;;  %v24942_v27 = vld [vmem:[%s33925_s0 + $0x3e4] ss:$8 sps:$4 sm:$0xff]  }
 0x1f2   :  { %14729 = vxpose.xlu0.b32.cont [8/16] (narrow) %v11915_v53, 88  ;;  %v7532_v44 = vcombine.low %v7516_v40, %v7530_v13  ;;  %v7531_v47 = vcombine.low %v7509_v0, %v7523_v24  ;;  %v3403_v52 = vrot.slane %v3375_v51, %v25109_v12  ;;  %v3405_v53 = vcombine.high %v3389_v29, %v3389_v29 }
 0x1f3   :  { %v3406_v41 = vcombine.high %v3396_v43, %v3396_v43  ;;  %v7533_v25 = vcombine.low %v3396_v43, %v3404_v60  ;;  %v11926_v36 = vrot.slane %v33945_v19, %v25109_v12  ;;  %v33946_v10 = vcombine.high %v26958_v2, %v26961_v18 }
 0x1f4   :  { %23513 = vmatprep.mubr.msk.f32.mxu0 %vm7786_vm0, %v7532_v44  ;;  %v3407_v46 = vcombine.high %v3403_v52, %v3403_v52  ;;  %v7535_v56 = vcombine.low %v3403_v52, %v3405_v53  ;;  %v11940_v0 = vrot.slane %v11918_v4, %v25109_v12  ;;  %v3432_v13 = vrot.slane %v3416_v49, %v25109_v12  ;;  %v27292_v44 = vpop.f32.mrf.mxu0 }
 0x1f5   :  { %v11933_v40 = vrot.slane %v33946_v10, %v25109_v12  ;;  %8284 = vmatmul.mubr.f32.gmra.mxu0 %v7531_v47  ;;  %v7534_v24 = vcombine.low %v3406_v41, %v3389_v29  ;;  %v7543_v51 = vrot.slane %v7533_v25, %v25109_v12  ;;  %v33947_v2 = vcombine.high %v26967_v30, %v26970_v57 }
 0x1f6   :  { %v9005_v4 = vcombine.high %v26675_v15, %v26675_v15  ;;  %v9012_v60 = vrot.slane %v26675_v15, %v25109_v12  ;;  %v7536_v41 = vcombine.low %v3407_v46, %v3432_v13  ;;  %v7557_v29 = vrot.slane %v7535_v56, %v25109_v12  ;;  %v8147_v53 = vpop.f32.mrf.mxu0 }
 0x1f7   :  { %v11947_v18 = vrot.slane %v33947_v2, %v25109_v12  ;;  %v11948_v43 = vcombine.low %v11926_v36, %v11933_v40  ;;  %v7550_v25 = vrot.slane %v7534_v24, %v25109_v12  ;;  %v3423_v36 = vrot.slane %v24942_v27, %v25109_v12 }
 0x1f8   :  { %v9019_v57 = vrot.slane %v9005_v4, %v25109_v12  ;;  %v9020_v52 = vcombine.high %v9012_v60, %v9012_v60  ;;  %v7564_v21 = vrot.slane %v7536_v41, %v25109_v12  ;;  %v27302_v24 = vrot.slane %v9012_v60, %v25109_v12 }
 0x1f9   :  { %v11949_v47 = vcombine.low %v11940_v0, %v11947_v18  ;;  %v11956_v30 = vrot.slane %v11948_v43, %v25109_v12  ;;  %v7566_v10 = vcombine.high %v7543_v51, %v7550_v25  ;;  %v7565_v40 = vcombine.low %v7543_v51, %v7550_v25 }
 0x1fa   :  { %v9021_v46 = vcombine.high %v9019_v57, %v9019_v57  ;;  %v27305_v56 = vrot.slane %v9020_v52, %v25109_v12  ;;  %v3424_v0 = vcombine.high %v3416_v49, %v3416_v49  ;;  %v7568_v2 = vcombine.high %v7557_v29, %v7564_v21  ;;  %v24943_v49 = vld [vmem:[%s33925_s0 + $0x3f0] ss:$8 sps:$4 sm:$0xff]  }
 0x1fb   :  { %v11963_v15 = vrot.slane %v11949_v47, %v25109_v12  ;;  %v7582_v18 = vrot.slane %v7566_v10, %v25109_v12  ;;  %v7567_v27 = vcombine.low %v7557_v29, %v7564_v21  ;;  %v27309_v4 = vrot.slane %v9019_v57, %v25109_v12  ;;  %v27323_v57 = vpop.f32.mrf.mxu0 }
 0x1fc   :  { %v27312_v41 = vrot.slane %v9021_v46, %v25109_v12  ;;  %v7575_v60 = vrot.slane %v7565_v40, %v25109_v12  ;;  %v7596_v25 = vrot.slane %v7568_v2, %v25109_v12  ;;  %v3425_v47 = vcombine.high %v3423_v36, %v3423_v36 }
 0x1fd   :  { %v11964_v43 = vcombine.low %v11956_v30, %v11963_v15  ;;  %v7589_v29 = vrot.slane %v7567_v27, %v25109_v12  ;;  %v3439_v30 = vrot.slane %v3423_v36, %v25109_v12  ;;  %v3446_v21 = vrot.slane %v3424_v0, %v25109_v12 }
 0x1fe   :  { %v3454_v10 = vcombine.high %v3432_v13, %v3432_v13  ;;  %v7598_v15 = vcombine.low %v7582_v18, %v7596_v25  ;;  %v3453_v46 = vrot.slane %v3425_v47, %v25109_v12  ;;  %v3466_v36 = vrot.slane %v24943_v49, %v25109_v12  ;;  %v24945_v25 = vld [vmem:[%s33925_s0 + $0x3f4] ss:$8 sps:$4 sm:$0x77]   ;;  %s24975_s0 = smov 40  }
 0x1ff   :  { %14730 = vxpose.xlu0.b32.cont [9/16] (narrow) %v11964_v43, 88  ;;  %v7597_v40 = vcombine.low %v7575_v60, %v7589_v29  ;;  %v3455_v2 = vcombine.high %v3439_v30, %v3439_v30  ;;  %v8152_v43 = vpop.f32.mrf.mxu0  ;;  %v3456_v27 = vcombine.high %v3446_v21, %v3446_v21  ;;  %v33948_v52 = vcombine.low %v27028_v3, %v27031_v7 }
 0x200   :  { %v7599_v51 = vcombine.low %v3446_v21, %v3454_v10  ;;  %23514 = vmatprep.mubr.msk.f32.mxu0 %vm7786_vm0, %v7598_v15  ;;  %v3457_v53 = vcombine.high %v3453_v46, %v3453_v46  ;;  %v33949_v13 = vcombine.high %v27028_v3, %v27031_v7  ;;  %v33950_v60 = vcombine.low %v27035_v62, %v27038_v6 }
 0x201   :  { %v11975_v19 = vrot.slane %v33948_v52, %v25109_v12  ;;  %v7601_v0 = vcombine.low %v3453_v46, %v3455_v2  ;;  %v27348_v29 = vpop.f32.mrf.mxu0  ;;  %8289 = vmatmul.mubr.f32.gmra.mxu0 %v7597_v40  ;;  %v3482_v47 = vrot.slane %v3466_v36, %v25109_v12  ;;  %v7600_v52 = vcombine.low %v3456_v27, %v3439_v30 }
 0x202   :  { %v11982_v18 = vrot.slane %v33949_v13, %v25109_v12  ;;  %v11989_v49 = vrot.slane %v33950_v60, %v25109_v12  ;;  %v7609_v21 = vrot.slane %v7599_v51, %v25109_v12  ;;  %v11996_v3 = vrot.slane %v23536_v17, %v25109_v12 }
 0x203   :  { %v23544_v7 = vcombine.high %v27309_v4, %v27312_v41  ;;  %v9054_v15 = vcombine.high %v26741_v23, %v26741_v23  ;;  %v9061_v40 = vrot.slane %v26741_v23, %v25109_v12  ;;  %v8157_v46 = vpop.f32.mrf.mxu0  ;;  %v7602_v2 = vcombine.low %v3457_v53, %v3482_v47 }
 0x204   :  { %v11997_v10 = vcombine.low %v11975_v19, %v11982_v18  ;;  %v7616_v30 = vrot.slane %v7600_v52, %v25109_v12  ;;  %v7623_v51 = vrot.slane %v7601_v0, %v25109_v12  ;;  %v11998_v43 = vcombine.low %v11989_v49, %v11996_v3 }
 0x205   :  { %v9068_v6 = vrot.slane %v9054_v15, %v25109_v12  ;;  %v9069_v17 = vcombine.high %v9061_v40, %v9061_v40  ;;  %v3473_v19 = vrot.slane %v24945_v25, %v25109_v12  ;;  %v7630_v27 = vrot.slane %v7602_v2, %v25109_v12  ;;  %v27376_v25 = vpop.f32.mrf.mxu0 }
 0x206   :  { %v12005_v62 = vrot.slane %v11997_v10, %v25109_v12  ;;  %v7632_v13 = vcombine.high %v7609_v21, %v7616_v30  ;;  %v12012_v18 = vrot.slane %v11998_v43, %v25109_v12  ;;  %v7631_v23 = vcombine.low %v7609_v21, %v7616_v30 }
 0x207   :  { %v9070_v60 = vcombine.high %v9068_v6, %v9068_v6  ;;  %v27370_v53 = vrot.slane %v9061_v40, %v25109_v12  ;;  %v27373_v0 = vrot.slane %v9069_v17, %v25109_v12  ;;  %v3474_v49 = vcombine.high %v3466_v36, %v3466_v36 }
 0x208   :  { %v7634_v52 = vcombine.high %v7623_v51, %v7630_v27  ;;  %v7648_v3 = vrot.slane %v7632_v13, %v25109_v12  ;;  %v12013_v10 = vcombine.low %v12005_v62, %v12012_v18  ;;  %v7633_v15 = vcombine.low %v7623_v51, %v7630_v27  ;;  %v8162_v62 = vpop.f32.mrf.mxu0 }
 0x209   :  { %v27379_v46 = vrot.slane %v9068_v6, %v25109_v12  ;;  %v27382_v21 = vrot.slane %v9070_v60, %v25109_v12  ;;  %v12210_v40 = vcombine.low %v27370_v53, %v27373_v0  ;;  %v7641_v2 = vrot.slane %v7631_v23, %v25109_v12 }
 0x20a   :  { %v7662_v36 = vrot.slane %v7634_v52, %v25109_v12  ;;  %14731 = vxpose.xlu0.b32.cont [10/16] (narrow) %v12013_v10, 88  ;;  %v7655_v30 = vrot.slane %v7633_v15, %v25109_v12  ;;  %v3475_v43 = vcombine.high %v3473_v19, %v3473_v19  ;;  %v3489_v51 = vrot.slane %v3473_v19, %v25109_v12 }
 0x20b   :  { %v3496_v27 = vrot.slane %v3474_v49, %v25109_v12  ;;  %v3504_v13 = vcombine.high %v3482_v47, %v3482_v47  ;;  %v33951_v19 = vcombine.low %v27096_v45, %v27099_v22  ;;  %v33952_v6 = vcombine.high %v27096_v45, %v27099_v22 }
 0x20c   :  { %v7664_v18 = vcombine.low %v7648_v3, %v7662_v36  ;;  %v7663_v23 = vcombine.low %v7641_v2, %v7655_v30  ;;  %v3503_v60 = vrot.slane %v3475_v43, %v25109_v12  ;;  %v3505_v52 = vcombine.high %v3489_v51, %v3489_v51 }
 0x20d   :  { %v3506_v10 = vcombine.high %v3496_v27, %v3496_v27  ;;  %v7665_v15 = vcombine.low %v3496_v27, %v3504_v13  ;;  %v12024_v62 = vrot.slane %v33951_v19, %v25109_v12  ;;  %v12031_v17 = vrot.slane %v33952_v6, %v25109_v12 }
 0x20e   :  { %23515 = vmatprep.mubr.msk.f32.mxu0 %vm7786_vm0, %v7664_v18  ;;  %v7667_v47 = vcombine.low %v3503_v60, %v3505_v52  ;;  %v33953_v49 = vcombine.low %v27105_v28, %v27108_v55  ;;  %v33954_v2 = vcombine.high %v27105_v28, %v27108_v55  ;;  %v9103_v30 = vcombine.high %v26798_v33, %v26798_v33  ;;  %v27429_v52 = vpop.f32.mrf.mxu0 }
 0x20f   :  { %8294 = vmatmul.mubr.f32.gmra.mxu0 %v7663_v23  ;;  %v7666_v43 = vcombine.low %v3506_v10, %v3489_v51  ;;  %v7674_v45 = vrot.slane %v7665_v15, %v25109_v12  ;;  %v12046_v22 = vcombine.low %v12024_v62, %v12031_v17  ;;  %v9110_v6 = vrot.slane %v26798_v33, %v25109_v12 }
 0x210   :  { %v12038_v3 = vrot.slane %v33953_v49, %v25109_v12  ;;  %v12045_v36 = vrot.slane %v33954_v2, %v25109_v12  ;;  %v7688_v27 = vrot.slane %v7667_v47, %v25109_v12  ;;  %v9117_v18 = vrot.slane %v9103_v30, %v25109_v12  ;;  %v8167_v2 = vpop.f32.mrf.mxu0 }
 0x211   :  { %v33955_v28 = vcombine.low %v27166_v38, %v27169_v37  ;;  %v7681_v60 = vrot.slane %v7666_v43, %v25109_v12  ;;  %v12054_v51 = vrot.slane %v12046_v22, %v25109_v12  ;;  %v9118_v23 = vcombine.high %v9110_v6, %v9110_v6 }
 0x212   :  { %v12047_v13 = vcombine.low %v12038_v3, %v12045_v36  ;;  %v27427_v17 = vrot.slane %v9110_v6, %v25109_v12  ;;  %v7691_v33 = vcombine.high %v7688_v27, %v7688_v27  ;;  %v9119_v15 = vcombine.high %v9117_v18, %v9117_v18 }
 0x213   :  { %v12073_v55 = vrot.slane %v33955_v28, %v25109_v12  ;;  %v27433_v19 = vrot.slane %v9117_v18, %v25109_v12  ;;  %v7690_v62 = vcombine.high %v7674_v45, %v7681_v60  ;;  %v27436_v47 = vrot.slane %v9118_v23, %v25109_v12 }
 0x214   :  { %v12061_v10 = vrot.slane %v12047_v13, %v25109_v12  ;;  %v7689_v49 = vcombine.low %v7674_v45, %v7681_v60  ;;  %v7712_v3 = vrot.slane %v7688_v27, %v25109_v12  ;;  %v7719_v36 = vrot.slane %v7691_v33, %v25109_v12 }
 0x215   :  { %v27441_v43 = vrot.slane %v9119_v15, %v25109_v12  ;;  %v33956_v22 = vcombine.high %v27166_v38, %v27169_v37  ;;  %v23546_v13 = vcombine.high %v27379_v46, %v27382_v21  ;;  %v7705_v18 = vrot.slane %v7690_v62, %v25109_v12 }
 0x216   :  { %v12062_v30 = vcombine.low %v12054_v51, %v12061_v10  ;;  %v12259_v45 = vcombine.low %v27427_v17, %v27436_v47  ;;  %v7698_v27 = vrot.slane %v7689_v49, %v25109_v12  ;;  %v23547_v28 = vcombine.high %v27427_v17, %v27436_v47  ;;  %v27467_v49 = vpop.f32.mrf.mxu0 }
 0x217   :  { %v12080_v6 = vrot.slane %v33956_v22, %v25109_v12  ;;  %v12261_v60 = vcombine.low %v27433_v19, %v27441_v43  ;;  %v33957_v38 = vcombine.low %v27173_v32, %v27176_v8  ;;  %v33958_v51 = vcombine.high %v27173_v32, %v27176_v8 }
 0x218   :  { %14732 = vxpose.xlu0.b32.cont [11/16] (narrow) %v12062_v30, 88  ;;  %v7721_v33 = vcombine.low %v7705_v18, %v7719_v36  ;;  %v7720_v10 = vcombine.low %v7698_v27, %v7712_v3  ;;  %v9152_v62 = vcombine.high %v26819_v48, %v26819_v48  ;;  %v9159_v30 = vrot.slane %v26819_v48, %v25109_v12  ;;  %v8172_v27 = vpop.f32.mrf.mxu0 }
 0x219   :  { %v12087_v37 = vrot.slane %v33957_v38, %v25109_v12  ;;  %v12094_v23 = vrot.slane %v33958_v51, %v25109_v12  ;;  %v12095_v15 = vcombine.low %v12073_v55, %v12080_v6  ;;  %v33959_v22 = vcombine.low %v27234_v11, %v27237_v50 }
 0x21a   :  { %v33960_v32 = vcombine.high %v27234_v11, %v27237_v50  ;;  %23516 = vmatprep.mubr.msk.f32.mxu0 %vm7786_vm0, %v7721_v33  ;;  %v23548_v55 = vcombine.high %v27433_v19, %v27441_v43  ;;  %v9166_v3 = vrot.slane %v9152_v62, %v25109_v12  ;;  %v33961_v48 = vcombine.low %v27241_v63, %v27244_v26 }
 0x21b   :  { %v12096_v2 = vcombine.low %v12087_v37, %v12094_v23  ;;  %v12122_v38 = vrot.slane %v33959_v22, %v25109_v12  ;;  %v33962_v6 = vcombine.high %v27241_v63, %v27244_v26  ;;  %8299 = vmatmul.mubr.f32.gmra.mxu0 %v7720_v10  ;;  %v12103_v11 = vrot.slane %v12095_v15, %v25109_v12 }
 0x21c   :  { %v12129_v8 = vrot.slane %v33960_v32, %v25109_v12  ;;  %v12136_v36 = vrot.slane %v33961_v48, %v25109_v12  ;;  %v9167_v37 = vcombine.high %v9159_v30, %v9159_v30  ;;  %v9168_v23 = vcombine.high %v9166_v3, %v9166_v3 }
 0x21d   :  { %v12143_v18 = vrot.slane %v33962_v6, %v25109_v12  ;;  %v12110_v50 = vrot.slane %v12096_v2, %v25109_v12  ;;  %v27494_v33 = vrot.slane %v9159_v30, %v25109_v12  ;;  %v9201_v22 = vcombine.high %v26843_v59, %v26843_v59 }
 0x21e   :  { %v12144_v51 = vcombine.low %v12122_v38, %v12129_v8  ;;  %v27499_v63 = vrot.slane %v9166_v3, %v25109_v12  ;;  %v27502_v26 = vrot.slane %v9167_v37, %v25109_v12  ;;  %v9208_v10 = vrot.slane %v26843_v59, %v25109_v12  ;;  %v27512_v8 = vpop.f32.mrf.mxu0 }
 0x21f   :  { %v12145_v62 = vcombine.low %v12136_v36, %v12143_v18  ;;  %v12111_v32 = vcombine.low %v12103_v11, %v12110_v50  ;;  %v27507_v15 = vrot.slane %v9168_v23, %v25109_v12  ;;  %v9215_v38 = vrot.slane %v9201_v22, %v25109_v12 }
 0x220   :  { %v12152_v2 = vrot.slane %v12144_v51, %v25109_v12  ;;  %v12308_v3 = vcombine.low %v27494_v33, %v27502_v26  ;;  %v23549_v48 = vcombine.high %v27494_v33, %v27502_v26  ;;  %v9216_v36 = vcombine.high %v9208_v10, %v9208_v10  ;;  %v8177_v37 = vpop.f32.mrf.mxu0 }
 0x221   :  { %v12159_v30 = vrot.slane %v12145_v62, %v25109_v12  ;;  %14733 = vxpose.xlu0.b32.cont [12/16] (narrow) %v12111_v32, 88  ;;  %v33963_v59 = vcombine.low %v27302_v24, %v27305_v56  ;;  %v12310_v18 = vcombine.low %v27499_v63, %v27507_v15  ;;  %v9217_v11 = vcombine.high %v9215_v38, %v9215_v38 }
 0x222   :  { %v27525_v50 = vrot.slane %v9208_v10, %v25109_v12  ;;  %v27528_v51 = vrot.slane %v9215_v38, %v25109_v12  ;;  %v27531_v23 = vrot.slane %v9216_v36, %v25109_v12  ;;  %v33964_v62 = vcombine.high %v27302_v24, %v27305_v56 }
 0x223   :  { %v12171_v6 = vrot.slane %v33963_v59, %v25109_v12  ;;  %v12160_v27 = vcombine.low %v12152_v2, %v12159_v30  ;;  %v33965_v32 = vcombine.low %v27309_v4, %v27312_v41  ;;  %v27542_v10 = vrot.slane %v9217_v11, %v25109_v12 }
 0x224   :  { %v12178_v22 = vrot.slane %v33964_v62, %v25109_v12  ;;  %v12192_v30 = vrot.slane %v23544_v7, %v25109_v12  ;;  %v9250_v38 = vcombine.high %v26882_v39, %v26882_v39  ;;  %v9257_v24 = vrot.slane %v26882_v39, %v25109_v12 }
 0x225   :  { %v12185_v2 = vrot.slane %v33965_v32, %v25109_v12  ;;  %v23550_v56 = vcombine.high %v27499_v63, %v27507_v15  ;;  %14734 = vxpose.xlu0.b32.cont [13/16] (narrow) %v12160_v27, 88  ;;  %v12357_v36 = vcombine.low %v27525_v50, %v27531_v23  ;;  %v12220_v4 = vrot.slane %v12210_v40, %v25109_v12 }
 0x226   :  { %v12193_v59 = vcombine.low %v12171_v6, %v12178_v22  ;;  %v9264_v11 = vrot.slane %v9250_v38, %v25109_v12  ;;  %v9265_v6 = vcombine.high %v9257_v24, %v9257_v24  ;;  %v33966_v62 = vcombine.high %v27370_v53, %v27373_v0  ;;  %v27572_v22 = vpop.f32.mrf.mxu0 }
 0x227   :  { %v12194_v39 = vcombine.low %v12185_v2, %v12192_v30  ;;  %v27576_v2 = vrot.slane %v9257_v24, %v25109_v12  ;;  %v33967_v30 = vcombine.low %v27379_v46, %v27382_v21  ;;  %v12241_v53 = vrot.slane %v23546_v13, %v25109_v12 }
 0x228   :  { %v12201_v37 = vrot.slane %v12193_v59, %v25109_v12  ;;  %v12227_v40 = vrot.slane %v33966_v62, %v25109_v12  ;;  %v9266_v41 = vcombine.high %v9264_v11, %v9264_v11  ;;  %v27583_v59 = vrot.slane %v9265_v6, %v25109_v12  ;;  %v8182_v62 = vpop.f32.mrf.mxu0 }
 0x229   :  { %v12208_v32 = vrot.slane %v12194_v39, %v25109_v12  ;;  %v12234_v38 = vrot.slane %v33967_v30, %v25109_v12  ;;  %v9299_v39 = vcombine.high %v26908_v35, %v26908_v35  ;;  %v27592_v27 = vrot.slane %v9264_v11, %v25109_v12 }
 0x22a   :  { %v12242_v0 = vcombine.low %v12220_v4, %v12227_v40  ;;  %v27595_v7 = vrot.slane %v9266_v41, %v25109_v12  ;;  %v9306_v6 = vrot.slane %v26908_v35, %v25109_v12  ;;  %v12406_v30 = vcombine.low %v27576_v2, %v27583_v59 }
 0x22b   :  { %v12209_v24 = vcombine.low %v12201_v37, %v12208_v32  ;;  %v23553_v46 = vcombine.high %v27576_v2, %v27583_v59  ;;  %v12243_v21 = vcombine.low %v12234_v38, %v12241_v53  ;;  %v12269_v13 = vrot.slane %v12259_v45, %v25109_v12  ;;  %v27622_v38 = vpop.f32.mrf.mxu0 }
 0x22c   :  { %v12408_v4 = vcombine.low %v27592_v27, %v27595_v7  ;;  %v12250_v41 = vrot.slane %v12242_v0, %v25109_v12  ;;  %v9313_v35 = vrot.slane %v9299_v39, %v25109_v12  ;;  %v9314_v11 = vcombine.high %v9306_v6, %v9306_v6 }
 0x22d   :  { %14735 = vxpose.xlu0.b32.cont [14/16] (narrow) %v12209_v24, 88  ;;  %v23554_v37 = vcombine.high %v27592_v27, %v27595_v7  ;;  %v12257_v40 = vrot.slane %v12243_v21, %v25109_v12  ;;  %v12276_v32 = vrot.slane %v23547_v28, %v25109_v12  ;;  %v12283_v45 = vrot.slane %v12261_v60, %v25109_v12  ;;  %v8187_v24 = vpop.f32.mrf.mxu0 }
 0x22e   :  { %v9315_v53 = vcombine.high %v9313_v35, %v9313_v35  ;;  %v27625_v0 = vrot.slane %v9306_v6, %v25109_v12  ;;  %v27628_v39 = vrot.slane %v9314_v11, %v25109_v12  ;;  %v12290_v17 = vrot.slane %v23548_v55, %v25109_v12 }
 0x22f   :  { %v12258_v47 = vcombine.low %v12250_v41, %v12257_v40  ;;  %v12291_v28 = vcombine.low %v12269_v13, %v12276_v32  ;;  %v9348_v62 = vcombine.high %v26936_v31, %v26936_v31  ;;  %v9355_v60 = vrot.slane %v26936_v31, %v25109_v12  ;;  %v27679_v24 = vpop.f32.mrf.mxu0 }
 0x230   :  { %v27639_v6 = vrot.slane %v9313_v35, %v25109_v12  ;;  %v27642_v21 = vrot.slane %v9315_v53, %v25109_v12  ;;  %v12455_v11 = vcombine.low %v27625_v0, %v27628_v39  ;;  %v12292_v19 = vcombine.low %v12283_v45, %v12290_v17 }
 0x231   :  { %14736 = vxpose.xlu0.b32.cont [15/16] (narrow) %v12258_v47, 88  ;;  %v23555_v43 = vcombine.high %v27625_v0, %v27628_v39  ;;  %v12299_v55 = vrot.slane %v12291_v28, %v25109_v12  ;;  %v9362_v13 = vrot.slane %v9348_v62, %v25109_v12  ;;  %v9363_v31 = vcombine.high %v9355_v60, %v9355_v60 }
 0x232   :  { %v12457_v41 = vcombine.low %v27639_v6, %v27642_v21  ;;  %v12306_v35 = vrot.slane %v12292_v19, %v25109_v12  ;;  %v27654_v40 = vrot.slane %v9355_v60, %v25109_v12  ;;  %v12318_v32 = vrot.slane %v12308_v3, %v25109_v12 }
 0x233   :  { %v23556_v45 = vcombine.high %v27639_v6, %v27642_v21  ;;  %v9364_v53 = vcombine.high %v9362_v13, %v9362_v13  ;;  %v27663_v17 = vrot.slane %v9363_v31, %v25109_v12  ;;  %v12325_v47 = vrot.slane %v23549_v48, %v25109_v12 }
 0x234   :  { %v12307_v28 = vcombine.low %v12299_v55, %v12306_v35  ;;  %v12332_v62 = vrot.slane %v12310_v18, %v25109_v12  ;;  %v12339_v3 = vrot.slane %v23550_v56, %v25109_v12  ;;  %v9397_v60 = vcombine.high %v26963_v16, %v26963_v16  ;;  %v8192_v55 = vpop.f32.mrf.mxu0 }
 0x235   :  { %v27682_v19 = vrot.slane %v9362_v13, %v25109_v12  ;;  %v27685_v33 = vrot.slane %v9364_v53, %v25109_v12  ;;  %v12504_v26 = vcombine.low %v27654_v40, %v27663_v17  ;;  %v12340_v48 = vcombine.low %v12318_v32, %v12325_v47 }
 0x236   :  { %14737 = vxpose.xlu0.b32.end [16/16] (narrow) %v12307_v28, 88  ;;  %v12341_v18 = vcombine.low %v12332_v62, %v12339_v3  ;;  %v9404_v63 = vrot.slane %v26963_v16, %v25109_v12  ;;  %v9411_v15 = vrot.slane %v9397_v60, %v25109_v12  ;;  %v12367_v56 = vrot.slane %v12357_v36, %v25109_v12 }
 0x237   :  { %v23557_v13 = vcombine.high %v27654_v40, %v27663_v17  ;;  %v12348_v35 = vrot.slane %v12340_v48, %v25109_v12  ;;  %v33968_v16 = vcombine.high %v27525_v50, %v27531_v23  ;;  %v33969_v3 = vcombine.low %v27528_v51, %v27542_v10 }
 0x238   :  { %v12355_v53 = vrot.slane %v12341_v18, %v25109_v12  ;;  %v9412_v47 = vcombine.high %v9404_v63, %v9404_v63  ;;  %v9413_v28 = vcombine.high %v9411_v15, %v9411_v15  ;;  %v27707_v36 = vrot.slane %v9404_v63, %v25109_v12 }
 0x239   :  { %v12374_v32 = vrot.slane %v33968_v16, %v25109_v12  ;;  %v27710_v62 = vrot.slane %v9411_v15, %v25109_v12  ;;  %v12381_v60 = vrot.slane %v33969_v3, %v25109_v12  ;;  %v33970_v50 = vcombine.high %v27528_v51, %v27542_v10  ;;  %v27728_v16 = vpop.f32.mrf.mxu0 }
 0x23a   :  { %v12356_v18 = vcombine.low %v12348_v35, %v12355_v53  ;;  %v27721_v55 = vrot.slane %v9412_v47, %v25109_v12  ;;  %v27724_v63 = vrot.slane %v9413_v28, %v25109_v12  ;;  %v9446_v15 = vcombine.high %v26987_v1, %v26987_v1 }
 0x23b   :  { %v12388_v23 = vrot.slane %v33970_v50, %v25109_v12  ;;  %v12389_v48 = vcombine.low %v12367_v56, %v12374_v32  ;;  %v23558_v3 = vcombine.high %v27682_v19, %v27685_v33  ;;  %v9453_v10 = vrot.slane %v26987_v1, %v25109_v12  ;;  %v8197_v47 = vpop.f32.mrf.mxu0 }
 0x23c   :  { %14754 = vxpose.xlu1.b32.start [1/16] (narrow) %v12356_v18, 88  ;;  %v12553_v56 = vcombine.low %v27707_v36, %v27721_v55  ;;  %v23559_v35 = vcombine.high %v27707_v36, %v27721_v55  ;;  %v12555_v32 = vcombine.low %v27710_v62, %v27724_v63  ;;  %v12416_v53 = vrot.slane %v12406_v30, %v25109_v12 }
 0x23d   :  { %v12390_v31 = vcombine.low %v12381_v60, %v12388_v23  ;;  %v12397_v51 = vrot.slane %v12389_v48, %v25109_v12  ;;  %v9460_v60 = vrot.slane %v9446_v15, %v25109_v12  ;;  %v9461_v50 = vcombine.high %v9453_v10, %v9453_v10 }
 0x23e   :  { %v12423_v23 = vrot.slane %v23553_v46, %v25109_v12  ;;  %v12430_v48 = vrot.slane %v12408_v4, %v25109_v12  ;;  %v12437_v30 = vrot.slane %v23554_v37, %v25109_v12  ;;  %v27764_v47 = vrot.slane %v9453_v10, %v25109_v12  ;;  %v27782_v10 = vpop.f32.mrf.mxu0 }
 0x23f   :  { %v12404_v1 = vrot.slane %v12390_v31, %v25109_v12  ;;  %v9495_v31 = vcombine.high %v27020_v58, %v27020_v58  ;;  %v9462_v15 = vcombine.high %v9460_v60, %v9460_v60  ;;  %v27767_v2 = vrot.slane %v9461_v50, %v25109_v12 }
 0x240   :  { %v12438_v59 = vcombine.low %v12416_v53, %v12423_v23  ;;  %v12439_v46 = vcombine.low %v12430_v48, %v12437_v30  ;;  %v9502_v4 = vrot.slane %v27020_v58, %v25109_v12  ;;  %v27773_v7 = vrot.slane %v9460_v60, %v25109_v12 }
 0x241   :  { %v12405_v18 = vcombine.low %v12397_v51, %v12404_v1  ;;  %v9509_v28 = vrot.slane %v9495_v31, %v25109_v12  ;;  %v27776_v27 = vrot.slane %v9462_v15, %v25109_v12  ;;  %v12602_v37 = vcombine.low %v27764_v47, %v27767_v2  ;;  %v8202_v31 = vpop.f32.mrf.mxu0 }
 0x242   :  { %v23561_v51 = vcombine.high %v27764_v47, %v27767_v2  ;;  %v12446_v53 = vrot.slane %v12438_v59, %v25109_v12  ;;  %v12453_v58 = vrot.slane %v12439_v46, %v25109_v12  ;;  %v9510_v1 = vcombine.high %v9502_v4, %v9502_v4 }
 0x243   :  { %14755 = vxpose.xlu1.b32.cont [2/16] (narrow) %v12405_v18, 88  ;;  %v9511_v50 = vcombine.high %v9509_v28, %v9509_v28  ;;  %v12604_v60 = vcombine.low %v27773_v7, %v27776_v27  ;;  %v27789_v23 = vrot.slane %v9502_v4, %v25109_v12  ;;  %v27792_v48 = vrot.slane %v9509_v28, %v25109_v12 }
 0x244   :  { %v12465_v30 = vrot.slane %v12455_v11, %v25109_v12  ;;  %v12454_v18 = vcombine.low %v12446_v53, %v12453_v58  ;;  %v27799_v15 = vrot.slane %v9510_v1, %v25109_v12  ;;  %v12472_v46 = vrot.slane %v23555_v43, %v25109_v12  ;;  %v27829_v1 = vpop.f32.mrf.mxu0 }
 0x245   :  { %v27802_v59 = vrot.slane %v9511_v50, %v25109_v12  ;;  %v12479_v28 = vrot.slane %v12457_v41, %v25109_v12  ;;  %v12486_v11 = vrot.slane %v23556_v45, %v25109_v12  ;;  %v9544_v4 = vcombine.high %v27054_v20, %v27054_v20 }
 0x246   :  { %v9551_v53 = vrot.slane %v27054_v20, %v25109_v12  ;;  %v23562_v0 = vcombine.high %v27773_v7, %v27776_v27  ;;  %v12651_v39 = vcombine.low %v27789_v23, %v27799_v15  ;;  %v23563_v43 = vcombine.high %v27789_v23, %v27799_v15  ;;  %v8207_v20 = vpop.f32.mrf.mxu0 }
 0x247   :  { %14756 = vxpose.xlu1.b32.cont [3/16] (narrow) %v12454_v18, 88  ;;  %v12653_v6 = vcombine.low %v27792_v48, %v27802_v59  ;;  %v12487_v21 = vcombine.low %v12465_v30, %v12472_v46  ;;  %v12488_v41 = vcombine.low %v12479_v28, %v12486_v11  ;;  %v9558_v45 = vrot.slane %v9544_v4, %v25109_v12 }
 0x248   :  { %v9559_v58 = vcombine.high %v9551_v53, %v9551_v53  ;;  %v12514_v50 = vrot.slane %v12504_v26, %v25109_v12  ;;  %v12521_v31 = vrot.slane %v23557_v13, %v25109_v12  ;;  %v33971_v30 = vcombine.low %v27682_v19, %v27685_v33 }
 0x249   :  { %v12495_v46 = vrot.slane %v12487_v21, %v25109_v12  ;;  %v12502_v28 = vrot.slane %v12488_v41, %v25109_v12  ;;  %v9560_v11 = vcombine.high %v9558_v45, %v9558_v45  ;;  %v27848_v4 = vrot.slane %v9551_v53, %v25109_v12 }
 0x24a   :  { %v12528_v18 = vrot.slane %v33971_v30, %v25109_v12  ;;  %v27851_v26 = vrot.slane %v9559_v58, %v25109_v12  ;;  %v12535_v40 = vrot.slane %v23558_v3, %v25109_v12  ;;  %v12536_v17 = vcombine.low %v12514_v50, %v12521_v31 }
 0x24b   :  { %v9593_v13 = vcombine.high %v27086_v61, %v27086_v61  ;;  %v12503_v21 = vcombine.low %v12495_v46, %v12502_v28  ;;  %v27860_v41 = vrot.slane %v9558_v45, %v25109_v12  ;;  %v27863_v53 = vrot.slane %v9560_v11, %v25109_v12  ;;  %v27890_v28 = vpop.f32.mrf.mxu0 }
 0x24c   :  { %v9600_v58 = vrot.slane %v27086_v61, %v25109_v12  ;;  %v12700_v20 = vcombine.low %v27848_v4, %v27851_v26  ;;  %v23565_v19 = vcombine.high %v27848_v4, %v27851_v26  ;;  %v12537_v33 = vcombine.low %v12528_v18, %v12535_v40 }
 0x24d   :  { %v12563_v3 = vrot.slane %v12553_v56, %v25109_v12  ;;  %14757 = vxpose.xlu1.b32.cont [4/16] (narrow) %v12503_v21, 88  ;;  %v12702_v45 = vcombine.low %v27860_v41, %v27863_v53  ;;  %v12544_v50 = vrot.slane %v12536_v17, %v25109_v12  ;;  %v9607_v61 = vrot.slane %v9593_v13, %v25109_v12 }
 0x24e   :  { %v9608_v31 = vcombine.high %v9600_v58, %v9600_v58  ;;  %v12551_v46 = vrot.slane %v12537_v33, %v25109_v12  ;;  %v12570_v18 = vrot.slane %v23559_v35, %v25109_v12  ;;  %v12577_v56 = vrot.slane %v12555_v32, %v25109_v12  ;;  %v8212_v33 = vpop.f32.mrf.mxu0 }
 0x24f   :  { %v9609_v11 = vcombine.high %v9607_v61, %v9607_v61  ;;  %v27893_v40 = vrot.slane %v9600_v58, %v25109_v12  ;;  %v33972_v13 = vcombine.high %v27710_v62, %v27724_v63  ;;  %v9642_v21 = vcombine.high %v27102_v34, %v27102_v34 }
 0x250   :  { %v27896_v17 = vrot.slane %v9608_v31, %v25109_v12  ;;  %v12552_v55 = vcombine.low %v12544_v50, %v12551_v46  ;;  %v12585_v35 = vcombine.low %v12563_v3, %v12570_v18  ;;  %v9649_v32 = vrot.slane %v27102_v34, %v25109_v12 }
 0x251   :  { %v12584_v36 = vrot.slane %v33972_v13, %v25109_v12  ;;  %v27907_v58 = vrot.slane %v9607_v61, %v25109_v12  ;;  %v27910_v31 = vrot.slane %v9609_v11, %v25109_v12  ;;  %v9656_v50 = vrot.slane %v9642_v21, %v25109_v12 }
 0x252   :  { %v12749_v30 = vcombine.low %v27893_v40, %v27896_v17  ;;  %14758 = vxpose.xlu1.b32.cont [5/16] (narrow) %v12552_v55, 88  ;;  %v23567_v63 = vcombine.high %v27893_v40, %v27896_v17  ;;  %v12593_v3 = vrot.slane %v12585_v35, %v25109_v12  ;;  %v9657_v34 = vcombine.high %v9649_v32, %v9649_v32  ;;  %v27937_v35 = vpop.f32.mrf.mxu0 }
 0x253   :  { %v12586_v62 = vcombine.low %v12577_v56, %v12584_v36  ;;  %v12751_v61 = vcombine.low %v27907_v58, %v27910_v31  ;;  %v27922_v18 = vrot.slane %v9649_v32, %v25109_v12  ;;  %v12612_v56 = vrot.slane %v12602_v37, %v25109_v12 }
 0x254   :  { %v23568_v11 = vcombine.high %v27907_v58, %v27910_v31  ;;  %v9658_v13 = vcombine.high %v9656_v50, %v9656_v50  ;;  %v27931_v36 = vrot.slane %v9657_v34, %v25109_v12  ;;  %v12619_v55 = vrot.slane %v23561_v51, %v25109_v12 }
 0x255   :  { %v12600_v46 = vrot.slane %v12586_v62, %v25109_v12  ;;  %v12626_v37 = vrot.slane %v12604_v60, %v25109_v12  ;;  %v12633_v32 = vrot.slane %v23562_v0, %v25109_v12  ;;  %v9691_v33 = vcombine.high %v27142_v54, %v27142_v54 }
 0x256   :  { %v27950_v62 = vrot.slane %v9656_v50, %v25109_v12  ;;  %v27953_v47 = vrot.slane %v9658_v13, %v25109_v12  ;;  %v12798_v2 = vcombine.low %v27922_v18, %v27931_v36  ;;  %v12634_v51 = vcombine.low %v12612_v56, %v12619_v55 }
 0x257   :  { %v12601_v21 = vcombine.low %v12593_v3, %v12600_v46  ;;  %v8217_v3 = vpop.f32.mrf.mxu0  ;;  %v12635_v60 = vcombine.low %v12626_v37, %v12633_v32  ;;  %v9698_v7 = vrot.slane %v27142_v54, %v25109_v12  ;;  %v9705_v27 = vrot.slane %v9691_v33, %v25109_v12 }
 0x258   :  { %v12661_v0 = vrot.slane %v12651_v39, %v25109_v12  ;;  %v23569_v50 = vcombine.high %v27922_v18, %v27931_v36  ;;  %v12800_v34 = vcombine.low %v27950_v62, %v27953_v47  ;;  %v12642_v46 = vrot.slane %v12634_v51, %v25109_v12 }
 0x259   :  { %14759 = vxpose.xlu1.b32.cont [6/16] (narrow) %v12601_v21, 88  ;;  %v12668_v54 = vrot.slane %v23563_v43, %v25109_v12  ;;  %v12649_v56 = vrot.slane %v12635_v60, %v25109_v12  ;;  %v9706_v13 = vcombine.high %v9698_v7, %v9698_v7  ;;  %v9707_v55 = vcombine.high %v9705_v27, %v9705_v27  ;;  %v27996_v60 = vpop.f32.mrf.mxu0 }
 0x25a   :  { %v27975_v21 = vrot.slane %v9698_v7, %v25109_v12  ;;  %v27978_v39 = vrot.slane %v9705_v27, %v25109_v12  ;;  %v12675_v37 = vrot.slane %v12653_v6, %v25109_v12  ;;  %v33973_v23 = vcombine.high %v27792_v48, %v27802_v59 }
 0x25b   :  { %v12683_v43 = vcombine.low %v12661_v0, %v12668_v54  ;;  %v12650_v32 = vcombine.low %v12642_v46, %v12649_v56  ;;  %v27989_v33 = vrot.slane %v9706_v13, %v25109_v12  ;;  %v27992_v51 = vrot.slane %v9707_v55, %v25109_v12  ;;  %v8222_v56 = vpop.f32.mrf.mxu0 }
 0x25c   :  { %v12682_v15 = vrot.slane %v33973_v23, %v25109_v12  ;;  %v9740_v3 = vcombine.high %v27163_v5, %v27163_v5  ;;  %v23570_v6 = vcombine.high %v27950_v62, %v27953_v47  ;;  %v9747_v59 = vrot.slane %v27163_v5, %v25109_v12 }
 0x25d   :  { %v12691_v48 = vrot.slane %v12683_v43, %v25109_v12  ;;  %14760 = vxpose.xlu1.b32.cont [7/16] (narrow) %v12650_v32, 88  ;;  %v12847_v27 = vcombine.low %v27975_v21, %v27989_v33  ;;  %v23571_v0 = vcombine.high %v27975_v21, %v27989_v33  ;;  %v12849_v46 = vcombine.low %v27978_v39, %v27992_v51 }
 0x25e   :  { %v12684_v7 = vcombine.low %v12675_v37, %v12682_v15  ;;  %v12710_v54 = vrot.slane %v12700_v20, %v25109_v12  ;;  %v9754_v55 = vrot.slane %v9740_v3, %v25109_v12  ;;  %v9755_v37 = vcombine.high %v9747_v59, %v9747_v59 }
 0x25f   :  { %v12717_v23 = vrot.slane %v23565_v19, %v25109_v12  ;;  %v12724_v15 = vrot.slane %v12702_v45, %v25109_v12  ;;  %v33974_v20 = vcombine.high %v27860_v41, %v27863_v53  ;;  %v9789_v32 = vcombine.high %v27192_v9, %v27192_v9  ;;  %v28040_v41 = vpop.f32.mrf.mxu0 }
 0x260   :  { %v12698_v5 = vrot.slane %v12684_v7, %v25109_v12  ;;  %v9756_v7 = vcombine.high %v9754_v55, %v9754_v55  ;;  %v28032_v56 = vrot.slane %v9747_v59, %v25109_v12  ;;  %v28035_v4 = vrot.slane %v9755_v37, %v25109_v12 }
 0x261   :  { %v12731_v43 = vrot.slane %v33974_v20, %v25109_v12  ;;  %v12732_v26 = vcombine.low %v12710_v54, %v12717_v23  ;;  %v9796_v45 = vrot.slane %v27192_v9, %v25109_v12  ;;  %v9803_v13 = vrot.slane %v9789_v32, %v25109_v12 }
 0x262   :  { %v12699_v3 = vcombine.low %v12691_v48, %v12698_v5  ;;  %v28043_v53 = vrot.slane %v9754_v55, %v25109_v12  ;;  %v28046_v48 = vrot.slane %v9756_v7, %v25109_v12  ;;  %v12896_v59 = vcombine.low %v28032_v56, %v28035_v4 }
 0x263   :  { %v12733_v19 = vcombine.low %v12724_v15, %v12731_v43  ;;  %v23573_v54 = vcombine.high %v28032_v56, %v28035_v4  ;;  %v12740_v5 = vrot.slane %v12732_v26, %v25109_v12  ;;  %v9804_v37 = vcombine.high %v9796_v45, %v9796_v45  ;;  %v8227_v15 = vpop.f32.mrf.mxu0 }
 0x264   :  { %14761 = vxpose.xlu1.b32.cont [8/16] (narrow) %v12699_v3, 88  ;;  %v9805_v23 = vcombine.high %v9803_v13, %v9803_v13  ;;  %v12898_v55 = vcombine.low %v28043_v53, %v28046_v48  ;;  %v28057_v20 = vrot.slane %v9796_v45, %v25109_v12  ;;  %v28060_v43 = vrot.slane %v9803_v13, %v25109_v12 }
 0x265   :  { %v12747_v9 = vrot.slane %v12733_v19, %v25109_v12  ;;  %v12759_v32 = vrot.slane %v12749_v30, %v25109_v12  ;;  %v28067_v7 = vrot.slane %v9804_v37, %v25109_v12  ;;  %v12766_v19 = vrot.slane %v23567_v63, %v25109_v12  ;;  %v28097_v37 = vpop.f32.mrf.mxu0 }
 0x266   :  { %v28070_v26 = vrot.slane %v9805_v23, %v25109_v12  ;;  %v12773_v13 = vrot.slane %v12751_v61, %v25109_v12  ;;  %v12780_v30 = vrot.slane %v23568_v11, %v25109_v12  ;;  %v9838_v45 = vcombine.high %v27229_v14, %v27229_v14 }
 0x267   :  { %v12748_v3 = vcombine.low %v12740_v5, %v12747_v9  ;;  %v9845_v5 = vrot.slane %v27229_v14, %v25109_v12  ;;  %v23574_v40 = vcombine.high %v28043_v53, %v28046_v48  ;;  %v12945_v17 = vcombine.low %v28057_v20, %v28067_v7 }
 0x268   :  { %v23575_v63 = vcombine.high %v28057_v20, %v28067_v7  ;;  %v12947_v58 = vcombine.low %v28060_v43, %v28070_v26  ;;  %v12781_v31 = vcombine.low %v12759_v32, %v12766_v19  ;;  %v12782_v61 = vcombine.low %v12773_v13, %v12780_v30 }
 0x269   :  { %14762 = vxpose.xlu1.b32.cont [9/16] (narrow) %v12748_v3, 88  ;;  %v9852_v11 = vrot.slane %v9838_v45, %v25109_v12  ;;  %v9853_v9 = vcombine.high %v9845_v5, %v9845_v5  ;;  %v23576_v14 = vcombine.high %v28060_v43, %v28070_v26  ;;  %v12808_v23 = vrot.slane %v12798_v2, %v25109_v12  ;;  %v8232_v45 = vpop.f32.mrf.mxu0 }
 0x26a   :  { %v12815_v15 = vrot.slane %v23569_v50, %v25109_v12  ;;  %v12822_v32 = vrot.slane %v12800_v34, %v25109_v12  ;;  %v12789_v3 = vrot.slane %v12781_v31, %v25109_v12  ;;  %v12796_v19 = vrot.slane %v12782_v61, %v25109_v12 }
 0x26b   :  { %v9854_v13 = vcombine.high %v9852_v11, %v9852_v11  ;;  %v28116_v30 = vrot.slane %v9845_v5, %v25109_v12  ;;  %v28119_v2 = vrot.slane %v9853_v9, %v25109_v12  ;;  %v12829_v18 = vrot.slane %v23570_v6, %v25109_v12 }
 0x26c   :  { %v12830_v36 = vcombine.low %v12808_v23, %v12815_v15  ;;  %v9887_v50 = vcombine.high %v27255_v42, %v27255_v42  ;;  %v12797_v34 = vcombine.low %v12789_v3, %v12796_v19  ;;  %v28128_v31 = vrot.slane %v9852_v11, %v25109_v12  ;;  %v28143_v11 = vpop.f32.mrf.mxu0 }
 0x26d   :  { %v28131_v5 = vrot.slane %v9854_v13, %v25109_v12  ;;  %v9894_v61 = vrot.slane %v27255_v42, %v25109_v12  ;;  %v12994_v9 = vcombine.low %v28116_v30, %v28119_v2  ;;  %v23577_v62 = vcombine.high %v28116_v30, %v28119_v2 }
 0x26e   :  { %v12831_v47 = vcombine.low %v12822_v32, %v12829_v18  ;;  %v12857_v6 = vrot.slane %v12847_v27, %v25109_v12  ;;  %14763 = vxpose.xlu1.b32.cont [10/16] (narrow) %v12797_v34, 88  ;;  %v12838_v42 = vrot.slane %v12830_v36, %v25109_v12  ;;  %v9901_v15 = vrot.slane %v9887_v50, %v25109_v12  ;;  %v8237_v45 = vpop.f32.mrf.mxu0 }
 0x26f   :  { %v12996_v23 = vcombine.low %v28128_v31, %v28131_v5  ;;  %v9902_v3 = vcombine.high %v9894_v61, %v9894_v61  ;;  %v28151_v32 = vrot.slane %v9894_v61, %v25109_v12  ;;  %v12864_v27 = vrot.slane %v23571_v0, %v25109_v12 }
 0x270   :  { %v12845_v19 = vrot.slane %v12831_v47, %v25109_v12  ;;  %v12871_v13 = vrot.slane %v12849_v46, %v25109_v12  ;;  %v9903_v18 = vcombine.high %v9901_v15, %v9901_v15  ;;  %v28162_v36 = vrot.slane %v9901_v15, %v25109_v12 }
 0x271   :  { %v28165_v50 = vrot.slane %v9902_v3, %v25109_v12  ;;  %v33975_v34 = vcombine.high %v27978_v39, %v27992_v51  ;;  %v12879_v33 = vcombine.low %v12857_v6, %v12864_v27  ;;  %v9936_v0 = vcombine.high %v27292_v44, %v27292_v44 }
 0x272   :  { %v12846_v21 = vcombine.low %v12838_v42, %v12845_v19  ;;  %v9943_v46 = vrot.slane %v27292_v44, %v25109_v12  ;;  %v23578_v47 = vcombine.high %v28128_v31, %v28131_v5  ;;  %v28178_v15 = vrot.slane %v9903_v18, %v25109_v12 }
 0x273   :  { %v12878_v61 = vrot.slane %v33975_v34, %v25109_v12  ;;  %v9950_v42 = vrot.slane %v9936_v0, %v25109_v12  ;;  %v12887_v19 = vrot.slane %v12879_v33, %v25109_v12  ;;  %v12906_v18 = vrot.slane %v12896_v59, %v25109_v12  ;;  %v28200_v0 = vpop.f32.mrf.mxu0 }
 0x274   :  { %14764 = vxpose.xlu1.b32.cont [11/16] (narrow) %v12846_v21, 88  ;;  %v9951_v44 = vcombine.high %v9943_v46, %v9943_v46  ;;  %v9935_v27 = vcombine.high %v28178_v15, %v28178_v15  ;;  %v9959_v45 = vrot.slane %v9943_v46, %v25109_v12  ;;  %v12913_v46 = vrot.slane %v23573_v54, %v25109_v12 }
 0x275   :  { %v12880_v6 = vcombine.low %v12871_v13, %v12878_v61  ;;  %v9952_v21 = vcombine.high %v9950_v42, %v9950_v42  ;;  %v28197_v13 = vrot.slane %v9950_v42, %v25109_v12  ;;  %v12920_v59 = vrot.slane %v12898_v55, %v25109_v12  ;;  %v8242_v33 = vpop.f32.mrf.mxu0 }
 0x276   :  { %v9973_v61 = vrot.slane %v9951_v44, %v25109_v12  ;;  %v9981_v3 = vcombine.high %v9959_v45, %v9959_v45  ;;  %v28217_v51 = vcombine.low %v9935_v27, %v9959_v45  ;;  %v12927_v56 = vrot.slane %v23574_v40, %v25109_v12 }
 0x277   :  { %v12894_v34 = vrot.slane %v12880_v6, %v25109_v12  ;;  %v28213_v42 = vrot.slane %v9952_v21, %v25109_v12  ;;  %v9982_v44 = vcombine.high %v28197_v13, %v28197_v13  ;;  %v12928_v4 = vcombine.low %v12906_v18, %v12913_v46  ;;  %v28241_v18 = vpop.f32.mrf.mxu0 }
 0x278   :  { %v9983_v39 = vcombine.high %v9973_v61, %v9973_v61  ;;  %v9985_v54 = vcombine.high %v27323_v57, %v27323_v57  ;;  %v28225_v55 = vcombine.low %v9973_v61, %v9981_v3  ;;  %v9992_v27 = vrot.slane %v27323_v57, %v25109_v12 }
 0x279   :  { %v12895_v6 = vcombine.low %v12887_v19, %v12894_v34  ;;  %v9984_v19 = vcombine.high %v28213_v42, %v28213_v42  ;;  %v12955_v45 = vrot.slane %v12945_v17, %v25109_v12  ;;  %v12929_v53 = vcombine.low %v12920_v59, %v12927_v56 }
 0x27a   :  { %v12936_v48 = vrot.slane %v12928_v4, %v25109_v12  ;;  %v9999_v40 = vrot.slane %v9985_v54, %v25109_v12  ;;  %v12962_v3 = vrot.slane %v23575_v63, %v25109_v12  ;;  %v10000_v34 = vcombine.high %v9992_v27, %v9992_v27  ;;  %v8247_v63 = vpop.f32.mrf.mxu0 }
 0x27b   :  { %14765 = vxpose.xlu1.b32.cont [12/16] (narrow) %v12895_v6, 88  ;;  %v10008_v57 = vrot.slane %v9992_v27, %v25109_v12  ;;  %v12969_v17 = vrot.slane %v12947_v58, %v25109_v12  ;;  %v12976_v21 = vrot.slane %v23576_v14, %v25109_v12  ;;  %v12943_v61 = vrot.slane %v12929_v53, %v25109_v12 }
 0x27c   :  { %v10001_v33 = vcombine.high %v9999_v40, %v9999_v40  ;;  %v10015_v20 = vrot.slane %v9999_v40, %v25109_v12  ;;  %v12977_v7 = vcombine.low %v12955_v45, %v12962_v3  ;;  %v10022_v46 = vrot.slane %v10000_v34, %v25109_v12 }
 0x27d   :  { %v10030_v59 = vcombine.high %v10008_v57, %v10008_v57  ;;  %v28255_v6 = vcombine.low %v9984_v19, %v10008_v57  ;;  %v12978_v56 = vcombine.low %v12969_v17, %v12976_v21  ;;  %v28258_v58 = vcombine.low %v9983_v39, %v28197_v13 }
 0x27e   :  { %v12944_v4 = vcombine.low %v12936_v48, %v12943_v61  ;;  %v10029_v43 = vrot.slane %v10001_v33, %v25109_v12  ;;  %v10031_v26 = vcombine.high %v10015_v20, %v10015_v20  ;;  %v10032_v14 = vcombine.high %v10022_v46, %v10022_v46 }
 0x27f   :  { %v28261_v54 = vcombine.low %v10022_v46, %v10030_v59  ;;  %v12985_v27 = vrot.slane %v12977_v7, %v25109_v12  ;;  %v12992_v45 = vrot.slane %v12978_v56, %v25109_v12  ;;  %v13150_v19 = vrot.slane %v28255_v6, %v25109_v12  ;;  %v28299_v46 = vpop.f32.mrf.mxu0 }
 0x280   :  { %14766 = vxpose.xlu1.b32.cont [13/16] (narrow) %v12944_v4, 88  ;;  %v28265_v53 = vcombine.low %v10029_v43, %v10031_v26  ;;  %v10034_v39 = vcombine.high %v27348_v29, %v27348_v29  ;;  %v10041_v48 = vrot.slane %v27348_v29, %v25109_v12  ;;  %v28273_v40 = vcombine.low %v10032_v14, %v10015_v20 }
 0x281   :  { %v12993_v3 = vcombine.low %v12985_v27, %v12992_v45  ;;  %v10033_v34 = vcombine.high %v10029_v43, %v10029_v43  ;;  %v13004_v57 = vrot.slane %v12994_v9, %v25109_v12  ;;  %v13011_v33 = vrot.slane %v23577_v62, %v25109_v12  ;;  %v8252_v26 = vpop.f32.mrf.mxu0 }
 0x282   :  { %v10048_v17 = vrot.slane %v10034_v39, %v25109_v12  ;;  %v10049_v21 = vcombine.high %v10041_v48, %v10041_v48  ;;  %v10057_v61 = vrot.slane %v10041_v48, %v25109_v12  ;;  %v13157_v29 = vrot.slane %v28261_v54, %v25109_v12 }
 0x283   :  { %v13018_v20 = vrot.slane %v12996_v23, %v25109_v12  ;;  %v13025_v9 = vrot.slane %v23578_v47, %v25109_v12  ;;  %v10083_v7 = vcombine.high %v27376_v25, %v27376_v25  ;;  %v13026_v23 = vcombine.low %v13004_v57, %v13011_v33  ;;  %v28319_v57 = vpop.f32.mrf.mxu0 }
 0x284   :  { %14767 = vxpose.xlu1.b32.cont [14/16] (narrow) %v12993_v3, 88  ;;  %v10050_v63 = vcombine.high %v10048_v17, %v10048_v17  ;;  %v10064_v30 = vrot.slane %v10048_v17, %v25109_v12  ;;  %v10071_v2 = vrot.slane %v10049_v21, %v25109_v12  ;;  %v10079_v62 = vcombine.high %v10057_v61, %v10057_v61 }
 0x285   :  { %v28301_v59 = vcombine.low %v10033_v34, %v10057_v61  ;;  %v13027_v56 = vcombine.low %v13018_v20, %v13025_v9  ;;  %v10090_v31 = vrot.slane %v27376_v25, %v25109_v12  ;;  %v13164_v14 = vrot.slane %v28273_v40, %v25109_v12 }
 0x286   :  { %v10078_v5 = vrot.slane %v10050_v63, %v25109_v12  ;;  %v10080_v47 = vcombine.high %v10064_v30, %v10064_v30  ;;  %v10081_v4 = vcombine.high %v10071_v2, %v10071_v2  ;;  %v28306_v43 = vcombine.low %v10071_v2, %v10079_v62  ;;  %v8257_v62 = vpop.f32.mrf.mxu0 }
 0x287   :  { %v13034_v27 = vrot.slane %v13026_v23, %v25109_v12  ;;  %v13041_v45 = vrot.slane %v13027_v56, %v25109_v12  ;;  %v10097_v39 = vrot.slane %v10083_v7, %v25109_v12  ;;  %v13199_v25 = vrot.slane %v28301_v59, %v25109_v12 }
 0x288   :  { %v28313_v48 = vcombine.low %v10081_v4, %v10064_v30  ;;  %v28315_v3 = vcombine.low %v10078_v5, %v10080_v47  ;;  %v10082_v34 = vcombine.high %v10078_v5, %v10078_v5  ;;  %v10098_v21 = vcombine.high %v10090_v31, %v10090_v31 }
 0x289   :  { %v13042_v17 = vcombine.low %v13034_v27, %v13041_v45  ;;  %v10099_v61 = vcombine.high %v10097_v39, %v10097_v39  ;;  %v10106_v33 = vrot.slane %v10090_v31, %v25109_v12  ;;  %v13206_v20 = vrot.slane %v28306_v43, %v25109_v12 }
 0x28a   :  { %v10113_v9 = vrot.slane %v10097_v39, %v25109_v12  ;;  %v33976_v7 = vcombine.low %v28151_v32, %v28165_v50  ;;  %v33977_v30 = vcombine.high %v28151_v32, %v28165_v50  ;;  %v10120_v23 = vrot.slane %v10098_v21, %v25109_v12 }
 0x28b   :  { %14768 = vxpose.xlu1.b32.cont [15/16] (narrow) %v13042_v17, 88  ;;  %v10127_v56 = vrot.slane %v10099_v61, %v25109_v12  ;;  %v10128_v31 = vcombine.high %v10106_v33, %v10106_v33  ;;  %v28335_v5 = vcombine.low %v10082_v34, %v10106_v33  ;;  %v33978_v4 = vcombine.low %v28162_v36, %v28178_v15 }
 0x28c   :  { %v13052_v63 = vrot.slane %v33976_v7, %v25109_v12  ;;  %v13059_v2 = vrot.slane %v33977_v30, %v25109_v12  ;;  %v10129_v47 = vcombine.high %v10113_v9, %v10113_v9  ;;  %v33979_v32 = vcombine.high %v28162_v36, %v28162_v36 }
 0x28d   :  { %v13066_v26 = vrot.slane %v33978_v4, %v25109_v12  ;;  %v13213_v45 = vrot.slane %v28313_v48, %v25109_v12  ;;  %v10130_v39 = vcombine.high %v10120_v23, %v10120_v23  ;;  %v28347_v17 = vcombine.low %v10120_v23, %v10128_v31 }
 0x28e   :  { %v13073_v50 = vrot.slane %v33979_v32, %v25109_v12  ;;  %v13074_v27 = vcombine.low %v13052_v63, %v13059_v2  ;;  %v13248_v34 = vrot.slane %v28335_v5, %v25109_v12  ;;  %v28351_v21 = vcombine.low %v10127_v56, %v10129_v47  ;;  %v28364_v2 = vpop.f32.mrf.mxu0 }
 0x28f   :  { %v10131_v15 = vcombine.high %v10127_v56, %v10127_v56  ;;  %v10132_v33 = vcombine.high %v27429_v52, %v27429_v52  ;;  %v28355_v7 = vcombine.low %v10130_v39, %v10113_v9  ;;  %v10139_v63 = vrot.slane %v27429_v52, %v25109_v12 }
 0x290   :  { %v13075_v61 = vcombine.low %v13066_v26, %v13073_v50  ;;  %v13082_v36 = vrot.slane %v13074_v27, %v25109_v12  ;;  %v13094_v30 = vcombine.low %v28213_v42, %v9982_v44  ;;  %v13101_v9 = vrot.slane %v28217_v51, %v25109_v12  ;;  %v8262_v44 = vpop.f32.mrf.mxu0 }
 0x291   :  { %v10146_v23 = vrot.slane %v10132_v33, %v25109_v12  ;;  %v13108_v56 = vrot.slane %v28225_v55, %v25109_v12  ;;  %v13255_v52 = vrot.slane %v28347_v17, %v25109_v12  ;;  %v10147_v31 = vcombine.high %v10139_v63, %v10139_v63 }
 0x292   :  { %v13089_v62 = vrot.slane %v13075_v61, %v25109_v12  ;;  %v10155_v13 = vrot.slane %v10139_v63, %v25109_v12  ;;  %v13115_v42 = vrot.slane %v28258_v58, %v25109_v12  ;;  %v13122_v32 = vrot.slane %v13094_v30, %v25109_v12 }
 0x293   :  { %v10148_v4 = vcombine.high %v10146_v23, %v10146_v23  ;;  %v10162_v26 = vrot.slane %v10146_v23, %v25109_v12  ;;  %v10169_v51 = vrot.slane %v10147_v31, %v25109_v12  ;;  %v13123_v27 = vcombine.low %v13101_v9, %v13108_v56 }
 0x294   :  { %v13090_v47 = vcombine.low %v13082_v36, %v13089_v62  ;;  %v10177_v50 = vcombine.high %v10155_v13, %v10155_v13  ;;  %v28380_v55 = vcombine.low %v10131_v15, %v10155_v13  ;;  %v13124_v33 = vcombine.low %v13115_v42, %v13122_v32  ;;  %v28391_v15 = vpop.f32.mrf.mxu0 }
 0x295   :  { %v10176_v39 = vrot.slane %v10148_v4, %v25109_v12  ;;  %v10178_v61 = vcombine.high %v10162_v26, %v10162_v26  ;;  %v10181_v58 = vcombine.high %v27467_v49, %v27467_v49  ;;  %v13262_v36 = vrot.slane %v28355_v7, %v25109_v12 }
 0x296   :  { %14769 = vxpose.xlu1.b32.end [16/16] (narrow) %v13090_v47, 88  ;;  %v10179_v63 = vcombine.high %v10169_v51, %v10169_v51  ;;  %v28387_v62 = vcombine.low %v10169_v51, %v10177_v50  ;;  %v13297_v30 = vrot.slane %v28380_v55, %v25109_v12  ;;  %v13131_v23 = vrot.slane %v13123_v27, %v25109_v12  ;;  %v8267_v4 = vpop.f32.mrf.mxu0 }
 0x297   :  { %v13138_v9 = vrot.slane %v13124_v33, %v25109_v12  ;;  %v10180_v56 = vcombine.high %v10176_v39, %v10176_v39  ;;  %v10188_v31 = vrot.slane %v27467_v49, %v25109_v12  ;;  %v28399_v42 = vcombine.low %v10176_v39, %v10178_v61 }
 0x298   :  { %v28397_v13 = vcombine.low %v10179_v63, %v10162_v26  ;;  %v10195_v44 = vrot.slane %v10181_v58, %v25109_v12  ;;  %v13171_v47 = vrot.slane %v28265_v53, %v25109_v12  ;;  %v13172_v49 = vcombine.low %v13150_v19, %v13157_v29 }
 0x299   :  { %v13139_v32 = vcombine.low %v13131_v23, %v13138_v9  ;;  %v10196_v51 = vcombine.high %v10188_v31, %v10188_v31  ;;  %v10204_v50 = vrot.slane %v10188_v31, %v25109_v12  ;;  %v13304_v26 = vrot.slane %v28387_v62, %v25109_v12 }
 0x29a   :  { %v10197_v27 = vcombine.high %v10195_v44, %v10195_v44  ;;  %v10211_v39 = vrot.slane %v10195_v44, %v25109_v12  ;;  %v13173_v53 = vcombine.low %v13164_v14, %v13171_v47  ;;  %v13180_v54 = vrot.slane %v13172_v49, %v25109_v12 }
 0x29b   :  { %14786 = vxpose.xlu0.b32.start [1/16] (narrow) %v13139_v32, 88  ;;  %v10218_v61 = vrot.slane %v10196_v51, %v25109_v12  ;;  %v10226_v33 = vcombine.high %v10204_v50, %v10204_v50  ;;  %v28418_v58 = vcombine.low %v10180_v56, %v10204_v50  ;;  %v10230_v63 = vcombine.high %v27512_v8, %v27512_v8  ;;  %v28431_v56 = vpop.f32.mrf.mxu0 }
 0x29c   :  { %v10225_v6 = vrot.slane %v10197_v27, %v25109_v12  ;;  %v10227_v19 = vcombine.high %v10211_v39, %v10211_v39  ;;  %v13187_v29 = vrot.slane %v13173_v53, %v25109_v12  ;;  %v13311_v40 = vrot.slane %v28397_v13, %v25109_v12 }
 0x29d   :  { %v10228_v14 = vcombine.high %v10218_v61, %v10218_v61  ;;  %v28427_v23 = vcombine.low %v10218_v61, %v10226_v33  ;;  %v10237_v9 = vrot.slane %v27512_v8, %v25109_v12  ;;  %v13346_v31 = vrot.slane %v28418_v58, %v25109_v12  ;;  %v8272_v27 = vpop.f32.mrf.mxu0 }
 0x29e   :  { %v13188_v44 = vcombine.low %v13180_v54, %v13187_v29  ;;  %v10229_v47 = vcombine.high %v10225_v6, %v10225_v6  ;;  %v10244_v4 = vrot.slane %v10230_v63, %v25109_v12  ;;  %v28438_v51 = vcombine.low %v10225_v6, %v10227_v19 }
 0x29f   :  { %v28436_v32 = vcombine.low %v10228_v14, %v10211_v39  ;;  %v10245_v50 = vcombine.high %v10237_v9, %v10237_v9  ;;  %v10253_v49 = vrot.slane %v10237_v9, %v25109_v12  ;;  %v13220_v61 = vrot.slane %v28315_v3, %v25109_v12  ;;  %v28466_v9 = vpop.f32.mrf.mxu0 }
 0x2a0   :  { %14787 = vxpose.xlu0.b32.cont [2/16] (narrow) %v13188_v44, 88  ;;  %v10246_v53 = vcombine.high %v10244_v4, %v10244_v4  ;;  %v10260_v8 = vrot.slane %v10244_v4, %v25109_v12  ;;  %v13221_v39 = vcombine.low %v13199_v25, %v13206_v20  ;;  %v13353_v33 = vrot.slane %v28427_v23, %v25109_v12 }
 0x2a1   :  { %v10267_v54 = vrot.slane %v10245_v50, %v25109_v12  ;;  %v10275_v6 = vcombine.high %v10253_v49, %v10253_v49  ;;  %v28453_v19 = vcombine.low %v10229_v47, %v10253_v49  ;;  %v13360_v29 = vrot.slane %v28436_v32, %v25109_v12 }
 0x2a2   :  { %v10274_v3 = vrot.slane %v10246_v53, %v25109_v12  ;;  %v10276_v63 = vcombine.high %v10260_v8, %v10260_v8  ;;  %v13222_v43 = vcombine.low %v13213_v45, %v13220_v61  ;;  %v13229_v20 = vrot.slane %v13221_v39, %v25109_v12  ;;  %v8277_v53 = vpop.f32.mrf.mxu0 }
 0x2a3   :  { %v10277_v59 = vcombine.high %v10267_v54, %v10267_v54  ;;  %v28461_v25 = vcombine.low %v10267_v54, %v10275_v6  ;;  %v10279_v14 = vcombine.high %v27572_v22, %v27572_v22  ;;  %v13395_v44 = vrot.slane %v28453_v19, %v25109_v12 }
 0x2a4   :  { %v13236_v47 = vrot.slane %v13222_v43, %v25109_v12  ;;  %v10278_v4 = vcombine.high %v10274_v3, %v10274_v3  ;;  %v10286_v48 = vrot.slane %v27572_v22, %v25109_v12  ;;  %v28475_v50 = vcombine.low %v10274_v3, %v10276_v63 }
 0x2a5   :  { %v28473_v45 = vcombine.low %v10277_v59, %v10260_v8  ;;  %v10293_v49 = vrot.slane %v10279_v14, %v25109_v12  ;;  %v13269_v27 = vrot.slane %v28351_v21, %v25109_v12  ;;  %v13270_v22 = vcombine.low %v13248_v34, %v13255_v52 }
 0x2a6   :  { %v13237_v61 = vcombine.low %v13229_v20, %v13236_v47  ;;  %v10294_v39 = vcombine.high %v10286_v48, %v10286_v48  ;;  %v10302_v54 = vrot.slane %v10286_v48, %v25109_v12  ;;  %v13402_v8 = vrot.slane %v28461_v25, %v25109_v12 }
 0x2a7   :  { %v10295_v6 = vcombine.high %v10293_v49, %v10293_v49  ;;  %v10309_v3 = vrot.slane %v10293_v49, %v25109_v12  ;;  %v13271_v21 = vcombine.low %v13262_v36, %v13269_v27  ;;  %v13278_v17 = vrot.slane %v13270_v22, %v25109_v12 }
 0x2a8   :  { %14788 = vxpose.xlu0.b32.cont [3/16] (narrow) %v13237_v61, 88  ;;  %v10316_v63 = vrot.slane %v10294_v39, %v25109_v12  ;;  %v10324_v43 = vcombine.high %v10302_v54, %v10302_v54  ;;  %v28494_v59 = vcombine.low %v10278_v4, %v10302_v54  ;;  %v10328_v20 = vcombine.high %v27622_v38, %v27622_v38  ;;  %v28515_v22 = vpop.f32.mrf.mxu0 }
 0x2a9   :  { %v10323_v5 = vrot.slane %v10295_v6, %v25109_v12  ;;  %v10325_v34 = vcombine.high %v10309_v3, %v10309_v3  ;;  %v13285_v52 = vrot.slane %v13271_v21, %v25109_v12  ;;  %v13409_v7 = vrot.slane %v28473_v45, %v25109_v12 }
 0x2aa   :  { %v10326_v36 = vcombine.high %v10316_v63, %v10316_v63  ;;  %v28503_v14 = vcombine.low %v10316_v63, %v10324_v43  ;;  %v10335_v47 = vrot.slane %v27622_v38, %v25109_v12  ;;  %v13444_v4 = vrot.slane %v28494_v59, %v25109_v12 }
 0x2ab   :  { %v13286_v48 = vcombine.low %v13278_v17, %v13285_v52  ;;  %v10327_v49 = vcombine.high %v10323_v5, %v10323_v5  ;;  %v10342_v27 = vrot.slane %v10328_v20, %v25109_v12  ;;  %v28512_v61 = vcombine.low %v10323_v5, %v10325_v34  ;;  %v8282_v34 = vpop.f32.mrf.mxu0 }
 0x2ac   :  { %v28510_v53 = vcombine.low %v10326_v36, %v10309_v3  ;;  %v10343_v39 = vcombine.high %v10335_v47, %v10335_v47  ;;  %v10351_v54 = vrot.slane %v10335_v47, %v25109_v12  ;;  %v13318_v21 = vrot.slane %v28399_v42, %v25109_v12 }
 0x2ad   :  { %14789 = vxpose.xlu0.b32.cont [4/16] (narrow) %v13286_v48, 88  ;;  %v10344_v6 = vcombine.high %v10342_v27, %v10342_v27  ;;  %v10358_v38 = vrot.slane %v10342_v27, %v25109_v12  ;;  %v13319_v3 = vcombine.low %v13297_v30, %v13304_v26  ;;  %v13451_v63 = vrot.slane %v28503_v14, %v25109_v12 }
 0x2ae   :  { %v10365_v43 = vrot.slane %v10343_v39, %v25109_v12  ;;  %v10373_v17 = vcombine.high %v10351_v54, %v10351_v54  ;;  %v28529_v5 = vcombine.low %v10327_v49, %v10351_v54  ;;  %v13458_v52 = vrot.slane %v28510_v53, %v25109_v12 }
 0x2af   :  { %v10372_v42 = vrot.slane %v10344_v6, %v25109_v12  ;;  %v10374_v20 = vcombine.high %v10358_v38, %v10358_v38  ;;  %v13320_v55 = vcombine.low %v13311_v40, %v13318_v21  ;;  %v13327_v26 = vrot.slane %v13319_v3, %v25109_v12 }
 0x2b0   :  { %v10375_v62 = vcombine.high %v10365_v43, %v10365_v43  ;;  %v28537_v30 = vcombine.low %v10365_v43, %v10373_v17  ;;  %v10377_v36 = vcombine.high %v27679_v24, %v27679_v24  ;;  %v13493_v47 = vrot.slane %v28529_v5, %v25109_v12 }
 0x2b1   :  { %v13334_v48 = vrot.slane %v13320_v55, %v25109_v12  ;;  %v10376_v49 = vcombine.high %v10372_v42, %v10372_v42  ;;  %v10384_v27 = vrot.slane %v27679_v24, %v25109_v12  ;;  %v28549_v13 = vcombine.low %v10372_v42, %v10374_v20 }
 0x2b2   :  { %v28547_v39 = vcombine.low %v10375_v62, %v10358_v38  ;;  %v10391_v40 = vrot.slane %v10377_v36, %v25109_v12  ;;  %v13367_v54 = vrot.slane %v28438_v51, %v25109_v12  ;;  %v13368_v24 = vcombine.low %v13346_v31, %v13353_v33 }
 0x2b3   :  { %v13335_v6 = vcombine.low %v13327_v26, %v13334_v48  ;;  %v10392_v21 = vcombine.high %v10384_v27, %v10384_v27  ;;  %v10400_v3 = vrot.slane %v10384_v27, %v25109_v12  ;;  %v13500_v38 = vrot.slane %v28537_v30, %v25109_v12 }
 0x2b4   :  { %v10393_v43 = vcombine.high %v10391_v40, %v10391_v40  ;;  %v10407_v17 = vrot.slane %v10391_v40, %v25109_v12  ;;  %v13369_v51 = vcombine.low %v13360_v29, %v13367_v54  ;;  %v13376_v23 = vrot.slane %v13368_v24, %v25109_v12 }
 0x2b5   :  { %14790 = vxpose.xlu0.b32.cont [5/16] (narrow) %v13335_v6, 88  ;;  %v10414_v34 = vrot.slane %v10392_v21, %v25109_v12  ;;  %v10422_v42 = vcombine.high %v10400_v3, %v10400_v3  ;;  %v28568_v20 = vcombine.low %v10376_v49, %v10400_v3  ;;  %v10426_v55 = vcombine.high %v27728_v16, %v27728_v16  ;;  %v28589_v3 = vpop.f32.mrf.mxu0 }
 0x2b6   :  { %v10421_v58 = vrot.slane %v10393_v43, %v25109_v12  ;;  %v10423_v31 = vcombine.high %v10407_v17, %v10407_v17  ;;  %v13383_v33 = vrot.slane %v13369_v51, %v25109_v12  ;;  %v13507_v32 = vrot.slane %v28547_v39, %v25109_v12 }
 0x2b7   :  { %v10424_v29 = vcombine.high %v10414_v34, %v10414_v34  ;;  %v28577_v62 = vcombine.low %v10414_v34, %v10422_v42  ;;  %v10433_v26 = vrot.slane %v27728_v16, %v25109_v12  ;;  %v13542_v36 = vrot.slane %v28568_v20, %v25109_v12 }
 0x2b8   :  { %v13384_v48 = vcombine.low %v13376_v23, %v13383_v33  ;;  %v10425_v49 = vcombine.high %v10421_v58, %v10421_v58  ;;  %v10440_v27 = vrot.slane %v10426_v55, %v25109_v12  ;;  %v28586_v54 = vcombine.low %v10421_v58, %v10423_v31  ;;  %v8287_v58 = vpop.f32.mrf.mxu0 }
 0x2b9   :  { %v28584_v40 = vcombine.low %v10424_v29, %v10407_v17  ;;  %v10441_v6 = vcombine.high %v10433_v26, %v10433_v26  ;;  %v10449_v21 = vrot.slane %v10433_v26, %v25109_v12  ;;  %v13416_v43 = vrot.slane %v28475_v50, %v25109_v12 }
 0x2ba   :  { %14791 = vxpose.xlu0.b32.cont [6/16] (narrow) %v13384_v48, 88  ;;  %v10442_v24 = vcombine.high %v10440_v27, %v10440_v27  ;;  %v10456_v16 = vrot.slane %v10440_v27, %v25109_v12  ;;  %v13417_v17 = vcombine.low %v13395_v44, %v13402_v8  ;;  %v13549_v51 = vrot.slane %v28577_v62, %v25109_v12 }
 0x2bb   :  { %v10463_v34 = vrot.slane %v10441_v6, %v25109_v12  ;;  %v10471_v42 = vcombine.high %v10449_v21, %v10449_v21  ;;  %v28603_v23 = vcombine.low %v10425_v49, %v10449_v21  ;;  %v13556_v31 = vrot.slane %v28584_v40, %v25109_v12 }
 0x2bc   :  { %v10470_v50 = vrot.slane %v10442_v24, %v25109_v12  ;;  %v10472_v33 = vcombine.high %v10456_v16, %v10456_v16  ;;  %v13418_v19 = vcombine.low %v13409_v7, %v13416_v43  ;;  %v13425_v8 = vrot.slane %v13417_v17, %v25109_v12 }
 0x2bd   :  { %v10473_v25 = vcombine.high %v10463_v34, %v10463_v34  ;;  %v28611_v44 = vcombine.low %v10463_v34, %v10471_v42  ;;  %v10475_v55 = vcombine.high %v27782_v10, %v27782_v10  ;;  %v13591_v29 = vrot.slane %v28603_v23, %v25109_v12 }
 0x2be   :  { %v13432_v26 = vrot.slane %v13418_v19, %v25109_v12  ;;  %v10474_v48 = vcombine.high %v10470_v50, %v10470_v50  ;;  %v10482_v49 = vrot.slane %v27782_v10, %v25109_v12  ;;  %v28623_v45 = vcombine.low %v10470_v50, %v10472_v33 }
 0x2bf   :  { %v28621_v27 = vcombine.low %v10473_v25, %v10456_v16  ;;  %v10489_v7 = vrot.slane %v10475_v55, %v25109_v12  ;;  %v13465_v6 = vrot.slane %v28512_v61, %v25109_v12  ;;  %v13466_v10 = vcombine.low %v13444_v4, %v13451_v63 }
 0x2c0   :  { %v13433_v21 = vcombine.low %v13425_v8, %v13432_v26  ;;  %v10490_v24 = vcombine.high %v10482_v49, %v10482_v49  ;;  %v10498_v43 = vrot.slane %v10482_v49, %v25109_v12  ;;  %v13598_v16 = vrot.slane %v28611_v44, %v25109_v12 }
 0x2c1   :  { %v10491_v17 = vcombine.high %v10489_v7, %v10489_v7  ;;  %v10505_v34 = vrot.slane %v10489_v7, %v25109_v12  ;;  %v13467_v61 = vcombine.low %v13458_v52, %v13465_v6  ;;  %v13474_v14 = vrot.slane %v13466_v10, %v25109_v12 }
 0x2c2   :  { %14792 = vxpose.xlu0.b32.cont [7/16] (narrow) %v13433_v21, 88  ;;  %v10512_v42 = vrot.slane %v10490_v24, %v25109_v12  ;;  %v10520_v58 = vcombine.high %v10498_v43, %v10498_v43  ;;  %v28642_v50 = vcombine.low %v10474_v48, %v10498_v43  ;;  %v10524_v33 = vcombine.high %v27829_v1, %v27829_v1  ;;  %v28663_v24 = vpop.f32.mrf.mxu0 }
 0x2c3   :  { %v10519_v59 = vrot.slane %v10491_v17, %v25109_v12  ;;  %v10521_v4 = vcombine.high %v10505_v34, %v10505_v34  ;;  %v13481_v63 = vrot.slane %v13467_v61, %v25109_v12  ;;  %v13605_v53 = vrot.slane %v28621_v27, %v25109_v12 }
 0x2c4   :  { %v10522_v52 = vcombine.high %v10512_v42, %v10512_v42  ;;  %v28651_v19 = vcombine.low %v10512_v42, %v10520_v58  ;;  %v10531_v25 = vrot.slane %v27829_v1, %v25109_v12  ;;  %v13640_v8 = vrot.slane %v28642_v50, %v25109_v12  ;;  %v11515_v50 = vld [vmem:[%s33927_s2 + $0x68] sm:$0xff] }
 0x2c5   :  { %v13482_v55 = vcombine.low %v13474_v14, %v13481_v63  ;;  %v10523_v26 = vcombine.high %v10519_v59, %v10519_v59  ;;  %v10538_v48 = vrot.slane %v10524_v33, %v25109_v12  ;;  %v28660_v7 = vcombine.low %v10519_v59, %v10521_v4  ;;  %v8292_v14 = vpop.f32.mrf.mxu0 }
 0x2c6   :  { %v28658_v49 = vcombine.low %v10522_v52, %v10505_v34  ;;  %v10539_v6 = vcombine.high %v10531_v25, %v10531_v25  ;;  %v10547_v21 = vrot.slane %v10531_v25, %v25109_v12  ;;  %v13514_v10 = vrot.slane %v28549_v13, %v25109_v12 }
 0x2c7   :  { %14793 = vxpose.xlu0.b32.cont [8/16] (narrow) %v13482_v55, 88  ;;  %v10540_v43 = vcombine.high %v10538_v48, %v10538_v48  ;;  %v10554_v1 = vrot.slane %v10538_v48, %v25109_v12  ;;  %v13515_v17 = vcombine.low %v13493_v47, %v13500_v38  ;;  %v13647_v34 = vrot.slane %v28651_v19, %v25109_v12 }
 0x2c8   :  { %v10561_v61 = vrot.slane %v10539_v6, %v25109_v12  ;;  %v10569_v42 = vcombine.high %v10547_v21, %v10547_v21  ;;  %v28677_v58 = vcombine.low %v10523_v26, %v10547_v21  ;;  %v13654_v59 = vrot.slane %v28658_v49, %v25109_v12 }
 0x2c9   :  { %v10568_v13 = vrot.slane %v10540_v43, %v25109_v12  ;;  %v10570_v4 = vcombine.high %v10554_v1, %v10554_v1  ;;  %v13516_v5 = vcombine.low %v13507_v32, %v13514_v10  ;;  %v13523_v38 = vrot.slane %v13515_v17, %v25109_v12  ;;  %v11522_v10 = vld [vmem:[%s33927_s2 + $0xa0] sm:$0x1f] }
 0x2ca   :  { %v10571_v30 = vcombine.high %v10561_v61, %v10561_v61  ;;  %v28685_v47 = vcombine.low %v10561_v61, %v10569_v42  ;;  %v10573_v63 = vcombine.high %v27890_v28, %v27890_v28  ;;  %v13689_v33 = vrot.slane %v28677_v58, %v25109_v12 }
 0x2cb   :  { %v13530_v52 = vrot.slane %v13516_v5, %v25109_v12  ;;  %v10572_v25 = vcombine.high %v10568_v13, %v10568_v13  ;;  %v10580_v55 = vrot.slane %v27890_v28, %v25109_v12  ;;  %v28697_v39 = vcombine.low %v10568_v13, %v10570_v4 }
 0x2cc   :  { %v28695_v26 = vcombine.low %v10571_v30, %v10554_v1  ;;  %v10587_v32 = vrot.slane %v10573_v63, %v25109_v12  ;;  %v13563_v48 = vrot.slane %v28586_v54, %v25109_v12  ;;  %v13564_v28 = vcombine.low %v13542_v36, %v13549_v51  ;;  %v11523_v1 = vld [vmem:[%s33927_s2 + $0xa8] sm:$0x1f]  ;;  %v11521_v63 = vld [vmem:[%s33927_s2 + $0x98] sm:$0xff] }
 0x2cd   :  { %v13531_v6 = vcombine.low %v13523_v38, %v13530_v52  ;;  %v10588_v21 = vcombine.high %v10580_v55, %v10580_v55  ;;  %v10596_v43 = vrot.slane %v10580_v55, %v25109_v12  ;;  %v13696_v54 = vrot.slane %v28685_v47, %v25109_v12  ;;  %23601 = vmatprep.subr.msk.mxu1 %vm7786_vm0, %v11523_v1 }
 0x2ce   :  { %v10589_v17 = vcombine.high %v10587_v32, %v10587_v32  ;;  %v10603_v61 = vrot.slane %v10587_v32, %v25109_v12  ;;  %v13565_v62 = vcombine.low %v13556_v31, %v13563_v48  ;;  %v13572_v42 = vrot.slane %v13564_v28, %v25109_v12  ;;  %17493 = vmatpush1.xpose.msra.mxu1 %v11522_v10  ;;  %v11520_v48 = vld [vmem:[%s33927_s2 + $0x90] sm:$0xff] }
 0x2cf   :  { %14794 = vxpose.xlu0.b32.cont [9/16] (narrow) %v13531_v6, 88  ;;  %v10610_v20 = vrot.slane %v10588_v21, %v25109_v12  ;;  %v10618_v36 = vcombine.high %v10596_v43, %v10596_v43  ;;  %v28723_v51 = vcombine.low %v10572_v25, %v10596_v43  ;;  %v10622_v5 = vcombine.high %v27937_v35, %v27937_v35  ;;  %v28751_v28 = vpop.f32.mrf.mxu0 }
 0x2d0   :  { %v10617_v14 = vrot.slane %v10589_v17, %v25109_v12  ;;  %v10619_v13 = vcombine.high %v10603_v61, %v10603_v61  ;;  %v13579_v4 = vrot.slane %v13565_v62, %v25109_v12  ;;  %v13703_v40 = vrot.slane %v28695_v26, %v25109_v12  ;;  %23602 = vmatprep.subr.msk.mxu1 %vm7786_vm0, %v11521_v63  ;;  %v11511_v26 = vld [vmem:[%s33927_s2 + $0x48] sm:$0xff] }
 0x2d1   :  { %v10620_v31 = vcombine.high %v10610_v20, %v10610_v20  ;;  %v28732_v30 = vcombine.low %v10610_v20, %v10618_v36  ;;  %v10629_v38 = vrot.slane %v27937_v35, %v25109_v12  ;;  %v13738_v52 = vrot.slane %v28723_v51, %v25109_v12  ;;  %v11510_v51 = vld [vmem:[%s33927_s2 + $0x40] sm:$0xff] }
 0x2d2   :  { %v13580_v25 = vcombine.low %v13572_v42, %v13579_v4  ;;  %v10621_v55 = vcombine.high %v10617_v14, %v10617_v14  ;;  %v10636_v32 = vrot.slane %v10622_v5, %v25109_v12  ;;  %v28748_v35 = vcombine.low %v10617_v14, %v10619_v13  ;;  %v8297_v14 = vpop.f32.mrf.mxu0  ;;  %17495 = vmatpush1.xpose.msra.mxu1 %v11520_v48  ;;  %v11518_v13 = vld [vmem:[%s33927_s2 + $0x80] sm:$0xff] }
 0x2d3   :  { %v28746_v6 = vcombine.low %v10620_v31, %v10603_v61  ;;  %v10637_v21 = vcombine.high %v10629_v38, %v10629_v38  ;;  %v10645_v43 = vrot.slane %v10629_v38, %v25109_v12  ;;  %v13612_v17 = vrot.slane %v28623_v45, %v25109_v12  ;;  %v11519_v45 = vld [vmem:[%s33927_s2 + $0x88] sm:$0xff] }
 0x2d4   :  { %14795 = vxpose.xlu0.b32.cont [10/16] (narrow) %v13580_v25, 88  ;;  %v10638_v1 = vcombine.high %v10636_v32, %v10636_v32  ;;  %v10652_v10 = vrot.slane %v10636_v32, %v25109_v12  ;;  %v13613_v61 = vcombine.low %v13591_v29, %v13598_v16  ;;  %v13745_v62 = vrot.slane %v28732_v30, %v25109_v12 }
 0x2d5   :  { %v10659_v20 = vrot.slane %v10637_v21, %v25109_v12  ;;  %v10667_v36 = vcombine.high %v10645_v43, %v10645_v43  ;;  %v28765_v42 = vcombine.low %v10621_v55, %v10645_v43  ;;  %v13752_v44 = vrot.slane %v28746_v6, %v25109_v12  ;;  %23603 = vmatprep.subr.msk.mxu1 %vm7786_vm0, %v11519_v45  ;;  %v11517_v43 = vld [vmem:[%s33927_s2 + $0x78] sm:$0xff] }
 0x2d6   :  { %v10666_v23 = vrot.slane %v10638_v1, %v25109_v12  ;;  %v10668_v29 = vcombine.high %v10652_v10, %v10652_v10  ;;  %v13614_v16 = vcombine.low %v13605_v53, %v13612_v17  ;;  %v13621_v31 = vrot.slane %v13613_v61, %v25109_v12  ;;  %17497 = vmatpush1.xpose.msra.mxu1 %v11518_v13  ;;  %v11509_v6 = vld [vmem:[%s33927_s2 + $0x38] sm:$0xff] }
 0x2d7   :  { %v10669_v4 = vcombine.high %v10659_v20, %v10659_v20  ;;  %v28780_v5 = vcombine.low %v10659_v20, %v10667_v36  ;;  %v10671_v38 = vcombine.high %v27996_v60, %v27996_v60  ;;  %v13787_v63 = vrot.slane %v28765_v42, %v25109_v12  ;;  %23604 = vmatprep.subr.msk.mxu1 %vm7786_vm0, %v11517_v43 }
 0x2d8   :  { %v13628_v27 = vrot.slane %v13614_v16, %v25109_v12  ;;  %v10670_v53 = vcombine.high %v10666_v23, %v10666_v23  ;;  %v10678_v25 = vrot.slane %v27996_v60, %v25109_v12  ;;  %v28792_v32 = vcombine.low %v10666_v23, %v10668_v29 }
 0x2d9   :  { %v28790_v55 = vcombine.low %v10669_v4, %v10652_v10  ;;  %v10685_v48 = vrot.slane %v10671_v38, %v25109_v12  ;;  %v13661_v21 = vrot.slane %v28660_v7, %v25109_v12  ;;  %v13662_v60 = vcombine.low %v13640_v8, %v13647_v34  ;;  %v11516_v7 = vld [vmem:[%s33927_s2 + $0x70] sm:$0xff] }
 0x2da   :  { %v13629_v1 = vcombine.low %v13621_v31, %v13628_v27  ;;  %v10686_v17 = vcombine.high %v10678_v25, %v10678_v25  ;;  %v10694_v61 = vrot.slane %v10678_v25, %v25109_v12  ;;  %v13794_v10 = vrot.slane %v28780_v5, %v25109_v12  ;;  %17499 = vmatpush1.xpose.msra.mxu1 %v11516_v7 }
 0x2db   :  { %v10687_v20 = vcombine.high %v10685_v48, %v10685_v48  ;;  %v10701_v36 = vrot.slane %v10685_v48, %v25109_v12  ;;  %v13663_v19 = vcombine.low %v13654_v59, %v13661_v21  ;;  %v13670_v45 = vrot.slane %v13662_v60, %v25109_v12  ;;  %v28834_v38 = vpop.f32.mrf.mxu0  ;;  %23605 = vmatprep.subr.msk.mxu1 %vm7786_vm0, %v11515_v50  ;;  %v11514_v21 = vld [vmem:[%s33927_s2 + $0x60] sm:$0xff]  ;;  %v11513_v60 = vld [vmem:[%s33927_s2 + $0x58] sm:$0xff] }
 0x2dc   :  { %14796 = vxpose.xlu0.b32.cont [11/16] (narrow) %v13629_v1, 88  ;;  %v10708_v8 = vrot.slane %v10686_v17, %v25109_v12  ;;  %v10716_v34 = vcombine.high %v10694_v61, %v10694_v61  ;;  %v28821_v14 = vcombine.low %v10670_v53, %v10694_v61  ;;  %v10720_v49 = vcombine.high %v28040_v41, %v28040_v41 }
 0x2dd   :  { %v10715_v23 = vrot.slane %v10687_v20, %v25109_v12  ;;  %v10717_v29 = vcombine.high %v10701_v36, %v10701_v36  ;;  %v13677_v16 = vrot.slane %v13663_v19, %v25109_v12  ;;  %v13801_v59 = vrot.slane %v28790_v55, %v25109_v12  ;;  %v8302_v61 = vpop.f32.mrf.mxu0 }
 0x2de   :  { %v10718_v13 = vcombine.high %v10708_v8, %v10708_v8  ;;  %v28830_v4 = vcombine.low %v10708_v8, %v10716_v34  ;;  %v10727_v31 = vrot.slane %v28040_v41, %v25109_v12  ;;  %v13836_v27 = vrot.slane %v28821_v14, %v25109_v12  ;;  %17501 = vmatpush1.xpose.msra.mxu1 %v11514_v21 }
 0x2df   :  { %v13678_v53 = vcombine.low %v13670_v45, %v13677_v16  ;;  %v10719_v25 = vcombine.high %v10715_v23, %v10715_v23  ;;  %v10734_v48 = vrot.slane %v10720_v49, %v25109_v12  ;;  %v28845_v1 = vcombine.low %v10715_v23, %v10717_v29  ;;  %23606 = vmatprep.subr.msk.mxu1 %vm7786_vm0, %v11513_v60 }
 0x2e0   :  { %v28843_v43 = vcombine.low %v10718_v13, %v10701_v36  ;;  %v10735_v41 = vcombine.high %v10727_v31, %v10727_v31  ;;  %v10743_v17 = vrot.slane %v10727_v31, %v25109_v12  ;;  %v13710_v19 = vrot.slane %v28697_v39, %v25109_v12 }
 0x2e1   :  { %14797 = vxpose.xlu0.b32.cont [12/16] (narrow) %v13678_v53, 88  ;;  %v10736_v7 = vcombine.high %v10734_v48, %v10734_v48  ;;  %v28852_v20 = vrot.slane %v10734_v48, %v25109_v12  ;;  %v13711_v36 = vcombine.low %v13689_v33, %v13696_v54  ;;  %v13843_v50 = vrot.slane %v28830_v4, %v25109_v12  ;;  %v11512_v33 = vld [vmem:[%s33927_s2 + $0x50] sm:$0xff] }
 0x2e2   :  { %v13850_v8 = vrot.slane %v28843_v43, %v25109_v12  ;;  %v10757_v34 = vrot.slane %v10735_v41, %v25109_v12  ;;  %v10765_v45 = vcombine.high %v10743_v17, %v10743_v17  ;;  %v28872_v39 = vcombine.low %v10719_v25, %v10743_v17  ;;  %17503 = vmatpush1.xpose.msra.mxu1 %v11512_v33 }
 0x2e3   :  { %v28868_v23 = vrot.slane %v10736_v7, %v25109_v12  ;;  %v10766_v47 = vcombine.high %v28852_v20, %v28852_v20  ;;  %v13712_v58 = vcombine.low %v13703_v40, %v13710_v19  ;;  %v13719_v29 = vrot.slane %v13711_v36, %v25109_v12  ;;  %23607 = vmatprep.subr.msk.mxu1 %vm7786_vm0, %v11511_v26 }
 0x2e4   :  { %v10767_v54 = vcombine.high %v10757_v34, %v10757_v34  ;;  %v10769_v16 = vcombine.high %v28097_v37, %v28097_v37  ;;  %v10776_v49 = vrot.slane %v28097_v37, %v25109_v12  ;;  %v13759_v31 = vrot.slane %v28748_v35, %v25109_v12 }
 0x2e5   :  { %v13726_v40 = vrot.slane %v13712_v58, %v25109_v12  ;;  %v10768_v13 = vcombine.high %v28868_v23, %v28868_v23  ;;  %v13760_v53 = vcombine.low %v13738_v52, %v13745_v62  ;;  %v28900_v37 = vcombine.low %v10757_v34, %v10765_v45 }
 0x2e6   :  { %v10783_v25 = vrot.slane %v10769_v16, %v25109_v12  ;;  %v10784_v48 = vcombine.high %v10776_v49, %v10776_v49  ;;  %v10792_v21 = vrot.slane %v10776_v49, %v25109_v12  ;;  %v13761_v35 = vcombine.low %v13752_v44, %v13759_v31  ;;  %17505 = vmatpush1.xpose.msra.mxu1 %v11510_v51 }
 0x2e7   :  { %v13727_v41 = vcombine.low %v13719_v29, %v13726_v40  ;;  %v13768_v17 = vrot.slane %v13760_v53, %v25109_v12  ;;  %v10818_v30 = vcombine.high %v28143_v11, %v28143_v11  ;;  %v10825_v19 = vrot.slane %v28143_v11, %v25109_v12  ;;  %23608 = vmatprep.subr.msk.mxu1 %vm7786_vm0, %v11509_v6  ;;  %v11508_v11 = vld [vmem:[%s33927_s2 + $0x30] sm:$0xff]  ;;  %v11505_v6 = vld [vmem:[%s33927_s2 + $0x18] sm:$0xff] }
 0x2e8   :  { %v10785_v52 = vcombine.high %v10783_v25, %v10783_v25  ;;  %v10799_v62 = vrot.slane %v10783_v25, %v25109_v12  ;;  %v10806_v61 = vrot.slane %v10784_v48, %v25109_v12  ;;  %v10814_v60 = vcombine.high %v10792_v21, %v10792_v21 }
 0x2e9   :  { %14798 = vxpose.xlu0.b32.cont [13/16] (narrow) %v13727_v41, 88  ;;  %v28919_v44 = vcombine.low %v10768_v13, %v10792_v21  ;;  %v13775_v7 = vrot.slane %v13761_v35, %v25109_v12  ;;  %v10832_v36 = vrot.slane %v10818_v30, %v25109_v12  ;;  %v28929_v29 = vcombine.low %v10767_v54, %v28852_v20  ;;  %v11507_v54 = vld [vmem:[%s33927_s2 + $0x28] sm:$0xff] }
 0x2ea   :  { %v10813_v34 = vrot.slane %v10785_v52, %v25109_v12  ;;  %v10815_v45 = vcombine.high %v10799_v62, %v10799_v62  ;;  %v10816_v58 = vcombine.high %v10806_v61, %v10806_v61  ;;  %v28926_v33 = vcombine.low %v10806_v61, %v10814_v60  ;;  %17507 = vmatpush1.xpose.msra.mxu1 %v11508_v11 }
 0x2eb   :  { %v13776_v16 = vcombine.low %v13768_v17, %v13775_v7  ;;  %v10833_v49 = vcombine.high %v10825_v19, %v10825_v19  ;;  %v10834_v26 = vcombine.high %v10832_v36, %v10832_v36  ;;  %v13934_v31 = vrot.slane %v28919_v44, %v25109_v12  ;;  %23609 = vmatprep.subr.msk.mxu1 %vm7786_vm0, %v11507_v54 }
 0x2ec   :  { %v28935_v40 = vcombine.low %v10816_v58, %v10799_v62  ;;  %v28937_v13 = vcombine.low %v10813_v34, %v10815_v45  ;;  %v10817_v53 = vcombine.high %v10813_v34, %v10813_v34  ;;  %v10841_v25 = vrot.slane %v10825_v19, %v25109_v12 }
 0x2ed   :  { %14799 = vxpose.xlu0.b32.cont [14/16] (narrow) %v13776_v16, 88  ;;  %v10848_v48 = vrot.slane %v10832_v36, %v25109_v12  ;;  %v10855_v21 = vrot.slane %v10833_v49, %v25109_v12  ;;  %v10862_v41 = vrot.slane %v10834_v26, %v25109_v12  ;;  %v13941_v35 = vrot.slane %v28926_v33, %v25109_v12 }
 0x2ee   :  { %v13808_v17 = vrot.slane %v28792_v32, %v25109_v12  ;;  %v13809_v30 = vcombine.low %v13787_v63, %v13794_v10  ;;  %v10867_v51 = vcombine.high %v28200_v0, %v28200_v0  ;;  %v10863_v52 = vcombine.high %v10841_v25, %v10841_v25  ;;  %v11506_v32 = vld [vmem:[%s33927_s2 + $0x20] sm:$0xff] }
 0x2ef   :  { %v10864_v62 = vcombine.high %v10848_v48, %v10848_v48  ;;  %v10865_v61 = vcombine.high %v10855_v21, %v10855_v21  ;;  %v28960_v60 = vcombine.low %v10817_v53, %v10841_v25  ;;  %v13948_v5 = vrot.slane %v28935_v40, %v25109_v12  ;;  %17509 = vmatpush1.xpose.msra.mxu1 %v11506_v32 }
 0x2f0   :  { %v13810_v42 = vcombine.low %v13801_v59, %v13808_v17  ;;  %v13817_v63 = vrot.slane %v13809_v30, %v25109_v12  ;;  %v10874_v10 = vrot.slane %v28200_v0, %v25109_v12  ;;  %v28977_v7 = vcombine.low %v10855_v21, %v10863_v52  ;;  %23610 = vmatprep.subr.msk.mxu1 %vm7786_vm0, %v11505_v6 }
 0x2f1   :  { %v28979_v19 = vcombine.low %v10865_v61, %v10848_v48  ;;  %v28981_v36 = vcombine.low %v10862_v41, %v10864_v62  ;;  %v10866_v34 = vcombine.high %v10862_v41, %v10862_v41  ;;  %v10881_v55 = vrot.slane %v10867_v51, %v25109_v12  ;;  %v11504_v48 = vld [vmem:[%s33927_s2 + $0x10] sm:$0xff] }
 0x2f2   :  { %v13824_v45 = vrot.slane %v13810_v42, %v25109_v12  ;;  %v10882_v59 = vcombine.high %v10874_v10, %v10874_v10  ;;  %v10890_v58 = vrot.slane %v10874_v10, %v25109_v12  ;;  %v13983_v0 = vrot.slane %v28960_v60, %v25109_v12 }
 0x2f3   :  { %v13990_v16 = vrot.slane %v28977_v7, %v25109_v12  ;;  %v13857_v49 = vrot.slane %v28845_v1, %v25109_v12  ;;  %v13858_v26 = vcombine.low %v13836_v27, %v13843_v50  ;;  %v10883_v53 = vcombine.high %v10881_v55, %v10881_v55  ;;  %v11503_v27 = vld [vmem:[%s33927_s2 + $0x8] sm:$0xff]  ;;  %17511 = vmatpush1.xpose.msra.mxu1 %v11504_v48 }
 0x2f4   :  { %v13825_v11 = vcombine.low %v13817_v63, %v13824_v45  ;;  %v10897_v54 = vrot.slane %v10881_v55, %v25109_v12  ;;  %v10904_v25 = vrot.slane %v10882_v59, %v25109_v12  ;;  %v13997_v1 = vrot.slane %v28979_v19, %v25109_v12  ;;  %23611 = vmatprep.subr.msk.mxu1 %vm7786_vm0, %v11503_v27 }
 0x2f5   :  { %v10912_v4 = vcombine.high %v10890_v58, %v10890_v58  ;;  %v29006_v21 = vcombine.low %v10866_v34, %v10890_v58  ;;  %v13859_v14 = vcombine.low %v13850_v8, %v13857_v49  ;;  %v10911_v50 = vrot.slane %v10883_v53, %v25109_v12 }
 0x2f6   :  { %14800 = vxpose.xlu0.b32.cont [15/16] (narrow) %v13825_v11, 88  ;;  %v10913_v41 = vcombine.high %v10897_v54, %v10897_v54  ;;  %v10914_v17 = vcombine.high %v10904_v25, %v10904_v25  ;;  %v10916_v30 = vcombine.high %v28241_v18, %v28241_v18  ;;  %v13866_v52 = vrot.slane %v13858_v26, %v25109_v12 }
 0x2f7   :  { %v29017_v51 = vcombine.low %v10904_v25, %v10912_v4  ;;  %v13873_v62 = vrot.slane %v13859_v14, %v25109_v12  ;;  %v10923_v43 = vrot.slane %v28241_v18, %v25109_v12  ;;  %v14032_v61 = vrot.slane %v29006_v21, %v25109_v12  ;;  %v11502_v18 = vld [vmem:[%s33927_s2] sm:$0xff]  ;;  %s24990_s2 = smov 79  }
 0x2f8   :  { %v29023_v8 = vcombine.low %v10914_v17, %v10897_v54  ;;  %v10915_v32 = vcombine.high %v10911_v50, %v10911_v50  ;;  %v10930_v42 = vrot.slane %v10916_v30, %v25109_v12  ;;  %v29029_v63 = vcombine.low %v10911_v50, %v10913_v41  ;;  %17513 = vmatpush1.xpose.msra.mxu1 %v11502_v18 }
 0x2f9   :  { %v13874_v10 = vcombine.low %v13866_v52, %v13873_v62  ;;  %v10931_v6 = vcombine.high %v10923_v43, %v10923_v43  ;;  %v10939_v34 = vrot.slane %v10923_v43, %v25109_v12  ;;  %v14039_v45 = vrot.slane %v29017_v51, %v25109_v12 }
 0x2fa   :  { %v10932_v55 = vcombine.high %v10930_v42, %v10930_v42  ;;  %v10946_v59 = vrot.slane %v10930_v42, %v25109_v12  ;;  %v13878_v58 = vcombine.low %v28868_v23, %v10766_v47  ;;  %v13885_v53 = vrot.slane %v28872_v39, %v25109_v12 }
 0x2fb   :  { %14801 = vxpose.xlu0.b32.end [16/16] (narrow) %v13874_v10, 88  ;;  %v10953_v49 = vrot.slane %v10931_v6, %v25109_v12  ;;  %v10961_v26 = vcombine.high %v10939_v34, %v10939_v34  ;;  %v29043_v11 = vcombine.low %v10915_v32, %v10939_v34  ;;  %v13892_v48 = vrot.slane %v28900_v37, %v25109_v12 }
 0x2fc   :  { %v10960_v54 = vrot.slane %v10932_v55, %v25109_v12  ;;  %v10962_v25 = vcombine.high %v10946_v59, %v10946_v59  ;;  %v13899_v20 = vrot.slane %v28929_v29, %v25109_v12  ;;  %v14046_v23 = vrot.slane %v29023_v8, %v25109_v12 }
 0x2fd   :  { %v10963_v47 = vcombine.high %v10953_v49, %v10953_v49  ;;  %v29054_v4 = vcombine.low %v10953_v49, %v10961_v26  ;;  %v13906_v14 = vrot.slane %v13878_v58, %v25109_v12  ;;  %v14081_v39 = vrot.slane %v29043_v11, %v25109_v12 }
 0x2fe   :  { %v29057_v27 = vcombine.low %v10960_v54, %v10962_v25  ;;  %v13907_v50 = vcombine.low %v13885_v53, %v13892_v48  ;;  %v10965_v37 = vcombine.high %v28299_v46, %v28299_v46  ;;  %v10964_v17 = vcombine.high %v10960_v54, %v10960_v54 }
 0x2ff   :  { %v29063_v41 = vcombine.low %v10963_v47, %v10946_v59  ;;  %v13908_v29 = vcombine.low %v13899_v20, %v13906_v14  ;;  %v10972_v30 = vrot.slane %v28299_v46, %v25109_v12  ;;  %v14088_v52 = vrot.slane %v29054_v4, %v25109_v12 }
 0x300   :  { %v10979_v62 = vrot.slane %v10965_v37, %v25109_v12  ;;  %v13955_v43 = vrot.slane %v28937_v13, %v25109_v12  ;;  %v13956_v32 = vcombine.low %v13934_v31, %v13941_v35  ;;  %v13915_v42 = vrot.slane %v13907_v50, %v25109_v12 }
 0x301   :  { %v13922_v10 = vrot.slane %v13908_v29, %v25109_v12  ;;  %v10980_v46 = vcombine.high %v10972_v30, %v10972_v30  ;;  %v10988_v6 = vrot.slane %v10972_v30, %v25109_v12  ;;  %v11014_v26 = vcombine.high %v28319_v57, %v28319_v57 }
 0x302   :  { %v10981_v34 = vcombine.high %v10979_v62, %v10979_v62  ;;  %v10995_v18 = vrot.slane %v10979_v62, %v25109_v12  ;;  %v13957_v13 = vcombine.low %v13948_v5, %v13955_v43  ;;  %v13964_v33 = vrot.slane %v13956_v32, %v25109_v12 }
 0x303   :  { %v13923_v55 = vcombine.low %v13915_v42, %v13922_v10  ;;  %v11002_v44 = vrot.slane %v10980_v46, %v25109_v12  ;;  %v11010_v31 = vcombine.high %v10988_v6, %v10988_v6  ;;  %v29087_v35 = vcombine.low %v10964_v17, %v10988_v6 }
 0x304   :  { %v11009_v59 = vrot.slane %v10981_v34, %v25109_v12  ;;  %v11011_v58 = vcombine.high %v10995_v18, %v10995_v18  ;;  %v13971_v49 = vrot.slane %v13957_v13, %v25109_v12  ;;  %v14095_v40 = vrot.slane %v29063_v41, %v25109_v12 }
 0x305   :  { %14818 = vxpose.xlu1.b32.start [1/16] (narrow) %v13923_v55, 88  ;;  %v11012_v5 = vcombine.high %v11002_v44, %v11002_v44  ;;  %v29095_v53 = vcombine.low %v11002_v44, %v11010_v31  ;;  %v11021_v54 = vrot.slane %v28319_v57, %v25109_v12  ;;  %v14130_v25 = vrot.slane %v29087_v35, %v25109_v12 }
 0x306   :  { %v13972_v48 = vcombine.low %v13964_v33, %v13971_v49  ;;  %v11013_v20 = vcombine.high %v11009_v59, %v11009_v59  ;;  %v11028_v47 = vrot.slane %v11014_v26, %v25109_v12  ;;  %v29104_v50 = vcombine.low %v11009_v59, %v11011_v58 }
 0x307   :  { %v29102_v14 = vcombine.low %v11012_v5, %v10995_v18  ;;  %v11029_v37 = vcombine.high %v11021_v54, %v11021_v54  ;;  %v11037_v29 = vrot.slane %v11021_v54, %v25109_v12  ;;  %v14004_v57 = vrot.slane %v28981_v36, %v25109_v12 }
 0x308   :  { %v11030_v17 = vcombine.high %v11028_v47, %v11028_v47  ;;  %v11044_v30 = vrot.slane %v11028_v47, %v25109_v12  ;;  %v14005_v62 = vcombine.low %v13983_v0, %v13990_v16  ;;  %v14137_v43 = vrot.slane %v29095_v53, %v25109_v12 }
 0x309   :  { %14819 = vxpose.xlu1.b32.cont [2/16] (narrow) %v13972_v48, 88  ;;  %v11051_v32 = vrot.slane %v11029_v37, %v25109_v12  ;;  %v11059_v42 = vcombine.high %v11037_v29, %v11037_v29  ;;  %v29119_v10 = vcombine.low %v11013_v20, %v11037_v29  ;;  %v14144_v46 = vrot.slane %v29102_v14, %v25109_v12 }
 0x30a   :  { %v11058_v36 = vrot.slane %v11030_v17, %v25109_v12  ;;  %v11060_v6 = vcombine.high %v11044_v30, %v11044_v30  ;;  %v14006_v60 = vcombine.low %v13997_v1, %v14004_v57  ;;  %v14013_v16 = vrot.slane %v14005_v62, %v25109_v12 }
 0x30b   :  { %v11061_v7 = vcombine.high %v11051_v32, %v11051_v32  ;;  %v29127_v0 = vcombine.low %v11051_v32, %v11059_v42  ;;  %v11063_v34 = vcombine.high %v28364_v2, %v28364_v2  ;;  %v14179_v18 = vrot.slane %v29119_v10, %v25109_v12 }
 0x30c   :  { %v14020_v13 = vrot.slane %v14006_v60, %v25109_v12  ;;  %v11062_v33 = vcombine.high %v11058_v36, %v11058_v36  ;;  %v11070_v55 = vrot.slane %v28364_v2, %v25109_v12  ;;  %v29139_v19 = vcombine.low %v11058_v36, %v11060_v6 }
 0x30d   :  { %v29137_v44 = vcombine.low %v11061_v7, %v11044_v30  ;;  %v11077_v1 = vrot.slane %v11063_v34, %v25109_v12  ;;  %v14053_v31 = vrot.slane %v29029_v63, %v25109_v12  ;;  %v14054_v2 = vcombine.low %v14032_v61, %v14039_v45 }
 0x30e   :  { %v14021_v59 = vcombine.low %v14013_v16, %v14020_v13  ;;  %v11078_v58 = vcombine.high %v11070_v55, %v11070_v55  ;;  %v11086_v49 = vrot.slane %v11070_v55, %v25109_v12  ;;  %v14186_v26 = vrot.slane %v29127_v0, %v25109_v12 }
 0x30f   :  { %v11079_v5 = vcombine.high %v11077_v1, %v11077_v1  ;;  %v11093_v54 = vrot.slane %v11077_v1, %v25109_v12  ;;  %v14055_v63 = vcombine.low %v14046_v23, %v14053_v31  ;;  %v14062_v51 = vrot.slane %v14054_v2, %v25109_v12 }
 0x310   :  { %14820 = vxpose.xlu1.b32.cont [3/16] (narrow) %v14021_v59, 88  ;;  %v11100_v48 = vrot.slane %v11078_v58, %v25109_v12  ;;  %v11108_v20 = vcombine.high %v11086_v49, %v11086_v49  ;;  %v29158_v47 = vcombine.low %v11062_v33, %v11086_v49  ;;  %v11112_v37 = vcombine.high %v28391_v15, %v28391_v15 }
 0x311   :  { %v11107_v21 = vrot.slane %v11079_v5, %v25109_v12  ;;  %v11109_v61 = vcombine.high %v11093_v54, %v11093_v54  ;;  %v14069_v45 = vrot.slane %v14055_v63, %v25109_v12  ;;  %v14193_v8 = vrot.slane %v29137_v44, %v25109_v12 }
 0x312   :  { %v11110_v23 = vcombine.high %v11100_v48, %v11100_v48  ;;  %v29167_v29 = vcombine.low %v11100_v48, %v11108_v20  ;;  %v11119_v17 = vrot.slane %v28391_v15, %v25109_v12  ;;  %v14228_v30 = vrot.slane %v29158_v47, %v25109_v12 }
 0x313   :  { %v14070_v57 = vcombine.low %v14062_v51, %v14069_v45  ;;  %v11111_v62 = vcombine.high %v11107_v21, %v11107_v21  ;;  %v11126_v32 = vrot.slane %v11112_v37, %v25109_v12  ;;  %v29176_v36 = vcombine.low %v11107_v21, %v11109_v61 }
 0x314   :  { %v29174_v42 = vcombine.low %v11110_v23, %v11093_v54  ;;  %v11127_v6 = vcombine.high %v11119_v17, %v11119_v17  ;;  %v11135_v60 = vrot.slane %v11119_v17, %v25109_v12  ;;  %v14102_v15 = vrot.slane %v29057_v27, %v25109_v12 }
 0x315   :  { %14821 = vxpose.xlu1.b32.cont [4/16] (narrow) %v14070_v57, 88  ;;  %v11128_v7 = vcombine.high %v11126_v32, %v11126_v32  ;;  %v11142_v16 = vrot.slane %v11126_v32, %v25109_v12  ;;  %v14103_v34 = vcombine.low %v14081_v39, %v14088_v52  ;;  %v14235_v13 = vrot.slane %v29167_v29, %v25109_v12 }
 0x316   :  { %v11149_v33 = vrot.slane %v11127_v6, %v25109_v12  ;;  %v11157_v55 = vcombine.high %v11135_v60, %v11135_v60  ;;  %v29191_v1 = vcombine.low %v11111_v62, %v11135_v60  ;;  %v14242_v31 = vrot.slane %v29174_v42, %v25109_v12 }
 0x317   :  { %v11156_v27 = vrot.slane %v11128_v7, %v25109_v12  ;;  %v11158_v59 = vcombine.high %v11142_v16, %v11142_v16  ;;  %v14104_v4 = vcombine.low %v14095_v40, %v14102_v15  ;;  %v14111_v52 = vrot.slane %v14103_v34, %v25109_v12 }
 0x318   :  { %v11159_v11 = vcombine.high %v11149_v33, %v11149_v33  ;;  %v29199_v39 = vcombine.low %v11149_v33, %v11157_v55  ;;  %v11161_v58 = vcombine.high %v28431_v56, %v28431_v56  ;;  %v14277_v49 = vrot.slane %v29191_v1, %v25109_v12 }
 0x319   :  { %v14118_v2 = vrot.slane %v14104_v4, %v25109_v12  ;;  %v11160_v5 = vcombine.high %v11156_v27, %v11156_v27  ;;  %v11168_v54 = vrot.slane %v28431_v56, %v25109_v12  ;;  %v29211_v41 = vcombine.low %v11156_v27, %v11158_v59 }
 0x31a   :  { %v29209_v63 = vcombine.low %v11159_v11, %v11142_v16  ;;  %v11175_v40 = vrot.slane %v11161_v58, %v25109_v12  ;;  %v14151_v48 = vrot.slane %v29104_v50, %v25109_v12  ;;  %v14152_v56 = vcombine.low %v14130_v25, %v14137_v43 }
 0x31b   :  { %v14119_v20 = vcombine.low %v14111_v52, %v14118_v2  ;;  %v11176_v51 = vcombine.high %v11168_v54, %v11168_v54  ;;  %v11184_v21 = vrot.slane %v11168_v54, %v25109_v12  ;;  %v14284_v61 = vrot.slane %v29199_v39, %v25109_v12 }
 0x31c   :  { %v11177_v45 = vcombine.high %v11175_v40, %v11175_v40  ;;  %v11191_v37 = vrot.slane %v11175_v40, %v25109_v12  ;;  %v14153_v50 = vcombine.low %v14144_v46, %v14151_v48  ;;  %v14160_v53 = vrot.slane %v14152_v56, %v25109_v12 }
 0x31d   :  { %14822 = vxpose.xlu1.b32.cont [5/16] (narrow) %v14119_v20, 88  ;;  %v11198_v23 = vrot.slane %v11176_v51, %v25109_v12  ;;  %v11206_v17 = vcombine.high %v11184_v21, %v11184_v21  ;;  %v29230_v57 = vcombine.low %v11160_v5, %v11184_v21  ;;  %v11210_v62 = vcombine.high %v28466_v9, %v28466_v9 }
 0x31e   :  { %v11205_v35 = vrot.slane %v11177_v45, %v25109_v12  ;;  %v11207_v25 = vcombine.high %v11191_v37, %v11191_v37  ;;  %v14167_v43 = vrot.slane %v14153_v50, %v25109_v12  ;;  %v14291_v14 = vrot.slane %v29209_v63, %v25109_v12 }
 0x31f   :  { %v11208_v46 = vcombine.high %v11198_v23, %v11198_v23  ;;  %v29239_v32 = vcombine.low %v11198_v23, %v11206_v17  ;;  %v11217_v6 = vrot.slane %v28466_v9, %v25109_v12  ;;  %v14326_v60 = vrot.slane %v29230_v57, %v25109_v12 }
 0x320   :  { %v14168_v7 = vcombine.low %v14160_v53, %v14167_v43  ;;  %v11209_v16 = vcombine.high %v11205_v35, %v11205_v35  ;;  %v11224_v15 = vrot.slane %v11210_v62, %v25109_v12  ;;  %v29248_v33 = vcombine.low %v11205_v35, %v11207_v25 }
 0x321   :  { %v29246_v34 = vcombine.low %v11208_v46, %v11191_v37  ;;  %v11225_v55 = vcombine.high %v11217_v6, %v11217_v6  ;;  %v11233_v27 = vrot.slane %v11217_v6, %v25109_v12  ;;  %v14200_v9 = vrot.slane %v29139_v19, %v25109_v12 }
 0x322   :  { %14823 = vxpose.xlu1.b32.cont [6/16] (narrow) %v14168_v7, 88  ;;  %v11226_v59 = vcombine.high %v11224_v15, %v11224_v15  ;;  %v11240_v4 = vrot.slane %v11224_v15, %v25109_v12  ;;  %v14201_v11 = vcombine.low %v14179_v18, %v14186_v26  ;;  %v14333_v52 = vrot.slane %v29239_v32, %v25109_v12 }
 0x323   :  { %v11247_v58 = vrot.slane %v11225_v55, %v25109_v12  ;;  %v11255_v2 = vcombine.high %v11233_v27, %v11233_v27  ;;  %v29263_v5 = vcombine.low %v11209_v16, %v11233_v27  ;;  %v14340_v54 = vrot.slane %v29246_v34, %v25109_v12 }
 0x324   :  { %v11254_v19 = vrot.slane %v11226_v59, %v25109_v12  ;;  %v11256_v40 = vcombine.high %v11240_v4, %v11240_v4  ;;  %v14202_v0 = vcombine.low %v14193_v8, %v14200_v9  ;;  %v14209_v26 = vrot.slane %v14201_v11, %v25109_v12 }
 0x325   :  { %v11257_v10 = vcombine.high %v11247_v58, %v11247_v58  ;;  %v29271_v18 = vcombine.low %v11247_v58, %v11255_v2  ;;  %v11259_v48 = vcombine.high %v28515_v22, %v28515_v22  ;;  %v14375_v20 = vrot.slane %v29263_v5, %v25109_v12 }
 0x326   :  { %v14216_v51 = vrot.slane %v14202_v0, %v25109_v12  ;;  %v11258_v21 = vcombine.high %v11254_v19, %v11254_v19  ;;  %v11266_v56 = vrot.slane %v28515_v22, %v25109_v12  ;;  %v29283_v44 = vcombine.low %v11254_v19, %v11256_v40 }
 0x327   :  { %v29281_v45 = vcombine.low %v11257_v10, %v11240_v4  ;;  %v11273_v8 = vrot.slane %v11259_v48, %v25109_v12  ;;  %v14249_v37 = vrot.slane %v29176_v36, %v25109_v12  ;;  %v14250_v22 = vcombine.low %v14228_v30, %v14235_v13 }
 0x328   :  { %v14217_v50 = vcombine.low %v14209_v26, %v14216_v51  ;;  %v11274_v23 = vcombine.high %v11266_v56, %v11266_v56  ;;  %v11282_v17 = vrot.slane %v11266_v56, %v25109_v12  ;;  %v14382_v53 = vrot.slane %v29271_v18, %v25109_v12 }
 0x329   :  { %v11275_v35 = vcombine.high %v11273_v8, %v11273_v8  ;;  %v11289_v25 = vrot.slane %v11273_v8, %v25109_v12  ;;  %v14251_v36 = vcombine.low %v14242_v31, %v14249_v37  ;;  %v14258_v29 = vrot.slane %v14250_v22, %v25109_v12 }
 0x32a   :  { %14824 = vxpose.xlu1.b32.cont [7/16] (narrow) %v14217_v50, 88  ;;  %v11296_v43 = vrot.slane %v11274_v23, %v25109_v12  ;;  %v11304_v62 = vcombine.high %v11282_v17, %v11282_v17  ;;  %v29302_v46 = vcombine.low %v11258_v21, %v11282_v17  ;;  %v11308_v6 = vcombine.high %v28589_v3, %v28589_v3 }
 0x32b   :  { %v11303_v47 = vrot.slane %v11275_v35, %v25109_v12  ;;  %v11305_v30 = vcombine.high %v11289_v25, %v11289_v25  ;;  %v14265_v13 = vrot.slane %v14251_v36, %v25109_v12  ;;  %v14389_v42 = vrot.slane %v29281_v45, %v25109_v12 }
 0x32c   :  { %v11306_v31 = vcombine.high %v11296_v43, %v11296_v43  ;;  %v29311_v7 = vcombine.low %v11296_v43, %v11304_v62  ;;  %v11315_v16 = vrot.slane %v28589_v3, %v25109_v12  ;;  %v14424_v15 = vrot.slane %v29302_v46, %v25109_v12 }
 0x32d   :  { %v14266_v55 = vcombine.low %v14258_v29, %v14265_v13  ;;  %v11307_v27 = vcombine.high %v11303_v47, %v11303_v47  ;;  %v11322_v59 = vrot.slane %v11308_v6, %v25109_v12  ;;  %v29320_v9 = vcombine.low %v11303_v47, %v11305_v30 }
 0x32e   :  { %v29318_v4 = vcombine.low %v11306_v31, %v11289_v25  ;;  %v11323_v11 = vcombine.high %v11315_v16, %v11315_v16  ;;  %v11331_v58 = vrot.slane %v11315_v16, %v25109_v12  ;;  %v14298_v3 = vrot.slane %v29211_v41, %v25109_v12 }
 0x32f   :  { %14825 = vxpose.xlu1.b32.cont [8/16] (narrow) %v14266_v55, 88  ;;  %v11324_v2 = vcombine.high %v11322_v59, %v11322_v59  ;;  %v11338_v19 = vrot.slane %v11322_v59, %v25109_v12  ;;  %v14299_v40 = vcombine.low %v14277_v49, %v14284_v61  ;;  %v14431_v0 = vrot.slane %v29311_v7, %v25109_v12 }
 0x330   :  { %v11345_v10 = vrot.slane %v11323_v11, %v25109_v12  ;;  %v11353_v26 = vcombine.high %v11331_v58, %v11331_v58  ;;  %v29335_v48 = vcombine.low %v11307_v27, %v11331_v58  ;;  %v14438_v51 = vrot.slane %v29318_v4, %v25109_v12 }
 0x331   :  { %v11352_v41 = vrot.slane %v11324_v2, %v25109_v12  ;;  %v11354_v21 = vcombine.high %v11338_v19, %v11338_v19  ;;  %v14300_v39 = vcombine.low %v14291_v14, %v14298_v3  ;;  %v14307_v61 = vrot.slane %v14299_v40, %v25109_v12 }
 0x332   :  { %v11355_v1 = vcombine.high %v11345_v10, %v11345_v10  ;;  %v29343_v49 = vcombine.low %v11345_v10, %v11353_v26  ;;  %v11357_v56 = vcombine.high %v28663_v24, %v28663_v24  ;;  %v14473_v8 = vrot.slane %v29335_v48, %v25109_v12 }
 0x333   :  { %v14314_v37 = vrot.slane %v14300_v39, %v25109_v12  ;;  %v11356_v50 = vcombine.high %v11352_v41, %v11352_v41  ;;  %v11364_v23 = vrot.slane %v28663_v24, %v25109_v12  ;;  %v29355_v63 = vcombine.low %v11352_v41, %v11354_v21 }
 0x334   :  { %v29353_v17 = vcombine.low %v11355_v1, %v11338_v19  ;;  %v11371_v14 = vrot.slane %v11357_v56, %v25109_v12  ;;  %v14347_v22 = vrot.slane %v29248_v33, %v25109_v12  ;;  %v14348_v24 = vcombine.low %v14326_v60, %v14333_v52  ;;  %v29405_v56 = vpop.trf.xlu1 }
 0x335   :  { %v14315_v35 = vcombine.low %v14307_v61, %v14314_v37  ;;  %v11372_v25 = vcombine.high %v11364_v23, %v11364_v23  ;;  %v11380_v36 = vrot.slane %v11364_v23, %v25109_v12  ;;  %v14480_v43 = vrot.slane %v29343_v49, %v25109_v12  ;;  %v29403_v61 = vpop.trf.xlu0 }
 0x336   :  { %v11373_v62 = vcombine.high %v11371_v14, %v11371_v14  ;;  %v11387_v29 = vrot.slane %v11371_v14, %v25109_v12  ;;  %v14349_v33 = vcombine.low %v14340_v54, %v14347_v22  ;;  %v14356_v32 = vrot.slane %v14348_v24, %v25109_v12 }
 0x337   :  { %14826 = vxpose.xlu1.b32.cont [9/16] (narrow) %v14315_v35, 88  ;;  %v11394_v47 = vrot.slane %v11372_v25, %v25109_v12  ;;  %v11402_v30 = vcombine.high %v11380_v36, %v11380_v36  ;;  %v29374_v13 = vcombine.low %v11356_v50, %v11380_v36  ;;  %v11406_v6 = vcombine.high %v28751_v28, %v28751_v28 }
 0x338   :  { %v11401_v57 = vrot.slane %v11373_v62, %v25109_v12  ;;  %v11403_v60 = vcombine.high %v11387_v29, %v11387_v29  ;;  %v14363_v52 = vrot.slane %v14349_v33, %v25109_v12  ;;  %v14487_v34 = vrot.slane %v29353_v17, %v25109_v12 }
 0x339   :  { %v11404_v54 = vcombine.high %v11394_v47, %v11394_v47  ;;  %v29383_v31 = vcombine.low %v11394_v47, %v11402_v30  ;;  %v11413_v16 = vrot.slane %v28751_v28, %v25109_v12  ;;  %v14522_v55 = vrot.slane %v29374_v13, %v25109_v12 }
 0x33a   :  { %v14364_v27 = vcombine.low %v14356_v32, %v14363_v52  ;;  %v11405_v59 = vcombine.high %v11401_v57, %v11401_v57  ;;  %v11420_v11 = vrot.slane %v11406_v6, %v25109_v12  ;;  %v14515_v2 = vcombine.low %v11401_v57, %v11403_v60  ;;  %v14739_v57 = vpop.trf.xlu0  ;;  %v14771_v60 = vpop.trf.xlu1 }
 0x33b   :  { %v14514_v58 = vcombine.low %v11404_v54, %v11387_v29  ;;  %v11421_v19 = vcombine.high %v11413_v16, %v11413_v16  ;;  %v11429_v3 = vrot.slane %v11413_v16, %v25109_v12  ;;  %v14396_v26 = vrot.slane %v29283_v44, %v25109_v12 }
 0x33c   :  { %14827 = vxpose.xlu1.b32.cont [10/16] (narrow) %v14364_v27, 88  ;;  %v11422_v40 = vcombine.high %v11420_v11, %v11420_v11  ;;  %v11436_v10 = vrot.slane %v11420_v11, %v25109_v12  ;;  %v14397_v28 = vcombine.low %v14375_v20, %v14382_v53  ;;  %v14529_v41 = vrot.slane %v29383_v31, %v25109_v12 }
 0x33d   :  { %v11443_v21 = vrot.slane %v11421_v19, %v25109_v12  ;;  %v11451_v39 = vcombine.high %v11429_v3, %v11429_v3  ;;  %v14561_v1 = vcombine.low %v11405_v59, %v11429_v3  ;;  %v14536_v44 = vrot.slane %v14514_v58, %v25109_v12 }
 0x33e   :  { %v11450_v37 = vrot.slane %v11422_v40, %v25109_v12  ;;  %v11452_v18 = vcombine.high %v11436_v10, %v11436_v10  ;;  %v14398_v5 = vcombine.low %v14389_v42, %v14396_v26  ;;  %v14405_v50 = vrot.slane %v14397_v28, %v25109_v12  ;;  %v14740_v17 = vpop.trf.xlu0 }
 0x33f   :  { %v11453_v20 = vcombine.high %v11443_v21, %v11443_v21  ;;  %v14562_v53 = vcombine.low %v11443_v21, %v11451_v39  ;;  %v11455_v23 = vcombine.high %v28834_v38, %v28834_v38  ;;  %v14571_v14 = vrot.slane %v14561_v1, %v25109_v12 }
 0x340   :  { %v14412_v22 = vrot.slane %v14398_v5, %v25109_v12  ;;  %v11454_v35 = vcombine.high %v11450_v37, %v11450_v37  ;;  %v11462_v25 = vrot.slane %v28834_v38, %v25109_v12  ;;  %v14564_v24 = vcombine.low %v11450_v37, %v11452_v18 }
 0x341   :  { %v14563_v36 = vcombine.low %v11453_v20, %v11436_v10  ;;  %v11469_v45 = vrot.slane %v11455_v23, %v25109_v12  ;;  %v14445_v42 = vrot.slane %v29320_v9, %v25109_v12  ;;  %v14446_v47 = vcombine.low %v14424_v15, %v14431_v0 }
 0x342   :  { %v14413_v62 = vcombine.low %v14405_v50, %v14412_v22  ;;  %v11470_v29 = vcombine.high %v11462_v25, %v11462_v25  ;;  %v11478_v33 = vrot.slane %v11462_v25, %v25109_v12  ;;  %v14578_v38 = vrot.slane %v14562_v53, %v25109_v12 }
 0x343   :  { %v14585_v30 = vrot.slane %v14563_v36, %v25109_v12  ;;  %v11471_v32 = vcombine.high %v11469_v45, %v11469_v45  ;;  %v14447_v9 = vcombine.low %v14438_v51, %v14445_v42  ;;  %v14454_v54 = vrot.slane %v14446_v47, %v25109_v12 }
 0x344   :  { %14828 = vxpose.xlu1.b32.cont [11/16] (narrow) %v14413_v62, 88  ;;  %v11492_v52 = vrot.slane %v11470_v29, %v25109_v12  ;;  %v11500_v6 = vcombine.high %v11478_v33, %v11478_v33  ;;  %v14610_v7 = vcombine.low %v11454_v35, %v11478_v33  ;;  %v14494_v0 = vrot.slane %v29355_v63, %v25109_v12 }
 0x345   :  { %v11499_v46 = vrot.slane %v11471_v32, %v25109_v12  ;;  %v14461_v15 = vrot.slane %v14447_v9, %v25109_v12  ;;  %v14495_v4 = vcombine.low %v14473_v8, %v14480_v43  ;;  %v11485_v51 = vrot.slane %v11469_v45, %v25109_v12 }
 0x346   :  { %v11501_v31 = vcombine.high %v11492_v52, %v11492_v52  ;;  %v14611_v16 = vcombine.low %v11492_v52, %v11500_v6  ;;  %v14543_v27 = vrot.slane %v14515_v2, %v25109_v12  ;;  %v14619_v59 = vrot.slane %v14610_v7, %v25109_v12 }
 0x347   :  { %v14640_v11 = vrot.slane %v11499_v46, %v25109_v12  ;;  %v14462_v58 = vcombine.low %v14454_v54, %v14461_v15  ;;  %v14496_v63 = vcombine.low %v14487_v34, %v14494_v0  ;;  %v14544_v48 = vcombine.low %v14522_v55, %v14529_v41  ;;  %v14772_v34 = vpop.trf.xlu1 }
 0x348   :  { %v14612_v49 = vcombine.low %v11501_v31, %v11485_v51  ;;  %v14626_v19 = vrot.slane %v14611_v16, %v25109_v12  ;;  %v14545_v8 = vcombine.low %v14536_v44, %v14543_v27  ;;  %v14503_v43 = vrot.slane %v14495_v4, %v25109_v12 }
 0x349   :  { %14829 = vxpose.xlu1.b32.cont [12/16] (narrow) %v14462_v58, 88  ;;  %v14510_v2 = vrot.slane %v14496_v63, %v25109_v12  ;;  %v14592_v3 = vrot.slane %v14564_v24, %v25109_v12  ;;  %v14894_v40 = vcombine.low %v29403_v61, %v29405_v56  ;;  %v14552_v26 = vrot.slane %v14544_v48, %v25109_v12 }
 0x34a   :  { %v14633_v10 = vrot.slane %v14612_v49, %v25109_v12  ;;  %v14559_v13 = vrot.slane %v14545_v8, %v25109_v12  ;;  %v14593_v55 = vcombine.low %v14571_v14, %v14578_v38  ;;  %v14641_v21 = vcombine.low %v14619_v59, %v14626_v19 }
 0x34b   :  { %v14511_v28 = vcombine.low %v14503_v43, %v14510_v2  ;;  %v14594_v41 = vcombine.low %v14585_v30, %v14592_v3  ;;  %v14895_v39 = vcombine.high %v29403_v61, %v29405_v56  ;;  %v14902_v37 = vrot.slane %v14894_v40, %v25109_v12  ;;  %v14741_v56 = vpop.trf.xlu0  ;;  %v14773_v25 = vpop.trf.xlu1 }
 0x34c   :  { %v14560_v1 = vcombine.low %v14552_v26, %v14559_v13  ;;  %v14642_v44 = vcombine.low %v14633_v10, %v14640_v11  ;;  %v14944_v20 = vcombine.low %v14739_v57, %v14771_v60  ;;  %v14945_v53 = vcombine.high %v14739_v57, %v14771_v60 }
 0x34d   :  { %14830 = vxpose.xlu1.b32.cont [13/16] (narrow) %v14511_v28, 88  ;;  %v14608_v18 = vrot.slane %v14594_v41, %v25109_v12  ;;  %v14909_v5 = vrot.slane %v14895_v39, %v25109_v12  ;;  %v14601_v50 = vrot.slane %v14593_v55, %v25109_v12  ;;  %v14994_v14 = vcombine.low %v14740_v17, %v14772_v34 }
 0x34e   :  { %v14656_v23 = vrot.slane %v14642_v44, %v25109_v12  ;;  %v14649_v22 = vrot.slane %v14641_v21, %v25109_v12  ;;  %v14910_v35 = vcombine.high %v14902_v37, %v14902_v37  ;;  %v14952_v61 = vrot.slane %v14944_v20, %v25109_v12 }
 0x34f   :  { %v14609_v36 = vcombine.low %v14601_v50, %v14608_v18  ;;  %v14911_v24 = vcombine.high %v14909_v5, %v14909_v5  ;;  %v14959_v45 = vrot.slane %v14945_v53, %v25109_v12  ;;  %v14995_v42 = vcombine.high %v14740_v17, %v14772_v34  ;;  %v14742_v2 = vpop.trf.xlu0  ;;  %v14774_v3 = vpop.trf.xlu1 }
 0x350   :  { %v14657_v62 = vcombine.low %v14649_v22, %v14656_v23  ;;  %v14960_v29 = vcombine.high %v14952_v61, %v14952_v61  ;;  %v14968_v33 = vrot.slane %v14952_v61, %v25109_v12  ;;  %v15002_v47 = vrot.slane %v14994_v14, %v25109_v12 }
 0x351   :  { %14831 = vxpose.xlu1.b32.cont [14/16] (narrow) %v14560_v1, 88  ;;  %v14961_v38 = vcombine.high %v14959_v45, %v14959_v45  ;;  %v14975_v30 = vrot.slane %v14959_v45, %v25109_v12  ;;  %v15009_v32 = vrot.slane %v14995_v42, %v25109_v12  ;;  %v15044_v9 = vcombine.low %v14741_v56, %v14773_v25 }
 0x352   :  { %v14982_v57 = vrot.slane %v14960_v29, %v25109_v12  ;;  %v15010_v60 = vcombine.high %v15002_v47, %v15002_v47  ;;  %v15018_v52 = vrot.slane %v15002_v47, %v25109_v12  ;;  %v15045_v6 = vcombine.high %v14741_v56, %v14773_v25 }
 0x353   :  { %v14989_v7 = vrot.slane %v14961_v38, %v25109_v12  ;;  %v15011_v54 = vcombine.high %v15009_v32, %v15009_v32  ;;  %v15025_v46 = vrot.slane %v15009_v32, %v25109_v12  ;;  %v15052_v15 = vrot.slane %v15044_v9, %v25109_v12  ;;  %v14743_v45 = vpop.trf.xlu0  ;;  %v14775_v42 = vpop.trf.xlu1 }
 0x354   :  { %v16040_v0 = vcombine.low %v14968_v33, %v14982_v57  ;;  %v23582_v4 = vcombine.high %v14968_v33, %v14982_v57  ;;  %v15032_v51 = vrot.slane %v15010_v60, %v25109_v12  ;;  %v15059_v31 = vrot.slane %v15045_v6, %v25109_v12 }
 0x355   :  { %14832 = vxpose.xlu1.b32.cont [15/16] (narrow) %v14609_v36, 88  ;;  %v16042_v16 = vcombine.low %v14975_v30, %v14989_v7  ;;  %v15039_v27 = vrot.slane %v15011_v54, %v25109_v12  ;;  %v15060_v59 = vcombine.high %v15052_v15, %v15052_v15  ;;  %v14918_v11 = vrot.slane %v14902_v37, %v25109_v12 }
 0x356   :  { %v14925_v58 = vrot.slane %v14909_v5, %v25109_v12  ;;  %v14932_v63 = vrot.slane %v14910_v35, %v25109_v12  ;;  %v14939_v49 = vrot.slane %v14911_v24, %v25109_v12  ;;  %v23583_v19 = vcombine.high %v14975_v30, %v14989_v7 }
 0x357   :  { %v29492_v48 = vrot.slane %v16040_v0, %v25109_v12  ;;  %v29495_v8 = vrot.slane %v23582_v4, %v25109_v12  ;;  %v16106_v43 = vcombine.low %v15018_v52, %v15032_v51  ;;  %v29498_v40 = vrot.slane %v16042_v16, %v25109_v12 }
 0x358   :  { %v23584_v17 = vcombine.high %v15018_v52, %v15032_v51  ;;  %v16108_v34 = vcombine.low %v15025_v46, %v15039_v27  ;;  %v15061_v10 = vcombine.high %v15059_v31, %v15059_v31  ;;  %v23585_v26 = vcombine.high %v15025_v46, %v15039_v27 }
 0x359   :  { %14833 = vxpose.xlu1.b32.end [16/16] (narrow) %v14657_v62, 88  ;;  %v15068_v13 = vrot.slane %v15052_v15, %v25109_v12  ;;  %v29502_v55 = vrot.slane %v15059_v31, %v25109_v12  ;;  %v15082_v28 = vrot.slane %v15060_v59, %v25109_v12  ;;  %v15094_v21 = vcombine.low %v14742_v2, %v14774_v3 }
 0x35a   :  { %v29506_v41 = vrot.slane %v15061_v10, %v25109_v12  ;;  %v15095_v39 = vcombine.high %v14742_v2, %v14774_v3  ;;  %v15974_v1 = vcombine.low %v14918_v11, %v14932_v63  ;;  %v29509_v44 = vrot.slane %v23583_v19, %v25109_v12  ;;  %v14744_v3 = vpop.trf.xlu0  ;;  %v14776_v10 = vpop.trf.xlu1 }
 0x35b   :  { %v29512_v37 = vrot.slane %v16106_v43, %v25109_v12  ;;  %v23580_v18 = vcombine.high %v14918_v11, %v14932_v63  ;;  %v15976_v5 = vcombine.low %v14925_v58, %v14939_v49  ;;  %v29515_v20 = vrot.slane %v23584_v17, %v25109_v12 }
 0x35c   :  { %v29518_v53 = vrot.slane %v16108_v34, %v25109_v12  ;;  %v15102_v50 = vrot.slane %v15094_v21, %v25109_v12  ;;  %v15109_v23 = vrot.slane %v15095_v39, %v25109_v12  ;;  %v29523_v14 = vrot.slane %v23585_v26, %v25109_v12 }
 0x35d   :  { %v16172_v22 = vcombine.low %v15068_v13, %v15082_v28  ;;  %v23581_v35 = vcombine.high %v14925_v58, %v14939_v49  ;;  %v15984_v61 = vrot.slane %v15974_v1, %v25109_v12  ;;  %v23586_v56 = vcombine.high %v15068_v13, %v15082_v28 }
 0x35e   :  { %v16174_v25 = vcombine.low %v29502_v55, %v29506_v41  ;;  %v15110_v36 = vcombine.high %v15102_v50, %v15102_v50  ;;  %v15111_v24 = vcombine.high %v15109_v23, %v15109_v23  ;;  %v23587_v62 = vcombine.high %v29502_v55, %v29506_v41 }
 0x35f   :  { %v15118_v29 = vrot.slane %v15102_v50, %v25109_v12  ;;  %v15991_v33 = vrot.slane %v23580_v18, %v25109_v12  ;;  %v15998_v47 = vrot.slane %v15976_v5, %v25109_v12  ;;  %v15125_v38 = vrot.slane %v15109_v23, %v25109_v12 }
 0x360   :  { %v15132_v30 = vrot.slane %v15110_v36, %v25109_v12  ;;  %v15139_v32 = vrot.slane %v15111_v24, %v25109_v12  ;;  %v16005_v9 = vrot.slane %v23581_v35, %v25109_v12  ;;  %v15144_v52 = vcombine.low %v14743_v45, %v14775_v42 }
 0x361   :  { %v16007_v57 = vcombine.high %v15984_v61, %v15991_v33  ;;  %v16006_v60 = vcombine.low %v15984_v61, %v15991_v33  ;;  %v15145_v6 = vcombine.high %v14743_v45, %v14775_v42  ;;  %v29538_v7 = vrot.slane %v16172_v22, %v25109_v12  ;;  %v14745_v42 = vpop.trf.xlu0 }
 0x362   :  { %v29541_v54 = vrot.slane %v23586_v56, %v25109_v12  ;;  %v29544_v46 = vrot.slane %v16174_v25, %v25109_v12  ;;  %v16073_v15 = vcombine.high %v29492_v48, %v29495_v8  ;;  %v16009_v0 = vcombine.high %v15998_v47, %v16005_v9 }
 0x363   :  { %v16023_v4 = vrot.slane %v16007_v57, %v25109_v12  ;;  %v16008_v51 = vcombine.low %v15998_v47, %v16005_v9  ;;  %v16016_v31 = vrot.slane %v16006_v60, %v25109_v12  ;;  %v16238_v16 = vcombine.low %v15118_v29, %v15132_v30 }
 0x364   :  { %v23588_v27 = vcombine.high %v15118_v29, %v15132_v30  ;;  %v16240_v59 = vcombine.low %v15125_v38, %v15139_v32  ;;  %v23589_v11 = vcombine.high %v15125_v38, %v15139_v32  ;;  %v16037_v58 = vrot.slane %v16009_v0, %v25109_v12 }
 0x365   :  { %v16030_v63 = vrot.slane %v16008_v51, %v25109_v12  ;;  %v15152_v49 = vrot.slane %v15144_v52, %v25109_v12  ;;  %v15159_v19 = vrot.slane %v15145_v6, %v25109_v12  ;;  %v16075_v43 = vcombine.high %v29498_v40, %v29509_v44 }
 0x366   :  { %v16089_v2 = vrot.slane %v16073_v15, %v25109_v12  ;;  %v16072_v17 = vcombine.low %v29492_v48, %v29495_v8  ;;  %v16074_v34 = vcombine.low %v29498_v40, %v29509_v44  ;;  %v16039_v26 = vcombine.low %v16023_v4, %v16037_v58 }
 0x367   :  { %v16038_v13 = vcombine.low %v16016_v31, %v16030_v63  ;;  %v15160_v55 = vcombine.high %v15152_v49, %v15152_v49  ;;  %v15161_v28 = vcombine.high %v15159_v19, %v15159_v19  ;;  %v15168_v41 = vrot.slane %v15152_v49, %v25109_v12 }
 0x368   :  { %v15175_v21 = vrot.slane %v15159_v19, %v25109_v12  ;;  %v16103_v39 = vrot.slane %v16075_v43, %v25109_v12  ;;  %v16082_v1 = vrot.slane %v16072_v17, %v25109_v12  ;;  %23612 = vmatprep.mubr.msk.f32.mxu1 %vm7786_vm0, %v16039_v26  ;;  %v16096_v40 = vrot.slane %v16074_v34, %v25109_v12  ;;  %v14746_v43 = vpop.trf.xlu0 }
 0x369   :  { %v15182_v48 = vrot.slane %v15160_v55, %v25109_v12  ;;  %v15189_v8 = vrot.slane %v15161_v28, %v25109_v12  ;;  %v15194_v44 = vcombine.low %v14744_v3, %v14776_v10  ;;  %v29570_v18 = vrot.slane %v23587_v62, %v25109_v12  ;;  %17547 = vmatmul.mubr.f32.vlgmr.msra.gmra.mxu1 %v16038_v13  ;;  %v14777_v62 = vpop.trf.xlu1 }
 0x36a   :  { %v16105_v5 = vcombine.low %v16089_v2, %v16103_v39  ;;  %v15195_v50 = vcombine.high %v14744_v3, %v14776_v10  ;;  %v16139_v23 = vcombine.high %v29512_v37, %v29515_v20  ;;  %v29575_v22 = vrot.slane %v16238_v16, %v25109_v12 }
 0x36b   :  { %v29578_v35 = vrot.slane %v23588_v27, %v25109_v12  ;;  %v29581_v61 = vrot.slane %v16240_v59, %v25109_v12  ;;  %v16141_v56 = vcombine.high %v29518_v53, %v29523_v14  ;;  %v29586_v25 = vrot.slane %v23589_v11, %v25109_v12 }
 0x36c   :  { %23613 = vmatprep.mubr.msk.f32.mxu1 %vm7786_vm0, %v16105_v5  ;;  %v16104_v36 = vcombine.low %v16082_v1, %v16096_v40  ;;  %v15202_v24 = vrot.slane %v15194_v44, %v25109_v12  ;;  %v15209_v45 = vrot.slane %v15195_v50, %v25109_v12  ;;  %v16304_v29 = vcombine.low %v15168_v41, %v15182_v48 }
 0x36d   :  { %v23590_v33 = vcombine.high %v15168_v41, %v15182_v48  ;;  %v16306_v47 = vcombine.low %v15175_v21, %v15189_v8  ;;  %v16155_v38 = vrot.slane %v16139_v23, %v25109_v12  ;;  %v23591_v30 = vcombine.high %v15175_v21, %v15189_v8  ;;  %v14778_v2 = vpop.trf.xlu1 }
 0x36e   :  { %17552 = vmatmul.mubr.f32.gmra.mxu1 %v16104_v36  ;;  %v15210_v32 = vcombine.high %v15202_v24, %v15202_v24  ;;  %v15211_v9 = vcombine.high %v15209_v45, %v15209_v45  ;;  %v15218_v57 = vrot.slane %v15202_v24, %v25109_v12  ;;  %v16169_v60 = vrot.slane %v16141_v56, %v25109_v12 }
 0x36f   :  { %v16138_v52 = vcombine.low %v29512_v37, %v29515_v20  ;;  %v16140_v6 = vcombine.low %v29518_v53, %v29523_v14  ;;  %v15244_v15 = vcombine.low %v14745_v42, %v14777_v62  ;;  %v15225_v0 = vrot.slane %v15209_v45, %v25109_v12 }
 0x370   :  { %v15232_v4 = vrot.slane %v15210_v32, %v25109_v12  ;;  %v15239_v51 = vrot.slane %v15211_v9, %v25109_v12  ;;  %v15245_v31 = vcombine.high %v14745_v42, %v14777_v62  ;;  %v16171_v16 = vcombine.low %v16155_v38, %v16169_v60  ;;  %v14747_v62 = vpop.trf.xlu0 }
 0x371   :  { %v16148_v27 = vrot.slane %v16138_v52, %v25109_v12  ;;  %v16162_v59 = vrot.slane %v16140_v6, %v25109_v12  ;;  %v15252_v11 = vrot.slane %v15244_v15, %v25109_v12  ;;  %v29605_v37 = vrot.slane %v16304_v29, %v25109_v12  ;;  %v14779_v29 = vpop.trf.xlu1 }
 0x372   :  { %v29608_v20 = vrot.slane %v23590_v33, %v25109_v12  ;;  %v29611_v53 = vrot.slane %v16306_v47, %v25109_v12  ;;  %v16205_v14 = vcombine.high %v29538_v7, %v29541_v54  ;;  %v16370_v58 = vcombine.low %v15218_v57, %v15232_v4  ;;  %23614 = vmatprep.mubr.msk.f32.mxu1 %vm7786_vm0, %v16171_v16 }
 0x373   :  { %v16170_v63 = vcombine.low %v16148_v27, %v16162_v59  ;;  %v15259_v49 = vrot.slane %v15245_v31, %v25109_v12  ;;  %v15260_v19 = vcombine.high %v15252_v11, %v15252_v11  ;;  %v29618_v3 = vrot.slane %v23591_v30, %v25109_v12 }
 0x374   :  { %v23592_v17 = vcombine.high %v15218_v57, %v15232_v4  ;;  %v16372_v34 = vcombine.low %v15225_v0, %v15239_v51  ;;  %v23593_v10 = vcombine.high %v15225_v0, %v15239_v51  ;;  %v15268_v13 = vrot.slane %v15252_v11, %v25109_v12 }
 0x375   :  { %17557 = vmatmul.mubr.f32.gmra.mxu1 %v16170_v63  ;;  %v15261_v26 = vcombine.high %v15259_v49, %v15259_v49  ;;  %v15282_v55 = vrot.slane %v15260_v19, %v25109_v12  ;;  %v16207_v28 = vcombine.high %v29544_v46, %v29570_v18  ;;  %v16221_v41 = vrot.slane %v16205_v14, %v25109_v12 }
 0x376   :  { %v16204_v21 = vcombine.low %v29538_v7, %v29541_v54  ;;  %v16206_v39 = vcombine.low %v29544_v46, %v29570_v18  ;;  %v15294_v1 = vcombine.low %v14746_v43, %v14778_v2  ;;  %v29630_v48 = vrot.slane %v16370_v58, %v25109_v12 }
 0x377   :  { %v15275_v8 = vrot.slane %v15259_v49, %v25109_v12  ;;  %v15289_v40 = vrot.slane %v15261_v26, %v25109_v12  ;;  %v16235_v44 = vrot.slane %v16207_v28, %v25109_v12  ;;  %v15295_v23 = vcombine.high %v14746_v43, %v14778_v2 }
 0x378   :  { %v16214_v5 = vrot.slane %v16204_v21, %v25109_v12  ;;  %v16228_v50 = vrot.slane %v16206_v39, %v25109_v12  ;;  %v15302_v7 = vrot.slane %v15294_v1, %v25109_v12  ;;  %v29639_v54 = vrot.slane %v23592_v17, %v25109_v12 }
 0x379   :  { %v29642_v46 = vrot.slane %v16372_v34, %v25109_v12  ;;  %v29645_v18 = vrot.slane %v23593_v10, %v25109_v12  ;;  %v16436_v56 = vcombine.low %v15268_v13, %v15282_v55  ;;  %v16237_v36 = vcombine.low %v16221_v41, %v16235_v44 }
 0x37a   :  { %v16236_v24 = vcombine.low %v16214_v5, %v16228_v50  ;;  %v15309_v45 = vrot.slane %v15295_v23, %v25109_v12  ;;  %v15310_v42 = vcombine.high %v15302_v7, %v15302_v7  ;;  %v23594_v33 = vcombine.high %v15268_v13, %v15282_v55  ;;  %v29697_v5 = vpop.trf.xlu0  ;;  %v29699_v50 = vpop.trf.xlu1 }
 0x37b   :  { %v16438_v47 = vcombine.low %v15275_v8, %v15289_v40  ;;  %v23595_v38 = vcombine.high %v15275_v8, %v15289_v40  ;;  %v16271_v30 = vcombine.high %v29575_v22, %v29578_v35  ;;  %23615 = vmatprep.mubr.msk.f32.mxu1 %vm7786_vm0, %v16237_v36  ;;  %v15318_v9 = vrot.slane %v15302_v7, %v25109_v12 }
 0x37c   :  { %v15311_v32 = vcombine.high %v15309_v45, %v15309_v45  ;;  %v15332_v57 = vrot.slane %v15310_v42, %v25109_v12  ;;  %v16273_v60 = vcombine.high %v29581_v61, %v29586_v25  ;;  %17562 = vmatmul.mubr.f32.gmra.mxu1 %v16236_v24  ;;  %v16270_v6 = vcombine.low %v29575_v22, %v29578_v35 }
 0x37d   :  { %v16287_v52 = vrot.slane %v16271_v30, %v25109_v12  ;;  %v16272_v15 = vcombine.low %v29581_v61, %v29586_v25  ;;  %v15344_v0 = vcombine.low %v14747_v62, %v14779_v29  ;;  %v29661_v4 = vrot.slane %v16436_v56, %v25109_v12 }
 0x37e   :  { %v15325_v51 = vrot.slane %v15309_v45, %v25109_v12  ;;  %v15339_v31 = vrot.slane %v15311_v32, %v25109_v12  ;;  %v16301_v16 = vrot.slane %v16273_v60, %v25109_v12  ;;  %v16280_v27 = vrot.slane %v16270_v6, %v25109_v12 }
 0x37f   :  { %v16294_v59 = vrot.slane %v16272_v15, %v25109_v12  ;;  %v15345_v11 = vcombine.high %v14747_v62, %v14779_v29  ;;  %v15352_v22 = vrot.slane %v15344_v0, %v25109_v12  ;;  %v29670_v35 = vrot.slane %v23594_v33, %v25109_v12 }
 0x380   :  { %v29673_v61 = vrot.slane %v16438_v47, %v25109_v12  ;;  %v29676_v25 = vrot.slane %v23595_v38, %v25109_v12  ;;  %v16502_v14 = vcombine.low %v15318_v9, %v15332_v57  ;;  %v16303_v58 = vcombine.low %v16287_v52, %v16301_v16 }
 0x381   :  { %v16302_v63 = vcombine.low %v16280_v27, %v16294_v59  ;;  %v15359_v49 = vrot.slane %v15345_v11, %v25109_v12  ;;  %v15360_v19 = vcombine.high %v15352_v22, %v15352_v22  ;;  %v23596_v43 = vcombine.high %v15318_v9, %v15332_v57 }
 0x382   :  { %v16504_v2 = vcombine.low %v15325_v51, %v15339_v31  ;;  %v23597_v17 = vcombine.high %v15325_v51, %v15339_v31  ;;  %v16337_v34 = vcombine.high %v29605_v37, %v29608_v20  ;;  %23616 = vmatprep.mubr.msk.f32.mxu1 %vm7786_vm0, %v16303_v58  ;;  %v15368_v26 = vrot.slane %v15352_v22, %v25109_v12 }
 0x383   :  { %v15361_v10 = vcombine.high %v15359_v49, %v15359_v49  ;;  %v15382_v13 = vrot.slane %v15360_v19, %v25109_v12  ;;  %v16339_v55 = vcombine.high %v29611_v53, %v29618_v3  ;;  %17567 = vmatmul.mubr.f32.gmra.mxu1 %v16302_v63  ;;  %v16336_v41 = vcombine.low %v29605_v37, %v29608_v20 }
 0x384   :  { %v16353_v28 = vrot.slane %v16337_v34, %v25109_v12  ;;  %v16338_v21 = vcombine.low %v29611_v53, %v29618_v3  ;;  %v16403_v39 = vcombine.high %v29630_v48, %v29639_v54  ;;  %v16512_v1 = vrot.slane %v16502_v14, %v25109_v12 }
 0x385   :  { %v15375_v8 = vrot.slane %v15359_v49, %v25109_v12  ;;  %v15389_v40 = vrot.slane %v15361_v10, %v25109_v12  ;;  %v16367_v44 = vrot.slane %v16339_v55, %v25109_v12  ;;  %v16346_v37 = vrot.slane %v16336_v41, %v25109_v12 }
 0x386   :  { %v16360_v20 = vrot.slane %v16338_v21, %v25109_v12  ;;  %v16405_v53 = vcombine.high %v29642_v46, %v29645_v18  ;;  %v16419_v3 = vrot.slane %v16403_v39, %v25109_v12  ;;  %v16519_v23 = vrot.slane %v23596_v43, %v25109_v12  ;;  %v14802_v43 = vpop.trf.xlu0 }
 0x387   :  { %v16526_v7 = vrot.slane %v16504_v2, %v25109_v12  ;;  %v16568_v56 = vcombine.low %v15368_v26, %v15382_v13  ;;  %v23598_v36 = vcombine.high %v15368_v26, %v15382_v13  ;;  %v16369_v24 = vcombine.low %v16353_v28, %v16367_v44 }
 0x388   :  { %v16368_v45 = vcombine.low %v16346_v37, %v16360_v20  ;;  %v16433_v42 = vrot.slane %v16405_v53, %v25109_v12  ;;  %v15394_v62 = vcombine.low %v29697_v5, %v29699_v50  ;;  %v16533_v29 = vrot.slane %v23597_v17, %v25109_v12 }
 0x389   :  { %v16570_v33 = vcombine.low %v15375_v8, %v15389_v40  ;;  %v23599_v47 = vcombine.high %v15375_v8, %v15389_v40  ;;  %v16402_v38 = vcombine.low %v29630_v48, %v29639_v54  ;;  %23617 = vmatprep.mubr.msk.f32.mxu1 %vm7786_vm0, %v16369_v24  ;;  %v16404_v9 = vcombine.low %v29642_v46, %v29645_v18 }
 0x38a   :  { %v16435_v30 = vcombine.low %v16419_v3, %v16433_v42  ;;  %v15402_v32 = vrot.slane %v15394_v62, %v25109_v12  ;;  %v16469_v57 = vcombine.high %v29661_v4, %v29670_v35  ;;  %v16578_v60 = vrot.slane %v16568_v56, %v25109_v12  ;;  %17572 = vmatmul.mubr.f32.gmra.mxu1 %v16368_v45  ;;  %v14803_v20 = vpop.trf.xlu0 }
 0x38b   :  { %v16412_v52 = vrot.slane %v16402_v38, %v25109_v12  ;;  %v16471_v6 = vcombine.high %v29673_v61, %v29676_v25  ;;  %v16468_v48 = vcombine.low %v29661_v4, %v29670_v35  ;;  %v16585_v54 = vrot.slane %v23598_v36, %v25109_v12 }
 0x38c   :  { %23618 = vmatprep.mubr.msk.f32.mxu1 %vm7786_vm0, %v16435_v30  ;;  %v15410_v15 = vcombine.high %v15402_v32, %v15402_v32  ;;  %v16426_v46 = vrot.slane %v16404_v9, %v25109_v12  ;;  %v16485_v18 = vrot.slane %v16469_v57, %v25109_v12  ;;  %v16592_v0 = vrot.slane %v16570_v33, %v25109_v12 }
 0x38d   :  { %v16499_v51 = vrot.slane %v16471_v6, %v25109_v12  ;;  %v16470_v31 = vcombine.low %v29673_v61, %v29676_v25  ;;  %v16478_v16 = vrot.slane %v16468_v48, %v25109_v12  ;;  %v16599_v4 = vrot.slane %v23599_v47, %v25109_v12 }
 0x38e   :  { %v16434_v27 = vcombine.low %v16412_v52, %v16426_v46  ;;  %v16535_v59 = vcombine.high %v16512_v1, %v16519_v23  ;;  %v16537_v11 = vcombine.high %v16526_v7, %v16533_v29  ;;  %v16534_v14 = vcombine.low %v16512_v1, %v16519_v23  ;;  %v14804_v30 = vpop.trf.xlu0 }
 0x38f   :  { %v16501_v22 = vcombine.low %v16485_v18, %v16499_v51  ;;  %v16492_v35 = vrot.slane %v16470_v31, %v25109_v12  ;;  %v16536_v58 = vcombine.low %v16526_v7, %v16533_v29  ;;  %v15417_v63 = vrot.slane %v15402_v32, %v25109_v12 }
 0x390   :  { %v15431_v49 = vrot.slane %v15410_v15, %v25109_v12  ;;  %17577 = vmatmul.mubr.f32.gmra.mxu1 %v16434_v27  ;;  %v16551_v19 = vrot.slane %v16535_v59, %v25109_v12  ;;  %v16565_v61 = vrot.slane %v16537_v11, %v25109_v12  ;;  %v16544_v2 = vrot.slane %v16534_v14, %v25109_v12 }
 0x391   :  { %23619 = vmatprep.mubr.msk.f32.mxu1 %vm7786_vm0, %v16501_v22  ;;  %v16500_v25 = vcombine.low %v16478_v16, %v16492_v35  ;;  %v16558_v17 = vrot.slane %v16536_v58, %v25109_v12  ;;  %v16601_v34 = vcombine.high %v16578_v60, %v16585_v54  ;;  %v16603_v26 = vcombine.high %v16592_v0, %v16599_v4 }
 0x392   :  { %v16567_v10 = vcombine.low %v16551_v19, %v16565_v61  ;;  %v16600_v55 = vcombine.low %v16578_v60, %v16585_v54  ;;  %v16602_v28 = vcombine.low %v16592_v0, %v16599_v4  ;;  %v16634_v41 = vcombine.low %v15417_v63, %v15431_v49 }
 0x393   :  { %v16617_v13 = vrot.slane %v16601_v34, %v25109_v12  ;;  %v23600_v21 = vcombine.high %v15417_v63, %v15431_v49  ;;  %v16566_v39 = vcombine.low %v16544_v2, %v16558_v17  ;;  %v16631_v1 = vrot.slane %v16603_v26, %v25109_v12  ;;  %v14805_v49 = vpop.trf.xlu0 }
 0x394   :  { %17582 = vmatmul.mubr.f32.gmra.mxu1 %v16500_v25  ;;  %v16610_v8 = vrot.slane %v16600_v55, %v25109_v12  ;;  %v16624_v40 = vrot.slane %v16602_v28, %v25109_v12  ;;  %v15395_v44 = vcombine.high %v29697_v5, %v29699_v50  ;;  %v16644_v53 = vrot.slane %v16634_v41, %v25109_v12 }
 0x395   :  { %23620 = vmatprep.mubr.msk.f32.mxu1 %vm7786_vm0, %v16567_v10  ;;  %v16633_v37 = vcombine.low %v16617_v13, %v16631_v1  ;;  %v16651_v3 = vrot.slane %v23600_v21, %v25109_v12  ;;  %vm20260_vm2 = vcmask 343040   ;;  %vm20258_vm3 = vcmask 695296  }
 0x396   :  { %v16632_v7 = vcombine.low %v16610_v8, %v16624_v40  ;;  %v15409_v24 = vrot.slane %v15395_v44, %v25109_v12  ;;  %vm20265_vm4 = vcmask 334848   ;;  %vm20267_vm5 = vcmask 1031168  }
 0x397   :  { %v16667_v50 = vcombine.high %v16644_v53, %v16651_v3  ;;  %v16666_v62 = vcombine.low %v16644_v53, %v16651_v3  ;;  %vm20275_vm6 = vcmask 670720   ;;  %vm20281_vm7 = vcmask 662528  }
 0x398   :  { %17587 = vmatmul.mubr.f32.gmra.mxu1 %v16566_v39  ;;  %v15424_v32 = vrot.slane %v15409_v24, %v25109_v12  ;;  %vm20283_vm8 = vcmask 310272   ;;  %vm20287_vm9 = vcmask 654336   ;;  %vm20285_vm10 = vcmask 1006592  }
 0x399   :  { %v14834_v23 = vpop.trf.xlu1  ;;  %23621 = vmatprep.mubr.msk.f32.mxu1 %vm7786_vm0, %v16633_v37  ;;  %v29765_v18 = vrot.slane %v16667_v50, %v25109_v12  ;;  %v29768_v0 = vrot.slane %v16666_v62, %v25109_v12  ;;  %vm20289_vm11 = vcmask 302080   ;;  %vm20263_vm12 = vcmask 687104  }
 0x39a   :  { %v15434_v56 = vcombine.low %v14802_v43, %v14834_v23  ;;  %v15435_v36 = vcombine.high %v14802_v43, %v14834_v23  ;;  %vm20291_vm13 = vcmask 998400   ;;  %vm20271_vm14 = vcmask 326656  }
 0x39b   :  { %vm20273_vm15 = vcmask 1022976   ;;  %vm20299_vm1 = vcmask 637952  }
 0x39c   :  { %v15442_v45 = vrot.slane %v15434_v56, %v25109_v12  ;;  %v15449_v42 = vrot.slane %v15435_v36, %v25109_v12  ;;  %17592 = vmatmul.mubr.f32.gmra.mxu1 %v16632_v7  ;;  %v14806_v56 = vpop.trf.xlu0 }
 0x39d   :  { %v14835_v5 = vpop.trf.xlu1 }
 0x39e   :  { %v15450_v29 = vcombine.high %v15442_v45, %v15442_v45  ;;  %v15451_v33 = vcombine.high %v15449_v42, %v15449_v42  ;;  %v15458_v47 = vrot.slane %v15442_v45, %v25109_v12  ;;  %v15465_v38 = vrot.slane %v15449_v42, %v25109_v12 }
 0x39f   :  { %v15484_v9 = vcombine.low %v14803_v20, %v14835_v5  ;;  %v15485_v57 = vcombine.high %v14803_v20, %v14835_v5 }
 0x3a0   :  { %v15472_v60 = vrot.slane %v15450_v29, %v25109_v12  ;;  %v15479_v52 = vrot.slane %v15451_v33, %v25109_v12  ;;  %v15480_v6 = vcombine.high %v15458_v47, %v15458_v47  ;;  %v15481_v48 = vcombine.high %v15465_v38, %v15465_v38 }
 0x3a1   :  { %v15492_v54 = vrot.slane %v15484_v9, %v25109_v12  ;;  %v15499_v15 = vrot.slane %v15485_v57, %v25109_v12  ;;  %v14836_v46 = vpop.trf.xlu1  ;;  %v16636_v31 = vcombine.low %v15424_v32, %v15458_v47 }
 0x3a2   :  { %v15482_v51 = vcombine.high %v15472_v60, %v15472_v60  ;;  %v29770_v16 = vcombine.low %v15472_v60, %v15480_v6  ;;  %v15483_v4 = vcombine.high %v15479_v52, %v15479_v52  ;;  %v29772_v27 = vcombine.low %v15479_v52, %v15481_v48 }
 0x3a3   :  { %v15500_v59 = vcombine.high %v15492_v54, %v15492_v54  ;;  %v15501_v11 = vcombine.high %v15499_v15, %v15499_v15  ;;  %v15508_v22 = vrot.slane %v15492_v54, %v25109_v12  ;;  %v15515_v14 = vrot.slane %v15499_v15, %v25109_v12 }
 0x3a4   :  { %v16700_v35 = vcombine.low %v15482_v51, %v15465_v38  ;;  %v15534_v58 = vcombine.low %v14804_v30, %v14836_v46  ;;  %v15535_v63 = vcombine.high %v14804_v30, %v14836_v46  ;;  %v29779_v17 = vrot.slane %v16636_v31, %v25109_v12 }
 0x3a5   :  { %v15522_v19 = vrot.slane %v15500_v59, %v25109_v12  ;;  %v15529_v61 = vrot.slane %v15501_v11, %v25109_v12  ;;  %v15530_v25 = vcombine.high %v15508_v22, %v15508_v22  ;;  %v16702_v43 = vcombine.low %v15483_v4, %v15508_v22  ;;  %v14837_v2 = vpop.trf.xlu1  ;;  %v14807_v59 = vpop.trf.xlu0 }
 0x3a6   :  { %v29782_v34 = vrot.slane %v16700_v35, %v25109_v12  ;;  %v15542_v10 = vrot.slane %v15534_v58, %v25109_v12  ;;  %v15549_v26 = vrot.slane %v15535_v63, %v25109_v12  ;;  %v15531_v13 = vcombine.high %v15515_v14, %v15515_v14 }
 0x3a7   :  { %v15532_v55 = vcombine.high %v15522_v19, %v15522_v19  ;;  %v29786_v28 = vcombine.low %v15522_v19, %v15530_v25  ;;  %v15533_v41 = vcombine.high %v15529_v61, %v15529_v61  ;;  %v29789_v21 = vrot.slane %v16702_v43, %v25109_v12 }
 0x3a8   :  { %v15550_v39 = vcombine.high %v15542_v10, %v15542_v10  ;;  %v15551_v1 = vcombine.high %v15549_v26, %v15549_v26  ;;  %v15558_v8 = vrot.slane %v15542_v10, %v25109_v12  ;;  %v15565_v44 = vrot.slane %v15549_v26, %v25109_v12 }
 0x3a9   :  { %v16766_v40 = vcombine.low %v15532_v55, %v15515_v14  ;;  %v15584_v37 = vcombine.low %v14805_v49, %v14837_v2  ;;  %v15585_v20 = vcombine.high %v14805_v49, %v14837_v2  ;;  %v14838_v36 = vpop.trf.xlu1  ;;  %v29795_v24 = vcombine.low %v15529_v61, %v15531_v13 }
 0x3aa   :  { %v15572_v53 = vrot.slane %v15550_v39, %v25109_v12  ;;  %v15579_v3 = vrot.slane %v15551_v1, %v25109_v12  ;;  %v15580_v23 = vcombine.high %v15558_v8, %v15558_v8  ;;  %v16768_v7 = vcombine.low %v15533_v41, %v15558_v8 }
 0x3ab   :  { %v29798_v45 = vrot.slane %v16766_v40, %v25109_v12  ;;  %v15592_v42 = vrot.slane %v15584_v37, %v25109_v12  ;;  %v15599_v5 = vrot.slane %v15585_v20, %v25109_v12  ;;  %v15581_v50 = vcombine.high %v15565_v44, %v15565_v44 }
 0x3ac   :  { %v15582_v62 = vcombine.high %v15572_v53, %v15572_v53  ;;  %v29802_v29 = vcombine.low %v15572_v53, %v15580_v23  ;;  %v15583_v33 = vcombine.high %v15579_v3, %v15579_v3  ;;  %v29805_v47 = vrot.slane %v16768_v7, %v25109_v12 }
 0x3ad   :  { %v15600_v38 = vcombine.high %v15592_v42, %v15592_v42  ;;  %v15601_v30 = vcombine.high %v15599_v5, %v15599_v5  ;;  %v15608_v32 = vrot.slane %v15592_v42, %v25109_v12  ;;  %v15615_v57 = vrot.slane %v15599_v5, %v25109_v12  ;;  %v14839_v11 = vpop.trf.xlu1 }
 0x3ae   :  { %v16832_v9 = vcombine.low %v15582_v62, %v15565_v44  ;;  %v15634_v60 = vcombine.low %v14806_v56, %v14838_v36  ;;  %v15635_v52 = vcombine.high %v14806_v56, %v14838_v36  ;;  %v29811_v46 = vcombine.low %v15579_v3, %v15581_v50  ;;  %v14808_v56 = vpop.trf.xlu0 }
 0x3af   :  { %v15622_v6 = vrot.slane %v15600_v38, %v25109_v12  ;;  %v15629_v48 = vrot.slane %v15601_v30, %v25109_v12  ;;  %v15630_v54 = vcombine.high %v15608_v32, %v15608_v32  ;;  %v16834_v15 = vcombine.low %v15583_v33, %v15608_v32 }
 0x3b0   :  { %v29814_v51 = vrot.slane %v16832_v9, %v25109_v12  ;;  %v15642_v31 = vrot.slane %v15634_v60, %v25109_v12  ;;  %v15649_v4 = vrot.slane %v15635_v52, %v25109_v12  ;;  %v15631_v22 = vcombine.high %v15615_v57, %v15615_v57 }
 0x3b1   :  { %v15632_v35 = vcombine.high %v15622_v6, %v15622_v6  ;;  %v29818_v14 = vcombine.low %v15622_v6, %v15630_v54  ;;  %v15633_v58 = vcombine.high %v15629_v48, %v15629_v48  ;;  %v29821_v63 = vrot.slane %v16834_v15, %v25109_v12  ;;  %v14840_v36 = vpop.trf.xlu1 }
 0x3b2   :  { %v15650_v49 = vcombine.high %v15642_v31, %v15642_v31  ;;  %v15651_v19 = vcombine.high %v15649_v4, %v15649_v4  ;;  %v15658_v61 = vrot.slane %v15642_v31, %v25109_v12  ;;  %v15665_v43 = vrot.slane %v15649_v4, %v25109_v12 }
 0x3b3   :  { %v16898_v25 = vcombine.low %v15632_v35, %v15615_v57  ;;  %v16665_v2 = vrot.slane %v29770_v16, %v25109_v12  ;;  %v15684_v10 = vcombine.low %v14807_v59, %v14839_v11  ;;  %v29829_v39 = vcombine.low %v15629_v48, %v15631_v22 }
 0x3b4   :  { %v15672_v26 = vrot.slane %v15650_v49, %v25109_v12  ;;  %v15679_v13 = vrot.slane %v15651_v19, %v25109_v12  ;;  %v15680_v55 = vcombine.high %v15658_v61, %v15658_v61  ;;  %v16900_v41 = vcombine.low %v15633_v58, %v15658_v61 }
 0x3b5   :  { %v15681_v1 = vcombine.high %v15665_v43, %v15665_v43  ;;  %v16669_v8 = vcombine.high %v29779_v17, %v16665_v2  ;;  %v16668_v40 = vcombine.low %v29779_v17, %v16665_v2  ;;  %v29834_v44 = vrot.slane %v16898_v25, %v25109_v12 }
 0x3b6   :  { %v15682_v37 = vcombine.high %v15672_v26, %v15672_v26  ;;  %v29836_v20 = vcombine.low %v15672_v26, %v15680_v55  ;;  %v29839_v16 = vrot.slane %v16900_v41, %v25109_v12  ;;  %v15683_v23 = vcombine.high %v15679_v13, %v15679_v13  ;;  %v14809_v41 = vpop.trf.xlu0 }
 0x3b7   :  { %v16697_v53 = vrot.slane %v16669_v8, %v25109_v12  ;;  %v16690_v3 = vrot.slane %v16668_v40, %v25109_v12  ;;  %v15685_v7 = vcombine.high %v14807_v59, %v14839_v11  ;;  %v29843_v42 = vcombine.low %v15679_v13, %v15681_v1  ;;  %v14841_v1 = vpop.trf.xlu1 }
 0x3b8   :  { %v15692_v17 = vrot.slane %v15684_v10, %v25109_v12  ;;  %v16717_v5 = vrot.slane %v29772_v27, %v25109_v12  ;;  %v16731_v50 = vrot.slane %v29786_v28, %v25109_v12  ;;  %v16964_v62 = vcombine.low %v15682_v37, %v15665_v43 }
 0x3b9   :  { %v16699_v33 = vcombine.low %v29765_v18, %v16697_v53  ;;  %v16698_v38 = vcombine.low %v29768_v0, %v16690_v3  ;;  %v15699_v30 = vrot.slane %v15685_v7, %v25109_v12  ;;  %v15734_v60 = vcombine.low %v14808_v56, %v14840_v36 }
 0x3ba   :  { %v15700_v32 = vcombine.high %v15692_v17, %v15692_v17  ;;  %v15708_v9 = vrot.slane %v15692_v17, %v25109_v12  ;;  %v16733_v57 = vcombine.high %v29782_v34, %v16717_v5  ;;  %v16735_v28 = vcombine.high %v29789_v21, %v16731_v50 }
 0x3bb   :  { %23622 = vmatprep.mubr.msk.f32.mxu1 %vm7786_vm0, %v16699_v33  ;;  %v15701_v52 = vcombine.high %v15699_v30, %v15699_v30  ;;  %v15715_v27 = vrot.slane %v15699_v30, %v25109_v12  ;;  %v16732_v6 = vcombine.low %v29782_v34, %v16717_v5  ;;  %v16734_v59 = vcombine.low %v29789_v21, %v16731_v50 }
 0x3bc   :  { %17597 = vmatmul.mubr.f32.gmra.mxu1 %v16698_v38  ;;  %v15722_v18 = vrot.slane %v15700_v32, %v25109_v12  ;;  %v15730_v0 = vcombine.high %v15708_v9, %v15708_v9  ;;  %v16966_v48 = vcombine.low %v15683_v23, %v15708_v9  ;;  %v16749_v54 = vrot.slane %v16733_v57, %v25109_v12 }
 0x3bd   :  { %v15729_v15 = vrot.slane %v15701_v52, %v25109_v12  ;;  %v15731_v31 = vcombine.high %v15715_v27, %v15715_v27  ;;  %v16763_v4 = vrot.slane %v16735_v28, %v25109_v12  ;;  %v29865_v11 = vrot.slane %v16964_v62, %v25109_v12  ;;  %v14810_v52 = vpop.trf.xlu0 }
 0x3be   :  { %v15732_v22 = vcombine.high %v15722_v18, %v15722_v18  ;;  %v16967_v35 = vcombine.low %v15722_v18, %v15730_v0  ;;  %v29868_v34 = vrot.slane %v16966_v48, %v25109_v12  ;;  %v16742_v19 = vrot.slane %v16732_v6, %v25109_v12 }
 0x3bf   :  { %v17031_v58 = vcombine.low %v15729_v15, %v15731_v31  ;;  %v16765_v49 = vcombine.low %v16749_v54, %v16763_v4  ;;  %v16756_v61 = vrot.slane %v16734_v59, %v25109_v12  ;;  %v15733_v43 = vcombine.high %v15729_v15, %v15729_v15 }
 0x3c0   :  { %v29873_v25 = vrot.slane %v16967_v35, %v25109_v12  ;;  %v15735_v2 = vcombine.high %v14808_v56, %v14840_v36  ;;  %v15742_v21 = vrot.slane %v15734_v60, %v25109_v12  ;;  %v17030_v10 = vcombine.low %v15732_v22, %v15715_v27  ;;  %v14842_v27 = vpop.trf.xlu1 }
 0x3c1   :  { %23623 = vmatprep.mubr.msk.f32.mxu1 %vm7786_vm0, %v16765_v49  ;;  %v16764_v26 = vcombine.low %v16742_v19, %v16756_v61  ;;  %v16783_v13 = vrot.slane %v29795_v24, %v25109_v12  ;;  %v16797_v55 = vrot.slane %v29802_v29, %v25109_v12  ;;  %v29882_v8 = vrot.slane %v17031_v58, %v25109_v12 }
 0x3c2   :  { %v15749_v40 = vrot.slane %v15735_v2, %v25109_v12  ;;  %v15750_v37 = vcombine.high %v15742_v21, %v15742_v21  ;;  %v15758_v53 = vrot.slane %v15742_v21, %v25109_v12  ;;  %v29893_v5 = vrot.slane %v17030_v10, %v25109_v12 }
 0x3c3   :  { %17602 = vmatmul.mubr.f32.gmra.mxu1 %v16764_v26  ;;  %v16799_v3 = vcombine.high %v29798_v45, %v16783_v13  ;;  %v16801_v23 = vcombine.high %v29805_v47, %v16797_v55  ;;  %v16798_v24 = vcombine.low %v29798_v45, %v16783_v13  ;;  %v16800_v7 = vcombine.low %v29805_v47, %v16797_v55 }
 0x3c4   :  { %v15751_v29 = vcombine.high %v15749_v40, %v15749_v40  ;;  %v15765_v56 = vrot.slane %v15749_v40, %v25109_v12  ;;  %v15772_v36 = vrot.slane %v15750_v37, %v25109_v12  ;;  %v15780_v17 = vcombine.high %v15758_v53, %v15758_v53 }
 0x3c5   :  { %v17032_v50 = vcombine.low %v15733_v43, %v15758_v53  ;;  %v16815_v62 = vrot.slane %v16799_v3, %v25109_v12  ;;  %v16829_v33 = vrot.slane %v16801_v23, %v25109_v12  ;;  %v16808_v9 = vrot.slane %v16798_v24, %v25109_v12 }
 0x3c6   :  { %v15779_v38 = vrot.slane %v15751_v29, %v25109_v12  ;;  %v15781_v30 = vcombine.high %v15765_v56, %v15765_v56  ;;  %v15782_v45 = vcombine.high %v15772_v36, %v15772_v36  ;;  %v17033_v32 = vcombine.low %v15772_v36, %v15780_v17 }
 0x3c7   :  { %v16831_v47 = vcombine.low %v16815_v62, %v16829_v33  ;;  %v16822_v57 = vrot.slane %v16800_v7, %v25109_v12  ;;  %v15784_v60 = vcombine.low %v14809_v41, %v14841_v1  ;;  %v29901_v28 = vrot.slane %v17032_v50, %v25109_v12 }
 0x3c8   :  { %v29904_v6 = vrot.slane %v17033_v32, %v25109_v12  ;;  %v17096_v18 = vcombine.low %v15782_v45, %v15765_v56  ;;  %v17097_v0 = vcombine.low %v15779_v38, %v15781_v30  ;;  %v15785_v54 = vcombine.high %v14809_v41, %v14841_v1 }
 0x3c9   :  { %23624 = vmatprep.mubr.msk.f32.mxu1 %vm7786_vm0, %v16831_v47  ;;  %v16830_v48 = vcombine.low %v16808_v9, %v16822_v57  ;;  %v15792_v15 = vrot.slane %v15784_v60, %v25109_v12  ;;  %v16849_v31 = vrot.slane %v29811_v46, %v25109_v12  ;;  %v15783_v59 = vcombine.high %v15779_v38, %v15779_v38  ;;  %v14811_v9 = vpop.trf.xlu0  ;;  %v14843_v57 = vpop.trf.xlu1 }
 0x3ca   :  { %v29911_v4 = vrot.slane %v17096_v18, %v25109_v12  ;;  %v16863_v22 = vrot.slane %v29818_v14, %v25109_v12  ;;  %v15834_v35 = vcombine.low %v14810_v52, %v14842_v27  ;;  %v15799_v58 = vrot.slane %v15785_v54, %v25109_v12 }
 0x3cb   :  { %17607 = vmatmul.mubr.f32.gmra.mxu1 %v16830_v48  ;;  %v15800_v49 = vcombine.high %v15792_v15, %v15792_v15  ;;  %v15808_v19 = vrot.slane %v15792_v15, %v25109_v12  ;;  %v16865_v61 = vcombine.high %v29814_v51, %v16849_v31  ;;  %v16864_v46 = vcombine.low %v29814_v51, %v16849_v31 }
 0x3cc   :  { %v16867_v43 = vcombine.high %v29821_v63, %v16863_v22  ;;  %v16866_v2 = vcombine.low %v29821_v63, %v16863_v22  ;;  %v15835_v21 = vcombine.high %v14810_v52, %v14842_v27  ;;  %v15801_v10 = vcombine.high %v15799_v58, %v15799_v58 }
 0x3cd   :  { %v15815_v26 = vrot.slane %v15799_v58, %v25109_v12  ;;  %v15822_v14 = vrot.slane %v15800_v49, %v25109_v12  ;;  %v15830_v13 = vcombine.high %v15808_v19, %v15808_v19  ;;  %v17098_v55 = vcombine.low %v15783_v59, %v15808_v19 }
 0x3ce   :  { %v16881_v41 = vrot.slane %v16865_v61, %v25109_v12  ;;  %v16895_v1 = vrot.slane %v16867_v43, %v25109_v12  ;;  %v16874_v40 = vrot.slane %v16864_v46, %v25109_v12  ;;  %v15829_v37 = vrot.slane %v15801_v10, %v25109_v12 }
 0x3cf   :  { %v15831_v53 = vcombine.high %v15815_v26, %v15815_v26  ;;  %v15832_v51 = vcombine.high %v15822_v14, %v15822_v14  ;;  %v17099_v3 = vcombine.low %v15822_v14, %v15830_v13  ;;  %v29928_v63 = vrot.slane %v17097_v0, %v25109_v12  ;;  %v14844_v14 = vpop.trf.xlu1 }
 0x3d0   :  { %v16897_v23 = vcombine.low %v16881_v41, %v16895_v1  ;;  %v16888_v24 = vrot.slane %v16866_v2, %v25109_v12  ;;  %v15842_v7 = vrot.slane %v15834_v35, %v25109_v12  ;;  %v29933_v29 = vrot.slane %v17098_v55, %v25109_v12 }
 0x3d1   :  { %v29936_v56 = vrot.slane %v17099_v3, %v25109_v12  ;;  %v17162_v36 = vcombine.low %v15832_v51, %v15815_v26  ;;  %v15833_v17 = vcombine.high %v15829_v37, %v15829_v37  ;;  %v15849_v62 = vrot.slane %v15835_v21, %v25109_v12  ;;  %v14812_v26 = vpop.trf.xlu0 }
 0x3d2   :  { %23625 = vmatprep.mubr.msk.f32.mxu1 %vm7786_vm0, %v16897_v23  ;;  %v16896_v50 = vcombine.low %v16874_v40, %v16888_v24  ;;  %v15850_v33 = vcombine.high %v15842_v7, %v15842_v7  ;;  %v15858_v38 = vrot.slane %v15842_v7, %v25109_v12  ;;  %v17163_v30 = vcombine.low %v15829_v37, %v15831_v53 }
 0x3d3   :  { %v29942_v45 = vrot.slane %v17162_v36, %v25109_v12  ;;  %v16915_v32 = vrot.slane %v29829_v39, %v25109_v12  ;;  %v16929_v47 = vrot.slane %v29836_v20, %v25109_v12  ;;  %v15851_v60 = vcombine.high %v15849_v62, %v15849_v62 }
 0x3d4   :  { %17612 = vmatmul.mubr.f32.gmra.mxu1 %v16896_v50  ;;  %v15865_v52 = vrot.slane %v15849_v62, %v25109_v12  ;;  %v15872_v27 = vrot.slane %v15850_v33, %v25109_v12  ;;  %v15880_v18 = vcombine.high %v15858_v38, %v15858_v38  ;;  %v17164_v0 = vcombine.low %v15833_v17, %v15858_v38 }
 0x3d5   :  { %v16931_v48 = vcombine.high %v29834_v44, %v16915_v32  ;;  %v16933_v54 = vcombine.high %v29839_v16, %v16929_v47  ;;  %v16930_v15 = vcombine.low %v29834_v44, %v16915_v32  ;;  %v15879_v39 = vrot.slane %v15851_v60, %v25109_v12 }
 0x3d6   :  { %v15881_v31 = vcombine.high %v15865_v52, %v15865_v52  ;;  %v15882_v20 = vcombine.high %v15872_v27, %v15872_v27  ;;  %v17165_v59 = vcombine.low %v15872_v27, %v15880_v18  ;;  %v29955_v22 = vrot.slane %v17163_v30, %v25109_v12 }
 0x3d7   :  { %v16947_v35 = vrot.slane %v16931_v48, %v25109_v12  ;;  %v16961_v58 = vrot.slane %v16933_v54, %v25109_v12  ;;  %v16932_v49 = vcombine.low %v29839_v16, %v16929_v47  ;;  %v29961_v19 = vrot.slane %v17164_v0, %v25109_v12 }
 0x3d8   :  { %v29964_v61 = vrot.slane %v17165_v59, %v25109_v12  ;;  %v17228_v44 = vcombine.low %v15882_v20, %v15865_v52  ;;  %v16940_v43 = vrot.slane %v16930_v15, %v25109_v12  ;;  %v17229_v46 = vcombine.low %v15879_v39, %v15881_v31 }
 0x3d9   :  { %v16963_v2 = vcombine.low %v16947_v35, %v16961_v58  ;;  %v16954_v21 = vrot.slane %v16932_v49, %v25109_v12  ;;  %v15884_v10 = vcombine.low %v14811_v9, %v14843_v57  ;;  %v15883_v16 = vcombine.high %v15879_v39, %v15879_v39 }
 0x3da   :  { %v29969_v13 = vrot.slane %v17228_v44, %v25109_v12  ;;  %v15885_v55 = vcombine.high %v14811_v9, %v14843_v57  ;;  %v16981_v41 = vrot.slane %v29843_v42, %v25109_v12  ;;  %v16999_v37 = vcombine.high %v29868_v34, %v29873_v25 }
 0x3db   :  { %23626 = vmatprep.mubr.msk.f32.mxu1 %vm7786_vm0, %v16963_v2  ;;  %v16962_v1 = vcombine.low %v16940_v43, %v16954_v21  ;;  %v15892_v40 = vrot.slane %v15884_v10, %v25109_v12  ;;  %v16998_v53 = vcombine.low %v29868_v34, %v29873_v25  ;;  %v15934_v24 = vcombine.low %v14812_v26, %v14844_v14 }
 0x3dc   :  { %v15899_v51 = vrot.slane %v15885_v55, %v25109_v12  ;;  %v16997_v3 = vcombine.high %v29865_v11, %v16981_v41  ;;  %v16996_v23 = vcombine.low %v29865_v11, %v16981_v41  ;;  %v17027_v36 = vrot.slane %v16999_v37, %v25109_v12 }
 0x3dd   :  { %17617 = vmatmul.mubr.f32.gmra.mxu1 %v16962_v1  ;;  %v15900_v42 = vcombine.high %v15892_v40, %v15892_v40  ;;  %v15908_v7 = vrot.slane %v15892_v40, %v25109_v12  ;;  %v17020_v17 = vrot.slane %v16998_v53, %v25109_v12  ;;  %v15935_v30 = vcombine.high %v14812_v26, %v14844_v14 }
 0x3de   :  { %v15901_v50 = vcombine.high %v15899_v51, %v15899_v51  ;;  %v15915_v62 = vrot.slane %v15899_v51, %v25109_v12  ;;  %v17013_v34 = vrot.slane %v16997_v3, %v25109_v12  ;;  %v17006_v25 = vrot.slane %v16996_v23, %v25109_v12 }
 0x3df   :  { %v15922_v33 = vrot.slane %v15900_v42, %v25109_v12  ;;  %v15930_v38 = vcombine.high %v15908_v7, %v15908_v7  ;;  %v17230_v11 = vcombine.low %v15883_v16, %v15908_v7  ;;  %v29991_v60 = vrot.slane %v17229_v46, %v25109_v12 }
 0x3e0   :  { %v15929_v32 = vrot.slane %v15901_v50, %v25109_v12  ;;  %v15931_v47 = vcombine.high %v15915_v62, %v15915_v62  ;;  %v17029_v9 = vcombine.low %v17013_v34, %v17027_v36  ;;  %v17028_v57 = vcombine.low %v17006_v25, %v17020_v17 }
 0x3e1   :  { %v15932_v52 = vcombine.high %v15922_v33, %v15922_v33  ;;  %v17231_v27 = vcombine.low %v15922_v33, %v15930_v38  ;;  %v15942_v18 = vrot.slane %v15934_v24, %v25109_v12  ;;  %v15949_v54 = vrot.slane %v15935_v30, %v25109_v12 }
 0x3e2   :  { %v17295_v0 = vcombine.low %v15929_v32, %v15931_v47  ;;  %23627 = vmatprep.mubr.msk.f32.mxu1 %vm7786_vm0, %v17029_v9  ;;  %v15933_v48 = vcombine.high %v15929_v32, %v15929_v32  ;;  %v17063_v15 = vcombine.high %v29893_v5, %v29882_v8  ;;  %v17252_v39 = vrot.slane %v17230_v11, %v25109_v12 }
 0x3e3   :  { %v17294_v31 = vcombine.low %v15932_v52, %v15915_v62  ;;  %17622 = vmatmul.mubr.f32.gmra.mxu1 %v17028_v57  ;;  %v15950_v20 = vcombine.high %v15942_v18, %v15942_v18  ;;  %v15957_v59 = vrot.slane %v15942_v18, %v25109_v12  ;;  %v17259_v35 = vrot.slane %v17231_v27, %v25109_v12 }
 0x3e4   :  { %v30002_v58 = vrot.slane %v17295_v0, %v25109_v12  ;;  %v17065_v49 = vcombine.high %v29901_v28, %v29904_v6  ;;  %v17079_v44 = vrot.slane %v17063_v15, %v25109_v12  ;;  %v15964_v43 = vrot.slane %v15949_v54, %v25109_v12 }
 0x3e5   :  { %v15971_v46 = vrot.slane %v15950_v20, %v25109_v12  ;;  %v15972_v2 = vcombine.high %v15957_v59, %v15957_v59  ;;  %v17296_v21 = vcombine.low %v15933_v48, %v15957_v59  ;;  %v17062_v26 = vcombine.low %v29893_v5, %v29882_v8 }
 0x3e6   :  { %v17093_v10 = vrot.slane %v17065_v49, %v25109_v12  ;;  %v17064_v14 = vcombine.low %v29901_v28, %v29904_v6  ;;  %v17129_v16 = vcombine.high %v29911_v4, %v29928_v63  ;;  %v17304_v55 = vrot.slane %v17294_v31, %v25109_v12 }
 0x3e7   :  { %v15973_v41 = vcombine.high %v15971_v46, %v15971_v46  ;;  %v17297_v1 = vcombine.low %v15971_v46, %v15972_v2  ;;  %v17131_v40 = vcombine.high %v29933_v29, %v29936_v56  ;;  %v17072_v53 = vrot.slane %v17062_v26, %v25109_v12 }
 0x3e8   :  { %v17095_v37 = vcombine.low %v17079_v44, %v17093_v10  ;;  %v17086_v51 = vrot.slane %v17064_v14, %v25109_v12  ;;  %v17145_v8 = vrot.slane %v17129_v16, %v25109_v12  ;;  %v17318_v5 = vrot.slane %v17296_v21, %v25109_v12 }
 0x3e9   :  { %v17325_v28 = vrot.slane %v17297_v1, %v25109_v12  ;;  %v17159_v6 = vrot.slane %v17131_v40, %v25109_v12  ;;  %v17128_v3 = vcombine.low %v29911_v4, %v29928_v63  ;;  %v17130_v24 = vcombine.low %v29933_v29, %v29936_v56  ;;  %v20440_v1 = vld [vmem:[%s33928_s3 + $0x78] sm:$0xff]  ;;  %v20455_v40 = vld [vmem:[%s33928_s3 + $0xf0] sm:$0xff] }
 0x3ea   :  { %23628 = vmatprep.mubr.msk.f32.mxu1 %vm7786_vm0, %v17095_v37  ;;  %v17094_v23 = vcombine.low %v17072_v53, %v17086_v51  ;;  %v17195_v42 = vcombine.high %v29942_v45, %v29955_v22  ;;  %v17197_v7 = vcombine.high %v29961_v19, %v29964_v61  ;;  %v17360_v36 = vcombine.low %v15973_v41, %v15964_v43  ;;  %v20456_v41 = vld [vmem:[%s33928_s3 + $0xf8] sm:$0xff]  ;;  %v20439_v53 = vld [vmem:[%s33928_s3 + $0x70] sm:$0xff]  ;;  %v20454_v51 = vld [vmem:[%s33928_s3 + $0xe8] sm:$0xff] }
 0x3eb   :  { %v17161_v17 = vcombine.low %v17145_v8, %v17159_v6  ;;  %v17138_v50 = vrot.slane %v17128_v3, %v25109_v12  ;;  %v17194_v62 = vcombine.low %v29942_v45, %v29955_v22  ;;  %v17152_v4 = vrot.slane %v17130_v24, %v25109_v12  ;;  %23658 = vmatprep.subr.mxu1 %v20456_v41  ;;  %v20648_v8 = vld [vmem:[%s33928_s3 + $0x6f8] sm:$0xff]  ;;  %v20453_v3 = vld [vmem:[%s33928_s3 + $0xe0] sm:$0xff] }
 0x3ec   :  { %17627 = vmatmul.mubr.f32.gmra.mxu1 %v17094_v23  ;;  %v17211_v63 = vrot.slane %v17195_v42, %v25109_v12  ;;  %v17225_v29 = vrot.slane %v17197_v7, %v25109_v12  ;;  %v17196_v56 = vcombine.low %v29961_v19, %v29964_v61  ;;  %v17261_v25 = vcombine.high %v29969_v13, %v29991_v60  ;;  %v20647_v23 = vld [vmem:[%s33928_s3 + $0x6f0] sm:$0xff]  ;;  %v20437_v24 = vld [vmem:[%s33928_s3 + $0x60] sm:$0xff] }
 0x3ed   :  { %23629 = vmatprep.mubr.msk.f32.mxu1 %vm7786_vm0, %v17161_v17  ;;  %v17204_v34 = vrot.slane %v17194_v62, %v25109_v12  ;;  %v17263_v33 = vcombine.high %v17252_v39, %v17259_v35  ;;  %v17260_v45 = vcombine.low %v29969_v13, %v29991_v60  ;;  %v17160_v22 = vcombine.low %v17138_v50, %v17152_v4  ;;  %v20631_v42 = vld [vmem:[%s33928_s3 + $0x670] sm:$0xff]  ;;  %v20436_v17 = vld [vmem:[%s33928_s3 + $0x58] sm:$0xff] }
 0x3ee   :  { %v17227_v38 = vcombine.low %v17211_v63, %v17225_v29  ;;  %v17218_v11 = vrot.slane %v17196_v56, %v25109_v12  ;;  %v17262_v30 = vcombine.low %v17252_v39, %v17259_v35  ;;  %v17277_v32 = vrot.slane %v17261_v25, %v25109_v12  ;;  %23659 = vmatpush3.msra.mxu1 %v20440_v1  ;;  %v20451_v62 = vld [vmem:[%s33928_s3 + $0xd0] sm:$0xff]  ;;  %v20450_v29 = vld [vmem:[%s33928_s3 + $0xc8] sm:$0xff]  ;;  %v20449_v25 = vld [vmem:[%s33928_s3 + $0xc0] sm:$0xff] }
 0x3ef   :  { %v17291_v19 = vrot.slane %v17263_v33, %v25109_v12  ;;  %v17270_v61 = vrot.slane %v17260_v45, %v25109_v12  ;;  %v17327_v47 = vcombine.high %v17304_v55, %v30002_v58  ;;  %v17329_v52 = vcombine.high %v17318_v5, %v17325_v28  ;;  %23660 = vmatprep.subr.mxu1 %v20455_v40  ;;  %v20435_v4 = vld [vmem:[%s33928_s3 + $0x50] sm:$0xff]  ;;  %v20434_v56 = vld [vmem:[%s33928_s3 + $0x48] sm:$0xff]  ;;  %v20433_v45 = vld [vmem:[%s33928_s3 + $0x40] sm:$0xff] }
 0x3f0   :  { %17632 = vmatmul.mubr.f32.gmra.mxu1 %v17160_v22  ;;  %v17226_v9 = vcombine.low %v17204_v34, %v17218_v11  ;;  %v17284_v57 = vrot.slane %v17262_v30, %v25109_v12  ;;  %v17326_v13 = vcombine.low %v17304_v55, %v30002_v58  ;;  %v17367_v60 = vrot.slane %v17360_v36, %v25109_v12  ;;  %v20452_v36 = vld [vmem:[%s33928_s3 + $0xd8] sm:$0xff]  ;;  %v20646_v33 = vld [vmem:[%s33928_s3 + $0x6e8] sm:$0xff] }
 0x3f1   :  { %23630 = vmatprep.mubr.msk.f32.mxu1 %vm7786_vm0, %v17227_v38  ;;  %v17293_v27 = vcombine.low %v17277_v32, %v17291_v19  ;;  %v17343_v18 = vrot.slane %v17327_v47, %v25109_v12  ;;  %v17328_v0 = vcombine.low %v17318_v5, %v17325_v28  ;;  %v17357_v48 = vrot.slane %v17329_v52, %v25109_v12  ;;  %v20632_v5 = vld [vmem:[%s33928_s3 + $0x678] sm:$0xff]  ;;  %v20438_v28 = vld [vmem:[%s33928_s3 + $0x68] sm:$0xff]  ;;  %v20447_v19 = vld [vmem:[%s33928_s3 + $0xb0] sm:$0xff] }
 0x3f2   :  { %v17292_v54 = vcombine.low %v17270_v61, %v17284_v57  ;;  %v17336_v15 = vrot.slane %v17326_v13, %v25109_v12  ;;  %v17368_v20 = vcombine.high %v17367_v60, %v17367_v60  ;;  %v17375_v58 = vrot.slane %v17367_v60, %v25109_v12  ;;  %23868 = vmatprep.subr.mxu0 %v20648_v8  ;;  %v20630_v22 = vld [vmem:[%s33928_s3 + $0x668] sm:$0xff]  ;;  %v20448_v11 = vld [vmem:[%s33928_s3 + $0xb8] sm:$0xff]  ;;  %v20431_v61 = vld [vmem:[%s33928_s3 + $0x30] sm:$0xff] }
 0x3f3   :  { %v17350_v39 = vrot.slane %v17328_v0, %v25109_v12  ;;  %v17359_v31 = vcombine.low %v17343_v18, %v17357_v48  ;;  %23661 = vmatpush3.msra.mxu1 %v20439_v53  ;;  %23869 = vmatpush3.msra.mxu0 %v20632_v5  ;;  %v20432_v30 = vld [vmem:[%s33928_s3 + $0x38] sm:$0xff]  ;;  %v20430_v57 = vld [vmem:[%s33928_s3 + $0x28] sm:$0xff]  ;;  %v20445_v52 = vld [vmem:[%s33928_s3 + $0xa0] sm:$0xff] }
 0x3f4   :  { %17637 = vmatmul.mubr.f32.gmra.mxu1 %v17226_v9  ;;  %v17382_v35 = vrot.slane %v17368_v20, %v25109_v12  ;;  %23662 = vmatprep.subr.mxu1 %v20454_v51  ;;  %v20446_v9 = vld [vmem:[%s33928_s3 + $0xa8] sm:$0xff]  ;;  %v20429_v13 = vld [vmem:[%s33928_s3 + $0x20] sm:$0xff]  ;;  %v20444_v18 = vld [vmem:[%s33928_s3 + $0x98] sm:$0xff] }
 0x3f5   :  { %23631 = vmatprep.mubr.msk.f32.mxu1 %vm7786_vm0, %v17293_v27  ;;  %v17358_v59 = vcombine.low %v17336_v15, %v17350_v39  ;;  %23870 = vmatprep.subr.mxu0 %v20647_v23  ;;  %v20645_v60 = vld [vmem:[%s33928_s3 + $0x6e0] sm:$0xff]  ;;  %v20428_v0 = vld [vmem:[%s33928_s3 + $0x18] sm:$0xff]  ;;  %v20443_v48 = vld [vmem:[%s33928_s3 + $0x90] sm:$0xff] }
 0x3f6   :  { %23663 = vmatpush3.msra.mxu1 %v20438_v28  ;;  %23871 = vmatpush3.msra.mxu0 %v20631_v42  ;;  %v20629_v27 = vld [vmem:[%s33928_s3 + $0x660] sm:$0xff]  ;;  %v20427_v15 = vld [vmem:[%s33928_s3 + $0x10] sm:$0xff] }
 0x3f7   :  { %23664 = vmatprep.subr.mxu1 %v20453_v3  ;;  %23872 = vmatprep.subr.mxu0 %v20646_v33 }
 0x3f8   :  { %17642 = vmatmul.mubr.f32.gmra.mxu1 %v17292_v54  ;;  %23873 = vmatpush3.msra.mxu0 %v20630_v22 }
 0x3f9   :  { %23632 = vmatprep.mubr.msk.f32.mxu1 %vm7786_vm0, %v17359_v31  ;;  %23665 = vmatpush3.msra.mxu1 %v20437_v24 }
 0x3fa   :  { %23666 = vmatprep.subr.mxu1 %v20452_v36  ;;  %23874 = vmatprep.subr.mxu0 %v20645_v60 }
 0x3fb   :  { %23667 = vmatpush3.msra.mxu1 %v20436_v17  ;;  %23875 = vmatpush3.msra.mxu0 %v20629_v27 }
 0x3fc   :  { %17647 = vmatmul.mubr.f32.gmra.mxu1 %v17358_v59  ;;  %23668 = vmatprep.subr.mxu1 %v20451_v62  ;;  %v20442_v59 = vld [vmem:[%s33928_s3 + $0x88] sm:$0xff] }
 0x3fd   :  { %23633 = vmatprep.mubr.msk.f32.mxu1 %vm7786_vm0, %v17382_v35  ;;  %23669 = vmatpush3.msra.mxu1 %v20435_v4  ;;  %v20426_v35 = vld [vmem:[%s33928_s3 + $0x8] sm:$0xff] }
 0x3fe   :  { %23670 = vmatprep.subr.mxu1 %v20450_v29 }
 0x3ff   :  { %23671 = vmatpush3.msra.mxu1 %v20434_v56  ;;  %v20488_v56 = vld [vmem:[%s33928_s3 + $0x1f8] sm:$0xff] }
 0x400   :  { %17652 = vmatmul.mubr.f32.gmra.mxu1 %v17375_v58  ;;  %23672 = vmatprep.subr.mxu1 %v20449_v25  ;;  %v20644_v58 = vld [vmem:[%s33928_s3 + $0x6d8] sm:$0xff] }
 0x401   :  { %23673 = vmatpush3.msra.mxu1 %v20433_v45  ;;  %23876 = vmatprep.subr.mxu0 %v20644_v58 }
 0x402   :  { %23674 = vmatprep.subr.mxu1 %v20448_v11 }
 0x403   :  { %23675 = vmatpush3.msra.mxu1 %v20432_v30 }
 0x404   :  { %23676 = vmatprep.subr.mxu1 %v20447_v19 }
 0x405   :  { %23677 = vmatpush3.msra.mxu1 %v20431_v61 }
 0x406   :  { %23678 = vmatprep.subr.mxu1 %v20446_v9 }
 0x407   :  { %23679 = vmatpush3.msra.mxu1 %v20430_v57 }
 0x408   :  { %23680 = vmatprep.subr.mxu1 %v20445_v52 }
 0x409   :  { %23681 = vmatpush3.msra.mxu1 %v20429_v13 }
 0x40a   :  { %23682 = vmatprep.subr.mxu1 %v20444_v18 }
 0x40b   :  { %23683 = vmatpush3.msra.mxu1 %v20428_v0 }
 0x40c   :  { %23684 = vmatprep.subr.mxu1 %v20443_v48 }
 0x40d   :  { %23685 = vmatpush3.msra.mxu1 %v20427_v15 }
 0x40e   :  { %23686 = vmatprep.subr.mxu1 %v20442_v59  ;;  %v20643_v59 = vld [vmem:[%s33928_s3 + $0x6d0] sm:$0xff] }
 0x40f   :  { %23687 = vmatpush3.msra.mxu1 %v20426_v35 }
 0x429   :  { %v30066_v49 = vpop.f32.mrf.mxu1 }
 0x42a   :  { %v17679_v54 = vcombine.high %v30066_v49, %v30066_v49  ;;  %v17686_v39 = vrot.slane %v30066_v49, %v25109_v12  ;;  %v20628_v49 = vld [vmem:[%s33928_s3 + $0x658] sm:$0xff] }
 0x42b   :  { %v17550_v44 = vpop.f32.mrf.mxu1  ;;  %23877 = vmatpush3.msra.mxu0 %v20628_v49 }
 0x42c   :  { %v17693_v20 = vrot.slane %v17679_v54, %v25109_v12  ;;  %v17694_v44 = vcombine.high %v17686_v39, %v17686_v39  ;;  %v30229_v5 = vrot.slane %v17686_v39, %v25109_v12  ;;  %23878 = vmatprep.subr.mxu0 %v20643_v59 }
 0x42e   :  { %v30068_v43 = vpop.f32.mrf.mxu1  ;;  %v17716_v1 = vrot.slane %v17694_v44, %v25109_v12  ;;  %v17709_v24 = vrot.slane %v17693_v20, %v25109_v12 }
 0x42f   :  { %v17728_v31 = vcombine.high %v30068_v43, %v30068_v43 }
 0x430   :  { %v17555_v46 = vpop.f32.mrf.mxu1  ;;  %v17726_v36 = vcombine.high %v17716_v1, %v17716_v1 }
 0x431   :  { %v17735_v46 = vrot.slane %v30068_v43, %v25109_v12  ;;  %v20425_v43 = vld [vmem:[%s33928_s3] sm:$0xff] }
 0x433   :  { %v17743_v53 = vcombine.high %v17735_v46, %v17735_v46  ;;  %v30239_v42 = vrot.slane %v17735_v46, %v25109_v12 }
 0x435   :  { %v30070_v2 = vpop.f32.mrf.mxu1  ;;  %v30247_v62 = vrot.slane %v17743_v53, %v25109_v12 }
 0x436   :  { %v17784_v33 = vrot.slane %v30070_v2, %v25109_v12 }
 0x437   :  { %v17560_v21 = vpop.f32.mrf.mxu1  ;;  %v17775_v13 = vcombine.high %v30247_v62, %v30247_v62 }
 0x438   :  { %v17742_v21 = vrot.slane %v17728_v31, %v25109_v12  ;;  %v17792_v18 = vcombine.high %v17784_v33, %v17784_v33 }
 0x43a   :  { %v17744_v8 = vcombine.high %v17742_v21, %v17742_v21  ;;  %v30244_v17 = vrot.slane %v17742_v21, %v25109_v12 }
 0x43c   :  { %v30072_v10 = vpop.f32.mrf.mxu1  ;;  %v30258_v25 = vrot.slane %v17744_v8, %v25109_v12 }
 0x43d   :  { %v17826_v52 = vcombine.high %v30072_v10, %v30072_v10  ;;  %v17833_v58 = vrot.slane %v30072_v10, %v25109_v12 }
 0x43e   :  { %v17565_v26 = vpop.f32.mrf.mxu1  ;;  %v17776_v54 = vcombine.high %v30258_v25, %v30258_v25 }
 0x43f   :  { %v17840_v46 = vrot.slane %v17826_v52, %v25109_v12 }
 0x443   :  { %v30074_v14 = vpop.f32.mrf.mxu1 }
 0x445   :  { %v17570_v16 = vpop.f32.mrf.mxu1 }
 0x446   :  { %v17695_v16 = vcombine.high %v17693_v20, %v17693_v20 }
 0x448   :  { %v30232_v28 = vrot.slane %v17695_v16, %v25109_v12 }
 0x44a   :  { %v30076_v55 = vpop.f32.mrf.mxu1  ;;  %v17727_v11 = vcombine.high %v30232_v28, %v30232_v28 }
 0x44c   :  { %v17575_v37 = vpop.f32.mrf.mxu1 }
 0x44d   :  { %v20441_v37 = vld [vmem:[%s33928_s3 + $0x80] sm:$0xff] }
 0x44e   :  { %23688 = vmatprep.subr.mxu1 %v20441_v37 }
 0x44f   :  { %23689 = vmatpush3.msra.mxu1 %v20425_v43  ;;  %v20627_v43 = vld [vmem:[%s33928_s3 + $0x650] sm:$0xff] }
 0x450   :  { %v30102_v6 = vpop.f32.mrf.mxu1  ;;  %23693 = vmatprep.subr.mxu1 %v20488_v56  ;;  %23879 = vmatpush3.msra.mxu0 %v20627_v43  ;;  %v20642_v43 = vld [vmem:[%s33928_s3 + $0x6c8] sm:$0xff] }
 0x451   :  { %23880 = vmatprep.subr.mxu0 %v20642_v43  ;;  %v20624_v43 = vld [vmem:[%s33928_s3 + $0x638] sm:$0xff] }
 0x452   :  { %v17580_v7 = vpop.f32.mrf.mxu1 }
 0x453   :  { %v17777_v7 = vcombine.high %v30070_v2, %v30070_v2 }
 0x454   :  { %v30122_v50 = vpop.f32.mrf.mxu1 }
 0x456   :  { %v17585_v63 = vpop.f32.mrf.mxu1 }
 0x458   :  { %v30136_v34 = vpop.f32.mrf.mxu1 }
 0x45a   :  { %v17590_v38 = vpop.f32.mrf.mxu1 }
 0x45c   :  { %v30156_v32 = vpop.f32.mrf.mxu1 }
 0x45e   :  { %v17595_v47 = vpop.f32.mrf.mxu1 }
 0x45f   :  { %v17791_v47 = vrot.slane %v17777_v7, %v25109_v12  ;;  %v30302_v7 = vrot.slane %v17792_v18, %v25109_v12 }
 0x461   :  { %v17793_v35 = vcombine.high %v17791_v47, %v17791_v47 }
 0x463   :  { %v30308_v56 = vrot.slane %v17793_v35, %v25109_v12  ;;  %v18022_v35 = vcombine.high %v30122_v50, %v30122_v50 }
 0x465   :  { %v17825_v18 = vcombine.high %v30308_v56, %v30308_v56 }
 0x47c   :  { %v30216_v26 = vpop.f32.mrf.mxu1 }
 0x47d   :  { %v18169_v41 = vcombine.high %v30216_v26, %v30216_v26 }
 0x47e   :  { %v17600_v40 = vpop.f32.mrf.mxu1 }
 0x47f   :  { %v18183_v51 = vrot.slane %v18169_v41, %v25109_v12 }
 0x481   :  { %v18185_v3 = vcombine.high %v18183_v51, %v18183_v51  ;;  %v30235_v23 = vrot.slane %v18183_v51, %v25109_v12 }
 0x483   :  { %v30250_v4 = vrot.slane %v18185_v3, %v25109_v12  ;;  %v18215_v63 = vcombine.high %v30235_v23, %v30235_v23  ;;  %v17603_v29 = vpop.f32.mrf.mxu1 }
 0x484   :  { %v18218_v45 = vcombine.high %v17603_v29, %v17603_v29  ;;  %v18225_v22 = vrot.slane %v17603_v29, %v25109_v12 }
 0x485   :  { %v17605_v30 = vpop.f32.mrf.mxu1  ;;  %v18746_v19 = vcombine.low %v17716_v1, %v18215_v63  ;;  %v23634_v61 = vcombine.high %v30229_v5, %v30250_v4 }
 0x486   :  { %v18232_v9 = vrot.slane %v18218_v45, %v25109_v12  ;;  %v18233_v2 = vcombine.high %v18225_v22, %v18225_v22  ;;  %v18241_v57 = vrot.slane %v18225_v22, %v25109_v12  ;;  %v30314_v30 = vrot.slane %v17784_v33, %v25109_v12 }
 0x487   :  { %v18753_v60 = vrot.slane %v18746_v19, %v25109_v12  ;;  %v18771_v27 = vrot.slane %v23634_v61, %v25109_v12  ;;  %v30317_v19 = vrot.slane %v17791_v47, %v25109_v12  ;;  %v17842_v61 = vcombine.high %v17840_v46, %v17840_v46 }
 0x488   :  { %v18234_v0 = vcombine.high %v18232_v9, %v18232_v9  ;;  %v18255_v48 = vrot.slane %v18233_v2, %v25109_v12  ;;  %v18263_v15 = vcombine.high %v18241_v57, %v18241_v57  ;;  %v18782_v39 = vcombine.low %v17726_v36, %v18241_v57 }
 0x489   :  { %v18760_v31 = vrot.slane %v18753_v60, %v25109_v12  ;;  %v18778_v20 = vrot.slane %v18771_v27, %v25109_v12  ;;  %v18248_v1 = vrot.slane %v18232_v9, %v25109_v12  ;;  %v17841_v36 = vcombine.high %v17833_v58, %v17833_v58 }
 0x48a   :  { %v18262_v44 = vrot.slane %v18234_v0, %v25109_v12  ;;  %v18800_v49 = vcombine.low %v17709_v24, %v18255_v48  ;;  %v23635_v21 = vcombine.high %v17709_v24, %v18255_v48  ;;  %v18789_v41 = vrot.slane %v18782_v39, %v25109_v12 }
 0x48b   :  { %v17608_v16 = vpop.f32.mrf.mxu1  ;;  %18761 = vrot.lane.b32.xlu0 %v18760_v31, %s24970_s22  ;;  %18779 = vrot.lane.b32.xlu1 %v18778_v20, %s24971_s23  ;;  %v18818_v53 = vcombine.low %v30232_v28, %v18263_v15  ;;  %v18264_v2 = vcombine.high %v18248_v1, %v18248_v1  ;;  %v18854_v57 = vcombine.low %v17727_v11, %v18248_v1  ;;  %s24982_s22 = smov 39   ;;  %s25011_s23 = smov 28  }
 0x48c   :  { %v18267_v40 = vcombine.high %v17608_v16, %v17608_v16  ;;  %v18274_v37 = vrot.slane %v17608_v16, %v25109_v12  ;;  %v18872_v10 = vcombine.low %v30239_v42, %v18262_v44  ;;  %v18796_v8 = vrot.slane %v18789_v41, %v25109_v12 }
 0x48d   :  { %v17610_v51 = vpop.f32.mrf.mxu1  ;;  %v18843_v3 = vrot.slane %v23635_v21, %v25109_v12  ;;  %v18807_v24 = vrot.slane %v18800_v49, %v25109_v12  ;;  %v23636_v22 = vcombine.high %v30239_v42, %v18262_v44  ;;  %v18825_v60 = vrot.slane %v18818_v53, %v25109_v12 }
 0x48e   :  { %v30305_v63 = vrot.slane %v18267_v40, %v25109_v12  ;;  %v18282_v29 = vcombine.high %v18274_v37, %v18274_v37  ;;  %v18879_v45 = vrot.slane %v18872_v10, %v25109_v12  ;;  %v30325_v42 = vrot.slane %v17841_v36, %v25109_v12 }
 0x48f   :  { %18797 = vrot.lane.b32.xlu1 %v18796_v8, %s24972_s26  ;;  %v18850_v28 = vrot.slane %v18843_v3, %v25109_v12  ;;  %v18814_v52 = vrot.slane %v18807_v24, %v25109_v12  ;;  %v17882_v33 = vrot.slane %v30074_v14, %v25109_v12  ;;  %v17824_v27 = vcombine.high %v30302_v7, %v30302_v7  ;;  %s25014_s26 = smov 71  }
 0x490   :  { %v30320_v9 = vrot.slane %v18282_v29, %v25109_v12  ;;  %v18283_v47 = vcombine.high %v30305_v63, %v30305_v63  ;;  %v18886_v0 = vrot.slane %v18879_v45, %v25109_v12  ;;  %v18915_v48 = vrot.slane %v23636_v22, %v25109_v12 }
 0x491   :  { %18851 = vrot.lane.b32.xlu0 %v18850_v28, %s24973_s27  ;;  %v30340_v15 = vrot.slane %v17833_v58, %v25109_v12  ;;  %v30343_v39 = vrot.slane %v17842_v61, %v25109_v12  ;;  %v17875_v31 = vcombine.high %v30074_v14, %v30074_v14  ;;  %v18290_v20 = vrot.slane %v18274_v37, %v25109_v12  ;;  %v20626_v28 = vld [vmem:[%s33928_s3 + $0x648] sm:$0xff]  ;;  %v20641_v61 = vld [vmem:[%s33928_s3 + $0x6c0] sm:$0xff]  ;;  %s24993_s27 = smov 34  }
 0x492   :  { %v18944_v11 = vcombine.low %v30244_v17, %v30320_v9  ;;  %v18832_v44 = vrot.slane %v18825_v60, %v25109_v12  ;;  %v18861_v58 = vrot.slane %v18854_v57, %v25109_v12  ;;  %v18890_v49 = vcombine.low %v30247_v62, %v18264_v2  ;;  %23881 = vmatpush3.msra.mxu0 %v20626_v28 }
 0x493   :  { %18815 = vrot.lane.b32.xlu1 %v18814_v52, %s24974_s28  ;;  %v30356_v21 = vrot.slane %v17840_v46, %v25109_v12  ;;  %v17890_v16 = vcombine.high %v17882_v33, %v17882_v33  ;;  %v30359_v14 = vrot.slane %v18283_v47, %v25109_v12  ;;  %v17873_v1 = vcombine.high %v30325_v42, %v30325_v42  ;;  %v20625_v52 = vld [vmem:[%s33928_s3 + $0x640] sm:$0xff]  ;;  %s24984_s28 = smov 81  }
 0x494   :  { %v30348_v59 = vpop.f32.mrf.mxu1  ;;  %v23637_v40 = vcombine.high %v30244_v17, %v30320_v9  ;;  %v18922_v46 = vrot.slane %v18915_v48, %v25109_v12  ;;  %v18951_v10 = vrot.slane %v18944_v11, %v25109_v12  ;;  %v30375_v53 = vrot.slane %v17875_v31, %v25109_v12  ;;  %23882 = vmatprep.subr.mxu0 %v20641_v61 }
 0x495   :  { %18887 = vrot.lane.b32.xlu0 %v18886_v0, %s24975_s0  ;;  %v30367_v37 = vrot.slane %v30348_v59, %v25109_v12  ;;  %v30378_v51 = vrot.slane %v17882_v33, %v25109_v12  ;;  %v18312_v17 = vcombine.high %v18290_v20, %v18290_v20  ;;  %v17874_v8 = vcombine.high %v30343_v39, %v30343_v39  ;;  %s25017_s0 = smov 26  }
 0x496   :  { %v17615_v41 = vpop.f32.mrf.mxu1  ;;  %v30383_v3 = vrot.slane %v18022_v35, %v25109_v12  ;;  %v18926_v24 = vcombine.low %v17775_v13, %v18290_v20  ;;  %v18868_v36 = vrot.slane %v18861_v58, %v25109_v12  ;;  %v18897_v29 = vrot.slane %v18890_v49, %v25109_v12  ;;  %v20640_v35 = vld [vmem:[%s33928_s3 + $0x6b8] sm:$0xff]  ;;  %23883 = vmatpush3.msra.mxu0 %v20625_v52 }
 0x497   :  { %18833 = vrot.lane.b32.xlu1 %v18832_v44, %s24976_s29  ;;  %v30394_v45 = vrot.slane %v17890_v16, %v25109_v12  ;;  %v18071_v22 = vcombine.high %v30136_v34, %v30136_v34  ;;  %v18078_v62 = vrot.slane %v30136_v34, %v25109_v12  ;;  %v19016_v13 = vcombine.low %v30314_v30, %v30359_v14  ;;  %s24994_s29 = smov 35  }
 0x498   :  { %v18316_v9 = vcombine.high %v30348_v59, %v30348_v59  ;;  %v18331_v2 = vcombine.high %v30367_v37, %v30367_v37  ;;  %v18958_v57 = vrot.slane %v18951_v10, %v25109_v12  ;;  %v18987_v34 = vrot.slane %v23637_v40, %v25109_v12  ;;  %23884 = vmatprep.subr.mxu0 %v20640_v35 }
 0x499   :  { %18923 = vrot.lane.b32.xlu0 %v18922_v46, %s24977_s7  ;;  %v30418_v33 = vrot.slane %v30375_v53, %v25109_v12  ;;  %v30422_v47 = vrot.slane %v30076_v55, %v25109_v12  ;;  %v18962_v11 = vcombine.low %v30258_v25, %v18312_v17  ;;  %v18038_v0 = vcombine.high %v30383_v3, %v30383_v3  ;;  %s24995_s7 = smov 76  }
 0x49a   :  { %v18297_v48 = vrot.slane %v30305_v63, %v25109_v12  ;;  %v18904_v20 = vrot.slane %v18897_v29, %v25109_v12  ;;  %v18933_v59 = vrot.slane %v18926_v24, %v25109_v12  ;;  %v18085_v44 = vrot.slane %v18071_v22, %v25109_v12  ;;  %23885 = vmatpush3.msra.mxu0 %v20624_v43 }
 0x49b   :  { %18869 = vrot.lane.b32.xlu1 %v18868_v36, %s24978_s12  ;;  %v18086_v58 = vcombine.high %v18078_v62, %v18078_v62  ;;  %v19023_v63 = vrot.slane %v19016_v13, %v25109_v12  ;;  %v18330_v16 = vrot.slane %v18316_v9, %v25109_v12  ;;  %v30442_v41 = vrot.slane %v18331_v2, %v25109_v12  ;;  %v20639_v13 = vld [vmem:[%s33928_s3 + $0x6b0] sm:$0xff]  ;;  %s24998_s12 = smov 119  }
 0x49c   :  { %v18994_v46 = vrot.slane %v18987_v34, %v25109_v12  ;;  %v23638_v10 = vcombine.high %v30314_v30, %v30359_v14  ;;  %v30454_v24 = vrot.slane %v30422_v47, %v25109_v12  ;;  %v18120_v36 = vcombine.high %v30156_v32, %v30156_v32  ;;  %23886 = vmatprep.subr.mxu0 %v20639_v13 }
 0x49d   :  { %v30429_v31 = vpop.f32.mrf.mxu1  ;;  %18959 = vrot.lane.b32.xlu0 %v18958_v57, %s24979_s15  ;;  %v18969_v29 = vrot.slane %v18962_v11, %v25109_v12  ;;  %v30460_v28 = vrot.slane %v18038_v0, %v25109_v12  ;;  %v18313_v30 = vcombine.high %v18297_v48, %v18297_v48  ;;  %v18998_v14 = vcombine.low %v17776_v54, %v18297_v48  ;;  %v20623_v11 = vld [vmem:[%s33928_s3 + $0x630] sm:$0xff]  ;;  %s25001_s15 = smov 74  }
 0x49e   :  { %v18940_v22 = vrot.slane %v18933_v59, %v25109_v12  ;;  %v18087_v61 = vcombine.high %v18085_v44, %v18085_v44  ;;  %v30470_v9 = vrot.slane %v18078_v62, %v25109_v12  ;;  %v30473_v2 = vrot.slane %v18086_v58, %v25109_v12  ;;  %23887 = vmatpush3.msra.mxu0 %v20623_v11 }
 0x49f   :  { %v17620_v40 = vpop.f32.mrf.mxu1  ;;  %18905 = vrot.lane.b32.xlu1 %v18904_v20, %s24980_s18  ;;  %v18127_v57 = vrot.slane %v30156_v32, %v25109_v12  ;;  %v18332_v25 = vcombine.high %v18330_v16, %v18330_v16  ;;  %v19088_v54 = vcombine.low %v30317_v19, %v30442_v41  ;;  %v19030_v52 = vrot.slane %v19023_v63, %v25109_v12  ;;  %s25004_s18 = smov 117  }
 0x4a0   :  { %v19059_v62 = vrot.slane %v23638_v10, %v25109_v12  ;;  %v30487_v0 = vrot.slane %v18085_v44, %v25109_v12  ;;  %v18134_v32 = vrot.slane %v18120_v36, %v25109_v12  ;;  %v18339_v48 = vrot.slane %v30367_v37, %v25109_v12  ;;  %v20638_v37 = vld [vmem:[%s33928_s3 + $0x6a8] sm:$0xff] }
 0x4a1   :  { %18995 = vrot.lane.b32.xlu0 %v18994_v46, %s24981_s1  ;;  %v18976_v20 = vrot.slane %v18969_v29, %v25109_v12  ;;  %v18365_v59 = vcombine.high %v30429_v31, %v30429_v31  ;;  %v18372_v35 = vrot.slane %v30429_v31, %v25109_v12  ;;  %v19005_v44 = vrot.slane %v18998_v14, %v25109_v12  ;;  %v20622_v14 = vld [vmem:[%s33928_s3 + $0x628] sm:$0xff]  ;;  %s25007_s1 = smov 72  }
 0x4a2   :  { %v19034_v63 = vcombine.low %v30302_v7, %v18313_v30  ;;  %v30503_v40 = vrot.slane %v18087_v61, %v25109_v12  ;;  %v18135_v46 = vcombine.high %v18127_v57, %v18127_v57  ;;  %v18070_v10 = vcombine.high %v30460_v28, %v30460_v28  ;;  %23888 = vmatprep.subr.mxu0 %v20638_v37 }
 0x4a3   :  { %v30479_v34 = vpop.f32.mrf.mxu1  ;;  %18941 = vrot.lane.b32.xlu1 %v18940_v22, %s24982_s22  ;;  %v18118_v31 = vcombine.high %v30473_v2, %v30473_v2  ;;  %v30510_v43 = vrot.slane %v18332_v25, %v25109_v12  ;;  %v23639_v36 = vcombine.high %v30317_v19, %v30442_v41  ;;  %v19066_v29 = vrot.slane %v19059_v62, %v25109_v12  ;;  %s25010_s22 = smov 115  }
 0x4a4   :  { %v19095_v30 = vrot.slane %v19088_v54, %v25109_v12  ;;  %v18136_v22 = vcombine.high %v18134_v32, %v18134_v32  ;;  %v18346_v13 = vrot.slane %v18330_v16, %v25109_v12  ;;  %v18361_v61 = vcombine.high %v18339_v48, %v18339_v48  ;;  %v20637_v16 = vld [vmem:[%s33928_s3 + $0x6a0] sm:$0xff]  ;;  %23889 = vmatpush3.msra.mxu0 %v20622_v14 }
 0x4a5   :  { %v17625_v58 = vpop.f32.mrf.mxu1  ;;  %19031 = vrot.lane.b32.xlu0 %v19030_v52, %s24983_s25  ;;  %v19070_v25 = vcombine.low %v17824_v27, %v18339_v48  ;;  %v30524_v19 = vrot.slane %v18365_v59, %v25109_v12  ;;  %v18380_v41 = vcombine.high %v18372_v35, %v18372_v35  ;;  %v19012_v54 = vrot.slane %v19005_v44, %v25109_v12  ;;  %s25013_s25 = smov 70  }
 0x4a6   :  { %v19041_v52 = vrot.slane %v19034_v63, %v25109_v12  ;;  %v30532_v62 = vrot.slane %v18127_v57, %v25109_v12  ;;  %v30535_v7 = vrot.slane %v18135_v46, %v25109_v12  ;;  %v18176_v27 = vrot.slane %v30216_v26, %v25109_v12  ;;  %v20621_v58 = vld [vmem:[%s33928_s3 + $0x620] sm:$0xff]  ;;  %23890 = vmatprep.subr.mxu0 %v20637_v16 }
 0x4a7   :  { %18977 = vrot.lane.b32.xlu1 %v18976_v20, %s24984_s28  ;;  %v18388_v11 = vrot.slane %v18372_v35, %v25109_v12  ;;  %v30541_v48 = vrot.slane %v18134_v32, %v25109_v12  ;;  %v19102_v20 = vrot.slane %v19095_v30, %v25109_v12  ;;  %v19131_v59 = vrot.slane %v23639_v36, %v25109_v12  ;;  %v20636_v30 = vld [vmem:[%s33928_s3 + $0x698] sm:$0xff]  ;;  %s25016_s28 = smov 113  }
 0x4a8   :  { %v19160_v57 = vcombine.low %v30340_v15, %v30510_v43  ;;  %v30551_v26 = vrot.slane %v18136_v22, %v25109_v12  ;;  %v18362_v35 = vcombine.high %v18346_v13, %v18346_v13  ;;  %v19106_v32 = vcombine.low %v30308_v56, %v18361_v61  ;;  %23891 = vmatpush3.msra.mxu0 %v20621_v58 }
 0x4a9   :  { %19067 = vrot.lane.b32.xlu0 %v19066_v29, %s24985_s30  ;;  %v18119_v63 = vcombine.high %v30503_v40, %v30503_v40  ;;  %v18381_v37 = vcombine.high %v30524_v19, %v30524_v19  ;;  %v18402_v46 = vrot.slane %v18380_v41, %v25109_v12  ;;  %v19048_v36 = vrot.slane %v19041_v52, %v25109_v12  ;;  %s25019_s30 = smov 68  }
 0x4aa   :  { %v19077_v29 = vrot.slane %v19070_v25, %v25109_v12  ;;  %v18184_v14 = vcombine.high %v18176_v27, %v18176_v27  ;;  %v30569_v22 = vcombine.low %v17825_v18, %v18346_v13  ;;  %v18410_v61 = vcombine.high %v18388_v11, %v18388_v11  ;;  %v20620_v18 = vld [vmem:[%s33928_s3 + $0x618] sm:$0xff]  ;;  %23892 = vmatprep.subr.mxu0 %v20636_v30 }
 0x4ab   :  { %19013 = vrot.lane.b32.xlu1 %v19012_v54, %s24986_s8  ;;  %v18167_v41 = vcombine.high %v30535_v7, %v30535_v7  ;;  %v18421_v52 = vrot.slane %v30479_v34, %v25109_v12  ;;  %v19138_v25 = vrot.slane %v19131_v59, %v25109_v12  ;;  %v19167_v16 = vrot.slane %v19160_v57, %v25109_v12  ;;  %s25022_s8 = smov 111  }
 0x4ac   :  { %v30554_v44 = vpop.f32.mrf.mxu1  ;;  %v23640_v56 = vcombine.high %v30340_v15, %v30510_v43  ;;  %v18414_v13 = vcombine.high %v30479_v34, %v30479_v34  ;;  %v18168_v58 = vcombine.high %v30551_v26, %v30551_v26  ;;  %v19178_v59 = vcombine.low %v30325_v42, %v18362_v35  ;;  %23893 = vmatpush3.msra.mxu0 %v20620_v18 }
 0x4ad   :  { %19103 = vrot.lane.b32.xlu0 %v19102_v20, %s24987_s11  ;;  %v30591_v57 = vrot.slane %v18381_v37, %v25109_v12  ;;  %v19214_v15 = vcombine.low %v17873_v1, %v18388_v11  ;;  %v19232_v43 = vcombine.low %v30356_v21, %v18402_v46  ;;  %v19084_v34 = vrot.slane %v19077_v29, %v25109_v12  ;;  %s24997_s11 = smov 118  }
 0x4ae   :  { %v17630_v54 = vpop.f32.mrf.mxu1  ;;  %v30602_v35 = vrot.slane %v18176_v27, %v25109_v12  ;;  %v30605_v37 = vrot.slane %v18184_v14, %v25109_v12  ;;  %v19250_v30 = vcombine.low %v30343_v39, %v18410_v61  ;;  %v23641_v42 = vcombine.high %v30356_v21, %v18402_v46  ;;  %v20619_v14 = vld [vmem:[%s33928_s3 + $0x610] sm:$0xff]  ;;  %v20633_v39 = vld [vmem:[%s33928_s3 + $0x680] sm:$0xff] }
 0x4af   :  { %19049 = vrot.lane.b32.xlu1 %v19048_v36, %s24988_s14  ;;  %v19113_v36 = vrot.slane %v19106_v32, %v25109_v12  ;;  %v20635_v32 = vld [vmem:[%s33928_s3 + $0x690] sm:$0xff]  ;;  %v18429_v11 = vcombine.high %v18421_v52, %v18421_v52  ;;  %v19174_v29 = vrot.slane %v19167_v16, %v25109_v12  ;;  %v19203_v54 = vrot.slane %v23640_v56, %v25109_v12  ;;  %s25000_s14 = smov 33  }
 0x4b0   :  { %v30584_v20 = vpop.f32.mrf.mxu1  ;;  %v19149_v27 = vrot.slane %v30569_v22, %v25109_v12  ;;  %v30618_v61 = vrot.slane %v30524_v19, %v25109_v12  ;;  %v30621_v21 = vrot.slane %v18414_v13, %v25109_v12  ;;  %v19185_v16 = vrot.slane %v19178_v59, %v25109_v12  ;;  %23894 = vmatprep.subr.mxu0 %v20635_v32  ;;  %v20634_v13 = vld [vmem:[%s33928_s3 + $0x688] sm:$0xff] }
 0x4b1   :  { %19139 = vrot.lane.b32.xlu0 %v19138_v25, %s24989_s17  ;;  %v19120_v25 = vrot.slane %v19113_v36, %v25109_v12  ;;  %v19239_v56 = vrot.slane %v19232_v43, %v25109_v12  ;;  %v19221_v19 = vrot.slane %v19214_v15, %v25109_v12  ;;  %v19304_v18 = vcombine.low %v30378_v51, %v30591_v57  ;;  %s25003_s17 = smov 116  }
 0x4b2   :  { %v17635_v1 = vpop.f32.mrf.mxu1  ;;  %v30637_v36 = vrot.slane %v18421_v52, %v25109_v12  ;;  %v30642_v32 = vrot.slane %v23641_v42, %v25109_v12  ;;  %v19257_v43 = vrot.slane %v19250_v30, %v25109_v12  ;;  %23895 = vmatpush3.msra.mxu0 %v20619_v14  ;;  %v30646_v15 = vrot.slane %v18429_v11, %v25109_v12 }
 0x4b3   :  { %19085 = vrot.lane.b32.xlu1 %v19084_v34, %s24990_s2  ;;  %v19210_v52 = vrot.slane %v19203_v54, %v25109_v12  ;;  %v18411_v42 = vcombine.high %v30618_v61, %v30618_v61  ;;  %v30660_v30 = vcombine.low %v17874_v8, %v30618_v61  ;;  %v18430_v11 = vcombine.high %v30621_v21, %v30621_v21  ;;  %s25006_s2 = smov 31  }
 0x4b4   :  { %v30623_v46 = vpop.f32.mrf.mxu1  ;;  %v19192_v54 = vrot.slane %v19185_v16, %v25109_v12  ;;  %23896 = vmatprep.subr.mxu0 %v20634_v13  ;;  %v30668_v38 = vrot.slane %v19304_v18, %v25109_v12  ;;  %v19282_v13 = vrot.slane %v30642_v32, %v25109_v12  ;;  %v20617_v32 = vld [vmem:[%s33928_s3 + $0x600] sm:$0xff] }
 0x4b5   :  { %v18561_v22 = vcombine.high %v30623_v46, %v30623_v46  ;;  %19175 = vrot.lane.b32.xlu0 %v19174_v29, %s24991_s21  ;;  %v19156_v29 = vrot.slane %v19149_v27, %v25109_v12  ;;  %s25009_s21 = smov 114  }
 0x4b6   :  { %v17640_v59 = vpop.f32.mrf.mxu1  ;;  %v19318_v8 = vrot.slane %v30668_v38, %v25109_v12 }
 0x4b7   :  { %v18575_v1 = vrot.slane %v18561_v22, %v25109_v12  ;;  %19121 = vrot.lane.b32.xlu1 %v19120_v25, %s24992_s24  ;;  %v20618_v59 = vld [vmem:[%s33928_s3 + $0x608] sm:$0xff]  ;;  %v19246_v25 = vrot.slane %v19239_v56, %v25109_v12  ;;  %v19228_v22 = vrot.slane %v19221_v19, %v25109_v12  ;;  %v30679_v56 = vrot.slane %v19257_v43, %v25109_v12  ;;  %s25012_s24 = smov 29  }
 0x4b8   :  { %v17643_v14 = vpop.f32.mrf.mxu1  ;;  %23897 = vmatpush3.msra.mxu0 %v20618_v59  ;;  %v19376_v19 = vcombine.low %v30418_v33, %v30646_v15  ;;  %v30692_v43 = vrot.slane %v18430_v11, %v25109_v12 }
 0x4b9   :  { %v18577_v27 = vcombine.high %v18575_v1, %v18575_v1  ;;  %19211 = vrot.lane.b32.xlu0 %v19210_v52, %s24993_s27  ;;  %v18591_v61 = vrot.slane %v18575_v1, %v25109_v12  ;;  %v18610_v52 = vcombine.high %v17643_v14, %v17643_v14  ;;  %v23642_v1 = vcombine.high %v30378_v51, %v30591_v57  ;;  %s25015_s27 = smov 112  }
 0x4ba   :  { %v17645_v16 = vpop.f32.mrf.mxu1  ;;  %23898 = vmatprep.subr.mxu0 %v20633_v39  ;;  %v30703_v51 = vrot.slane %v30554_v44, %v25109_v12  ;;  %v30724_v59 = vrot.slane %v19376_v19, %v25109_v12 }
 0x4bb   :  { %v30684_v18 = vrot.slane %v18577_v27, %v25109_v12  ;;  %19157 = vrot.lane.b32.xlu1 %v19156_v29, %s24994_s29  ;;  %v18607_v16 = vcombine.high %v18591_v61, %v18591_v61  ;;  %v30699_v27 = vcombine.low %v18070_v10, %v18591_v61  ;;  %v20712_v10 = vld [vmem:[%s33928_s3 + $0x8f8] sm:$0xff]  ;;  %v18617_v61 = vrot.slane %v17643_v14, %v25109_v12  ;;  %s25018_s29 = smov 27  }
 0x4bc   :  { %v17648_v29 = vpop.f32.mrf.mxu1  ;;  %v18624_v17 = vrot.slane %v18610_v52, %v25109_v12  ;;  %23899 = vmatpush3.msra.mxu0 %v20617_v32  ;;  %v19347_v38 = vrot.slane %v23642_v1, %v25109_v12 }
 0x4bd   :  { %19247 = vrot.lane.b32.xlu0 %v19246_v25, %s24995_s7  ;;  %v30715_v39 = vcombine.low %v30473_v2, %v18607_v16  ;;  %v18659_v57 = vcombine.high %v17648_v29, %v17648_v29  ;;  %v18666_v11 = vrot.slane %v17648_v29, %v25109_v12  ;;  %v19293_v25 = vrot.slane %v30660_v30, %v25109_v12  ;;  %s25021_s7 = smov 110  }
 0x4be   :  { %v17650_v34 = vpop.f32.mrf.mxu1  ;;  %v18625_v16 = vcombine.high %v18617_v61, %v18617_v61  ;;  %v18626_v60 = vcombine.high %v18624_v17, %v18624_v17  ;;  %v18633_v14 = vrot.slane %v18617_v61, %v25109_v12  ;;  %v18640_v52 = vrot.slane %v18624_v17, %v25109_v12  ;;  %23938 = vmatprep.subr.mxu0 %v20712_v10 }
 0x4bf   :  { %19193 = vrot.lane.b32.xlu1 %v19192_v54, %s24996_s10  ;;  %v18673_v32 = vrot.slane %v18659_v57, %v25109_v12  ;;  %v18674_v29 = vcombine.high %v18666_v11, %v18666_v11  ;;  %v18682_v54 = vrot.slane %v18666_v11, %v25109_v12  ;;  %v19322_v30 = vcombine.low %v30394_v45, %v18411_v42  ;;  %s25024_s10 = smov 25  }
 0x4c0   :  { %v17653_v34 = vpop.f32.mrf.mxu1  ;;  %v30732_v19 = vrot.slane %v18625_v16, %v25109_v12  ;;  %v30735_v1 = vrot.slane %v18626_v60, %v25109_v12  ;;  %v18655_v61 = vcombine.high %v18633_v14, %v18633_v14  ;;  %v18656_v49 = vcombine.high %v18640_v52, %v18640_v52 }
 0x4c1   :  { %19283 = vrot.lane.b32.xlu0 %v19282_v13, %s24997_s11  ;;  %v30740_v57 = vcombine.low %v18118_v31, %v18633_v14  ;;  %v30745_v13 = vcombine.low %v18119_v63, %v18640_v52  ;;  %v18675_v42 = vcombine.high %v18673_v32, %v18673_v32  ;;  %v18689_v11 = vrot.slane %v18673_v32, %v25109_v12  ;;  %s25025_s11 = smov 66  }
 0x4c2   :  { %v17655_v17 = vpop.f32.mrf.mxu1  ;;  %v19952_v60 = vcombine.low %v30487_v0, %v30732_v19  ;;  %v30751_v10 = vcombine.low %v30503_v40, %v18655_v61  ;;  %v23651_v2 = vcombine.high %v30487_v0, %v30732_v19  ;;  %v20024_v31 = vcombine.low %v30532_v62, %v30735_v1  ;;  %v20482_v0 = vld [vmem:[%s33928_s3 + $0x1c8] sm:$0xff] }
 0x4c3   :  { %19229 = vrot.lane.b32.xlu1 %v19228_v22, %s24998_s12  ;;  %v30758_v63 = vcombine.low %v30535_v7, %v18656_v49  ;;  %v23652_v16 = vcombine.high %v30532_v62, %v30735_v1  ;;  %v30763_v22 = vrot.slane %v18674_v29, %v25109_v12  ;;  %v30766_v14 = vrot.slane %v17653_v34, %v25109_v12  ;;  %s25026_s12 = smov 67   ;;  %v20466_v19 = vld [vmem:[%s33928_s3 + $0x148] sm:$0xff] }
 0x4c4   :  { %v30769_v40 = vrot.slane %v18675_v42, %v25109_v12  ;;  %v18704_v52 = vcombine.high %v18682_v54, %v18682_v54  ;;  %v18705_v32 = vcombine.high %v18689_v11, %v18689_v11  ;;  %v30774_v49 = vcombine.low %v18167_v41, %v18682_v54  ;;  %v20462_v1 = vld [vmem:[%s33928_s3 + $0x128] sm:$0xff] }
 0x4c5   :  { %19319 = vrot.lane.b32.xlu0 %v19318_v8, %s24999_s13  ;;  %v20096_v61 = vcombine.low %v30541_v48, %v30763_v22  ;;  %v23653_v29 = vcombine.high %v30541_v48, %v30763_v22  ;;  %v30783_v8 = vcombine.low %v18168_v58, %v18689_v11  ;;  %v19354_v34 = vrot.slane %v19347_v38, %v25109_v12  ;;  %s25027_s13 = smov 108   ;;  %v20474_v48 = vld [vmem:[%s33928_s3 + $0x188] sm:$0xff] }
 0x4c6   :  { %v33980_v7 = vcombine.high %v30394_v45, %v30394_v45  ;;  %v30792_v54 = vcombine.low %v30551_v26, %v18704_v52  ;;  %v20168_v17 = vcombine.low %v30602_v35, %v30769_v40  ;;  %v30797_v42 = vcombine.low %v30605_v37, %v18705_v32 }
 0x4c7   :  { %19265 = vrot.lane.b32.xlu1 %v30679_v56, %s25000_s14  ;;  %v23654_v58 = vcombine.high %v30602_v35, %v30769_v40  ;;  %v18722_v56 = vrot.slane %v30766_v14, %v25109_v12  ;;  %v19300_v45 = vrot.slane %v19293_v25, %v25109_v12  ;;  %v19329_v38 = vrot.slane %v19322_v30, %v25109_v12  ;;  %s25028_s14 = smov 109  }
 0x4c8   :  { %v19358_v41 = vcombine.low %v33980_v7, %v30637_v36  ;;  %v33981_v26 = vcombine.high %v30375_v53, %v30375_v53  ;;  %v18463_v52 = vcombine.high %v30554_v44, %v30554_v44  ;;  %v33982_v32 = vcombine.high %v30418_v33, %v30646_v15 }
 0x4c9   :  { %19355 = vrot.lane.b32.xlu0 %v19354_v34, %s25001_s15  ;;  %v18478_v34 = vcombine.high %v30703_v51, %v30703_v51  ;;  %v33983_v25 = vcombine.high %v30605_v37, %v30605_v37  ;;  %v19390_v53 = vrot.slane %v30724_v59, %v25109_v12  ;;  %v19448_v44 = vcombine.low %v30454_v24, %v30692_v43  ;;  %s25029_s15 = smov 22  }
 0x4ca   :  { %v17919_v11 = vrot.slane %v33981_v26, %v25109_v12  ;;  %v19419_v7 = vrot.slane %v33982_v32, %v25109_v12  ;;  %v33984_v33 = vcombine.high %v30076_v55, %v30076_v55  ;;  %v18444_v26 = vrot.slane %v30621_v21, %v25109_v12 }
 0x4cb   :  { %v30820_v30 = vcombine.low %v33983_v25, %v18722_v56  ;;  %19301 = vrot.lane.b32.xlu1 %v19300_v45, %s25002_s16  ;;  %v33985_v37 = vcombine.high %v30637_v36, %v30637_v36  ;;  %v19336_v45 = vrot.slane %v19329_v38, %v25109_v12  ;;  %v19365_v59 = vrot.slane %v19358_v41, %v25109_v12 }
 0x4cc   :  { %v17938_v15 = vrot.slane %v33984_v33, %v25109_v12  ;;  %v17939_v32 = vcombine.high %v30422_v47, %v30422_v47  ;;  %v17923_v25 = vcombine.high %v17919_v11, %v17919_v11  ;;  %v18477_v55 = vrot.slane %v18463_v52, %v25109_v12 }
 0x4cd   :  { %v19394_v56 = vcombine.low %v17919_v11, %v33985_v37  ;;  %19391 = vrot.lane.b32.xlu0 %v19390_v53, %s25003_s17  ;;  %v18500_v33 = vrot.slane %v18478_v34, %v25109_v12  ;;  %v19426_v21 = vrot.slane %v19419_v7, %v25109_v12  ;;  %v19455_v36 = vrot.slane %v19448_v44, %v25109_v12  ;;  %s25041_s17 = smov 18  }
 0x4ce   :  { %v23644_v53 = vcombine.high %v30454_v24, %v30692_v43  ;;  %v17954_v38 = vrot.slane %v17938_v15, %v25109_v12  ;;  %v18460_v41 = vcombine.high %v18444_v26, %v18444_v26  ;;  %v19430_v37 = vcombine.low %v17923_v25, %v18444_v26 }
 0x4cf   :  { %19337 = vrot.lane.b32.xlu1 %v19336_v45, %s25004_s18  ;;  %v19372_v47 = vrot.slane %v19365_v59, %v25109_v12  ;;  %v19401_v11 = vrot.slane %v19394_v56, %v25109_v12  ;;  %v17961_v52 = vrot.slane %v17939_v32, %v25109_v12  ;;  %v18479_v34 = vcombine.high %v18477_v55, %v18477_v55  ;;  %s25030_s18 = smov 23  }
 0x4d0   :  { %v19520_v45 = vcombine.low %v17954_v38, %v18500_v33  ;;  %v19462_v7 = vrot.slane %v19455_v36, %v25109_v12  ;;  %v19491_v24 = vrot.slane %v23644_v53, %v25109_v12  ;;  %v17980_v43 = vrot.slane %v30102_v6, %v25109_v12 }
 0x4d1   :  { %19427 = vrot.lane.b32.xlu0 %v19426_v21, %s25005_s19  ;;  %v18486_v44 = vrot.slane %v30703_v51, %v25109_v12  ;;  %v19408_v26 = vrot.slane %v19401_v11, %v25109_v12  ;;  %v19437_v56 = vrot.slane %v19430_v37, %v25109_v12  ;;  %v19466_v59 = vcombine.low %v17961_v52, %v18460_v41  ;;  %s25047_s19 = smov 16  }
 0x4d2   :  { %v17940_v32 = vcombine.high %v17938_v15, %v17938_v15  ;;  %v17971_v25 = vcombine.high %v17961_v52, %v17961_v52  ;;  %v18519_v21 = vrot.slane %v30584_v20, %v25109_v12  ;;  %v18507_v36 = vrot.slane %v18479_v34, %v25109_v12 }
 0x4d3   :  { %19373 = vrot.lane.b32.xlu1 %v19372_v47, %s25006_s2  ;;  %v23645_v53 = vcombine.high %v17954_v38, %v18500_v33  ;;  %v19498_v47 = vrot.slane %v19491_v24, %v25109_v12  ;;  %v19527_v51 = vrot.slane %v19520_v45, %v25109_v12  ;;  %v17973_v11 = vcombine.high %v30102_v6, %v30102_v6  ;;  %s25036_s2 = smov 21  }
 0x4d4   :  { %v17996_v37 = vrot.slane %v17980_v43, %v25109_v12  ;;  %v18508_v41 = vcombine.high %v18486_v44, %v18486_v44  ;;  %v19502_v15 = vcombine.low %v17971_v25, %v18486_v44  ;;  %v19444_v52 = vrot.slane %v19437_v56, %v25109_v12 }
 0x4d5   :  { %19463 = vrot.lane.b32.xlu0 %v19462_v7, %s25007_s1  ;;  %v19473_v34 = vrot.slane %v19466_v59, %v25109_v12  ;;  %v17968_v33 = vrot.slane %v17940_v32, %v25109_v12  ;;  %v18512_v38 = vcombine.high %v30584_v20, %v30584_v20  ;;  %v18527_v7 = vcombine.high %v18519_v21, %v18519_v21 }
 0x4d6   :  { %v19534_v6 = vrot.slane %v19527_v51, %v25109_v12  ;;  %v19563_v45 = vrot.slane %v23645_v53, %v25109_v12  ;;  %v19592_v24 = vcombine.low %v17996_v37, %v18507_v36  ;;  %v17987_v44 = vrot.slane %v17973_v11, %v25109_v12 }
 0x4d7   :  { %19409 = vrot.lane.b32.xlu1 %v19408_v26, %s25008_s20  ;;  %v18493_v26 = vrot.slane %v18477_v55, %v25109_v12  ;;  %v19538_v56 = vcombine.low %v17968_v33, %v18508_v41  ;;  %v19480_v59 = vrot.slane %v19473_v34, %v25109_v12  ;;  %v19509_v32 = vrot.slane %v19502_v15, %v25109_v12  ;;  %s25042_s20 = smov 19  }
 0x4d8   :  { %v17988_v20 = vcombine.high %v17980_v43, %v17980_v43  ;;  %v17972_v25 = vcombine.high %v17968_v33, %v17968_v33  ;;  %v18549_v51 = vrot.slane %v18527_v7, %v25109_v12  ;;  %v19570_v53 = vrot.slane %v19563_v45, %v25109_v12 }
 0x4d9   :  { %19499 = vrot.lane.b32.xlu0 %v19498_v47, %s25009_s21  ;;  %v18526_v47 = vrot.slane %v18512_v38, %v25109_v12  ;;  %v19599_v11 = vrot.slane %v19592_v24, %v25109_v12  ;;  %v23646_v55 = vcombine.high %v17996_v37, %v18507_v36  ;;  %v18003_v41 = vrot.slane %v17987_v44, %v25109_v12  ;;  %s25031_s21 = smov 64  }
 0x4da   :  { %v19516_v43 = vrot.slane %v19509_v32, %v25109_v12  ;;  %v19545_v15 = vrot.slane %v19538_v56, %v25109_v12  ;;  %v18010_v34 = vrot.slane %v17988_v20, %v25109_v12  ;;  %v18029_v37 = vrot.slane %v30122_v50, %v25109_v12 }
 0x4db   :  { %19445 = vrot.lane.b32.xlu1 %v19444_v52, %s25010_s22  ;;  %v18509_v52 = vcombine.high %v18493_v26, %v18493_v26  ;;  %v18528_v33 = vcombine.high %v18526_v47, %v18526_v47  ;;  %v19664_v38 = vcombine.low %v18003_v41, %v18549_v51  ;;  %v19606_v7 = vrot.slane %v19599_v11, %v25109_v12  ;;  %s25048_s22 = smov 17  }
 0x4dc   :  { %v19635_v36 = vrot.slane %v23646_v55, %v25109_v12  ;;  %v18535_v45 = vrot.slane %v18519_v21, %v25109_v12  ;;  %v19552_v24 = vrot.slane %v19545_v15, %v25109_v12  ;;  %v18020_v32 = vcombine.high %v18010_v34, %v18010_v34 }
 0x4dd   :  { %19535 = vrot.lane.b32.xlu0 %v19534_v6, %s25011_s23  ;;  %v19574_v6 = vcombine.low %v17972_v25, %v18493_v26  ;;  %v19610_v56 = vcombine.low %v18010_v34, %v18509_v52  ;;  %v18568_v20 = vrot.slane %v30623_v46, %v25109_v12  ;;  %v18556_v25 = vrot.slane %v18528_v33, %v25109_v12  ;;  %s25037_s23 = smov 62  }
 0x4de   :  { %v19642_v50 = vrot.slane %v19635_v36, %v25109_v12  ;;  %v19671_v21 = vrot.slane %v19664_v38, %v25109_v12  ;;  %v18045_v11 = vrot.slane %v18029_v37, %v25109_v12  ;;  %v18557_v55 = vcombine.high %v18535_v45, %v18535_v45 }
 0x4df   :  { %19481 = vrot.lane.b32.xlu1 %v19480_v59, %s25012_s24  ;;  %v19581_v26 = vrot.slane %v19574_v6, %v25109_v12  ;;  %v17989_v59 = vcombine.high %v17987_v44, %v17987_v44  ;;  %v19617_v52 = vrot.slane %v19610_v56, %v25109_v12  ;;  %v18576_v6 = vcombine.high %v18568_v20, %v18568_v20 }
 0x4e0   :  { %v19736_v15 = vcombine.low %v18045_v11, %v18556_v25  ;;  %v18542_v34 = vrot.slane %v18526_v47, %v25109_v12  ;;  %v18037_v36 = vcombine.high %v18029_v37, %v18029_v37  ;;  %v18052_v47 = vrot.slane %v30383_v3, %v25109_v12 }
 0x4e1   :  { %19571 = vrot.lane.b32.xlu0 %v19570_v53, %s25013_s25  ;;  %v23647_v53 = vcombine.high %v18003_v41, %v18549_v51  ;;  %v19588_v44 = vrot.slane %v19581_v26, %v25109_v12  ;;  %v18017_v46 = vrot.slane %v17989_v59, %v25109_v12  ;;  %v19678_v51 = vrot.slane %v19671_v21, %v25109_v12  ;;  %s25043_s25 = smov 60  }
 0x4e2   :  { %v19624_v38 = vrot.slane %v19617_v52, %v25109_v12  ;;  %v18598_v26 = vrot.slane %v18576_v6, %v25109_v12  ;;  %v19743_v59 = vrot.slane %v19736_v15, %v25109_v12  ;;  %v18584_v3 = vrot.slane %v18568_v20, %v25109_v12 }
 0x4e3   :  { %19517 = vrot.lane.b32.xlu1 %v19516_v43, %s25014_s26  ;;  %v19646_v43 = vcombine.low %v18020_v32, %v18535_v45  ;;  %v19707_v41 = vrot.slane %v23647_v53, %v25109_v12  ;;  %v19682_v33 = vcombine.low %v18017_v46, %v18557_v55  ;;  %v18021_v45 = vcombine.high %v18017_v46, %v18017_v46  ;;  %s25032_s26 = smov 65  }
 0x4e4   :  { %v18558_v32 = vcombine.high %v18542_v34, %v18542_v34  ;;  %v19808_v21 = vcombine.low %v18052_v47, %v18598_v26  ;;  %v23649_v6 = vcombine.high %v18052_v47, %v18598_v26  ;;  %v18606_v15 = vcombine.high %v18584_v3, %v18584_v3 }
 0x4e5   :  { %19607 = vrot.lane.b32.xlu0 %v19606_v7, %s25015_s27  ;;  %v19653_v7 = vrot.slane %v19646_v43, %v25109_v12  ;;  %v19714_v56 = vrot.slane %v19707_v41, %v25109_v12  ;;  %v19718_v53 = vcombine.low %v18021_v45, %v18542_v34  ;;  %v19689_v37 = vrot.slane %v19682_v33, %v25109_v12  ;;  %s25049_s27 = smov 58  }
 0x4e6   :  { %v19815_v41 = vrot.slane %v19808_v21, %v25109_v12  ;;  %v19826_v45 = vcombine.low %v30460_v28, %v18606_v15  ;;  %v33986_v26 = vcombine.low %v30229_v5, %v30250_v4  ;;  %v33987_v28 = vcombine.low %v30470_v9, %v30684_v18  ;;  %v20486_v15 = vld [vmem:[%s33928_s3 + $0x1e8] sm:$0xff] }
 0x4e7   :  { %19553 = vrot.lane.b32.xlu1 %v19552_v24, %s25016_s28  ;;  %v23648_v24 = vcombine.high %v18045_v11, %v18556_v25  ;;  %v18059_v25 = vrot.slane %v18037_v36, %v25109_v12  ;;  %v19750_v11 = vrot.slane %v19743_v59, %v25109_v12  ;;  %v19725_v52 = vrot.slane %v19718_v53, %v25109_v12  ;;  %s25038_s28 = smov 63  }
 0x4e8   :  { %v19887_v53 = vrot.slane %v33987_v28, %v25109_v12  ;;  %v20467_v28 = vld [vmem:[%s33928_s3 + $0x150] sm:$0xff]  ;;  %v20013_v62 = vrot.slane %v30745_v13, %v25109_v12  ;;  %v20103_v13 = vrot.slane %v20096_v61, %v25109_v12  ;;  %v18715_v61 = vcombine.high %v30766_v14, %v30766_v14 }
 0x4e9   :  { %19643 = vrot.lane.b32.xlu0 %v19642_v50, %s25017_s0  ;;  %v19660_v50 = vrot.slane %v19653_v7, %v25109_v12  ;;  %v19779_v55 = vrot.slane %v23648_v24, %v25109_v12  ;;  %v19754_v43 = vcombine.low %v18059_v25, %v18558_v32  ;;  %v18069_v46 = vcombine.high %v18059_v25, %v18059_v25 }
 0x4ea   :  { %v19732_v20 = vrot.slane %v19725_v52, %v25109_v12  ;;  %v19851_v7 = vrot.slane %v23649_v6, %v25109_v12  ;;  %v19833_v25 = vrot.slane %v19826_v45, %v25109_v12  ;;  %v33988_v52 = vcombine.high %v30470_v9, %v30684_v18  ;;  %v20471_v6 = vld [vmem:[%s33928_s3 + $0x170] sm:$0xff]  ;;  %v20470_v18 = vld [vmem:[%s33928_s3 + $0x168] sm:$0xff]  ;;  %v20484_v45 = vld [vmem:[%s33928_s3 + $0x1d8] sm:$0xff] }
 0x4eb   :  { %19589 = vrot.lane.b32.xlu1 %v19588_v44, %s25018_s29  ;;  %v19696_v44 = vrot.slane %v19689_v37, %v25109_v12  ;;  %v19790_v34 = vcombine.low %v18069_v46, %v18584_v3  ;;  %v19761_v33 = vrot.slane %v19754_v43, %v25109_v12  ;;  %v19894_v3 = vrot.slane %v19887_v53, %v25109_v12  ;;  %s25044_s29 = smov 61  }
 0x4ec   :  { %v19858_v32 = vrot.slane %v19851_v7, %v25109_v12  ;;  %v19923_v46 = vrot.slane %v33988_v52, %v25109_v12  ;;  %v19869_v9 = vrot.slane %v30699_v27, %v25109_v12  ;;  %v19959_v27 = vrot.slane %v19952_v60, %v25109_v12  ;;  %v20464_v52 = vld [vmem:[%s33928_s3 + $0x138] sm:$0xff] }
 0x4ed   :  { %19679 = vrot.lane.b32.xlu0 %v19678_v51, %s25019_s30  ;;  %v19786_v51 = vrot.slane %v19779_v55, %v25109_v12  ;;  %v19797_v36 = vrot.slane %v19790_v34, %v25109_v12  ;;  %v19768_v47 = vrot.slane %v19761_v33, %v25109_v12  ;;  %v20485_v33 = vld [vmem:[%s33928_s3 + $0x1e0] sm:$0xff]  ;;  %s25033_s30 = smov 106   ;;  %v19941_v53 = vrot.slane %v30740_v57, %v25109_v12 }
 0x4ee   :  { %v20139_v14 = vrot.slane %v23653_v29, %v25109_v12  ;;  %v18729_v22 = vrot.slane %v18715_v61, %v25109_v12  ;;  %v20193_v61 = vrot.slane %v30797_v42, %v25109_v12  ;;  %v20499_v42 = vld [vmem:[%s33928_s3 + $0x250] sm:$0xff] }
 0x4ef   :  { %19625 = vrot.lane.b32.xlu1 %v19624_v38, %s25020_s6  ;;  %v19822_v38 = vrot.slane %v19815_v41, %v25109_v12  ;;  %v19804_v4 = vrot.slane %v19797_v36, %v25109_v12  ;;  %v19840_v41 = vrot.slane %v19833_v25, %v25109_v12  ;;  %v19876_v36 = vrot.slane %v19869_v9, %v25109_v12  ;;  %s25050_s6 = smov 59  }
 0x4f0   :  { %v20031_v25 = vrot.slane %v20024_v31, %v25109_v12 }
 0x4f1   :  { %19715 = vrot.lane.b32.xlu0 %v19714_v56, %s25021_s7  ;;  %v18737_v56 = vrot.slane %v33986_v26, %v25109_v12  ;;  %v20468_v26 = vld [vmem:[%s33928_s3 + $0x158] sm:$0xff]  ;;  %s25039_s7 = smov 104  }
 0x4f3   :  { %19661 = vrot.lane.b32.xlu1 %v19660_v50, %s25022_s8  ;;  %v18744_v50 = vrot.slane %v18737_v56, %v25109_v12 }
 0x4f5   :  { %19751 = vrot.lane.b32.xlu0 %v19750_v11, %s25023_s9  ;;  %v20472_v11 = vld [vmem:[%s33928_s3 + $0x178] sm:$0xff]  ;;  %s25045_s9 = smov 102  }
 0x4f7   :  { %19697 = vrot.lane.b32.xlu1 %v19696_v44, %s25024_s10  ;;  %v20487_v44 = vld [vmem:[%s33928_s3 + $0x1f0] sm:$0xff]  ;;  %s25034_s10 = smov 107  }
 0x4f9   :  { %19787 = vrot.lane.b32.xlu0 %v19786_v51, %s25025_s11 }
 0x4fb   :  { %19733 = vrot.lane.b32.xlu1 %v19732_v20, %s25026_s12  ;;  %v19930_v20 = vrot.slane %v19923_v46, %v25109_v12  ;;  %s25040_s12 = smov 105  }
 0x4fd   :  { %19823 = vrot.lane.b32.xlu0 %v19822_v38, %s25027_s13  ;;  %v18762_v24 = vpop.permute.xlu0 %18761  ;;  %v18780_v59 = vpop.permute.xlu1 %18779  ;;  %v20469_v38 = vld [vmem:[%s33928_s3 + $0x160] sm:$0xff]  ;;  %s25051_s13 = smov 100  }
 0x4fe   :  { %v20261_v37 = vsel %vm20260_vm2, %v18762_v24, %v18780_v59  ;;  %v20259_v55 = vsel %vm20258_vm3, %v18744_v50, %v18762_v24  ;;  %v19905_v24 = vrot.slane %v30715_v39, %v25109_v12  ;;  %v19966_v59 = vrot.slane %v19959_v27, %v25109_v12  ;;  %v20483_v39 = vld [vmem:[%s33928_s3 + $0x1d0] sm:$0xff]  ;;  %v20477_v27 = vld [vmem:[%s33928_s3 + $0x1a0] sm:$0xff] }
 0x4ff   :  { %19769 = vrot.lane.b32.xlu1 %v19768_v47, %s25028_s14  ;;  %s25046_s14 = smov 103   ;;  %vm20297_vm2 = vcmask 990208   ;;  %vm20293_vm3 = vcmask 646144  }
 0x501   :  { %19859 = vrot.lane.b32.xlu0 %v19858_v32, %s25029_s15  ;;  %v30937_v5 = vpop.permute.xlu1 %18797  ;;  %v19995_v32 = vrot.slane %v23651_v2, %v25109_v12  ;;  %s25035_s15 = smov 20  }
 0x502   :  { %v20262_v21 = vsel %vm7786_vm0, %v20261_v37, %v30937_v5  ;;  %v19912_v37 = vrot.slane %v19905_v24, %v25109_v12  ;;  %v20049_v24 = vrot.slane %v30758_v63, %v25109_v12  ;;  %v20475_v63 = vld [vmem:[%s33928_s3 + $0x190] sm:$0xff]  ;;  %vm20295_vm0 = vcmask 293888  }
 0x503   :  { %v30946_v43 = vpop.permute.xlu0 %18851  ;;  %19805 = vrot.lane.b32.xlu1 %v19804_v4, %s25030_s18  ;;  %21407 = vmatprep.mubr.f32.mxu1 %v20262_v21  ;;  %v20002_v57 = vrot.slane %v19995_v32, %v25109_v12  ;;  %v20481_v4 = vld [vmem:[%s33928_s3 + $0x1c0] sm:$0xff]  ;;  %v20459_v32 = vld [vmem:[%s33928_s3 + $0x110] sm:$0xff] }
 0x504   :  { %21408 = vmatmul.mubr.f32.vlgmr.msra.gmra.mxu1 %v20259_v55  ;;  %v20465_v21 = vld [vmem:[%s33928_s3 + $0x140] sm:$0xff]  ;;  %v19948_v55 = vrot.slane %v19941_v53, %v25109_v12 }
 0x505   :  { %19895 = vrot.lane.b32.xlu0 %v19894_v3, %s25031_s21  ;;  %23694 = vmatpush3.msra.mxu1 %v20472_v11  ;;  %v30959_v51 = vpop.permute.xlu1 %18815  ;;  %v20480_v3 = vld [vmem:[%s33928_s3 + $0x1b8] sm:$0xff] }
 0x506   :  { %23695 = vmatprep.subr.mxu1 %v20487_v44  ;;  %v19977_v44 = vrot.slane %v30751_v10, %v25109_v12  ;;  %v20067_v10 = vrot.slane %v23652_v16, %v25109_v12 }
 0x507   :  { %v30970_v34 = vpop.permute.xlu0 %18887  ;;  %23696 = vmatpush3.msra.mxu1 %v20471_v6  ;;  %19841 = vrot.lane.b32.xlu1 %v19840_v41, %s25032_s26  ;;  %v20038_v6 = vrot.slane %v20031_v25, %v25109_v12  ;;  %v20479_v41 = vld [vmem:[%s33928_s3 + $0x1b0] sm:$0xff]  ;;  %v20473_v25 = vld [vmem:[%s33928_s3 + $0x180] sm:$0xff] }
 0x508   :  { %23697 = vmatprep.subr.mxu1 %v20486_v15  ;;  %v20463_v15 = vld [vmem:[%s33928_s3 + $0x130] sm:$0xff] }
 0x509   :  { %19931 = vrot.lane.b32.xlu0 %v19930_v20, %s25033_s30  ;;  %23698 = vmatpush3.msra.mxu1 %v20470_v18  ;;  %v18834_v7 = vpop.permute.xlu1 %18833  ;;  %v19984_v18 = vrot.slane %v19977_v44, %v25109_v12  ;;  %v20478_v20 = vld [vmem:[%s33928_s3 + $0x1a8] sm:$0xff]  ;;  %v20121_v44 = vrot.slane %v30792_v54, %v25109_v12  ;;  %v20211_v54 = vrot.slane %v23654_v58, %v25109_v12 }
 0x50a   :  { %23699 = vmatprep.subr.mxu1 %v20485_v33  ;;  %v20266_v60 = vsel %vm20265_vm4, %v30959_v51, %v18834_v7  ;;  %v20074_v33 = vrot.slane %v20067_v10, %v25109_v12  ;;  %v20264_v10 = vsel %vm20263_vm12, %v30937_v5, %v30959_v51  ;;  %v20503_v51 = vld [vmem:[%s33928_s3 + $0x270] sm:$0xff]  ;;  %vm20301_vm4 = vcmask 285696  }
 0x50b   :  { %v30993_v56 = vpop.permute.xlu0 %18923  ;;  %23700 = vmatpush3.msra.mxu1 %v20469_v38  ;;  %19877 = vrot.lane.b32.xlu1 %v19876_v36, %s25034_s10  ;;  %v20268_v47 = vsel %vm20267_vm5, %v20266_v60, %v30946_v43  ;;  %v20461_v38 = vld [vmem:[%s33928_s3 + $0x120] sm:$0xff]  ;;  %v20020_v36 = vrot.slane %v20013_v62, %v25109_v12  ;;  %v20128_v58 = vrot.slane %v20121_v44, %v25109_v12  ;;  %v20502_v62 = vld [vmem:[%s33928_s3 + $0x268] sm:$0xff]  ;;  %vm20303_vm5 = vcmask 982016  }
 0x50c   :  { %23701 = vmatprep.subr.mxu1 %v20484_v45  ;;  %21477 = vmatprep.mubr.f32.mxu1 %v20268_v47  ;;  %v20476_v45 = vld [vmem:[%s33928_s3 + $0x198] sm:$0xff]  ;;  %vm20277_vm12 = vcmask 318464  }
 0x50d   :  { %19967 = vrot.lane.b32.xlu0 %v19966_v59, %s25035_s15  ;;  %23702 = vmatpush3.msra.mxu1 %v20468_v26  ;;  %v31010_v50 = vpop.permute.xlu1 %18869  ;;  %v20460_v59 = vld [vmem:[%s33928_s3 + $0x118] sm:$0xff]  ;;  %s25053_s15 = smov 15  }
 0x50e   :  { %23703 = vmatprep.subr.mxu1 %v20483_v39  ;;  %v20110_v39 = vrot.slane %v20103_v13, %v25109_v12  ;;  %v20272_v5 = vsel %vm20271_vm14, %v31010_v50, %v30970_v34  ;;  %v20157_v34 = vrot.slane %v30783_v8, %v25109_v12  ;;  %v20517_v8 = vld [vmem:[%s33928_s3 + $0x2e0] sm:$0xff]  ;;  %vm20325_vm14 = vcmask 252928  }
 0x50f   :  { %v31019_v2 = vpop.permute.xlu0 %18959  ;;  %23704 = vmatpush3.msra.mxu1 %v20467_v28  ;;  %19913 = vrot.lane.b32.xlu1 %v19912_v37, %s25036_s2  ;;  %v20085_v28 = vrot.slane %v30774_v49, %v25109_v12  ;;  %v20056_v37 = vrot.slane %v20049_v24, %v25109_v12  ;;  %v20458_v49 = vld [vmem:[%s33928_s3 + $0x108] sm:$0xff]  ;;  %v20500_v24 = vld [vmem:[%s33928_s3 + $0x258] sm:$0xff] }
 0x510   :  { %23705 = vmatprep.subr.mxu1 %v20482_v0  ;;  %v20175_v0 = vrot.slane %v20168_v17, %v25109_v12 }
 0x511   :  { %20003 = vrot.lane.b32.xlu0 %v20002_v57, %s25037_s23  ;;  %23706 = vmatpush3.msra.mxu1 %v20466_v19  ;;  %v31032_v11 = vpop.permute.xlu1 %18905 }
 0x512   :  { %23707 = vmatprep.subr.mxu1 %v20481_v4  ;;  %v31042_v31 = vsel %vm20275_vm6, %v31032_v11, %v30993_v56  ;;  %v20146_v4 = vrot.slane %v20139_v14, %v25109_v12  ;;  %v20274_v35 = vsel %vm20273_vm15, %v20272_v5, %v31032_v11  ;;  %vm20311_vm6 = vcmask 621568   ;;  %v20495_v5 = vld [vmem:[%s33928_s3 + $0x230] sm:$0xff] }
 0x513   :  { %v18996_v46 = vpop.permute.xlu0 %18995  ;;  %23708 = vmatpush3.msra.mxu1 %v20465_v21  ;;  %19949 = vrot.lane.b32.xlu1 %v19948_v55, %s25038_s28  ;;  %v20457_v21 = vld [vmem:[%s33928_s3 + $0x100] sm:$0xff]  ;;  %v20092_v55 = vrot.slane %v20085_v28, %v25109_v12  ;;  %vm20279_vm15 = vcmask 1014784  }
 0x514   :  { %23709 = vmatprep.subr.mxu1 %v20480_v3  ;;  %v20520_v3 = vld [vmem:[%s33928_s3 + $0x2f8] sm:$0xff] }
 0x515   :  { %20039 = vrot.lane.b32.xlu0 %v20038_v6, %s25039_s7  ;;  %23710 = vmatpush3.msra.mxu1 %v20464_v52  ;;  %v31058_v9 = vpop.permute.xlu1 %18941  ;;  %v20240_v52 = vcombine.low %v30235_v23, %v18729_v22  ;;  %v20182_v6 = vrot.slane %v20175_v0, %v25109_v12  ;;  %v20519_v23 = vld [vmem:[%s33928_s3 + $0x2f0] sm:$0xff]  ;;  %v20229_v22 = vrot.slane %v30820_v30, %v25109_v12  ;;  %v20710_v0 = vld [vmem:[%s33928_s3 + $0x8e8] sm:$0xff] }
 0x516   :  { %23711 = vmatprep.subr.mxu1 %v20479_v41  ;;  %v20504_v41 = vld [vmem:[%s33928_s3 + $0x278] sm:$0xff]  ;;  %v20694_v30 = vld [vmem:[%s33928_s3 + $0x868] sm:$0xff] }
 0x517   :  { %v31069_v16 = vpop.permute.xlu0 %19031  ;;  %23712 = vmatpush3.msra.mxu1 %v20463_v15  ;;  %19985 = vrot.lane.b32.xlu1 %v19984_v18, %s25040_s12 }
 0x518   :  { %23713 = vmatprep.subr.mxu1 %v20478_v20  ;;  %v20518_v20 = vld [vmem:[%s33928_s3 + $0x2e8] sm:$0xff] }
 0x519   :  { %20075 = vrot.lane.b32.xlu0 %v20074_v33, %s25041_s17  ;;  %23714 = vmatpush3.msra.mxu1 %v20462_v1  ;;  %v18978_v7 = vpop.permute.xlu1 %18977  ;;  %v20247_v1 = vrot.slane %v20240_v52, %v25109_v12  ;;  %v20501_v33 = vld [vmem:[%s33928_s3 + $0x260] sm:$0xff]  ;;  %v20236_v52 = vrot.slane %v20229_v22, %v25109_v12 }
 0x51a   :  { %23715 = vmatprep.subr.mxu1 %v20477_v27  ;;  %v31091_v60 = vsel %vm20281_vm7, %v31019_v2, %v18978_v7  ;;  %v20284_v26 = vsel %vm20283_vm8, %v18978_v7, %v18996_v46  ;;  %v20516_v7 = vld [vmem:[%s33928_s3 + $0x2d8] sm:$0xff]  ;;  %vm20307_vm7 = vcmask 277504   ;;  %vm20309_vm8 = vcmask 973824   ;;  %v20505_v22 = vld [vmem:[%s33928_s3 + $0x280] sm:$0xff] }
 0x51b   :  { %v31096_v47 = vpop.permute.xlu0 %19067  ;;  %23716 = vmatpush3.msra.mxu1 %v20461_v38  ;;  %20021 = vrot.lane.b32.xlu1 %v20020_v36, %s25042_s20  ;;  %v20164_v38 = vrot.slane %v20157_v34, %v25109_v12 }
 0x51c   :  { %23717 = vmatprep.subr.mxu1 %v20476_v45 }
 0x51d   :  { %20111 = vrot.lane.b32.xlu0 %v20110_v39, %s25043_s25  ;;  %23718 = vmatpush3.msra.mxu1 %v20460_v59  ;;  %v19014_v53 = vpop.permute.xlu1 %19013  ;;  %v20254_v59 = vrot.slane %v20247_v1, %v25109_v12  ;;  %v20515_v39 = vld [vmem:[%s33928_s3 + $0x2d0] sm:$0xff]  ;;  %v20690_v1 = vld [vmem:[%s33928_s3 + $0x848] sm:$0xff] }
 0x51e   :  { %23719 = vmatprep.subr.mxu1 %v20475_v63  ;;  %v31117_v29 = vsel %vm20287_vm9, %v19014_v53, %v31069_v16  ;;  %v31126_v19 = vsel %vm20285_vm10, %v20284_v26, %v19014_v53  ;;  %v20696_v63 = vld [vmem:[%s33928_s3 + $0x878] sm:$0xff]  ;;  %vm20313_vm9 = vcmask 269312   ;;  %vm20315_vm10 = vcmask 965632  }
 0x51f   :  { %v19104_v57 = vpop.permute.xlu0 %19103  ;;  %23720 = vmatpush3.msra.mxu1 %v20459_v32  ;;  %20057 = vrot.lane.b32.xlu1 %v20056_v37, %s25044_s29  ;;  %v20711_v32 = vld [vmem:[%s33928_s3 + $0x8f0] sm:$0xff] }
 0x520   :  { %23721 = vmatprep.subr.mxu1 %v20474_v48  ;;  %v20695_v37 = vld [vmem:[%s33928_s3 + $0x870] sm:$0xff]  ;;  %v20200_v48 = vrot.slane %v20193_v61, %v25109_v12  ;;  %v20704_v61 = vld [vmem:[%s33928_s3 + $0x8b8] sm:$0xff] }
 0x521   :  { %20147 = vrot.lane.b32.xlu0 %v20146_v4, %s25045_s9  ;;  %23722 = vmatpush3.msra.mxu1 %v20458_v49  ;;  %v19050_v17 = vpop.permute.xlu1 %19049 }
 0x522   :  { %23723 = vmatprep.subr.mxu1 %v20473_v25  ;;  %v20290_v46 = vsel %vm20289_vm11, %v31069_v16, %v19050_v17  ;;  %v20218_v16 = vrot.slane %v20211_v54, %v25109_v12  ;;  %v20513_v25 = vld [vmem:[%s33928_s3 + $0x2c0] sm:$0xff]  ;;  %v20692_v12 = vld [vmem:[%s33928_s3 + $0x858] sm:$0xff]  ;;  %vm20323_vm11 = vcmask 605184  }
 0x523   :  { %v31150_v15 = vpop.permute.xlu0 %19139  ;;  %23724 = vmatpush3.msra.mxu1 %v20457_v21  ;;  %20093 = vrot.lane.b32.xlu1 %v20092_v55, %s25046_s14  ;;  %v31161_v18 = vsel %vm20291_vm13, %v20290_v46, %v31096_v47  ;;  %v20709_v21 = vld [vmem:[%s33928_s3 + $0x8e0] sm:$0xff]  ;;  %v20512_v46 = vld [vmem:[%s33928_s3 + $0x2b8] sm:$0xff]  ;;  %vm20269_vm13 = vcmask 678912  }
 0x524   :  { %21478 = vmatmul.mubr.f32.vlgmr.msra.gmra.mxu1 %v20264_v10  ;;  %23728 = vmatprep.subr.mxu1 %v20520_v3  ;;  %v20497_v55 = vld [vmem:[%s33928_s3 + $0x240] sm:$0xff]  ;;  %v20511_v10 = vld [vmem:[%s33928_s3 + $0x2b0] sm:$0xff] }
 0x525   :  { %20183 = vrot.lane.b32.xlu0 %v20182_v6, %s25047_s19  ;;  %23729 = vmatpush3.msra.mxu1 %v20504_v41  ;;  %v19086_v40 = vpop.permute.xlu1 %19085  ;;  %v20693_v3 = vld [vmem:[%s33928_s3 + $0x860] sm:$0xff]  ;;  %v20708_v6 = vld [vmem:[%s33928_s3 + $0x8d8] sm:$0xff] }
 0x526   :  { %21547 = vmatprep.mubr.f32.mxu1 %v20274_v35  ;;  %23730 = vmatprep.subr.mxu1 %v20519_v23  ;;  %v20296_v27 = vsel %vm20295_vm0, %v19086_v40, %v19104_v57  ;;  %v20294_v14 = vsel %vm20293_vm3, %v31096_v47, %v19086_v40  ;;  %v20514_v47 = vld [vmem:[%s33928_s3 + $0x2c8] sm:$0xff]  ;;  %v20496_v41 = vld [vmem:[%s33928_s3 + $0x238] sm:$0xff]  ;;  %vm20327_vm0 = vcmask 949248   ;;  %vm20319_vm3 = vcmask 261120  }
 0x527   :  { %v31181_v11 = vpop.permute.xlu0 %19175  ;;  %23731 = vmatpush3.msra.mxu1 %v20503_v51  ;;  %20129 = vrot.lane.b32.xlu1 %v20128_v58, %s25048_s22  ;;  %v20498_v57 = vld [vmem:[%s33928_s3 + $0x248] sm:$0xff]  ;;  %s25052_s22 = smov 101   ;;  %v20691_v51 = vld [vmem:[%s33928_s3 + $0x850] sm:$0xff] }
 0x528   :  { %23732 = vmatprep.subr.mxu1 %v20518_v20  ;;  %v20510_v58 = vld [vmem:[%s33928_s3 + $0x2a8] sm:$0xff] }
 0x529   :  { %20219 = vrot.lane.b32.xlu0 %v20218_v16, %s25049_s27  ;;  %23733 = vmatpush3.msra.mxu1 %v20502_v62  ;;  %v19122_v13 = vpop.permute.xlu1 %19121  ;;  %v20706_v20 = vld [vmem:[%s33928_s3 + $0x8c8] sm:$0xff]  ;;  %v20509_v16 = vld [vmem:[%s33928_s3 + $0x2a0] sm:$0xff] }
 0x52a   :  { %23734 = vmatprep.subr.mxu1 %v20517_v8  ;;  %v31195_v36 = vsel %vm20299_vm1, %v19122_v13, %v31150_v15  ;;  %v20298_v45 = vsel %vm20297_vm2, %v20296_v27, %v19122_v13  ;;  %v20494_v62 = vld [vmem:[%s33928_s3 + $0x228] sm:$0xff]  ;;  %v20493_v13 = vld [vmem:[%s33928_s3 + $0x220] sm:$0xff]  ;;  %vm20335_vm1 = vcmask 588800   ;;  %vm20305_vm2 = vcmask 629760  }
 0x52b   :  { %v31202_v26 = vpop.permute.xlu0 %19211  ;;  %23735 = vmatpush3.msra.mxu1 %v20501_v33  ;;  %20165 = vrot.lane.b32.xlu1 %v20164_v38, %s25050_s6  ;;  %v20705_v33 = vld [vmem:[%s33928_s3 + $0x8c0] sm:$0xff] }
 0x52c   :  { %23736 = vmatprep.subr.mxu1 %v20516_v7  ;;  %21827 = vmatprep.mubr.f32.mxu0 %v20298_v45  ;;  %v20689_v7 = vld [vmem:[%s33928_s3 + $0x840] sm:$0xff]  ;;  %v20508_v45 = vld [vmem:[%s33928_s3 + $0x298] sm:$0xff] }
 0x52d   :  { %20255 = vrot.lane.b32.xlu0 %v20254_v59, %s25051_s13  ;;  %23737 = vmatpush3.msra.mxu1 %v20500_v24  ;;  %v19158_v28 = vpop.permute.xlu1 %19157  ;;  %v20688_v59 = vld [vmem:[%s33928_s3 + $0x838] sm:$0xff] }
 0x52e   :  { %21828 = vmatmul.mubr.f32.vlgmr.msra.gmra.mxu0 %v20294_v14  ;;  %23738 = vmatprep.subr.mxu1 %v20515_v39  ;;  %v20302_v53 = vsel %vm20301_vm4, %v31150_v15, %v19158_v28  ;;  %v20707_v15 = vld [vmem:[%s33928_s3 + $0x8d0] sm:$0xff]  ;;  %vm20321_vm4 = vcmask 957440  }
 0x52f   :  { %23939 = vmatpush3.msra.mxu0 %v20696_v63  ;;  %v31229_v49 = vpop.permute.xlu0 %19247  ;;  %23739 = vmatpush3.msra.mxu1 %v20499_v42  ;;  %v31239_v4 = vsel %vm20303_vm5, %v20302_v53, %v31181_v11  ;;  %v20507_v39 = vld [vmem:[%s33928_s3 + $0x290] sm:$0xff]  ;;  %v20506_v53 = vld [vmem:[%s33928_s3 + $0x288] sm:$0xff]  ;;  %vm20337_vm5 = vcmask 236544  }
 0x530   :  { %23940 = vmatprep.subr.mxu0 %v20711_v32  ;;  %20201 = vrot.lane.b32.xlu1 %v20200_v48, %s25052_s22  ;;  %v20703_v42 = vld [vmem:[%s33928_s3 + $0x8b0] sm:$0xff]  ;;  %v20490_v48 = vld [vmem:[%s33928_s3 + $0x208] sm:$0xff] }
 0x531   :  { %23941 = vmatpush3.msra.mxu0 %v20695_v37  ;;  %23740 = vmatprep.subr.mxu1 %v20514_v47  ;;  %v31250_v17 = vpop.permute.xlu1 %19193  ;;  %v20491_v14 = vld [vmem:[%s33928_s3 + $0x210] sm:$0xff]  ;;  %v20702_v37 = vld [vmem:[%s33928_s3 + $0x8a8] sm:$0xff] }
 0x532   :  { %23942 = vmatprep.subr.mxu0 %v20710_v0  ;;  %23741 = vmatpush3.msra.mxu1 %v20498_v57  ;;  %v20308_v35 = vsel %vm20307_vm7, %v31250_v17, %v31202_v26  ;;  %v20492_v26 = vld [vmem:[%s33928_s3 + $0x218] sm:$0xff]  ;;  %v20687_v28 = vld [vmem:[%s33928_s3 + $0x830] sm:$0xff]  ;;  %v20686_v47 = vld [vmem:[%s33928_s3 + $0x828] sm:$0xff]  ;;  %vm20347_vm7 = vcmask 572416  }
 0x533   :  { %23943 = vmatpush3.msra.mxu0 %v20694_v30  ;;  %v31258_v44 = vpop.permute.xlu0 %19283  ;;  %23742 = vmatprep.subr.mxu1 %v20513_v25  ;;  %v20701_v0 = vld [vmem:[%s33928_s3 + $0x8a0] sm:$0xff] }
 0x534   :  { %23944 = vmatprep.subr.mxu0 %v20709_v21  ;;  %23743 = vmatpush3.msra.mxu1 %v20497_v55  ;;  %v20489_v30 = vld [vmem:[%s33928_s3 + $0x200] sm:$0xff]  ;;  %v20278_v55 = vsel %vm20277_vm12, %v30993_v56, %v31058_v9  ;;  %v20536_v56 = vld [vmem:[%s33928_s3 + $0x378] sm:$0xff]  ;;  %vm20363_vm12 = vcmask 900096  }
 0x535   :  { %23945 = vmatpush3.msra.mxu0 %v20693_v3  ;;  %20237 = vrot.lane.b32.xlu1 %v20236_v52, %s25053_s15  ;;  %v19230_v23 = vpop.permute.xlu1 %19229  ;;  %v20685_v21 = vld [vmem:[%s33928_s3 + $0x820] sm:$0xff]  ;;  %v20552_v3 = vld [vmem:[%s33928_s3 + $0x3f8] sm:$0xff] }
 0x536   :  { %23744 = vmatprep.subr.mxu1 %v20512_v46  ;;  %23946 = vmatprep.subr.mxu0 %v20708_v6  ;;  %v31280_v54 = vsel %vm20311_vm6, %v19230_v23, %v31229_v49  ;;  %v20310_v34 = vsel %vm20309_vm8, %v20308_v35, %v19230_v23  ;;  %v20700_v52 = vld [vmem:[%s33928_s3 + $0x898] sm:$0xff]  ;;  %v20270_v46 = vsel %vm20269_vm13, %v30946_v43, %v31010_v50  ;;  %v20534_v35 = vld [vmem:[%s33928_s3 + $0x368] sm:$0xff]  ;;  %vm20339_vm6 = vcmask 932864  }
 0x537   :  { %23745 = vmatpush3.msra.mxu1 %v20496_v41  ;;  %23947 = vmatpush3.msra.mxu0 %v20692_v12  ;;  %v31291_v40 = vpop.permute.xlu0 %19319  ;;  %v20684_v6 = vld [vmem:[%s33928_s3 + $0x818] sm:$0xff]  ;;  %v20551_v41 = vld [vmem:[%s33928_s3 + $0x3f0] sm:$0xff]  ;;  %v20280_v43 = vsel %vm20279_vm15, %v20278_v55, %v31019_v2  ;;  %v20550_v2 = vld [vmem:[%s33928_s3 + $0x3e8] sm:$0xff]  ;;  %vm20349_vm8 = vcmask 220160   ;;  %vm20317_vm13 = vcmask 613376   ;;  %vm20371_vm15 = vcmask 539648  }
 0x538   :  { %23746 = vmatprep.subr.mxu1 %v20511_v10  ;;  %23948 = vmatprep.subr.mxu0 %v20707_v15  ;;  %v20699_v10 = vld [vmem:[%s33928_s3 + $0x890] sm:$0xff]  ;;  %v20757_v55 = vld [vmem:[%s33928_s3 + $0xa60] sm:$0xff] }
 0x539   :  { %23747 = vmatpush3.msra.mxu1 %v20495_v5  ;;  %23949 = vmatpush3.msra.mxu0 %v20691_v51  ;;  %v19266_v8 = vpop.permute.xlu1 %19265  ;;  %v20535_v15 = vld [vmem:[%s33928_s3 + $0x370] sm:$0xff]  ;;  %v20698_v51 = vld [vmem:[%s33928_s3 + $0x888] sm:$0xff] }
 0x53a   :  { %23748 = vmatprep.subr.mxu1 %v20510_v58  ;;  %23950 = vmatprep.subr.mxu0 %v20706_v20  ;;  %v20314_v27 = vsel %vm20313_vm9, %v31229_v49, %v19266_v8  ;;  %v20683_v5 = vld [vmem:[%s33928_s3 + $0x810] sm:$0xff]  ;;  %v20682_v20 = vld [vmem:[%s33928_s3 + $0x808] sm:$0xff]  ;;  %v20681_v8 = vld [vmem:[%s33928_s3 + $0x800] sm:$0xff]  ;;  %vm20351_vm9 = vcmask 916480  }
 0x53b   :  { %21967 = vmatprep.mubr.f32.mxu0 %v20310_v34  ;;  %23749 = vmatpush3.msra.mxu1 %v20494_v62  ;;  %v19356_v38 = vpop.permute.xlu0 %19355  ;;  %v31323_v24 = vsel %vm20315_vm10, %v20314_v27, %v31258_v44  ;;  %v20549_v34 = vld [vmem:[%s33928_s3 + $0x3e0] sm:$0xff]  ;;  %v20776_v27 = vld [vmem:[%s33928_s3 + $0xaf8] sm:$0xff]  ;;  %vm20359_vm10 = vcmask 556032  }
 0x53c   :  { %23951 = vmatpush3.msra.mxu0 %v20690_v1  ;;  %23750 = vmatprep.subr.mxu1 %v20509_v16  ;;  %v20697_v1 = vld [vmem:[%s33928_s3 + $0x880] sm:$0xff] }
 0x53d   :  { %23952 = vmatprep.subr.mxu0 %v20705_v33  ;;  %23751 = vmatpush3.msra.mxu1 %v20493_v13  ;;  %v31337_v63 = vpop.permute.xlu1 %19301  ;;  %v20533_v16 = vld [vmem:[%s33928_s3 + $0x360] sm:$0xff]  ;;  %v20548_v33 = vld [vmem:[%s33928_s3 + $0x3d8] sm:$0xff] }
 0x53e   :  { %23953 = vmatpush3.msra.mxu0 %v20689_v7  ;;  %23752 = vmatprep.subr.mxu1 %v20508_v45  ;;  %v20760_v7 = vld [vmem:[%s33928_s3 + $0xa78] sm:$0xff] }
 0x53f   :  { %23954 = vmatprep.subr.mxu0 %v20704_v61  ;;  %23753 = vmatpush3.msra.mxu1 %v20492_v26  ;;  %v31345_v32 = vpop.permute.xlu0 %19391  ;;  %v20306_v61 = vsel %vm20305_vm2, %v31181_v11, %v31250_v17  ;;  %v20531_v11 = vld [vmem:[%s33928_s3 + $0x350] sm:$0xff]  ;;  %vm20375_vm2 = vcmask 883712  }
 0x540   :  { %23955 = vmatpush3.msra.mxu0 %v20688_v59  ;;  %23754 = vmatprep.subr.mxu1 %v20507_v39  ;;  %v20547_v59 = vld [vmem:[%s33928_s3 + $0x3d0] sm:$0xff]  ;;  %v20320_v39 = vsel %vm20319_vm3, %v31337_v63, %v31291_v40  ;;  %vm20383_vm3 = vcmask 523264  }
 0x541   :  { %23956 = vmatprep.subr.mxu0 %v20703_v42  ;;  %23755 = vmatpush3.msra.mxu1 %v20491_v14  ;;  %v31365_v49 = vpop.permute.xlu1 %19337  ;;  %v20775_v42 = vld [vmem:[%s33928_s3 + $0xaf0] sm:$0xff]  ;;  %v20546_v14 = vld [vmem:[%s33928_s3 + $0x3c8] sm:$0xff] }
 0x542   :  { %23957 = vmatpush3.msra.mxu0 %v20687_v28  ;;  %23756 = vmatprep.subr.mxu1 %v20506_v53  ;;  %v31371_v57 = vsel %vm20323_vm11, %v31365_v49, %v19356_v38  ;;  %v20322_v17 = vsel %vm20321_vm4, %v20320_v39, %v31365_v49  ;;  %v20759_v40 = vld [vmem:[%s33928_s3 + $0xa70] sm:$0xff]  ;;  %v20774_v53 = vld [vmem:[%s33928_s3 + $0xae8] sm:$0xff]  ;;  %v20545_v49 = vld [vmem:[%s33928_s3 + $0x3c0] sm:$0xff]  ;;  %vm20361_vm11 = vcmask 203776   ;;  %vm20385_vm4 = vcmask 171008  }
 0x543   :  { %23958 = vmatprep.subr.mxu0 %v20702_v37  ;;  %23757 = vmatpush3.msra.mxu1 %v20490_v48  ;;  %v31376_v25 = vpop.permute.xlu0 %19427  ;;  %v20530_v37 = vld [vmem:[%s33928_s3 + $0x348] sm:$0xff] }
 0x544   :  { %23959 = vmatpush3.msra.mxu0 %v20686_v47  ;;  %23758 = vmatprep.subr.mxu1 %v20505_v22  ;;  %v20758_v47 = vld [vmem:[%s33928_s3 + $0xa68] sm:$0xff] }
 0x545   :  { %23960 = vmatprep.subr.mxu0 %v20701_v0  ;;  %23759 = vmatpush3.msra.mxu1 %v20489_v30  ;;  %v19374_v9 = vpop.permute.xlu1 %19373  ;;  %v20773_v30 = vld [vmem:[%s33928_s3 + $0xae0] sm:$0xff] }
 0x546   :  { %23961 = vmatpush3.msra.mxu0 %v20685_v21  ;;  %21548 = vmatmul.mubr.f32.vlgmr.msra.gmra.mxu1 %v20270_v46  ;;  %v20326_v12 = vsel %vm20325_vm14, %v19356_v38, %v19374_v9  ;;  %v20532_v38 = vld [vmem:[%s33928_s3 + $0x358] sm:$0xff]  ;;  %v20529_v21 = vld [vmem:[%s33928_s3 + $0x340] sm:$0xff]  ;;  %vm20331_vm14 = vcmask 244736  }
 0x547   :  { %23763 = vmatprep.subr.mxu1 %v20552_v3  ;;  %23962 = vmatprep.subr.mxu0 %v20700_v52  ;;  %v19464_v50 = vpop.permute.xlu0 %19463  ;;  %v31412_v23 = vsel %vm20327_vm0, %v20326_v12, %v31345_v32  ;;  %v20544_v3 = vld [vmem:[%s33928_s3 + $0x3b8] sm:$0xff]  ;;  %v20771_v12 = vld [vmem:[%s33928_s3 + $0xad0] sm:$0xff]  ;;  %vm20333_vm0 = vcmask 941056  }
 0x548   :  { %23764 = vmatpush3.msra.mxu1 %v20536_v56  ;;  %21617 = vmatprep.mubr.f32.mxu1 %v20280_v43  ;;  %v20772_v46 = vld [vmem:[%s33928_s3 + $0xad8] sm:$0xff]  ;;  %v20527_v43 = vld [vmem:[%s33928_s3 + $0x330] sm:$0xff] }
 0x549   :  { %23963 = vmatpush3.msra.mxu0 %v20684_v6  ;;  %23765 = vmatprep.subr.mxu1 %v20551_v41  ;;  %v31426_v58 = vpop.permute.xlu1 %19409  ;;  %v20528_v56 = vld [vmem:[%s33928_s3 + $0x338] sm:$0xff]  ;;  %v20543_v41 = vld [vmem:[%s33928_s3 + $0x3b0] sm:$0xff] }
 0x54a   :  { %23964 = vmatprep.subr.mxu0 %v20699_v10  ;;  %23766 = vmatpush3.msra.mxu1 %v20535_v15  ;;  %v20756_v9 = vld [vmem:[%s33928_s3 + $0xa58] sm:$0xff]  ;;  %v20542_v10 = vld [vmem:[%s33928_s3 + $0x3a8] sm:$0xff] }
 0x54b   :  { %23965 = vmatpush3.msra.mxu0 %v20683_v5  ;;  %23767 = vmatprep.subr.mxu1 %v20550_v2  ;;  %v31434_v62 = vpop.permute.xlu0 %19499  ;;  %v20770_v5 = vld [vmem:[%s33928_s3 + $0xac8] sm:$0xff] }
 0x54c   :  { %23966 = vmatprep.subr.mxu0 %v20698_v51  ;;  %23768 = vmatpush3.msra.mxu1 %v20534_v35  ;;  %v20526_v2 = vld [vmem:[%s33928_s3 + $0x328] sm:$0xff] }
 0x54d   :  { %23967 = vmatpush3.msra.mxu0 %v20682_v20  ;;  %23769 = vmatprep.subr.mxu1 %v20549_v34  ;;  %v31451_v13 = vpop.permute.xlu1 %19445  ;;  %v20754_v35 = vld [vmem:[%s33928_s3 + $0xa48] sm:$0xff]  ;;  %v20541_v34 = vld [vmem:[%s33928_s3 + $0x3a0] sm:$0xff] }
 0x54e   :  { %23968 = vmatprep.subr.mxu0 %v20697_v1  ;;  %23770 = vmatpush3.msra.mxu1 %v20533_v16  ;;  %v31461_v45 = vsel %vm20335_vm1, %v31451_v13, %v19464_v50  ;;  %v20769_v1 = vld [vmem:[%s33928_s3 + $0xac0] sm:$0xff]  ;;  %vm20373_vm1 = vcmask 187392  }
 0x54f   :  { %23969 = vmatpush3.msra.mxu0 %v20681_v8  ;;  %23771 = vmatprep.subr.mxu1 %v20548_v33  ;;  %v31466_v26 = vpop.permute.xlu0 %19535  ;;  %v20525_v16 = vld [vmem:[%s33928_s3 + $0x320] sm:$0xff]  ;;  %v20540_v33 = vld [vmem:[%s33928_s3 + $0x398] sm:$0xff] }
 0x550   :  { %21968 = vmatmul.mubr.f32.vlgmr.msra.gmra.mxu0 %v20306_v61  ;;  %24008 = vmatprep.subr.mxu0 %v20776_v27  ;;  %v20753_v8 = vld [vmem:[%s33928_s3 + $0xa40] sm:$0xff] }
 0x551   :  { %23772 = vmatpush3.msra.mxu1 %v20532_v38  ;;  %24009 = vmatpush3.msra.mxu0 %v20760_v7  ;;  %v19482_v28 = vpop.permute.xlu1 %19481  ;;  %v20768_v38 = vld [vmem:[%s33928_s3 + $0xab8] sm:$0xff] }
 0x552   :  { %22107 = vmatprep.mubr.f32.mxu0 %v20322_v17  ;;  %23773 = vmatprep.subr.mxu1 %v20547_v59  ;;  %v20338_v48 = vsel %vm20337_vm5, %v19464_v50, %v19482_v28  ;;  %v20755_v50 = vld [vmem:[%s33928_s3 + $0xa50] sm:$0xff]  ;;  %v20524_v7 = vld [vmem:[%s33928_s3 + $0x318] sm:$0xff]  ;;  %v20538_v28 = vld [vmem:[%s33928_s3 + $0x388] sm:$0xff]  ;;  %vm20387_vm5 = vcmask 867328  }
 0x553   :  { %24010 = vmatprep.subr.mxu0 %v20775_v42  ;;  %23774 = vmatpush3.msra.mxu1 %v20531_v11  ;;  %v19572_v22 = vpop.permute.xlu0 %19571  ;;  %v31503_v0 = vsel %vm20339_vm6, %v20338_v48, %v31434_v62  ;;  %v20752_v59 = vld [vmem:[%s33928_s3 + $0xa38] sm:$0xff]  ;;  %v20539_v42 = vld [vmem:[%s33928_s3 + $0x390] sm:$0xff]  ;;  %v20522_v48 = vld [vmem:[%s33928_s3 + $0x308] sm:$0xff]  ;;  %vm20395_vm6 = vcmask 506880  }
 0x554   :  { %24011 = vmatpush3.msra.mxu0 %v20759_v40  ;;  %23775 = vmatprep.subr.mxu1 %v20546_v14  ;;  %v20767_v17 = vld [vmem:[%s33928_s3 + $0xab0] sm:$0xff] }
 0x555   :  { %24012 = vmatprep.subr.mxu0 %v20774_v53  ;;  %23776 = vmatpush3.msra.mxu1 %v20530_v37  ;;  %v31517_v52 = vpop.permute.xlu1 %19517  ;;  %v20523_v40 = vld [vmem:[%s33928_s3 + $0x310] sm:$0xff]  ;;  %v20766_v37 = vld [vmem:[%s33928_s3 + $0xaa8] sm:$0xff] }
 0x556   :  { %24013 = vmatpush3.msra.mxu0 %v20758_v47  ;;  %23777 = vmatprep.subr.mxu1 %v20545_v49  ;;  %v20751_v14 = vld [vmem:[%s33928_s3 + $0xa30] sm:$0xff]  ;;  %v20750_v47 = vld [vmem:[%s33928_s3 + $0xa28] sm:$0xff]  ;;  %v20537_v49 = vld [vmem:[%s33928_s3 + $0x380] sm:$0xff] }
 0x557   :  { %24014 = vmatprep.subr.mxu0 %v20773_v30  ;;  %23778 = vmatpush3.msra.mxu1 %v20529_v21  ;;  %v31528_v6 = vpop.permute.xlu0 %19607  ;;  %v20765_v30 = vld [vmem:[%s33928_s3 + $0xaa0] sm:$0xff] }
 0x558   :  { %24015 = vmatpush3.msra.mxu0 %v20757_v55  ;;  %23779 = vmatprep.subr.mxu1 %v20544_v3  ;;  %v20521_v21 = vld [vmem:[%s33928_s3 + $0x300] sm:$0xff] }
 0x559   :  { %24016 = vmatprep.subr.mxu0 %v20772_v46  ;;  %23780 = vmatpush3.msra.mxu1 %v20528_v56  ;;  %v31545_v15 = vpop.permute.xlu1 %19553  ;;  %v20749_v55 = vld [vmem:[%s33928_s3 + $0xa20] sm:$0xff]  ;;  %v20584_v46 = vld [vmem:[%s33928_s3 + $0x4f8] sm:$0xff] }
 0x55a   :  { %24017 = vmatpush3.msra.mxu0 %v20756_v9  ;;  %23781 = vmatprep.subr.mxu1 %v20543_v41  ;;  %v31554_v51 = vsel %vm20347_vm7, %v31545_v15, %v19572_v22  ;;  %v20764_v56 = vld [vmem:[%s33928_s3 + $0xa98] sm:$0xff]  ;;  %vm20397_vm7 = vcmask 154624  }
 0x55b   :  { %24018 = vmatprep.subr.mxu0 %v20771_v12  ;;  %23782 = vmatpush3.msra.mxu1 %v20527_v43  ;;  %v31559_v20 = vpop.permute.xlu0 %19643  ;;  %v20568_v41 = vld [vmem:[%s33928_s3 + $0x478] sm:$0xff] }
 0x55c   :  { %24019 = vmatpush3.msra.mxu0 %v20755_v50  ;;  %23783 = vmatprep.subr.mxu1 %v20542_v10  ;;  %v20748_v43 = vld [vmem:[%s33928_s3 + $0xa18] sm:$0xff]  ;;  %v20583_v50 = vld [vmem:[%s33928_s3 + $0x4f0] sm:$0xff] }
 0x55d   :  { %24020 = vmatprep.subr.mxu0 %v20770_v5  ;;  %23784 = vmatpush3.msra.mxu1 %v20526_v2  ;;  %v19590_v27 = vpop.permute.xlu1 %19589  ;;  %v20763_v10 = vld [vmem:[%s33928_s3 + $0xa90] sm:$0xff] }
 0x55e   :  { %24021 = vmatpush3.msra.mxu0 %v20754_v35  ;;  %23785 = vmatprep.subr.mxu1 %v20541_v34  ;;  %v20350_v61 = vsel %vm20349_vm8, %v19572_v22, %v19590_v27  ;;  %v20567_v5 = vld [vmem:[%s33928_s3 + $0x470] sm:$0xff]  ;;  %v20582_v35 = vld [vmem:[%s33928_s3 + $0x4e8] sm:$0xff]  ;;  %v20581_v27 = vld [vmem:[%s33928_s3 + $0x4e0] sm:$0xff]  ;;  %vm20399_vm8 = vcmask 850944  }
 0x55f   :  { %24022 = vmatprep.subr.mxu0 %v20769_v1  ;;  %23786 = vmatpush3.msra.mxu1 %v20525_v16  ;;  %v19680_v39 = vpop.permute.xlu0 %19679  ;;  %v31590_v11 = vsel %vm20351_vm9, %v20350_v61, %v31528_v6  ;;  %v20747_v2 = vld [vmem:[%s33928_s3 + $0xa10] sm:$0xff]  ;;  %v20762_v1 = vld [vmem:[%s33928_s3 + $0xa88] sm:$0xff]  ;;  %vm20329_vm9 = vcmask 596992  }
 0x560   :  { %24023 = vmatpush3.msra.mxu0 %v20753_v8  ;;  %23787 = vmatprep.subr.mxu1 %v20540_v33  ;;  %v20566_v16 = vld [vmem:[%s33928_s3 + $0x468] sm:$0xff] }
 0x561   :  { %24024 = vmatprep.subr.mxu0 %v20768_v38  ;;  %23788 = vmatpush3.msra.mxu1 %v20524_v7  ;;  %v31604_v53 = vpop.permute.xlu1 %19625  ;;  %v20746_v33 = vld [vmem:[%s33928_s3 + $0xa08] sm:$0xff]  ;;  %v20761_v38 = vld [vmem:[%s33928_s3 + $0xa80] sm:$0xff] }
 0x562   :  { %24025 = vmatpush3.msra.mxu0 %v20752_v59  ;;  %23789 = vmatprep.subr.mxu1 %v20539_v42  ;;  %v20565_v7 = vld [vmem:[%s33928_s3 + $0x460] sm:$0xff]  ;;  %v20840_v42 = vld [vmem:[%s33928_s3 + $0xcf8] sm:$0xff] }
 0x563   :  { %24026 = vmatprep.subr.mxu0 %v20767_v17  ;;  %23790 = vmatpush3.msra.mxu1 %v20523_v40  ;;  %v31615_v22 = vpop.permute.xlu0 %19715  ;;  %v20745_v59 = vld [vmem:[%s33928_s3 + $0xa00] sm:$0xff]  ;;  %v20564_v40 = vld [vmem:[%s33928_s3 + $0x458] sm:$0xff] }
 0x564   :  { %24027 = vmatpush3.msra.mxu0 %v20751_v14  ;;  %23791 = vmatprep.subr.mxu1 %v20538_v28  ;;  %v20824_v14 = vld [vmem:[%s33928_s3 + $0xc78] sm:$0xff]  ;;  %v20318_v28 = vsel %vm20317_vm13, %v31258_v44, %v31337_v63  ;;  %v20563_v44 = vld [vmem:[%s33928_s3 + $0x450] sm:$0xff]  ;;  %vm20409_vm13 = vcmask 138240  }
 0x565   :  { %24028 = vmatprep.subr.mxu0 %v20766_v37  ;;  %23792 = vmatpush3.msra.mxu1 %v20522_v48  ;;  %v31629_v3 = vpop.permute.xlu1 %19661  ;;  %v20579_v37 = vld [vmem:[%s33928_s3 + $0x4d0] sm:$0xff] }
 0x566   :  { %24029 = vmatpush3.msra.mxu0 %v20750_v47  ;;  %23793 = vmatprep.subr.mxu1 %v20537_v49  ;;  %v31638_v9 = vsel %vm20359_vm10, %v31629_v3, %v19680_v39  ;;  %v20332_v47 = vsel %vm20331_vm14, %v31426_v58, %v31376_v25  ;;  %v20839_v49 = vld [vmem:[%s33928_s3 + $0xcf0] sm:$0xff]  ;;  %vm20343_vm10 = vcmask 228352   ;;  %vm20411_vm14 = vcmask 834560  }
 0x567   :  { %24030 = vmatprep.subr.mxu0 %v20765_v30  ;;  %23794 = vmatpush3.msra.mxu1 %v20521_v21  ;;  %v31643_v12 = vpop.permute.xlu0 %19751  ;;  %v20334_v30 = vsel %vm20333_vm0, %v20332_v47, %v31451_v13  ;;  %v20823_v25 = vld [vmem:[%s33928_s3 + $0xc70] sm:$0xff]  ;;  %v20578_v21 = vld [vmem:[%s33928_s3 + $0x4c8] sm:$0xff]  ;;  %vm20341_vm0 = vcmask 580608  }
 0x568   :  { %24031 = vmatpush3.msra.mxu0 %v20749_v55  ;;  %21618 = vmatmul.mubr.f32.vlgmr.msra.gmra.mxu1 %v31042_v31  ;;  %v20562_v13 = vld [vmem:[%s33928_s3 + $0x448] sm:$0xff] }
 0x569   :  { %23798 = vmatprep.subr.mxu1 %v20584_v46  ;;  %24032 = vmatprep.subr.mxu0 %v20764_v56  ;;  %v19698_v31 = vpop.permute.xlu1 %19697  ;;  %v20838_v46 = vld [vmem:[%s33928_s3 + $0xce8] sm:$0xff] }
 0x56a   :  { %23799 = vmatpush3.msra.mxu1 %v20568_v41  ;;  %21687 = vmatprep.mubr.f32.mxu1 %v31126_v19  ;;  %v20362_v34 = vsel %vm20361_vm11, %v19680_v39, %v19698_v31  ;;  %v20580_v39 = vld [vmem:[%s33928_s3 + $0x4d8] sm:$0xff]  ;;  %v20822_v56 = vld [vmem:[%s33928_s3 + $0xc68] sm:$0xff]  ;;  %v20577_v41 = vld [vmem:[%s33928_s3 + $0x4c0] sm:$0xff]  ;;  %vm20345_vm11 = vcmask 924672  }
 0x56b   :  { %24033 = vmatpush3.msra.mxu0 %v20748_v43  ;;  %23800 = vmatprep.subr.mxu1 %v20583_v50  ;;  %v19788_v19 = vpop.permute.xlu0 %19787  ;;  %v31673_v8 = vsel %vm20363_vm12, %v20362_v34, %v31615_v22  ;;  %v20837_v50 = vld [vmem:[%s33928_s3 + $0xce0] sm:$0xff]  ;;  %vm20407_vm12 = vcmask 490496  }
 0x56c   :  { %24034 = vmatprep.subr.mxu0 %v20763_v10  ;;  %23801 = vmatpush3.msra.mxu1 %v20567_v5  ;;  %v20561_v10 = vld [vmem:[%s33928_s3 + $0x440] sm:$0xff] }
 0x56d   :  { %24035 = vmatpush3.msra.mxu0 %v20747_v2  ;;  %23802 = vmatprep.subr.mxu1 %v20582_v35  ;;  %v31687_v61 = vpop.permute.xlu1 %19733  ;;  %v20821_v31 = vld [vmem:[%s33928_s3 + $0xc60] sm:$0xff]  ;;  %v20576_v2 = vld [vmem:[%s33928_s3 + $0x4b8] sm:$0xff] }
 0x56e   :  { %24036 = vmatprep.subr.mxu0 %v20762_v1  ;;  %23803 = vmatpush3.msra.mxu1 %v20566_v16  ;;  %v20836_v1 = vld [vmem:[%s33928_s3 + $0xcd8] sm:$0xff] }
 0x56f   :  { %24037 = vmatpush3.msra.mxu0 %v20746_v33  ;;  %23804 = vmatprep.subr.mxu1 %v20581_v27  ;;  %v31698_v17 = vpop.permute.xlu0 %19823  ;;  %v20560_v16 = vld [vmem:[%s33928_s3 + $0x438] sm:$0xff]  ;;  %v20575_v33 = vld [vmem:[%s33928_s3 + $0x4b0] sm:$0xff] }
 0x570   :  { %24038 = vmatprep.subr.mxu0 %v20761_v38  ;;  %23805 = vmatpush3.msra.mxu1 %v20565_v7  ;;  %v20835_v38 = vld [vmem:[%s33928_s3 + $0xcd0] sm:$0xff] }
 0x571   :  { %24039 = vmatpush3.msra.mxu0 %v20745_v59  ;;  %23806 = vmatprep.subr.mxu1 %v20580_v39  ;;  %v31712_v48 = vpop.permute.xlu1 %19769  ;;  %v20559_v7 = vld [vmem:[%s33928_s3 + $0x430] sm:$0xff]  ;;  %v20574_v39 = vld [vmem:[%s33928_s3 + $0x4a8] sm:$0xff] }
 0x572   :  { %22108 = vmatmul.mubr.f32.vlgmr.msra.gmra.mxu0 %v20318_v28  ;;  %24078 = vmatprep.subr.mxu0 %v20840_v42  ;;  %v31725_v63 = vsel %vm20371_vm15, %v31712_v48, %v19788_v19  ;;  %v20819_v59 = vld [vmem:[%s33928_s3 + $0xc50] sm:$0xff]  ;;  %v20818_v28 = vld [vmem:[%s33928_s3 + $0xc48] sm:$0xff]  ;;  %vm20419_vm15 = vcmask 474112  }
 0x573   :  { %23807 = vmatpush3.msra.mxu1 %v20564_v40  ;;  %24079 = vmatpush3.msra.mxu0 %v20824_v14  ;;  %v31734_v55 = vpop.permute.xlu0 %19859  ;;  %v20834_v40 = vld [vmem:[%s33928_s3 + $0xcc8] sm:$0xff] }
 0x574   :  { %22247 = vmatprep.mubr.f32.mxu0 %v20334_v30  ;;  %23808 = vmatprep.subr.mxu1 %v20579_v37  ;;  %v20558_v14 = vld [vmem:[%s33928_s3 + $0x428] sm:$0xff]  ;;  %v20573_v37 = vld [vmem:[%s33928_s3 + $0x4a0] sm:$0xff] }
 0x575   :  { %24080 = vmatprep.subr.mxu0 %v20839_v49  ;;  %23809 = vmatpush3.msra.mxu1 %v20563_v44  ;;  %v19806_v43 = vpop.permute.xlu1 %19805  ;;  %v20833_v49 = vld [vmem:[%s33928_s3 + $0xcc0] sm:$0xff] }
 0x576   :  { %24081 = vmatpush3.msra.mxu0 %v20823_v25  ;;  %23810 = vmatprep.subr.mxu1 %v20578_v21  ;;  %v20374_v5 = vsel %vm20373_vm1, %v19788_v19, %v19806_v43  ;;  %v20820_v19 = vld [vmem:[%s33928_s3 + $0xc58] sm:$0xff]  ;;  %v20557_v44 = vld [vmem:[%s33928_s3 + $0x420] sm:$0xff]  ;;  %v20571_v43 = vld [vmem:[%s33928_s3 + $0x490] sm:$0xff]  ;;  %vm20355_vm1 = vcmask 211968  }
 0x577   :  { %24082 = vmatprep.subr.mxu0 %v20838_v46  ;;  %23811 = vmatpush3.msra.mxu1 %v20562_v13  ;;  %v19896_v35 = vpop.permute.xlu0 %19895  ;;  %v31762_v34 = vsel %vm20375_vm2, %v20374_v5, %v31698_v17  ;;  %v20817_v25 = vld [vmem:[%s33928_s3 + $0xc40] sm:$0xff]  ;;  %v20572_v21 = vld [vmem:[%s33928_s3 + $0x498] sm:$0xff]  ;;  %v20555_v5 = vld [vmem:[%s33928_s3 + $0x410] sm:$0xff]  ;;  %vm20357_vm2 = vcmask 908288  }
 0x578   :  { %24083 = vmatpush3.msra.mxu0 %v20822_v56  ;;  %23812 = vmatprep.subr.mxu1 %v20577_v41  ;;  %v20832_v13 = vld [vmem:[%s33928_s3 + $0xcb8] sm:$0xff] }
 0x579   :  { %24084 = vmatprep.subr.mxu0 %v20837_v50  ;;  %23813 = vmatpush3.msra.mxu1 %v20561_v10  ;;  %v31776_v27 = vpop.permute.xlu1 %19841  ;;  %v20556_v56 = vld [vmem:[%s33928_s3 + $0x418] sm:$0xff]  ;;  %v20831_v10 = vld [vmem:[%s33928_s3 + $0xcb0] sm:$0xff] }
 0x57a   :  { %24085 = vmatpush3.msra.mxu0 %v20821_v31  ;;  %23814 = vmatprep.subr.mxu1 %v20576_v2  ;;  %v20816_v41 = vld [vmem:[%s33928_s3 + $0xc38] sm:$0xff]  ;;  %v20815_v2 = vld [vmem:[%s33928_s3 + $0xc30] sm:$0xff] }
 0x57b   :  { %24086 = vmatprep.subr.mxu0 %v20836_v1  ;;  %23815 = vmatpush3.msra.mxu1 %v20560_v16  ;;  %v31790_v42 = vpop.permute.xlu0 %19931  ;;  %v20570_v1 = vld [vmem:[%s33928_s3 + $0x488] sm:$0xff] }
 0x57c   :  { %24087 = vmatpush3.msra.mxu0 %v20820_v19  ;;  %23816 = vmatprep.subr.mxu1 %v20575_v33  ;;  %v20554_v33 = vld [vmem:[%s33928_s3 + $0x408] sm:$0xff] }
 0x57d   :  { %24088 = vmatprep.subr.mxu0 %v20835_v38  ;;  %23817 = vmatpush3.msra.mxu1 %v20559_v7  ;;  %v31804_v47 = vpop.permute.xlu1 %19877  ;;  %v20814_v38 = vld [vmem:[%s33928_s3 + $0xc28] sm:$0xff]  ;;  %v20569_v7 = vld [vmem:[%s33928_s3 + $0x480] sm:$0xff] }
 0x57e   :  { %24089 = vmatpush3.msra.mxu0 %v20819_v59  ;;  %23818 = vmatprep.subr.mxu1 %v20574_v39  ;;  %v31813_v30 = vsel %vm20383_vm3, %v31804_v47, %v19896_v35  ;;  %v20829_v39 = vld [vmem:[%s33928_s3 + $0xca0] sm:$0xff]  ;;  %vm20353_vm3 = vcmask 564224  }
 0x57f   :  { %24090 = vmatprep.subr.mxu0 %v20834_v40  ;;  %23819 = vmatpush3.msra.mxu1 %v20558_v14  ;;  %v31821_v46 = vpop.permute.xlu0 %19967  ;;  %v20553_v40 = vld [vmem:[%s33928_s3 + $0x400] sm:$0xff] }
 0x580   :  { %24091 = vmatpush3.msra.mxu0 %v20818_v28  ;;  %23820 = vmatprep.subr.mxu1 %v20573_v37  ;;  %v20813_v14 = vld [vmem:[%s33928_s3 + $0xc20] sm:$0xff]  ;;  %v20616_v37 = vld [vmem:[%s33928_s3 + $0x5f8] sm:$0xff] }
 0x581   :  { %24092 = vmatprep.subr.mxu0 %v20833_v49  ;;  %23821 = vmatpush3.msra.mxu1 %v20557_v44  ;;  %v19914_v50 = vpop.permute.xlu1 %19913  ;;  %v20828_v49 = vld [vmem:[%s33928_s3 + $0xc98] sm:$0xff] }
 0x582   :  { %24093 = vmatpush3.msra.mxu0 %v20817_v25  ;;  %23822 = vmatprep.subr.mxu1 %v20572_v21  ;;  %v20386_v31 = vsel %vm20385_vm4, %v19896_v35, %v19914_v50  ;;  %v20830_v35 = vld [vmem:[%s33928_s3 + $0xca8] sm:$0xff]  ;;  %v20600_v44 = vld [vmem:[%s33928_s3 + $0x578] sm:$0xff]  ;;  %v20811_v50 = vld [vmem:[%s33928_s3 + $0xc10] sm:$0xff]  ;;  %vm20367_vm4 = vcmask 195584  }
 0x583   :  { %24094 = vmatprep.subr.mxu0 %v20832_v13  ;;  %23823 = vmatpush3.msra.mxu1 %v20556_v56  ;;  %v20004_v16 = vpop.permute.xlu0 %20003  ;;  %v31849_v19 = vsel %vm20387_vm5, %v20386_v31, %v31790_v42  ;;  %v20812_v21 = vld [vmem:[%s33928_s3 + $0xc18] sm:$0xff]  ;;  %v20615_v13 = vld [vmem:[%s33928_s3 + $0x5f0] sm:$0xff]  ;;  %v20598_v31 = vld [vmem:[%s33928_s3 + $0x568] sm:$0xff]  ;;  %vm20369_vm5 = vcmask 891904  }
 0x584   :  { %24095 = vmatpush3.msra.mxu0 %v20816_v41  ;;  %23824 = vmatprep.subr.mxu1 %v20571_v43  ;;  %v20827_v41 = vld [vmem:[%s33928_s3 + $0xc90] sm:$0xff] }
 0x585   :  { %24096 = vmatprep.subr.mxu0 %v20831_v10  ;;  %23825 = vmatpush3.msra.mxu1 %v20555_v5  ;;  %v31863_v59 = vpop.permute.xlu1 %19949  ;;  %v20614_v10 = vld [vmem:[%s33928_s3 + $0x5e8] sm:$0xff] }
 0x586   :  { %24097 = vmatpush3.msra.mxu0 %v20815_v2  ;;  %23826 = vmatprep.subr.mxu1 %v20570_v1  ;;  %v20826_v5 = vld [vmem:[%s33928_s3 + $0xc88] sm:$0xff]  ;;  %v20613_v1 = vld [vmem:[%s33928_s3 + $0x5e0] sm:$0xff] }
 0x587   :  { %24098 = vmatprep.subr.mxu0 %v20830_v35  ;;  %23827 = vmatpush3.msra.mxu1 %v20554_v33  ;;  %v31874_v28 = vpop.permute.xlu0 %20039  ;;  %v20810_v2 = vld [vmem:[%s33928_s3 + $0xc08] sm:$0xff]  ;;  %v20825_v33 = vld [vmem:[%s33928_s3 + $0xc80] sm:$0xff] }
 0x588   :  { %24099 = vmatpush3.msra.mxu0 %v20814_v38  ;;  %23828 = vmatprep.subr.mxu1 %v20569_v7  ;;  %v20597_v38 = vld [vmem:[%s33928_s3 + $0x560] sm:$0xff] }
 0x589   :  { %24100 = vmatprep.subr.mxu0 %v20829_v39  ;;  %23829 = vmatpush3.msra.mxu1 %v20553_v40  ;;  %v31885_v25 = vpop.permute.xlu1 %19985  ;;  %v20612_v39 = vld [vmem:[%s33928_s3 + $0x5d8] sm:$0xff] }
 0x58a   :  { %24101 = vmatpush3.msra.mxu0 %v20813_v14  ;;  %21688 = vmatmul.mubr.f32.vlgmr.msra.gmra.mxu1 %v31091_v60  ;;  %v31895_v56 = vsel %vm20395_vm6, %v31885_v25, %v20004_v16  ;;  %v20599_v60 = vld [vmem:[%s33928_s3 + $0x570] sm:$0xff]  ;;  %v20904_v14 = vld [vmem:[%s33928_s3 + $0xef8] sm:$0xff]  ;;  %vm20365_vm6 = vcmask 547840  }
 0x58b   :  { %23833 = vmatprep.subr.mxu1 %v20616_v37  ;;  %24102 = vmatprep.subr.mxu0 %v20828_v49  ;;  %v31903_v43 = vpop.permute.xlu0 %20075  ;;  %v20596_v49 = vld [vmem:[%s33928_s3 + $0x558] sm:$0xff] }
 0x58c   :  { %23834 = vmatpush3.msra.mxu1 %v20600_v44  ;;  %21757 = vmatprep.mubr.f32.mxu1 %v31161_v18  ;;  %v20888_v44 = vld [vmem:[%s33928_s3 + $0xe78] sm:$0xff] }
 0x58d   :  { %24103 = vmatpush3.msra.mxu0 %v20812_v21  ;;  %23835 = vmatprep.subr.mxu1 %v20615_v13  ;;  %v20022_v18 = vpop.permute.xlu1 %20021  ;;  %v20330_v21 = vsel %vm20329_vm9, %v31345_v32, %v31426_v58  ;;  %v20611_v13 = vld [vmem:[%s33928_s3 + $0x5d0] sm:$0xff]  ;;  %vm20377_vm9 = vcmask 531456  }
 0x58e   :  { %24104 = vmatprep.subr.mxu0 %v20827_v41  ;;  %23836 = vmatpush3.msra.mxu1 %v20599_v60  ;;  %v20398_v35 = vsel %vm20397_vm7, %v20004_v16, %v20022_v18  ;;  %v20809_v16 = vld [vmem:[%s33928_s3 + $0xc00] sm:$0xff]  ;;  %v20344_v41 = vsel %vm20343_vm10, %v31517_v52, %v31466_v26  ;;  %v20903_v60 = vld [vmem:[%s33928_s3 + $0xef0] sm:$0xff]  ;;  %v20610_v26 = vld [vmem:[%s33928_s3 + $0x5c8] sm:$0xff]  ;;  %vm20379_vm7 = vcmask 179200   ;;  %vm20391_vm10 = vcmask 162816  }
 0x58f   :  { %24105 = vmatpush3.msra.mxu0 %v20811_v50  ;;  %23837 = vmatprep.subr.mxu1 %v20614_v10  ;;  %v31931_v7 = vsel %vm20399_vm8, %v20398_v35, %v31874_v28  ;;  %v20112_v40 = vpop.permute.xlu0 %20111  ;;  %v20595_v32 = vld [vmem:[%s33928_s3 + $0x550] sm:$0xff]  ;;  %v20346_v58 = vsel %vm20345_vm11, %v20344_v41, %v31545_v15  ;;  %v20594_v15 = vld [vmem:[%s33928_s3 + $0x548] sm:$0xff]  ;;  %v20901_v35 = vld [vmem:[%s33928_s3 + $0xee0] sm:$0xff]  ;;  %vm20381_vm8 = vcmask 875520   ;;  %vm20393_vm11 = vcmask 859136  }
 0x590   :  { %24106 = vmatprep.subr.mxu0 %v20826_v5  ;;  %23838 = vmatpush3.msra.mxu1 %v20598_v31  ;;  %v20887_v50 = vld [vmem:[%s33928_s3 + $0xe70] sm:$0xff]  ;;  %v20902_v5 = vld [vmem:[%s33928_s3 + $0xee8] sm:$0xff] }
 0x591   :  { %24107 = vmatpush3.msra.mxu0 %v20810_v2  ;;  %23839 = vmatprep.subr.mxu1 %v20613_v1  ;;  %v31942_v37 = vpop.permute.xlu1 %20057  ;;  %v20886_v2 = vld [vmem:[%s33928_s3 + $0xe68] sm:$0xff]  ;;  %v20609_v1 = vld [vmem:[%s33928_s3 + $0x5c0] sm:$0xff] }
 0x592   :  { %24108 = vmatprep.subr.mxu0 %v20825_v33  ;;  %23840 = vmatpush3.msra.mxu1 %v20597_v38  ;;  %v20593_v33 = vld [vmem:[%s33928_s3 + $0x540] sm:$0xff] }
 0x593   :  { %24109 = vmatpush3.msra.mxu0 %v20809_v16  ;;  %23841 = vmatprep.subr.mxu1 %v20612_v39  ;;  %v31979_v31 = vpop.permute.xlu0 %20147  ;;  %v20885_v38 = vld [vmem:[%s33928_s3 + $0xe60] sm:$0xff]  ;;  %v20608_v16 = vld [vmem:[%s33928_s3 + $0x5b8] sm:$0xff] }
 0x594   :  { %22248 = vmatmul.mubr.f32.vlgmr.msra.gmra.mxu0 %v20330_v21  ;;  %24148 = vmatprep.subr.mxu0 %v20904_v14  ;;  %v20900_v14 = vld [vmem:[%s33928_s3 + $0xed8] sm:$0xff] }
 0x595   :  { %23842 = vmatpush3.msra.mxu1 %v20596_v49  ;;  %24149 = vmatpush3.msra.mxu0 %v20888_v44  ;;  %v31971_v10 = vpop.permute.xlu1 %20093  ;;  %v20592_v49 = vld [vmem:[%s33928_s3 + $0x538] sm:$0xff] }
 0x596   :  { %22387 = vmatprep.mubr.f32.mxu0 %v20346_v58  ;;  %23843 = vmatprep.subr.mxu1 %v20611_v13  ;;  %v31983_v18 = vsel %vm20407_vm12, %v31971_v10, %v20112_v40  ;;  %v20884_v21 = vld [vmem:[%s33928_s3 + $0xe58] sm:$0xff]  ;;  %v20607_v13 = vld [vmem:[%s33928_s3 + $0x5b0] sm:$0xff]  ;;  %vm20389_vm12 = vcmask 515072  }
 0x597   :  { %24150 = vmatprep.subr.mxu0 %v20903_v60  ;;  %23844 = vmatpush3.msra.mxu1 %v20595_v32  ;;  %v32018_v60 = vpop.permute.xlu0 %20183  ;;  %v20591_v32 = vld [vmem:[%s33928_s3 + $0x530] sm:$0xff] }
 0x598   :  { %24151 = vmatpush3.msra.mxu0 %v20887_v50  ;;  %23845 = vmatprep.subr.mxu1 %v20610_v26  ;;  %v20883_v58 = vld [vmem:[%s33928_s3 + $0xe50] sm:$0xff]  ;;  %v20606_v50 = vld [vmem:[%s33928_s3 + $0x5a8] sm:$0xff] }
 0x599   :  { %24152 = vmatprep.subr.mxu0 %v20902_v5  ;;  %23846 = vmatpush3.msra.mxu1 %v20594_v15  ;;  %v20130_v39 = vpop.permute.xlu1 %20129  ;;  %v20898_v5 = vld [vmem:[%s33928_s3 + $0xec8] sm:$0xff] }
 0x59a   :  { %24153 = vmatpush3.msra.mxu0 %v20886_v2  ;;  %23847 = vmatprep.subr.mxu1 %v20609_v1  ;;  %v20410_v44 = vsel %vm20409_vm13, %v20112_v40, %v20130_v39  ;;  %v20899_v40 = vld [vmem:[%s33928_s3 + $0xed0] sm:$0xff]  ;;  %v20590_v15 = vld [vmem:[%s33928_s3 + $0x528] sm:$0xff]  ;;  %v20605_v1 = vld [vmem:[%s33928_s3 + $0x5a0] sm:$0xff]  ;;  %vm20403_vm13 = vcmask 146432  }
 0x59b   :  { %24154 = vmatprep.subr.mxu0 %v20901_v35  ;;  %23848 = vmatpush3.msra.mxu1 %v20593_v33  ;;  %v32016_v41 = vsel %vm20411_vm14, %v20410_v44, %v31979_v31  ;;  %v20882_v2 = vld [vmem:[%s33928_s3 + $0xe48] sm:$0xff]  ;;  %v20897_v35 = vld [vmem:[%s33928_s3 + $0xec0] sm:$0xff]  ;;  %v32058_v39 = vpop.permute.xlu0 %20219  ;;  %vm20405_vm14 = vcmask 842752  }
 0x59c   :  { %24155 = vmatpush3.msra.mxu0 %v20885_v38  ;;  %23849 = vmatprep.subr.mxu1 %v20608_v16  ;;  %v20589_v33 = vld [vmem:[%s33928_s3 + $0x520] sm:$0xff]  ;;  %v20604_v16 = vld [vmem:[%s33928_s3 + $0x598] sm:$0xff] }
 0x59d   :  { %24156 = vmatprep.subr.mxu0 %v20900_v14  ;;  %23850 = vmatpush3.msra.mxu1 %v20592_v49  ;;  %v32032_v26 = vpop.permute.xlu1 %20165  ;;  %v20881_v38 = vld [vmem:[%s33928_s3 + $0xe40] sm:$0xff]  ;;  %v20896_v14 = vld [vmem:[%s33928_s3 + $0xeb8] sm:$0xff] }
 0x59e   :  { %24157 = vmatpush3.msra.mxu0 %v20884_v21  ;;  %23851 = vmatprep.subr.mxu1 %v20607_v13  ;;  %v20588_v49 = vld [vmem:[%s33928_s3 + $0x518] sm:$0xff]  ;;  %v20603_v13 = vld [vmem:[%s33928_s3 + $0x590] sm:$0xff] }
 0x59f   :  { %24158 = vmatprep.subr.mxu0 %v20899_v40  ;;  %23852 = vmatpush3.msra.mxu1 %v20591_v32  ;;  %v20880_v21 = vld [vmem:[%s33928_s3 + $0xe38] sm:$0xff]  ;;  %v20895_v32 = vld [vmem:[%s33928_s3 + $0xeb0] sm:$0xff] }
 0x5a0   :  { %24159 = vmatpush3.msra.mxu0 %v20883_v58  ;;  %23853 = vmatprep.subr.mxu1 %v20606_v50  ;;  %v20587_v58 = vld [vmem:[%s33928_s3 + $0x510] sm:$0xff] }
 0x5a1   :  { %24160 = vmatprep.subr.mxu0 %v20898_v5  ;;  %23854 = vmatpush3.msra.mxu1 %v20590_v15  ;;  %v20879_v50 = vld [vmem:[%s33928_s3 + $0xe30] sm:$0xff]  ;;  %v20602_v5 = vld [vmem:[%s33928_s3 + $0x588] sm:$0xff] }
 0x5a2   :  { %24161 = vmatpush3.msra.mxu0 %v20882_v2  ;;  %23855 = vmatprep.subr.mxu1 %v20605_v1  ;;  %v32066_v44 = vpop.permute.xlu1 %20201  ;;  %v20894_v15 = vld [vmem:[%s33928_s3 + $0xea8] sm:$0xff] }
 0x5a3   :  { %24162 = vmatprep.subr.mxu0 %v20897_v35  ;;  %23856 = vmatpush3.msra.mxu1 %v20589_v33  ;;  %v32076_v40 = vsel %vm20419_vm15, %v32066_v44, %v32058_v39  ;;  %v20586_v2 = vld [vmem:[%s33928_s3 + $0x508] sm:$0xff]  ;;  %v20601_v35 = vld [vmem:[%s33928_s3 + $0x580] sm:$0xff]  ;;  %vm20401_vm15 = vcmask 498688  }
 0x5a4   :  { %24163 = vmatpush3.msra.mxu0 %v20881_v38  ;;  %23857 = vmatprep.subr.mxu1 %v20604_v16  ;;  %v20878_v1 = vld [vmem:[%s33928_s3 + $0xe28] sm:$0xff]  ;;  %v20893_v33 = vld [vmem:[%s33928_s3 + $0xea0] sm:$0xff] }
 0x5a5   :  { %24164 = vmatprep.subr.mxu0 %v20896_v14  ;;  %23858 = vmatpush3.msra.mxu1 %v20588_v49  ;;  %v20585_v38 = vld [vmem:[%s33928_s3 + $0x500] sm:$0xff]  ;;  %v20680_v14 = vld [vmem:[%s33928_s3 + $0x7f8] sm:$0xff] }
 0x5a6   :  { %24165 = vmatpush3.msra.mxu0 %v20880_v21  ;;  %23859 = vmatprep.subr.mxu1 %v20603_v13  ;;  %v20877_v16 = vld [vmem:[%s33928_s3 + $0xe20] sm:$0xff]  ;;  %v20892_v49 = vld [vmem:[%s33928_s3 + $0xe98] sm:$0xff] }
 0x5a7   :  { %24166 = vmatprep.subr.mxu0 %v20895_v32  ;;  %23860 = vmatpush3.msra.mxu1 %v20587_v58  ;;  %v20664_v21 = vld [vmem:[%s33928_s3 + $0x778] sm:$0xff]  ;;  %v20679_v32 = vld [vmem:[%s33928_s3 + $0x7f0] sm:$0xff] }
 0x5a8   :  { %24167 = vmatpush3.msra.mxu0 %v20879_v50  ;;  %23861 = vmatprep.subr.mxu1 %v20602_v5  ;;  %v20876_v13 = vld [vmem:[%s33928_s3 + $0xe18] sm:$0xff]  ;;  %v20891_v58 = vld [vmem:[%s33928_s3 + $0xe90] sm:$0xff]  ;;  %v20678_v5 = vld [vmem:[%s33928_s3 + $0x7e8] sm:$0xff] }
 0x5a9   :  { %24168 = vmatprep.subr.mxu0 %v20894_v15  ;;  %23862 = vmatpush3.msra.mxu1 %v20586_v2  ;;  %v20663_v50 = vld [vmem:[%s33928_s3 + $0x770] sm:$0xff]  ;;  %v20890_v15 = vld [vmem:[%s33928_s3 + $0xe88] sm:$0xff] }
 0x5aa   :  { %24169 = vmatpush3.msra.mxu0 %v20878_v1  ;;  %23863 = vmatprep.subr.mxu1 %v20601_v35  ;;  %v20662_v2 = vld [vmem:[%s33928_s3 + $0x768] sm:$0xff]  ;;  %v20677_v1 = vld [vmem:[%s33928_s3 + $0x7e0] sm:$0xff] }
 0x5ab   :  { %24170 = vmatprep.subr.mxu0 %v20893_v33  ;;  %23864 = vmatpush3.msra.mxu1 %v20585_v38  ;;  %v20889_v35 = vld [vmem:[%s33928_s3 + $0xe80] sm:$0xff] }
 0x5ac   :  { %24171 = vmatpush3.msra.mxu0 %v20877_v16  ;;  %21758 = vmatmul.mubr.f32.vlgmr.msra.gmra.mxu1 %v31117_v29  ;;  %v20875_v29 = vld [vmem:[%s33928_s3 + $0xe10] sm:$0xff]  ;;  %v20661_v33 = vld [vmem:[%s33928_s3 + $0x760] sm:$0xff]  ;;  %v20676_v16 = vld [vmem:[%s33928_s3 + $0x7d8] sm:$0xff] }
 0x5ad   :  { %23903 = vmatprep.subr.mxu1 %v20680_v14  ;;  %24172 = vmatprep.subr.mxu0 %v20892_v49  ;;  %v20873_v38 = vld [vmem:[%s33928_s3 + $0xe00] sm:$0xff]  ;;  %v20968_v14 = vld [vmem:[%s33928_s3 + $0x10f8] sm:$0xff] }
 0x5ae   :  { %23904 = vmatpush3.msra.mxu1 %v20664_v21  ;;  %21897 = vmatprep.mubr.f32.mxu1 %v31239_v4  ;;  %v20874_v4 = vld [vmem:[%s33928_s3 + $0xe08] sm:$0xff]  ;;  %v20660_v49 = vld [vmem:[%s33928_s3 + $0x758] sm:$0xff] }
 0x5af   :  { %24173 = vmatpush3.msra.mxu0 %v20876_v13  ;;  %23905 = vmatprep.subr.mxu1 %v20679_v32  ;;  %v20952_v21 = vld [vmem:[%s33928_s3 + $0x1078] sm:$0xff]  ;;  %v20342_v13 = vsel %vm20341_vm0, %v31434_v62, %v31517_v52  ;;  %v20675_v32 = vld [vmem:[%s33928_s3 + $0x7d0] sm:$0xff]  ;;  %vm20415_vm0 = vcmask 130048  }
 0x5b0   :  { %24174 = vmatprep.subr.mxu0 %v20891_v58  ;;  %23906 = vmatpush3.msra.mxu1 %v20663_v50  ;;  %v20356_v58 = vsel %vm20355_vm1, %v31604_v53, %v31559_v20  ;;  %v20967_v50 = vld [vmem:[%s33928_s3 + $0x10f0] sm:$0xff]  ;;  %v20674_v20 = vld [vmem:[%s33928_s3 + $0x7c8] sm:$0xff]  ;;  %vm20417_vm1 = vcmask 826368  }
 0x5b1   :  { %24175 = vmatpush3.msra.mxu0 %v20875_v29  ;;  %23907 = vmatprep.subr.mxu1 %v20678_v5  ;;  %v20659_v29 = vld [vmem:[%s33928_s3 + $0x750] sm:$0xff]  ;;  %v20358_v62 = vsel %vm20357_vm2, %v20356_v58, %v31629_v3  ;;  %v20966_v5 = vld [vmem:[%s33928_s3 + $0x10e8] sm:$0xff]  ;;  %vm20413_vm2 = vcmask 482304  }
 0x5b2   :  { %24176 = vmatprep.subr.mxu0 %v20890_v15  ;;  %23908 = vmatpush3.msra.mxu1 %v20662_v2  ;;  %v20951_v52 = vld [vmem:[%s33928_s3 + $0x1070] sm:$0xff]  ;;  %v20658_v15 = vld [vmem:[%s33928_s3 + $0x748] sm:$0xff]  ;;  %v20673_v2 = vld [vmem:[%s33928_s3 + $0x7c0] sm:$0xff] }
 0x5b3   :  { %24177 = vmatpush3.msra.mxu0 %v20874_v4  ;;  %23909 = vmatprep.subr.mxu1 %v20677_v1  ;;  %v20950_v3 = vld [vmem:[%s33928_s3 + $0x1068] sm:$0xff]  ;;  %v20965_v4 = vld [vmem:[%s33928_s3 + $0x10e0] sm:$0xff] }
 0x5b4   :  { %24178 = vmatprep.subr.mxu0 %v20889_v35  ;;  %23910 = vmatpush3.msra.mxu1 %v20661_v33  ;;  %v20657_v1 = vld [vmem:[%s33928_s3 + $0x740] sm:$0xff]  ;;  %v20672_v33 = vld [vmem:[%s33928_s3 + $0x7b8] sm:$0xff]  ;;  %v20670_v58 = vld [vmem:[%s33928_s3 + $0x7a8] sm:$0xff] }
 0x5b5   :  { %24179 = vmatpush3.msra.mxu0 %v20873_v38  ;;  %23911 = vmatprep.subr.mxu1 %v20676_v16  ;;  %v20949_v35 = vld [vmem:[%s33928_s3 + $0x1060] sm:$0xff]  ;;  %v20964_v38 = vld [vmem:[%s33928_s3 + $0x10d8] sm:$0xff] }
 0x5b6   :  { %22388 = vmatmul.mubr.f32.vlgmr.msra.gmra.mxu0 %v20342_v13  ;;  %24218 = vmatprep.subr.mxu0 %v20968_v14  ;;  %v20656_v16 = vld [vmem:[%s33928_s3 + $0x738] sm:$0xff]  ;;  %v20655_v13 = vld [vmem:[%s33928_s3 + $0x730] sm:$0xff] }
 0x5b7   :  { %23912 = vmatpush3.msra.mxu1 %v20660_v49  ;;  %24219 = vmatpush3.msra.mxu0 %v20952_v21  ;;  %v20948_v14 = vld [vmem:[%s33928_s3 + $0x1058] sm:$0xff]  ;;  %v20671_v49 = vld [vmem:[%s33928_s3 + $0x7b0] sm:$0xff] }
 0x5b8   :  { %22527 = vmatprep.mubr.f32.mxu0 %v20358_v62  ;;  %23913 = vmatprep.subr.mxu1 %v20675_v32  ;;  %v20963_v21 = vld [vmem:[%s33928_s3 + $0x10d0] sm:$0xff]  ;;  %v20946_v62 = vld [vmem:[%s33928_s3 + $0x1048] sm:$0xff] }
 0x5b9   :  { %24220 = vmatprep.subr.mxu0 %v20967_v50  ;;  %23914 = vmatpush3.msra.mxu1 %v20659_v29  ;;  %v20947_v32 = vld [vmem:[%s33928_s3 + $0x1050] sm:$0xff]  ;;  %v20962_v50 = vld [vmem:[%s33928_s3 + $0x10c8] sm:$0xff] }
 0x5ba   :  { %24221 = vmatpush3.msra.mxu0 %v20951_v52  ;;  %23915 = vmatprep.subr.mxu1 %v20674_v20  ;;  %v20654_v29 = vld [vmem:[%s33928_s3 + $0x728] sm:$0xff]  ;;  %v20669_v52 = vld [vmem:[%s33928_s3 + $0x7a0] sm:$0xff] }
 0x5bb   :  { %24222 = vmatprep.subr.mxu0 %v20966_v5  ;;  %23916 = vmatpush3.msra.mxu1 %v20658_v15  ;;  %v20961_v20 = vld [vmem:[%s33928_s3 + $0x10c0] sm:$0xff] }
 0x5bc   :  { %24223 = vmatpush3.msra.mxu0 %v20950_v3  ;;  %23917 = vmatprep.subr.mxu1 %v20673_v2  ;;  %v20653_v5 = vld [vmem:[%s33928_s3 + $0x720] sm:$0xff]  ;;  %v20668_v3 = vld [vmem:[%s33928_s3 + $0x798] sm:$0xff] }
 0x5bd   :  { %24224 = vmatprep.subr.mxu0 %v20965_v4  ;;  %23918 = vmatpush3.msra.mxu1 %v20657_v1  ;;  %v20945_v15 = vld [vmem:[%s33928_s3 + $0x1040] sm:$0xff]  ;;  %v20960_v2 = vld [vmem:[%s33928_s3 + $0x10b8] sm:$0xff] }
 0x5be   :  { %24225 = vmatpush3.msra.mxu0 %v20949_v35  ;;  %23919 = vmatprep.subr.mxu1 %v20672_v33  ;;  %v20652_v4 = vld [vmem:[%s33928_s3 + $0x718] sm:$0xff]  ;;  %v20667_v35 = vld [vmem:[%s33928_s3 + $0x790] sm:$0xff] }
 0x5bf   :  { %24226 = vmatprep.subr.mxu0 %v20964_v38  ;;  %23920 = vmatpush3.msra.mxu1 %v20656_v16  ;;  %v20944_v1 = vld [vmem:[%s33928_s3 + $0x1038] sm:$0xff]  ;;  %v20959_v33 = vld [vmem:[%s33928_s3 + $0x10b0] sm:$0xff] }
 0x5c0   :  { %24227 = vmatpush3.msra.mxu0 %v20948_v14  ;;  %23921 = vmatprep.subr.mxu1 %v20671_v49  ;;  %v20651_v38 = vld [vmem:[%s33928_s3 + $0x710] sm:$0xff]  ;;  %v20666_v14 = vld [vmem:[%s33928_s3 + $0x788] sm:$0xff] }
 0x5c1   :  { %24228 = vmatprep.subr.mxu0 %v20963_v21  ;;  %23922 = vmatpush3.msra.mxu1 %v20655_v13  ;;  %v20943_v16 = vld [vmem:[%s33928_s3 + $0x1030] sm:$0xff]  ;;  %v20958_v49 = vld [vmem:[%s33928_s3 + $0x10a8] sm:$0xff] }
 0x5c2   :  { %24229 = vmatpush3.msra.mxu0 %v20947_v32  ;;  %23923 = vmatprep.subr.mxu1 %v20670_v58  ;;  %v20650_v21 = vld [vmem:[%s33928_s3 + $0x708] sm:$0xff]  ;;  %v20665_v32 = vld [vmem:[%s33928_s3 + $0x780] sm:$0xff] }
 0x5c3   :  { %24230 = vmatprep.subr.mxu0 %v20962_v50  ;;  %23924 = vmatpush3.msra.mxu1 %v20654_v29  ;;  %v20942_v13 = vld [vmem:[%s33928_s3 + $0x1028] sm:$0xff]  ;;  %v20957_v58 = vld [vmem:[%s33928_s3 + $0x10a0] sm:$0xff] }
 0x5c4   :  { %24231 = vmatpush3.msra.mxu0 %v20946_v62  ;;  %23925 = vmatprep.subr.mxu1 %v20669_v52  ;;  %v20649_v50 = vld [vmem:[%s33928_s3 + $0x700] sm:$0xff]  ;;  %v20744_v62 = vld [vmem:[%s33928_s3 + $0x9f8] sm:$0xff] }
 0x5c5   :  { %24232 = vmatprep.subr.mxu0 %v20961_v20  ;;  %23926 = vmatpush3.msra.mxu1 %v20653_v5  ;;  %v20941_v29 = vld [vmem:[%s33928_s3 + $0x1020] sm:$0xff]  ;;  %v20956_v52 = vld [vmem:[%s33928_s3 + $0x1098] sm:$0xff] }
 0x5c6   :  { %24233 = vmatpush3.msra.mxu0 %v20945_v15  ;;  %23927 = vmatprep.subr.mxu1 %v20668_v3  ;;  %v20728_v20 = vld [vmem:[%s33928_s3 + $0x978] sm:$0xff]  ;;  %v20743_v15 = vld [vmem:[%s33928_s3 + $0x9f0] sm:$0xff] }
 0x5c7   :  { %24234 = vmatprep.subr.mxu0 %v20960_v2  ;;  %23928 = vmatpush3.msra.mxu1 %v20652_v4  ;;  %v20940_v5 = vld [vmem:[%s33928_s3 + $0x1018] sm:$0xff]  ;;  %v20955_v3 = vld [vmem:[%s33928_s3 + $0x1090] sm:$0xff]  ;;  %v20742_v4 = vld [vmem:[%s33928_s3 + $0x9e8] sm:$0xff] }
 0x5c8   :  { %24235 = vmatpush3.msra.mxu0 %v20944_v1  ;;  %23929 = vmatprep.subr.mxu1 %v20667_v35  ;;  %v20727_v2 = vld [vmem:[%s33928_s3 + $0x970] sm:$0xff]  ;;  %v20954_v1 = vld [vmem:[%s33928_s3 + $0x1088] sm:$0xff] }
 0x5c9   :  { %24236 = vmatprep.subr.mxu0 %v20959_v33  ;;  %23930 = vmatpush3.msra.mxu1 %v20651_v38  ;;  %v20726_v35 = vld [vmem:[%s33928_s3 + $0x968] sm:$0xff]  ;;  %v20741_v33 = vld [vmem:[%s33928_s3 + $0x9e0] sm:$0xff] }
 0x5ca   :  { %24237 = vmatpush3.msra.mxu0 %v20943_v16  ;;  %23931 = vmatprep.subr.mxu1 %v20666_v14  ;;  %v20953_v38 = vld [vmem:[%s33928_s3 + $0x1080] sm:$0xff] }
 0x5cb   :  { %24238 = vmatprep.subr.mxu0 %v20958_v49  ;;  %23932 = vmatpush3.msra.mxu1 %v20650_v21  ;;  %v20725_v16 = vld [vmem:[%s33928_s3 + $0x960] sm:$0xff]  ;;  %v20740_v49 = vld [vmem:[%s33928_s3 + $0x9d8] sm:$0xff] }
 0x5cc   :  { %24239 = vmatpush3.msra.mxu0 %v20942_v13  ;;  %23933 = vmatprep.subr.mxu1 %v20665_v32  ;;  %v20937_v14 = vld [vmem:[%s33928_s3 + $0x1000] sm:$0xff]  ;;  %v21032_v21 = vld [vmem:[%s33928_s3 + $0x12f8] sm:$0xff] }
 0x5cd   :  { %24240 = vmatprep.subr.mxu0 %v20957_v58  ;;  %23934 = vmatpush3.msra.mxu1 %v20649_v50  ;;  %v20724_v13 = vld [vmem:[%s33928_s3 + $0x958] sm:$0xff]  ;;  %v20354_v58 = vsel %vm20353_vm3, %v31528_v6, %v31604_v53  ;;  %v20739_v50 = vld [vmem:[%s33928_s3 + $0x9d0] sm:$0xff]  ;;  %vm21339_vm3 = vcmask 1040384  }
 0x5ce   :  { %24241 = vmatpush3.msra.mxu0 %v20941_v29  ;;  %21898 = vmatmul.mubr.f32.vlgmr.msra.gmra.mxu1 %v31195_v36  ;;  %v20939_v36 = vld [vmem:[%s33928_s3 + $0x1010] sm:$0xff]  ;;  %v21016_v32 = vld [vmem:[%s33928_s3 + $0x1278] sm:$0xff]  ;;  %v20368_v29 = vsel %vm20367_vm4, %v31687_v61, %v31643_v12  ;;  %v20738_v12 = vld [vmem:[%s33928_s3 + $0x9c8] sm:$0xff]  ;;  %vm21336_vm4 = vcmask 465920  }
 0x5cf   :  { %23973 = vmatprep.subr.mxu1 %v20744_v62  ;;  %24242 = vmatprep.subr.mxu0 %v20956_v52  ;;  %v21031_v62 = vld [vmem:[%s33928_s3 + $0x12f0] sm:$0xff]  ;;  %v20370_v6 = vsel %vm20369_vm5, %v20368_v29, %v31712_v48  ;;  %v21014_v48 = vld [vmem:[%s33928_s3 + $0x1268] sm:$0xff]  ;;  %v20717_v29 = vld [vmem:[%s33928_s3 + $0x920] sm:$0xff]  ;;  %vm25054_vm5 = vmmov 0  }
 0x5d0   :  { %23974 = vmatpush3.msra.mxu1 %v20728_v20  ;;  %22037 = vmatprep.mubr.f32.mxu1 %v31323_v24  ;;  %v20938_v24 = vld [vmem:[%s33928_s3 + $0x1008] sm:$0xff]  ;;  %v20723_v52 = vld [vmem:[%s33928_s3 + $0x950] sm:$0xff] }
 0x5d1   :  { %24243 = vmatpush3.msra.mxu0 %v20940_v5  ;;  %23975 = vmatprep.subr.mxu1 %v20743_v15  ;;  %v21015_v53 = vld [vmem:[%s33928_s3 + $0x1270] sm:$0xff]  ;;  %v21030_v20 = vld [vmem:[%s33928_s3 + $0x12e8] sm:$0xff]  ;;  %v20737_v15 = vld [vmem:[%s33928_s3 + $0x9c0] sm:$0xff] }
 0x5d2   :  { %24244 = vmatprep.subr.mxu0 %v20955_v3  ;;  %23976 = vmatpush3.msra.mxu1 %v20727_v2  ;;  %v20722_v5 = vld [vmem:[%s33928_s3 + $0x948] sm:$0xff]  ;;  %v21029_v3 = vld [vmem:[%s33928_s3 + $0x12e0] sm:$0xff] }
 0x5d3   :  { %24245 = vmatpush3.msra.mxu0 %v20939_v36  ;;  %23977 = vmatprep.subr.mxu1 %v20742_v4  ;;  %v20721_v2 = vld [vmem:[%s33928_s3 + $0x940] sm:$0xff]  ;;  %v20736_v4 = vld [vmem:[%s33928_s3 + $0x9b8] sm:$0xff] }
 0x5d4   :  { %24246 = vmatprep.subr.mxu0 %v20954_v1  ;;  %23978 = vmatpush3.msra.mxu1 %v20726_v35  ;;  %v21013_v36 = vld [vmem:[%s33928_s3 + $0x1260] sm:$0xff]  ;;  %v21028_v1 = vld [vmem:[%s33928_s3 + $0x12d8] sm:$0xff] }
 0x5d5   :  { %24247 = vmatpush3.msra.mxu0 %v20938_v24  ;;  %23979 = vmatprep.subr.mxu1 %v20741_v33  ;;  %v20720_v35 = vld [vmem:[%s33928_s3 + $0x938] sm:$0xff]  ;;  %v20735_v33 = vld [vmem:[%s33928_s3 + $0x9b0] sm:$0xff] }
 0x5d6   :  { %24248 = vmatprep.subr.mxu0 %v20953_v38  ;;  %23980 = vmatpush3.msra.mxu1 %v20725_v16  ;;  %v21012_v24 = vld [vmem:[%s33928_s3 + $0x1258] sm:$0xff]  ;;  %v21027_v38 = vld [vmem:[%s33928_s3 + $0x12d0] sm:$0xff] }
 0x5d7   :  { %24249 = vmatpush3.msra.mxu0 %v20937_v14  ;;  %23981 = vmatprep.subr.mxu1 %v20740_v49  ;;  %v20719_v16 = vld [vmem:[%s33928_s3 + $0x930] sm:$0xff]  ;;  %v20734_v49 = vld [vmem:[%s33928_s3 + $0x9a8] sm:$0xff] }
 0x5d8   :  { %22528 = vmatmul.mubr.f32.vlgmr.msra.gmra.mxu0 %v20354_v58  ;;  %24288 = vmatprep.subr.mxu0 %v21032_v21  ;;  %v21011_v14 = vld [vmem:[%s33928_s3 + $0x1250] sm:$0xff]  ;;  %v21026_v21 = vld [vmem:[%s33928_s3 + $0x12c8] sm:$0xff]  ;;  %v20733_v58 = vld [vmem:[%s33928_s3 + $0x9a0] sm:$0xff] }
 0x5d9   :  { %23982 = vmatpush3.msra.mxu1 %v20724_v13  ;;  %24289 = vmatpush3.msra.mxu0 %v21016_v32  ;;  %v20718_v13 = vld [vmem:[%s33928_s3 + $0x928] sm:$0xff] }
 0x5da   :  { %22667 = vmatprep.mubr.f32.mxu0 %v20370_v6  ;;  %23983 = vmatprep.subr.mxu1 %v20739_v50  ;;  %v21010_v32 = vld [vmem:[%s33928_s3 + $0x1248] sm:$0xff]  ;;  %v21025_v50 = vld [vmem:[%s33928_s3 + $0x12c0] sm:$0xff]  ;;  %v21024_v6 = vld [vmem:[%s33928_s3 + $0x12b8] sm:$0xff] }
 0x5db   :  { %24290 = vmatprep.subr.mxu0 %v21031_v62  ;;  %23984 = vmatpush3.msra.mxu1 %v20723_v52  ;;  %v21009_v62 = vld [vmem:[%s33928_s3 + $0x1240] sm:$0xff]  ;;  %v20732_v52 = vld [vmem:[%s33928_s3 + $0x998] sm:$0xff] }
 0x5dc   :  { %24291 = vmatpush3.msra.mxu0 %v21015_v53  ;;  %23985 = vmatprep.subr.mxu1 %v20738_v12  ;;  %v20716_v53 = vld [vmem:[%s33928_s3 + $0x918] sm:$0xff] }
 0x5dd   :  { %24292 = vmatprep.subr.mxu0 %v21030_v20  ;;  %23986 = vmatpush3.msra.mxu1 %v20722_v5  ;;  %v21008_v12 = vld [vmem:[%s33928_s3 + $0x1238] sm:$0xff]  ;;  %v20731_v20 = vld [vmem:[%s33928_s3 + $0x990] sm:$0xff] }
 0x5de   :  { %24293 = vmatpush3.msra.mxu0 %v21014_v48  ;;  %23987 = vmatprep.subr.mxu1 %v20737_v15  ;;  %v21023_v5 = vld [vmem:[%s33928_s3 + $0x12b0] sm:$0xff] }
 0x5df   :  { %24294 = vmatprep.subr.mxu0 %v21029_v3  ;;  %23988 = vmatpush3.msra.mxu1 %v20721_v2  ;;  %v20715_v48 = vld [vmem:[%s33928_s3 + $0x910] sm:$0xff]  ;;  %v20730_v3 = vld [vmem:[%s33928_s3 + $0x988] sm:$0xff] }
 0x5e0   :  { %24295 = vmatpush3.msra.mxu0 %v21013_v36  ;;  %23989 = vmatprep.subr.mxu1 %v20736_v4  ;;  %v21007_v15 = vld [vmem:[%s33928_s3 + $0x1230] sm:$0xff]  ;;  %v21022_v2 = vld [vmem:[%s33928_s3 + $0x12a8] sm:$0xff] }
 0x5e1   :  { %24296 = vmatprep.subr.mxu0 %v21028_v1  ;;  %23990 = vmatpush3.msra.mxu1 %v20720_v35  ;;  %v20714_v36 = vld [vmem:[%s33928_s3 + $0x908] sm:$0xff]  ;;  %v20729_v1 = vld [vmem:[%s33928_s3 + $0x980] sm:$0xff] }
 0x5e2   :  { %24297 = vmatpush3.msra.mxu0 %v21012_v24  ;;  %23991 = vmatprep.subr.mxu1 %v20735_v33  ;;  %v21006_v4 = vld [vmem:[%s33928_s3 + $0x1228] sm:$0xff]  ;;  %v21021_v35 = vld [vmem:[%s33928_s3 + $0x12a0] sm:$0xff] }
 0x5e3   :  { %24298 = vmatprep.subr.mxu0 %v21027_v38  ;;  %23992 = vmatpush3.msra.mxu1 %v20719_v16  ;;  %v20713_v24 = vld [vmem:[%s33928_s3 + $0x900] sm:$0xff]  ;;  %v20808_v38 = vld [vmem:[%s33928_s3 + $0xbf8] sm:$0xff] }
 0x5e4   :  { %24299 = vmatpush3.msra.mxu0 %v21011_v14  ;;  %23993 = vmatprep.subr.mxu1 %v20734_v49  ;;  %v21005_v33 = vld [vmem:[%s33928_s3 + $0x1220] sm:$0xff]  ;;  %v21020_v16 = vld [vmem:[%s33928_s3 + $0x1298] sm:$0xff] }
 0x5e5   :  { %24300 = vmatprep.subr.mxu0 %v21026_v21  ;;  %23994 = vmatpush3.msra.mxu1 %v20718_v13  ;;  %v20792_v49 = vld [vmem:[%s33928_s3 + $0xb78] sm:$0xff]  ;;  %v20807_v13 = vld [vmem:[%s33928_s3 + $0xbf0] sm:$0xff] }
 0x5e6   :  { %24301 = vmatpush3.msra.mxu0 %v21010_v32  ;;  %23995 = vmatprep.subr.mxu1 %v20733_v58  ;;  %v21004_v21 = vld [vmem:[%s33928_s3 + $0x1218] sm:$0xff]  ;;  %v21019_v58 = vld [vmem:[%s33928_s3 + $0x1290] sm:$0xff] }
 0x5e7   :  { %24302 = vmatprep.subr.mxu0 %v21025_v50  ;;  %23996 = vmatpush3.msra.mxu1 %v20717_v29  ;;  %v20791_v50 = vld [vmem:[%s33928_s3 + $0xb70] sm:$0xff] }
 0x5e8   :  { %24303 = vmatpush3.msra.mxu0 %v21009_v62  ;;  %23997 = vmatprep.subr.mxu1 %v20732_v52  ;;  %v21003_v29 = vld [vmem:[%s33928_s3 + $0x1210] sm:$0xff]  ;;  %v20806_v62 = vld [vmem:[%s33928_s3 + $0xbe8] sm:$0xff] }
 0x5e9   :  { %24304 = vmatprep.subr.mxu0 %v21024_v6  ;;  %23998 = vmatpush3.msra.mxu1 %v20716_v53  ;;  %v21018_v52 = vld [vmem:[%s33928_s3 + $0x1288] sm:$0xff]  ;;  %v20805_v53 = vld [vmem:[%s33928_s3 + $0xbe0] sm:$0xff] }
 0x5ea   :  { %24305 = vmatpush3.msra.mxu0 %v21008_v12  ;;  %23999 = vmatprep.subr.mxu1 %v20731_v20  ;;  %v20790_v6 = vld [vmem:[%s33928_s3 + $0xb68] sm:$0xff]  ;;  %v21017_v12 = vld [vmem:[%s33928_s3 + $0x1280] sm:$0xff] }
 0x5eb   :  { %24306 = vmatprep.subr.mxu0 %v21023_v5  ;;  %24000 = vmatpush3.msra.mxu1 %v20715_v48  ;;  %v20789_v20 = vld [vmem:[%s33928_s3 + $0xb60] sm:$0xff]  ;;  %v20804_v48 = vld [vmem:[%s33928_s3 + $0xbd8] sm:$0xff] }
 0x5ec   :  { %24307 = vmatpush3.msra.mxu0 %v21007_v15  ;;  %24001 = vmatprep.subr.mxu1 %v20730_v3  ;;  %v21001_v5 = vld [vmem:[%s33928_s3 + $0x1200] sm:$0xff]  ;;  %v21096_v15 = vld [vmem:[%s33928_s3 + $0x14f8] sm:$0xff] }
 0x5ed   :  { %24308 = vmatprep.subr.mxu0 %v21022_v2  ;;  %24002 = vmatpush3.msra.mxu1 %v20714_v36  ;;  %v20788_v3 = vld [vmem:[%s33928_s3 + $0xb58] sm:$0xff]  ;;  %v20366_v36 = vsel %vm20365_vm6, %v31615_v22, %v31687_v61  ;;  %v21079_v61 = vld [vmem:[%s33928_s3 + $0x1470] sm:$0xff]  ;;  %vm20421_vm6 = vcmask 121856  }
 0x5ee   :  { %24309 = vmatpush3.msra.mxu0 %v21006_v4  ;;  %24003 = vmatprep.subr.mxu1 %v20729_v1  ;;  %v23900_v14 = vpop.f32.mrf.mxu0  ;;  %v21080_v2 = vld [vmem:[%s33928_s3 + $0x1478] sm:$0xff]  ;;  %v20803_v4 = vld [vmem:[%s33928_s3 + $0xbd0] sm:$0xff]  ;;  %v20380_v1 = vsel %vm20379_vm7, %v31776_v27, %v31734_v55  ;;  %v20802_v55 = vld [vmem:[%s33928_s3 + $0xbc8] sm:$0xff]  ;;  %vm20423_vm7 = vcmask 818176  }
 0x5ef   :  { %24310 = vmatprep.subr.mxu0 %v21021_v35  ;;  %24004 = vmatpush3.msra.mxu1 %v20713_v24  ;;  %v21095_v35 = vld [vmem:[%s33928_s3 + $0x14f0] sm:$0xff]  ;;  %v20382_v22 = vsel %vm20381_vm8, %v20380_v1, %v31804_v47  ;;  %v21078_v47 = vld [vmem:[%s33928_s3 + $0x1468] sm:$0xff]  ;;  %v21072_v1 = vld [vmem:[%s33928_s3 + $0x1438] sm:$0xff]  ;;  %vm23373_vm8 = vcmask 320512  }
 0x5f0   :  { %24311 = vmatpush3.msra.mxu0 %v21005_v33  ;;  %22038 = vmatmul.mubr.f32.vlgmr.msra.gmra.mxu1 %v31280_v54  ;;  %v23901_v32 = vpop.f32.mrf.mxu0  ;;  %v20787_v24 = vld [vmem:[%s33928_s3 + $0xb50] sm:$0xff]  ;;  %v21094_v33 = vld [vmem:[%s33928_s3 + $0x14e8] sm:$0xff] }
 0x5f1   :  { %24043 = vmatprep.subr.mxu1 %v20808_v38  ;;  %24312 = vmatprep.subr.mxu0 %v21020_v16  ;;  %v32531_v54 = vadd.f32 %v23901_v32, %v23900_v14  ;;  %v20786_v38 = vld [vmem:[%s33928_s3 + $0xb48] sm:$0xff]  ;;  %v20801_v16 = vld [vmem:[%s33928_s3 + $0xbc0] sm:$0xff]  ;;  %v21092_v32 = vld [vmem:[%s33928_s3 + $0x14d8] sm:$0xff] }
 0x5f2   :  { %24044 = vmatpush3.msra.mxu1 %v20792_v49  ;;  %22177 = vmatprep.mubr.f32.mxu1 %v31412_v23  ;;  %v21002_v23 = vld [vmem:[%s33928_s3 + $0x1208] sm:$0xff]  ;;  %v21093_v14 = vld [vmem:[%s33928_s3 + $0x14e0] sm:$0xff] }
 0x5f3   :  { %24313 = vmatpush3.msra.mxu0 %v21004_v21  ;;  %24045 = vmatprep.subr.mxu1 %v20807_v13  ;;  %v20785_v49 = vld [vmem:[%s33928_s3 + $0xb40] sm:$0xff]  ;;  %v20800_v13 = vld [vmem:[%s33928_s3 + $0xbb8] sm:$0xff] }
 0x5f4   :  { %24314 = vmatprep.subr.mxu0 %v21019_v58  ;;  %24046 = vmatpush3.msra.mxu1 %v20791_v50  ;;  %v21077_v21 = vld [vmem:[%s33928_s3 + $0x1460] sm:$0xff]  ;;  %v20784_v58 = vld [vmem:[%s33928_s3 + $0xb38] sm:$0xff] }
 0x5f5   :  { %24315 = vmatpush3.msra.mxu0 %v21003_v29  ;;  %24047 = vmatprep.subr.mxu1 %v20806_v62  ;;  %v21076_v50 = vld [vmem:[%s33928_s3 + $0x1458] sm:$0xff]  ;;  %v20799_v29 = vld [vmem:[%s33928_s3 + $0xbb0] sm:$0xff] }
 0x5f6   :  { %24316 = vmatprep.subr.mxu0 %v21018_v52  ;;  %24048 = vmatpush3.msra.mxu1 %v20790_v6  ;;  %v21091_v62 = vld [vmem:[%s33928_s3 + $0x14d0] sm:$0xff] }
 0x5f7   :  { %24317 = vmatpush3.msra.mxu0 %v21002_v23  ;;  %24049 = vmatprep.subr.mxu1 %v20805_v53  ;;  %v20783_v52 = vld [vmem:[%s33928_s3 + $0xb30] sm:$0xff]  ;;  %v20798_v23 = vld [vmem:[%s33928_s3 + $0xba8] sm:$0xff] }
 0x5f8   :  { %24318 = vmatprep.subr.mxu0 %v21017_v12  ;;  %24050 = vmatpush3.msra.mxu1 %v20789_v20  ;;  %v21075_v6 = vld [vmem:[%s33928_s3 + $0x1450] sm:$0xff]  ;;  %v21090_v53 = vld [vmem:[%s33928_s3 + $0x14c8] sm:$0xff] }
 0x5f9   :  { %24319 = vmatpush3.msra.mxu0 %v21001_v5  ;;  %24051 = vmatprep.subr.mxu1 %v20804_v48  ;;  %v20782_v12 = vld [vmem:[%s33928_s3 + $0xb28] sm:$0xff]  ;;  %v20797_v5 = vld [vmem:[%s33928_s3 + $0xba0] sm:$0xff] }
 0x5fa   :  { %22668 = vmatmul.mubr.f32.vlgmr.msra.gmra.mxu0 %v20366_v36  ;;  %24358 = vmatprep.subr.mxu0 %v21096_v15  ;;  %v21074_v20 = vld [vmem:[%s33928_s3 + $0x1448] sm:$0xff]  ;;  %v21089_v48 = vld [vmem:[%s33928_s3 + $0x14c0] sm:$0xff]  ;;  %v21088_v36 = vld [vmem:[%s33928_s3 + $0x14b8] sm:$0xff] }
 0x5fb   :  { %24052 = vmatpush3.msra.mxu1 %v20788_v3  ;;  %24359 = vmatpush3.msra.mxu0 %v21080_v2  ;;  %v20781_v15 = vld [vmem:[%s33928_s3 + $0xb20] sm:$0xff]  ;;  %v20796_v2 = vld [vmem:[%s33928_s3 + $0xb98] sm:$0xff] }
 0x5fc   :  { %22807 = vmatprep.mubr.f32.mxu0 %v20382_v22  ;;  %24053 = vmatprep.subr.mxu1 %v20803_v4  ;;  %v21073_v3 = vld [vmem:[%s33928_s3 + $0x1440] sm:$0xff]  ;;  %v20780_v4 = vld [vmem:[%s33928_s3 + $0xb18] sm:$0xff]  ;;  %v20779_v22 = vld [vmem:[%s33928_s3 + $0xb10] sm:$0xff] }
 0x5fd   :  { %24360 = vmatprep.subr.mxu0 %v21095_v35  ;;  %24054 = vmatpush3.msra.mxu1 %v20787_v24  ;;  %v20795_v35 = vld [vmem:[%s33928_s3 + $0xb90] sm:$0xff] }
 0x5fe   :  { %24361 = vmatpush3.msra.mxu0 %v21079_v61  ;;  %24055 = vmatprep.subr.mxu1 %v20802_v55  ;;  %v21087_v24 = vld [vmem:[%s33928_s3 + $0x14b0] sm:$0xff]  ;;  %v20794_v55 = vld [vmem:[%s33928_s3 + $0xb88] sm:$0xff] }
 0x5ff   :  { %24362 = vmatprep.subr.mxu0 %v21094_v33  ;;  %24056 = vmatpush3.msra.mxu1 %v20786_v38  ;;  %v21071_v61 = vld [vmem:[%s33928_s3 + $0x1430] sm:$0xff]  ;;  %v21086_v33 = vld [vmem:[%s33928_s3 + $0x14a8] sm:$0xff] }
 0x600   :  { %24363 = vmatpush3.msra.mxu0 %v21078_v47  ;;  %24057 = vmatprep.subr.mxu1 %v20801_v16  ;;  %v20778_v38 = vld [vmem:[%s33928_s3 + $0xb08] sm:$0xff]  ;;  %v20793_v16 = vld [vmem:[%s33928_s3 + $0xb80] sm:$0xff] }
 0x601   :  { %24364 = vmatprep.subr.mxu0 %v21093_v14  ;;  %24058 = vmatpush3.msra.mxu1 %v20785_v49  ;;  %v21070_v47 = vld [vmem:[%s33928_s3 + $0x1428] sm:$0xff]  ;;  %v21085_v14 = vld [vmem:[%s33928_s3 + $0x14a0] sm:$0xff] }
 0x602   :  { %24365 = vmatpush3.msra.mxu0 %v21077_v21  ;;  %24059 = vmatprep.subr.mxu1 %v20800_v13  ;;  %v20777_v49 = vld [vmem:[%s33928_s3 + $0xb00] sm:$0xff]  ;;  %v20872_v13 = vld [vmem:[%s33928_s3 + $0xdf8] sm:$0xff] }
 0x603   :  { %24366 = vmatprep.subr.mxu0 %v21092_v32  ;;  %24060 = vmatpush3.msra.mxu1 %v20784_v58  ;;  %v21069_v21 = vld [vmem:[%s33928_s3 + $0x1420] sm:$0xff]  ;;  %v21084_v32 = vld [vmem:[%s33928_s3 + $0x1498] sm:$0xff] }
 0x604   :  { %24367 = vmatpush3.msra.mxu0 %v21076_v50  ;;  %24061 = vmatprep.subr.mxu1 %v20799_v29  ;;  %v20856_v50 = vld [vmem:[%s33928_s3 + $0xd78] sm:$0xff] }
 0x605   :  { %24368 = vmatprep.subr.mxu0 %v21091_v62  ;;  %24062 = vmatpush3.msra.mxu1 %v20783_v52  ;;  %v21068_v29 = vld [vmem:[%s33928_s3 + $0x1418] sm:$0xff]  ;;  %v20871_v62 = vld [vmem:[%s33928_s3 + $0xdf0] sm:$0xff] }
 0x606   :  { %24369 = vmatpush3.msra.mxu0 %v21075_v6  ;;  %24063 = vmatprep.subr.mxu1 %v20798_v23  ;;  %v21083_v6 = vld [vmem:[%s33928_s3 + $0x1490] sm:$0xff] }
 0x607   :  { %24370 = vmatprep.subr.mxu0 %v21090_v53  ;;  %24064 = vmatpush3.msra.mxu1 %v20782_v12  ;;  %v20855_v23 = vld [vmem:[%s33928_s3 + $0xd70] sm:$0xff]  ;;  %v20870_v12 = vld [vmem:[%s33928_s3 + $0xde8] sm:$0xff] }
 0x608   :  { %24371 = vmatpush3.msra.mxu0 %v21074_v20  ;;  %24065 = vmatprep.subr.mxu1 %v20797_v5  ;;  %v21067_v53 = vld [vmem:[%s33928_s3 + $0x1410] sm:$0xff]  ;;  %v21082_v20 = vld [vmem:[%s33928_s3 + $0x1488] sm:$0xff] }
 0x609   :  { %24372 = vmatprep.subr.mxu0 %v21089_v48  ;;  %24066 = vmatpush3.msra.mxu1 %v20781_v15  ;;  %v20854_v5 = vld [vmem:[%s33928_s3 + $0xd68] sm:$0xff]  ;;  %v20869_v48 = vld [vmem:[%s33928_s3 + $0xde0] sm:$0xff] }
 0x60a   :  { %24373 = vmatpush3.msra.mxu0 %v21073_v3  ;;  %24067 = vmatprep.subr.mxu1 %v20796_v2  ;;  %v21081_v15 = vld [vmem:[%s33928_s3 + $0x1480] sm:$0xff] }
 0x60b   :  { %24374 = vmatprep.subr.mxu0 %v21088_v36  ;;  %24068 = vmatpush3.msra.mxu1 %v20780_v4  ;;  %v20853_v3 = vld [vmem:[%s33928_s3 + $0xd60] sm:$0xff]  ;;  %v20868_v36 = vld [vmem:[%s33928_s3 + $0xdd8] sm:$0xff] }
 0x60c   :  { %24375 = vmatpush3.msra.mxu0 %v21072_v1  ;;  %24069 = vmatprep.subr.mxu1 %v20795_v35  ;;  %v21065_v2 = vld [vmem:[%s33928_s3 + $0x1400] sm:$0xff]  ;;  %v21160_v4 = vld [vmem:[%s33928_s3 + $0x16f8] sm:$0xff] }
 0x60d   :  { %24376 = vmatprep.subr.mxu0 %v21087_v24  ;;  %24070 = vmatpush3.msra.mxu1 %v20779_v22  ;;  %v20852_v1 = vld [vmem:[%s33928_s3 + $0xd58] sm:$0xff]  ;;  %v20378_v24 = vsel %vm20377_vm9, %v31698_v17, %v31776_v27  ;;  %v20867_v22 = vld [vmem:[%s33928_s3 + $0xdd0] sm:$0xff] }
 0x60e   :  { %24377 = vmatpush3.msra.mxu0 %v21071_v61  ;;  %24071 = vmatprep.subr.mxu1 %v20794_v55  ;;  %v21144_v35 = vld [vmem:[%s33928_s3 + $0x1678] sm:$0xff]  ;;  %v20392_v61 = vsel %vm20391_vm10, %v31863_v59, %v31821_v46  ;;  %v21159_v55 = vld [vmem:[%s33928_s3 + $0x16f0] sm:$0xff]  ;;  %v20866_v46 = vld [vmem:[%s33928_s3 + $0xdc8] sm:$0xff] }
 0x60f   :  { %24378 = vmatprep.subr.mxu0 %v21086_v33  ;;  %24072 = vmatpush3.msra.mxu1 %v20778_v38  ;;  %v20851_v33 = vld [vmem:[%s33928_s3 + $0xd50] sm:$0xff]  ;;  %v20394_v17 = vsel %vm20393_vm11, %v20392_v61, %v31885_v25  ;;  %v21158_v38 = vld [vmem:[%s33928_s3 + $0x16e8] sm:$0xff] }
 0x610   :  { %24379 = vmatpush3.msra.mxu0 %v21070_v47  ;;  %24073 = vmatprep.subr.mxu1 %v20793_v16  ;;  %v23970_v58 = vpop.f32.mrf.mxu0  ;;  %v21143_v27 = vld [vmem:[%s33928_s3 + $0x1670] sm:$0xff]  ;;  %v20850_v47 = vld [vmem:[%s33928_s3 + $0xd48] sm:$0xff]  ;;  %v20865_v16 = vld [vmem:[%s33928_s3 + $0xdc0] sm:$0xff] }
 0x611   :  { %24380 = vmatprep.subr.mxu0 %v21085_v14  ;;  %24074 = vmatpush3.msra.mxu1 %v20777_v49  ;;  %v21142_v25 = vld [vmem:[%s33928_s3 + $0x1668] sm:$0xff]  ;;  %v21157_v14 = vld [vmem:[%s33928_s3 + $0x16e0] sm:$0xff] }
 0x612   :  { %24381 = vmatpush3.msra.mxu0 %v21069_v21  ;;  %22178 = vmatmul.mubr.f32.vlgmr.msra.gmra.mxu1 %v31371_v57  ;;  %v23971_v52 = vpop.f32.mrf.mxu0  ;;  %v20849_v49 = vld [vmem:[%s33928_s3 + $0xd40] sm:$0xff]  ;;  %v20858_v61 = vld [vmem:[%s33928_s3 + $0xd88] sm:$0xff] }
 0x613   :  { %24113 = vmatprep.subr.mxu1 %v20872_v13  ;;  %24382 = vmatprep.subr.mxu0 %v21084_v32  ;;  %v32732_v57 = vadd.f32 %v23971_v52, %v23970_v58  ;;  %v21141_v21 = vld [vmem:[%s33928_s3 + $0x1660] sm:$0xff]  ;;  %v20864_v13 = vld [vmem:[%s33928_s3 + $0xdb8] sm:$0xff]  ;;  %v20847_v52 = vld [vmem:[%s33928_s3 + $0xd30] sm:$0xff] }
 0x614   :  { %24114 = vmatpush3.msra.mxu1 %v20856_v50  ;;  %22317 = vmatprep.mubr.f32.mxu1 %v31503_v0  ;;  %v21066_v0 = vld [vmem:[%s33928_s3 + $0x1408] sm:$0xff]  ;;  %v21156_v32 = vld [vmem:[%s33928_s3 + $0x16d8] sm:$0xff] }
 0x615   :  { %24383 = vmatpush3.msra.mxu0 %v21068_v29  ;;  %24115 = vmatprep.subr.mxu1 %v20871_v62  ;;  %v20848_v58 = vld [vmem:[%s33928_s3 + $0xd38] sm:$0xff]  ;;  %v20863_v29 = vld [vmem:[%s33928_s3 + $0xdb0] sm:$0xff] }
 0x616   :  { %24384 = vmatprep.subr.mxu0 %v21083_v6  ;;  %24116 = vmatpush3.msra.mxu1 %v20855_v23  ;;  %v21140_v50 = vld [vmem:[%s33928_s3 + $0x1658] sm:$0xff]  ;;  %v21155_v62 = vld [vmem:[%s33928_s3 + $0x16d0] sm:$0xff]  ;;  %v20862_v23 = vld [vmem:[%s33928_s3 + $0xda8] sm:$0xff] }
 0x617   :  { %24385 = vmatpush3.msra.mxu0 %v21067_v53  ;;  %24117 = vmatprep.subr.mxu1 %v20870_v12  ;;  %v21139_v6 = vld [vmem:[%s33928_s3 + $0x1650] sm:$0xff]  ;;  %v21154_v53 = vld [vmem:[%s33928_s3 + $0x16c8] sm:$0xff] }
 0x618   :  { %24386 = vmatprep.subr.mxu0 %v21082_v20  ;;  %24118 = vmatpush3.msra.mxu1 %v20854_v5  ;;  %v20846_v12 = vld [vmem:[%s33928_s3 + $0xd28] sm:$0xff]  ;;  %v20861_v5 = vld [vmem:[%s33928_s3 + $0xda0] sm:$0xff] }
 0x619   :  { %24387 = vmatpush3.msra.mxu0 %v21066_v0  ;;  %24119 = vmatprep.subr.mxu1 %v20869_v48  ;;  %v21138_v20 = vld [vmem:[%s33928_s3 + $0x1648] sm:$0xff]  ;;  %v21153_v0 = vld [vmem:[%s33928_s3 + $0x16c0] sm:$0xff] }
 0x61a   :  { %24388 = vmatprep.subr.mxu0 %v21081_v15  ;;  %24120 = vmatpush3.msra.mxu1 %v20853_v3  ;;  %v20845_v48 = vld [vmem:[%s33928_s3 + $0xd20] sm:$0xff]  ;;  %v20860_v3 = vld [vmem:[%s33928_s3 + $0xd98] sm:$0xff] }
 0x61b   :  { %24389 = vmatpush3.msra.mxu0 %v21065_v2  ;;  %24121 = vmatprep.subr.mxu1 %v20868_v36  ;;  %v21137_v15 = vld [vmem:[%s33928_s3 + $0x1640] sm:$0xff]  ;;  %v21152_v2 = vld [vmem:[%s33928_s3 + $0x16b8] sm:$0xff] }
 0x61c   :  { %22808 = vmatmul.mubr.f32.vlgmr.msra.gmra.mxu0 %v20378_v24  ;;  %24428 = vmatprep.subr.mxu0 %v21160_v4  ;;  %v20844_v36 = vld [vmem:[%s33928_s3 + $0xd18] sm:$0xff]  ;;  %v20843_v24 = vld [vmem:[%s33928_s3 + $0xd10] sm:$0xff] }
 0x61d   :  { %24122 = vmatpush3.msra.mxu1 %v20852_v1  ;;  %24429 = vmatpush3.msra.mxu0 %v21144_v35  ;;  %v21136_v4 = vld [vmem:[%s33928_s3 + $0x1638] sm:$0xff]  ;;  %v20859_v1 = vld [vmem:[%s33928_s3 + $0xd90] sm:$0xff] }
 0x61e   :  { %22947 = vmatprep.mubr.f32.mxu0 %v20394_v17  ;;  %24123 = vmatprep.subr.mxu1 %v20867_v22  ;;  %v21151_v35 = vld [vmem:[%s33928_s3 + $0x16b0] sm:$0xff]  ;;  %v21134_v17 = vld [vmem:[%s33928_s3 + $0x1628] sm:$0xff] }
 0x61f   :  { %24430 = vmatprep.subr.mxu0 %v21159_v55  ;;  %24124 = vmatpush3.msra.mxu1 %v20851_v33  ;;  %v21135_v22 = vld [vmem:[%s33928_s3 + $0x1630] sm:$0xff]  ;;  %v21150_v55 = vld [vmem:[%s33928_s3 + $0x16a8] sm:$0xff] }
 0x620   :  { %24431 = vmatpush3.msra.mxu0 %v21143_v27  ;;  %24125 = vmatprep.subr.mxu1 %v20866_v46  ;;  %v20842_v33 = vld [vmem:[%s33928_s3 + $0xd08] sm:$0xff]  ;;  %v20857_v27 = vld [vmem:[%s33928_s3 + $0xd80] sm:$0xff] }
 0x621   :  { %24432 = vmatprep.subr.mxu0 %v21158_v38  ;;  %24126 = vmatpush3.msra.mxu1 %v20850_v47  ;;  %v21149_v46 = vld [vmem:[%s33928_s3 + $0x16a0] sm:$0xff] }
 0x622   :  { %24433 = vmatpush3.msra.mxu0 %v21142_v25  ;;  %24127 = vmatprep.subr.mxu1 %v20865_v16  ;;  %v20841_v38 = vld [vmem:[%s33928_s3 + $0xd00] sm:$0xff]  ;;  %v20936_v25 = vld [vmem:[%s33928_s3 + $0xff8] sm:$0xff] }
 0x623   :  { %24434 = vmatprep.subr.mxu0 %v21157_v14  ;;  %24128 = vmatpush3.msra.mxu1 %v20849_v49  ;;  %v21133_v47 = vld [vmem:[%s33928_s3 + $0x1620] sm:$0xff]  ;;  %v21148_v16 = vld [vmem:[%s33928_s3 + $0x1698] sm:$0xff] }
 0x624   :  { %24435 = vmatpush3.msra.mxu0 %v21141_v21  ;;  %24129 = vmatprep.subr.mxu1 %v20864_v13  ;;  %v20920_v49 = vld [vmem:[%s33928_s3 + $0xf78] sm:$0xff]  ;;  %v20935_v13 = vld [vmem:[%s33928_s3 + $0xff0] sm:$0xff] }
 0x625   :  { %24436 = vmatprep.subr.mxu0 %v21156_v32  ;;  %24130 = vmatpush3.msra.mxu1 %v20848_v58  ;;  %v21132_v21 = vld [vmem:[%s33928_s3 + $0x1618] sm:$0xff]  ;;  %v21147_v58 = vld [vmem:[%s33928_s3 + $0x1690] sm:$0xff] }
 0x626   :  { %24437 = vmatpush3.msra.mxu0 %v21140_v50  ;;  %24131 = vmatprep.subr.mxu1 %v20863_v29  ;;  %v20919_v50 = vld [vmem:[%s33928_s3 + $0xf70] sm:$0xff] }
 0x627   :  { %24438 = vmatprep.subr.mxu0 %v21155_v62  ;;  %24132 = vmatpush3.msra.mxu1 %v20847_v52  ;;  %v21131_v29 = vld [vmem:[%s33928_s3 + $0x1610] sm:$0xff]  ;;  %v20934_v62 = vld [vmem:[%s33928_s3 + $0xfe8] sm:$0xff] }
 0x628   :  { %24439 = vmatpush3.msra.mxu0 %v21139_v6  ;;  %24133 = vmatprep.subr.mxu1 %v20862_v23  ;;  %v21146_v52 = vld [vmem:[%s33928_s3 + $0x1688] sm:$0xff]  ;;  %v20933_v23 = vld [vmem:[%s33928_s3 + $0xfe0] sm:$0xff] }
 0x629   :  { %24440 = vmatprep.subr.mxu0 %v21154_v53  ;;  %24134 = vmatpush3.msra.mxu1 %v20846_v12  ;;  %v20918_v6 = vld [vmem:[%s33928_s3 + $0xf68] sm:$0xff]  ;;  %v21145_v53 = vld [vmem:[%s33928_s3 + $0x1680] sm:$0xff] }
 0x62a   :  { %24441 = vmatpush3.msra.mxu0 %v21138_v20  ;;  %24135 = vmatprep.subr.mxu1 %v20861_v5  ;;  %v20917_v12 = vld [vmem:[%s33928_s3 + $0xf60] sm:$0xff]  ;;  %v20932_v5 = vld [vmem:[%s33928_s3 + $0xfd8] sm:$0xff] }
 0x62b   :  { %24442 = vmatprep.subr.mxu0 %v21153_v0  ;;  %24136 = vmatpush3.msra.mxu1 %v20845_v48  ;;  %v21129_v20 = vld [vmem:[%s33928_s3 + $0x1600] sm:$0xff]  ;;  %v21224_v0 = vld [vmem:[%s33928_s3 + $0x18f8] sm:$0xff] }
 0x62c   :  { %24443 = vmatpush3.msra.mxu0 %v21137_v15  ;;  %24137 = vmatprep.subr.mxu1 %v20860_v3  ;;  %v20916_v48 = vld [vmem:[%s33928_s3 + $0xf58] sm:$0xff]  ;;  %v20390_v3 = vsel %vm20389_vm12, %v31790_v42, %v31863_v59  ;;  %v21207_v59 = vld [vmem:[%s33928_s3 + $0x1870] sm:$0xff] }
 0x62d   :  { %24444 = vmatprep.subr.mxu0 %v21152_v2  ;;  %24138 = vmatpush3.msra.mxu1 %v20844_v36  ;;  %v21208_v15 = vld [vmem:[%s33928_s3 + $0x1878] sm:$0xff]  ;;  %v20931_v2 = vld [vmem:[%s33928_s3 + $0xfd0] sm:$0xff]  ;;  %v20404_v36 = vsel %vm20403_vm13, %v31942_v37, %v31903_v43  ;;  %v20930_v43 = vld [vmem:[%s33928_s3 + $0xfc8] sm:$0xff] }
 0x62e   :  { %24445 = vmatpush3.msra.mxu0 %v21136_v4  ;;  %24139 = vmatprep.subr.mxu1 %v20859_v1  ;;  %v21223_v4 = vld [vmem:[%s33928_s3 + $0x18f0] sm:$0xff]  ;;  %v20406_v42 = vsel %vm20405_vm14, %v20404_v36, %v31971_v10  ;;  %v21206_v10 = vld [vmem:[%s33928_s3 + $0x1868] sm:$0xff]  ;;  %v21213_v36 = vld [vmem:[%s33928_s3 + $0x18a0] sm:$0xff] }
 0x62f   :  { %24446 = vmatprep.subr.mxu0 %v21151_v35  ;;  %24140 = vmatpush3.msra.mxu1 %v20843_v24  ;;  %v20915_v1 = vld [vmem:[%s33928_s3 + $0xf50] sm:$0xff]  ;;  %v21222_v35 = vld [vmem:[%s33928_s3 + $0x18e8] sm:$0xff] }
 0x630   :  { %24447 = vmatpush3.msra.mxu0 %v21135_v22  ;;  %24141 = vmatprep.subr.mxu1 %v20858_v61  ;;  %v20914_v24 = vld [vmem:[%s33928_s3 + $0xf48] sm:$0xff]  ;;  %v20929_v22 = vld [vmem:[%s33928_s3 + $0xfc0] sm:$0xff] }
 0x631   :  { %24448 = vmatprep.subr.mxu0 %v21150_v55  ;;  %24142 = vmatpush3.msra.mxu1 %v20842_v33  ;;  %v21221_v61 = vld [vmem:[%s33928_s3 + $0x18e0] sm:$0xff] }
 0x632   :  { %24449 = vmatpush3.msra.mxu0 %v21134_v17  ;;  %24143 = vmatprep.subr.mxu1 %v20857_v27  ;;  %v24040_v14 = vpop.f32.mrf.mxu0  ;;  %v20913_v55 = vld [vmem:[%s33928_s3 + $0xf40] sm:$0xff]  ;;  %v20928_v17 = vld [vmem:[%s33928_s3 + $0xfb8] sm:$0xff] }
 0x633   :  { %24450 = vmatprep.subr.mxu0 %v21149_v46  ;;  %24144 = vmatpush3.msra.mxu1 %v20841_v38  ;;  %v21205_v33 = vld [vmem:[%s33928_s3 + $0x1860] sm:$0xff]  ;;  %v21220_v27 = vld [vmem:[%s33928_s3 + $0x18d8] sm:$0xff] }
 0x634   :  { %24451 = vmatpush3.msra.mxu0 %v21133_v47  ;;  %22318 = vmatmul.mubr.f32.vlgmr.msra.gmra.mxu1 %v31461_v45  ;;  %v24041_v32 = vpop.f32.mrf.mxu0  ;;  %v20912_v46 = vld [vmem:[%s33928_s3 + $0xf38] sm:$0xff]  ;;  %v20927_v47 = vld [vmem:[%s33928_s3 + $0xfb0] sm:$0xff] }
 0x635   :  { %24183 = vmatprep.subr.mxu1 %v20936_v25  ;;  %24452 = vmatprep.subr.mxu0 %v21148_v16  ;;  %v32933_v45 = vadd.f32 %v24041_v32, %v24040_v14  ;;  %v21204_v38 = vld [vmem:[%s33928_s3 + $0x1858] sm:$0xff]  ;;  %v21219_v25 = vld [vmem:[%s33928_s3 + $0x18d0] sm:$0xff]  ;;  %v21202_v32 = vld [vmem:[%s33928_s3 + $0x1848] sm:$0xff] }
 0x636   :  { %24184 = vmatpush3.msra.mxu1 %v20920_v49  ;;  %22457 = vmatprep.mubr.f32.mxu1 %v31590_v11  ;;  %v21130_v11 = vld [vmem:[%s33928_s3 + $0x1608] sm:$0xff]  ;;  %v20911_v16 = vld [vmem:[%s33928_s3 + $0xf30] sm:$0xff] }
 0x637   :  { %24453 = vmatpush3.msra.mxu0 %v21132_v21  ;;  %24185 = vmatprep.subr.mxu1 %v20935_v13  ;;  %v21203_v14 = vld [vmem:[%s33928_s3 + $0x1850] sm:$0xff]  ;;  %v20926_v49 = vld [vmem:[%s33928_s3 + $0xfa8] sm:$0xff] }
 0x638   :  { %24454 = vmatprep.subr.mxu0 %v21147_v58  ;;  %24186 = vmatpush3.msra.mxu1 %v20919_v50  ;;  %v21218_v21 = vld [vmem:[%s33928_s3 + $0x18c8] sm:$0xff]  ;;  %v20925_v58 = vld [vmem:[%s33928_s3 + $0xfa0] sm:$0xff] }
 0x639   :  { %24455 = vmatpush3.msra.mxu0 %v21131_v29  ;;  %24187 = vmatprep.subr.mxu1 %v20934_v62  ;;  %v20910_v13 = vld [vmem:[%s33928_s3 + $0xf28] sm:$0xff]  ;;  %v21217_v50 = vld [vmem:[%s33928_s3 + $0x18c0] sm:$0xff] }
 0x63a   :  { %24456 = vmatprep.subr.mxu0 %v21146_v52  ;;  %24188 = vmatpush3.msra.mxu1 %v20918_v6  ;;  %v20909_v29 = vld [vmem:[%s33928_s3 + $0xf20] sm:$0xff]  ;;  %v20924_v52 = vld [vmem:[%s33928_s3 + $0xf98] sm:$0xff] }
 0x63b   :  { %24457 = vmatpush3.msra.mxu0 %v21130_v11  ;;  %24189 = vmatprep.subr.mxu1 %v20933_v23  ;;  %v21201_v62 = vld [vmem:[%s33928_s3 + $0x1840] sm:$0xff]  ;;  %v21216_v6 = vld [vmem:[%s33928_s3 + $0x18b8] sm:$0xff] }
 0x63c   :  { %24458 = vmatprep.subr.mxu0 %v21145_v53  ;;  %24190 = vmatpush3.msra.mxu1 %v20917_v12  ;;  %v20908_v11 = vld [vmem:[%s33928_s3 + $0xf18] sm:$0xff]  ;;  %v20923_v53 = vld [vmem:[%s33928_s3 + $0xf90] sm:$0xff] }
 0x63d   :  { %24459 = vmatpush3.msra.mxu0 %v21129_v20  ;;  %24191 = vmatprep.subr.mxu1 %v20932_v5  ;;  %v21200_v23 = vld [vmem:[%s33928_s3 + $0x1838] sm:$0xff]  ;;  %v21215_v12 = vld [vmem:[%s33928_s3 + $0x18b0] sm:$0xff] }
 0x63e   :  { %22948 = vmatmul.mubr.f32.vlgmr.msra.gmra.mxu0 %v20390_v3  ;;  %24498 = vmatprep.subr.mxu0 %v21224_v0  ;;  %v20907_v20 = vld [vmem:[%s33928_s3 + $0xf10] sm:$0xff]  ;;  %v20922_v0 = vld [vmem:[%s33928_s3 + $0xf88] sm:$0xff] }
 0x63f   :  { %24192 = vmatpush3.msra.mxu1 %v20916_v48  ;;  %24499 = vmatpush3.msra.mxu0 %v21208_v15  ;;  %v21199_v5 = vld [vmem:[%s33928_s3 + $0x1830] sm:$0xff]  ;;  %v21214_v48 = vld [vmem:[%s33928_s3 + $0x18a8] sm:$0xff] }
 0x640   :  { %23087 = vmatprep.mubr.f32.mxu0 %v20406_v42  ;;  %24193 = vmatprep.subr.mxu1 %v20931_v2  ;;  %v20906_v15 = vld [vmem:[%s33928_s3 + $0xf08] sm:$0xff]  ;;  %v20921_v2 = vld [vmem:[%s33928_s3 + $0xf80] sm:$0xff]  ;;  %v21000_v42 = vld [vmem:[%s33928_s3 + $0x11f8] sm:$0xff] }
 0x641   :  { %24500 = vmatprep.subr.mxu0 %v21223_v4  ;;  %24194 = vmatpush3.msra.mxu1 %v20915_v1  ;;  %v21198_v3 = vld [vmem:[%s33928_s3 + $0x1828] sm:$0xff]  ;;  %v20905_v4 = vld [vmem:[%s33928_s3 + $0xf00] sm:$0xff] }
 0x642   :  { %24501 = vmatpush3.msra.mxu0 %v21207_v59  ;;  %24195 = vmatprep.subr.mxu1 %v20930_v43  ;;  %v21197_v1 = vld [vmem:[%s33928_s3 + $0x1820] sm:$0xff]  ;;  %v21212_v59 = vld [vmem:[%s33928_s3 + $0x1898] sm:$0xff] }
 0x643   :  { %24502 = vmatprep.subr.mxu0 %v21222_v35  ;;  %24196 = vmatpush3.msra.mxu1 %v20914_v24  ;;  %v20984_v35 = vld [vmem:[%s33928_s3 + $0x1178] sm:$0xff] }
 0x644   :  { %24503 = vmatpush3.msra.mxu0 %v21206_v10  ;;  %24197 = vmatprep.subr.mxu1 %v20929_v22  ;;  %v21196_v24 = vld [vmem:[%s33928_s3 + $0x1818] sm:$0xff]  ;;  %v20999_v10 = vld [vmem:[%s33928_s3 + $0x11f0] sm:$0xff] }
 0x645   :  { %24504 = vmatprep.subr.mxu0 %v21221_v61  ;;  %24198 = vmatpush3.msra.mxu1 %v20913_v55  ;;  %v21211_v61 = vld [vmem:[%s33928_s3 + $0x1890] sm:$0xff] }
 0x646   :  { %24505 = vmatpush3.msra.mxu0 %v21205_v33  ;;  %24199 = vmatprep.subr.mxu1 %v20928_v17  ;;  %v20983_v55 = vld [vmem:[%s33928_s3 + $0x1170] sm:$0xff]  ;;  %v20998_v17 = vld [vmem:[%s33928_s3 + $0x11e8] sm:$0xff] }
 0x647   :  { %24506 = vmatprep.subr.mxu0 %v21220_v27  ;;  %24200 = vmatpush3.msra.mxu1 %v20912_v46  ;;  %v21195_v33 = vld [vmem:[%s33928_s3 + $0x1810] sm:$0xff]  ;;  %v21210_v27 = vld [vmem:[%s33928_s3 + $0x1888] sm:$0xff] }
 0x648   :  { %24507 = vmatpush3.msra.mxu0 %v21204_v38  ;;  %24201 = vmatprep.subr.mxu1 %v20927_v47  ;;  %v20982_v46 = vld [vmem:[%s33928_s3 + $0x1168] sm:$0xff]  ;;  %v20997_v38 = vld [vmem:[%s33928_s3 + $0x11e0] sm:$0xff] }
 0x649   :  { %24508 = vmatprep.subr.mxu0 %v21219_v25  ;;  %24202 = vmatpush3.msra.mxu1 %v20911_v16  ;;  %v21209_v47 = vld [vmem:[%s33928_s3 + $0x1880] sm:$0xff] }
 0x64a   :  { %24509 = vmatpush3.msra.mxu0 %v21203_v14  ;;  %24203 = vmatprep.subr.mxu1 %v20926_v49  ;;  %v20981_v25 = vld [vmem:[%s33928_s3 + $0x1160] sm:$0xff]  ;;  %v20996_v14 = vld [vmem:[%s33928_s3 + $0x11d8] sm:$0xff] }
 0x64b   :  { %24510 = vmatprep.subr.mxu0 %v21218_v21  ;;  %24204 = vmatpush3.msra.mxu1 %v20910_v13  ;;  %v21193_v16 = vld [vmem:[%s33928_s3 + $0x1800] sm:$0xff]  ;;  %v21288_v49 = vld [vmem:[%s33928_s3 + $0x1af8] sm:$0xff] }
 0x64c   :  { %24511 = vmatpush3.msra.mxu0 %v21202_v32  ;;  %24205 = vmatprep.subr.mxu1 %v20925_v58  ;;  %v20980_v21 = vld [vmem:[%s33928_s3 + $0x1158] sm:$0xff]  ;;  %v20402_v32 = vsel %vm20401_vm15, %v31874_v28, %v31942_v37  ;;  %v20995_v58 = vld [vmem:[%s33928_s3 + $0x11d0] sm:$0xff] }
 0x64d   :  { %24512 = vmatprep.subr.mxu0 %v21217_v50  ;;  %24206 = vmatpush3.msra.mxu1 %v20909_v29  ;;  %v21272_v13 = vld [vmem:[%s33928_s3 + $0x1a78] sm:$0xff]  ;;  %v20416_v50 = vsel %vm20415_vm0, %v32032_v26, %v32018_v60  ;;  %v21287_v29 = vld [vmem:[%s33928_s3 + $0x1af0] sm:$0xff]  ;;  %v20994_v60 = vld [vmem:[%s33928_s3 + $0x11c8] sm:$0xff] }
 0x64e   :  { %24513 = vmatpush3.msra.mxu0 %v21201_v62  ;;  %24207 = vmatprep.subr.mxu1 %v20924_v52  ;;  %v20979_v62 = vld [vmem:[%s33928_s3 + $0x1150] sm:$0xff]  ;;  %v20418_v28 = vsel %vm20417_vm1, %v20416_v50, %v32066_v44  ;;  %v21286_v52 = vld [vmem:[%s33928_s3 + $0x1ae8] sm:$0xff] }
 0x64f   :  { %24514 = vmatprep.subr.mxu0 %v21216_v6  ;;  %24208 = vmatpush3.msra.mxu1 %v20908_v11  ;;  %v21271_v37 = vld [vmem:[%s33928_s3 + $0x1a70] sm:$0xff]  ;;  %v20978_v6 = vld [vmem:[%s33928_s3 + $0x1148] sm:$0xff]  ;;  %v20993_v11 = vld [vmem:[%s33928_s3 + $0x11c0] sm:$0xff] }
 0x650   :  { %24515 = vmatpush3.msra.mxu0 %v21200_v23  ;;  %24209 = vmatprep.subr.mxu1 %v20923_v53  ;;  %v21270_v44 = vld [vmem:[%s33928_s3 + $0x1a68] sm:$0xff]  ;;  %v33208_v23 = vpop.f32.mrf.mxu1  ;;  %v21285_v53 = vld [vmem:[%s33928_s3 + $0x1ae0] sm:$0xff] }
 0x651   :  { %24516 = vmatprep.subr.mxu0 %v21215_v12  ;;  %24210 = vmatpush3.msra.mxu1 %v20907_v20  ;;  %v20977_v12 = vld [vmem:[%s33928_s3 + $0x1140] sm:$0xff] }
 0x652   :  { %24517 = vmatpush3.msra.mxu0 %v21199_v5  ;;  %24211 = vmatprep.subr.mxu1 %v20922_v0  ;;  %v21269_v20 = vld [vmem:[%s33928_s3 + $0x1a60] sm:$0xff]  ;;  %v20992_v5 = vld [vmem:[%s33928_s3 + $0x11b8] sm:$0xff] }
 0x653   :  { %24518 = vmatprep.subr.mxu0 %v21214_v48  ;;  %24212 = vmatpush3.msra.mxu1 %v20906_v15  ;;  %v21284_v0 = vld [vmem:[%s33928_s3 + $0x1ad8] sm:$0xff] }
 0x654   :  { %24519 = vmatpush3.msra.mxu0 %v21198_v3  ;;  %24213 = vmatprep.subr.mxu1 %v20921_v2  ;;  %v24110_v43 = vpop.f32.mrf.mxu0  ;;  %v20976_v48 = vld [vmem:[%s33928_s3 + $0x1138] sm:$0xff]  ;;  %v20991_v3 = vld [vmem:[%s33928_s3 + $0x11b0] sm:$0xff]  ;;  %v33234_v2 = vpop.f32.mrf.mxu1 }
 0x655   :  { %24520 = vmatprep.subr.mxu0 %v21213_v36  ;;  %24214 = vmatpush3.msra.mxu1 %v20905_v4  ;;  %v21268_v15 = vld [vmem:[%s33928_s3 + $0x1a58] sm:$0xff]  ;;  %v21283_v36 = vld [vmem:[%s33928_s3 + $0x1ad0] sm:$0xff] }
 0x656   :  { %24521 = vmatpush3.msra.mxu0 %v21197_v1  ;;  %22458 = vmatmul.mubr.f32.vlgmr.msra.gmra.mxu1 %v31554_v51  ;;  %v24111_v22 = vpop.f32.mrf.mxu0  ;;  %v20975_v4 = vld [vmem:[%s33928_s3 + $0x1130] sm:$0xff] }
 0x657   :  { %24253 = vmatprep.subr.mxu1 %v21000_v42  ;;  %24522 = vmatprep.subr.mxu0 %v21212_v59  ;;  %v33134_v51 = vadd.f32 %v24111_v22, %v24110_v43  ;;  %v21267_v1 = vld [vmem:[%s33928_s3 + $0x1a50] sm:$0xff]  ;;  %v20990_v42 = vld [vmem:[%s33928_s3 + $0x11a8] sm:$0xff]  ;;  %v33248_v59 = vpop.f32.mrf.mxu1  ;;  %v21281_v22 = vld [vmem:[%s33928_s3 + $0x1ac0] sm:$0xff] }
 0x658   :  { %24254 = vmatpush3.msra.mxu1 %v20984_v35  ;;  %22597 = vmatprep.mubr.f32.mxu1 %v31673_v8  ;;  %v21194_v8 = vld [vmem:[%s33928_s3 + $0x1808] sm:$0xff] }
 0x659   :  { %24523 = vmatpush3.msra.mxu0 %v21196_v24  ;;  %24255 = vmatprep.subr.mxu1 %v20999_v10  ;;  %v21282_v43 = vld [vmem:[%s33928_s3 + $0x1ac8] sm:$0xff]  ;;  %v20989_v10 = vld [vmem:[%s33928_s3 + $0x11a0] sm:$0xff] }
 0x65a   :  { %24524 = vmatprep.subr.mxu0 %v21211_v61  ;;  %24256 = vmatpush3.msra.mxu1 %v20983_v55  ;;  %v20974_v35 = vld [vmem:[%s33928_s3 + $0x1128] sm:$0xff]  ;;  %v20973_v61 = vld [vmem:[%s33928_s3 + $0x1120] sm:$0xff] }
 0x65b   :  { %24525 = vmatpush3.msra.mxu0 %v21195_v33  ;;  %24257 = vmatprep.subr.mxu1 %v20998_v17  ;;  %v21266_v24 = vld [vmem:[%s33928_s3 + $0x1a48] sm:$0xff]  ;;  %v21265_v55 = vld [vmem:[%s33928_s3 + $0x1a40] sm:$0xff]  ;;  %v20988_v33 = vld [vmem:[%s33928_s3 + $0x1198] sm:$0xff]  ;;  %v33274_v17 = vpop.f32.mrf.mxu1 }
 0x65c   :  { %24526 = vmatprep.subr.mxu0 %v21210_v27  ;;  %24258 = vmatpush3.msra.mxu1 %v20982_v46  ;;  %v21280_v27 = vld [vmem:[%s33928_s3 + $0x1ab8] sm:$0xff] }
 0x65d   :  { %24527 = vmatpush3.msra.mxu0 %v21194_v8  ;;  %24259 = vmatprep.subr.mxu1 %v20997_v38  ;;  %v20972_v46 = vld [vmem:[%s33928_s3 + $0x1118] sm:$0xff]  ;;  %v20987_v38 = vld [vmem:[%s33928_s3 + $0x1190] sm:$0xff] }
 0x65e   :  { %24528 = vmatprep.subr.mxu0 %v21209_v47  ;;  %24260 = vmatpush3.msra.mxu1 %v20981_v25  ;;  %v21264_v8 = vld [vmem:[%s33928_s3 + $0x1a38] sm:$0xff]  ;;  %v33288_v47 = vpop.f32.mrf.mxu1  ;;  %v21279_v25 = vld [vmem:[%s33928_s3 + $0x1ab0] sm:$0xff] }
 0x65f   :  { %24529 = vmatpush3.msra.mxu0 %v21193_v16  ;;  %24261 = vmatprep.subr.mxu1 %v20996_v14  ;;  %v20971_v16 = vld [vmem:[%s33928_s3 + $0x1110] sm:$0xff] }
 0x660   :  { %23088 = vmatmul.mubr.f32.vlgmr.msra.gmra.mxu0 %v20402_v32  ;;  %24568 = vmatprep.subr.mxu0 %v21288_v49  ;;  %v21263_v14 = vld [vmem:[%s33928_s3 + $0x1a30] sm:$0xff]  ;;  %v20986_v49 = vld [vmem:[%s33928_s3 + $0x1188] sm:$0xff]  ;;  %v33314_v50 = vpop.f32.mrf.mxu1 }
 0x661   :  { %24262 = vmatpush3.msra.mxu1 %v20980_v21  ;;  %24569 = vmatpush3.msra.mxu0 %v21272_v13  ;;  %v21278_v21 = vld [vmem:[%s33928_s3 + $0x1aa8] sm:$0xff] }
 0x662   :  { %23227 = vmatprep.mubr.f32.mxu0 %v20418_v28  ;;  %24263 = vmatprep.subr.mxu1 %v20995_v58  ;;  %v20970_v13 = vld [vmem:[%s33928_s3 + $0x1108] sm:$0xff]  ;;  %v20985_v58 = vld [vmem:[%s33928_s3 + $0x1180] sm:$0xff] }
 0x663   :  { %24570 = vmatprep.subr.mxu0 %v21287_v29  ;;  %24264 = vmatpush3.msra.mxu1 %v20979_v62  ;;  %v21262_v32 = vld [vmem:[%s33928_s3 + $0x1a28] sm:$0xff]  ;;  %v21277_v29 = vld [vmem:[%s33928_s3 + $0x1aa0] sm:$0xff] }
 0x664   :  { %24571 = vmatpush3.msra.mxu0 %v21271_v37  ;;  %24265 = vmatprep.subr.mxu1 %v20994_v60  ;;  %v20969_v62 = vld [vmem:[%s33928_s3 + $0x1100] sm:$0xff]  ;;  %v33325_v37 = vpop.f32.mrf.mxu1  ;;  %v21064_v60 = vld [vmem:[%s33928_s3 + $0x13f8] sm:$0xff] }
 0x665   :  { %24572 = vmatprep.subr.mxu0 %v21286_v52  ;;  %24266 = vmatpush3.msra.mxu1 %v20978_v6  ;;  %v21261_v28 = vld [vmem:[%s33928_s3 + $0x1a20] sm:$0xff]  ;;  %v21276_v52 = vld [vmem:[%s33928_s3 + $0x1a98] sm:$0xff] }
 0x666   :  { %24573 = vmatpush3.msra.mxu0 %v21270_v44  ;;  %24267 = vmatprep.subr.mxu1 %v20993_v11  ;;  %v21048_v44 = vld [vmem:[%s33928_s3 + $0x1378] sm:$0xff] }
 0x667   :  { %24574 = vmatprep.subr.mxu0 %v21285_v53  ;;  %24268 = vmatpush3.msra.mxu1 %v20977_v12  ;;  %v21260_v11 = vld [vmem:[%s33928_s3 + $0x1a18] sm:$0xff]  ;;  %v21063_v53 = vld [vmem:[%s33928_s3 + $0x13f0] sm:$0xff] }
 0x668   :  { %24575 = vmatpush3.msra.mxu0 %v21269_v20  ;;  %24269 = vmatprep.subr.mxu1 %v20992_v5  ;;  %v21275_v20 = vld [vmem:[%s33928_s3 + $0x1a90] sm:$0xff] }
 0x669   :  { %24576 = vmatprep.subr.mxu0 %v21284_v0  ;;  %24270 = vmatpush3.msra.mxu1 %v20976_v48  ;;  %v21047_v5 = vld [vmem:[%s33928_s3 + $0x1370] sm:$0xff]  ;;  %v23796_v0 = vpop.f32.mrf.mxu1 }
 0x66a   :  { %24577 = vmatpush3.msra.mxu0 %v21268_v15  ;;  %24271 = vmatprep.subr.mxu1 %v20991_v3  ;;  %v21259_v48 = vld [vmem:[%s33928_s3 + $0x1a10] sm:$0xff]  ;;  %v21062_v15 = vld [vmem:[%s33928_s3 + $0x13e8] sm:$0xff] }
 0x66b   :  { %24578 = vmatprep.subr.mxu0 %v21283_v36  ;;  %24272 = vmatpush3.msra.mxu1 %v20975_v4  ;;  %v21274_v3 = vld [vmem:[%s33928_s3 + $0x1a88] sm:$0xff]  ;;  %v23830_v4 = vpop.f32.mrf.mxu1 }
 0x66c   :  { %24579 = vmatpush3.msra.mxu0 %v21267_v1  ;;  %24273 = vmatprep.subr.mxu1 %v20990_v42  ;;  %v21046_v36 = vld [vmem:[%s33928_s3 + $0x1368] sm:$0xff]  ;;  %v21061_v1 = vld [vmem:[%s33928_s3 + $0x13e0] sm:$0xff] }
 0x66d   :  { %24580 = vmatprep.subr.mxu0 %v21282_v43  ;;  %24274 = vmatpush3.msra.mxu1 %v20974_v35  ;;  %v21273_v42 = vld [vmem:[%s33928_s3 + $0x1a80] sm:$0xff] }
 0x66e   :  { %24581 = vmatpush3.msra.mxu0 %v21266_v24  ;;  %24275 = vmatprep.subr.mxu1 %v20989_v10  ;;  %v21045_v43 = vld [vmem:[%s33928_s3 + $0x1360] sm:$0xff]  ;;  %v21060_v24 = vld [vmem:[%s33928_s3 + $0x13d8] sm:$0xff]  ;;  %v23692_v10 = vadd.f32 %v33234_v2, %v33208_v23  ;;  %v20414_v23 = vsel %vm20413_vm2, %v31979_v31, %v32032_v26  ;;  %v23727_v2 = vadd.f32 %v33274_v17, %v33248_v59  ;;  %v21327_v31 = vld [vmem:[%s33928_s3 + $0x1c30] sm:$0xff] }
 0x66f   :  { %24582 = vmatprep.subr.mxu0 %v21281_v22  ;;  %24276 = vmatpush3.msra.mxu1 %v20973_v61  ;;  %v21257_v35 = vld [vmem:[%s33928_s3 + $0x1a00] sm:$0xff]  ;;  %v23831_v61 = vpop.f32.mrf.mxu1  ;;  %v23762_v59 = vadd.f32 %v33314_v50, %v33288_v47  ;;  %v21058_v17 = vld [vmem:[%s33928_s3 + $0x13c8] sm:$0xff]  ;;  %v23797_v47 = vadd.f32 %v23796_v0, %v33325_v37 }
 0x670   :  { %24583 = vmatpush3.msra.mxu0 %v21265_v55  ;;  %24277 = vmatprep.subr.mxu1 %v20988_v33  ;;  %v23655_v22 = vld [vmem:[%s33929_s4] ss:$0 sm:$0xff]  ;;  %v21044_v55 = vld [vmem:[%s33928_s3 + $0x1358] sm:$0xff]  ;;  %v23832_v50 = vadd.f32 %v23831_v61, %v23830_v4 }
 0x671   :  { %24584 = vmatprep.subr.mxu0 %v21280_v27  ;;  %24278 = vmatpush3.msra.mxu1 %v20972_v46  ;;  %v21328_v33 = vld [vmem:[%s33928_s3 + $0x1c38] sm:$0x1]  ;;  %v21059_v27 = vld [vmem:[%s33928_s3 + $0x13d0] sm:$0xff]  ;;  %v23865_v46 = vpop.f32.mrf.mxu1  ;;  %v21410_v26 = vadd.f32 %v23692_v10, %v23655_v22  ;;  %v21053_v0 = vld [vmem:[%s33928_s3 + $0x13a0] sm:$0xff] }
 0x672   :  { %24585 = vmatpush3.msra.mxu0 %v21264_v8  ;;  %24279 = vmatprep.subr.mxu1 %v20987_v38  ;;  %v33989_v8 = vmov 0.0   ;;  %v21043_v38 = vld [vmem:[%s33928_s3 + $0x1350] sm:$0xff]  ;;  %v21036_v4 = vld [vmem:[%s33928_s3 + $0x1318] sm:$0xff]  ;;  %v21050_v10 = vld [vmem:[%s33928_s3 + $0x1388] sm:$0xff] }
 0x673   :  { %24586 = vmatprep.subr.mxu0 %v21279_v25  ;;  %24280 = vmatpush3.msra.mxu1 %v20971_v16  ;;  %v21042_v25 = vld [vmem:[%s33928_s3 + $0x1348] sm:$0xff]  ;;  %v21049_v61 = vld [vmem:[%s33928_s3 + $0x1380] sm:$0xff] }
 0x674   :  { %24587 = vmatpush3.msra.mxu0 %v21263_v14  ;;  %24281 = vmatprep.subr.mxu1 %v20986_v49  ;;  %v21326_v16 = vld [vmem:[%s33928_s3 + $0x1c28] sm:$0xff]  ;;  %v21480_v14 = vadd.f32 %v23727_v2, %v21410_v26  ;;  %v21057_v49 = vld [vmem:[%s33928_s3 + $0x13c0] sm:$0xff]  ;;  %v21112_v2 = vld [vmem:[%s33928_s3 + $0x1578] sm:$0xff] }
 0x675   :  { %24588 = vmatprep.subr.mxu0 %v21278_v21  ;;  %24282 = vmatpush3.msra.mxu1 %v20970_v13  ;;  %v23866_v21 = vpop.f32.mrf.mxu1  ;;  %v21041_v13 = vld [vmem:[%s33928_s3 + $0x1340] sm:$0xff] }
 0x676   :  { %24589 = vmatpush3.msra.mxu0 %v21262_v32  ;;  %24283 = vmatprep.subr.mxu1 %v20985_v58  ;;  %v24180_v6 = vpop.f32.mrf.mxu0  ;;  %v21325_v32 = vld [vmem:[%s33928_s3 + $0x1c20] sm:$0xff]  ;;  %v21550_v58 = vadd.f32 %v23762_v59, %v21480_v14  ;;  %v21124_v59 = vld [vmem:[%s33928_s3 + $0x15d8] sm:$0xff]  ;;  %v21122_v14 = vld [vmem:[%s33928_s3 + $0x15c8] sm:$0xff] }
 0x677   :  { %24590 = vmatprep.subr.mxu0 %v21277_v29  ;;  %24284 = vmatpush3.msra.mxu1 %v20969_v62  ;;  %v21056_v29 = vld [vmem:[%s33928_s3 + $0x13b8] sm:$0xff]  ;;  %v21125_v26 = vld [vmem:[%s33928_s3 + $0x15e0] sm:$0xff] }
 0x678   :  { %24591 = vmatpush3.msra.mxu0 %v21261_v28  ;;  %22598 = vmatmul.mubr.f32.vlgmr.msra.gmra.mxu1 %v31638_v9  ;;  %v24181_v12 = vpop.f32.mrf.mxu0  ;;  %v21040_v62 = vld [vmem:[%s33928_s3 + $0x1338] sm:$0xff]  ;;  %v21620_v37 = vadd.f32 %v23797_v47, %v21550_v58  ;;  %v21106_v47 = vld [vmem:[%s33928_s3 + $0x1548] sm:$0xff]  ;;  %v21119_v58 = vld [vmem:[%s33928_s3 + $0x15b0] sm:$0xff] }
 0x679   :  { %24323 = vmatprep.subr.mxu1 %v21064_v60  ;;  %24592 = vmatprep.subr.mxu0 %v21276_v52  ;;  %v33349_v9 = vadd.f32 %v24181_v12, %v24180_v6  ;;  %v21324_v28 = vld [vmem:[%s33928_s3 + $0x1c18] sm:$0xff]  ;;  %v23867_v60 = vadd.f32 %v23866_v21, %v23865_v46  ;;  %v21055_v52 = vld [vmem:[%s33928_s3 + $0x13b0] sm:$0xff]  ;;  %v21038_v12 = vld [vmem:[%s33928_s3 + $0x1328] sm:$0xff] }
 0x67a   :  { %24324 = vmatpush3.msra.mxu1 %v21048_v44  ;;  %22737 = vmatprep.mubr.f32.mxu1 %v31762_v34  ;;  %v21258_v34 = vld [vmem:[%s33928_s3 + $0x1a08] sm:$0xff]  ;;  %v21039_v6 = vld [vmem:[%s33928_s3 + $0x1330] sm:$0xff]  ;;  %v21105_v21 = vld [vmem:[%s33928_s3 + $0x1540] sm:$0xff] }
 0x67b   :  { %24593 = vmatpush3.msra.mxu0 %v21260_v11  ;;  %24325 = vmatprep.subr.mxu1 %v21063_v53  ;;  %v21323_v44 = vld [vmem:[%s33928_s3 + $0x1c10] sm:$0xff]  ;;  %v21690_v11 = vadd.f32 %v23832_v50, %v21620_v37  ;;  %v21054_v53 = vld [vmem:[%s33928_s3 + $0x13a8] sm:$0xff]  ;;  %v21101_v37 = vld [vmem:[%s33928_s3 + $0x1520] sm:$0xff] }
 0x67c   :  { %24594 = vmatprep.subr.mxu0 %v21275_v20  ;;  %24326 = vmatpush3.msra.mxu1 %v21047_v5  ;;  %v21322_v20 = vld [vmem:[%s33928_s3 + $0x1c08] sm:$0xff]  ;;  %v21111_v46 = vld [vmem:[%s33928_s3 + $0x1570] sm:$0xff] }
 0x67d   :  { %24595 = vmatpush3.msra.mxu0 %v21259_v48  ;;  %24327 = vmatprep.subr.mxu1 %v21062_v15  ;;  %v21760_v5 = vadd.f32 %v23867_v60, %v21690_v11  ;;  %v21037_v48 = vld [vmem:[%s33928_s3 + $0x1320] sm:$0xff]  ;;  %v21103_v50 = vld [vmem:[%s33928_s3 + $0x1530] sm:$0xff]  ;;  %v21116_v60 = vld [vmem:[%s33928_s3 + $0x1598] sm:$0xff] }
 0x67e   :  { %24596 = vmatprep.subr.mxu0 %v21274_v3  ;;  %24328 = vmatpush3.msra.mxu1 %v21046_v36  ;;  %v21321_v15 = vld [vmem:[%s33928_s3 + $0x1c00] sm:$0xff]  ;;  %v21052_v36 = vld [vmem:[%s33928_s3 + $0x1398] sm:$0xff]  ;;  %v21099_v11 = vld [vmem:[%s33928_s3 + $0x1510] sm:$0xff] }
 0x67f   :  { %24597 = vmatpush3.msra.mxu0 %v21258_v34  ;;  %24329 = vmatprep.subr.mxu1 %v21061_v1  ;;  %v21051_v1 = vld [vmem:[%s33928_s3 + $0x1390] sm:$0xff] }
 0x680   :  { %24598 = vmatprep.subr.mxu0 %v21273_v42  ;;  %24330 = vmatpush3.msra.mxu1 %v21045_v43  ;;  %v21830_v42 = vadd.f32 %v32531_v54, %v21760_v5  ;;  %v21034_v54 = vld [vmem:[%s33928_s3 + $0x1308] sm:$0xff] }
 0x681   :  { %24599 = vmatpush3.msra.mxu0 %v21257_v35  ;;  %24331 = vmatprep.subr.mxu1 %v21060_v24  ;;  %v33481_v35 = vpop.permute.xlu0 %20255  ;;  %v21035_v24 = vld [vmem:[%s33928_s3 + $0x1310] sm:$0xff]  ;;  %v21098_v5 = vld [vmem:[%s33928_s3 + $0x1508] sm:$0xff] }
 0x682   :  { %23228 = vmatmul.mubr.f32.vlgmr.msra.gmra.mxu0 %v20414_v23  ;;  %24647 = vmatprep.subr.mxu0 %v33989_v8  ;;  %v21128_v23 = vld [vmem:[%s33928_s3 + $0x15f8] sm:$0xff] }
 0x683   :  { %24332 = vmatpush3.msra.mxu1 %v21044_v55  ;;  %24648 = vmatpush3.msk.msra.mxu0 %vm21339_vm3, %v21328_v33  ;;  %v21033_v33 = vld [vmem:[%s33928_s3 + $0x1300] sm:$0xff] }
 0x684   :  { %24333 = vmatprep.subr.mxu1 %v21059_v27  ;;  %24649 = vmatprep.subr.mxu0 %v33989_v8 }
 0x685   :  { %24334 = vmatpush3.msra.mxu1 %v21043_v38  ;;  %24650 = vmatpush3.msra.mxu0 %v21327_v31  ;;  %v21126_v38 = vld [vmem:[%s33928_s3 + $0x15e8] sm:$0xff] }
 0x686   :  { %24335 = vmatprep.subr.mxu1 %v21058_v17  ;;  %24651 = vmatprep.subr.mxu0 %v33989_v8  ;;  %v21108_v17 = vld [vmem:[%s33928_s3 + $0x1558] sm:$0xff] }
 0x687   :  { %24336 = vmatpush3.msra.mxu1 %v21042_v25  ;;  %24652 = vmatpush3.msra.mxu0 %v21326_v16  ;;  %v21123_v25 = vld [vmem:[%s33928_s3 + $0x15d0] sm:$0xff] }
 0x688   :  { %24337 = vmatprep.subr.mxu1 %v21057_v49  ;;  %24653 = vmatprep.subr.mxu0 %v33989_v8  ;;  %v21107_v16 = vld [vmem:[%s33928_s3 + $0x1550] sm:$0xff]  ;;  %v21121_v49 = vld [vmem:[%s33928_s3 + $0x15c0] sm:$0xff] }
 0x689   :  { %24338 = vmatpush3.msra.mxu1 %v21041_v13  ;;  %24654 = vmatpush3.msra.mxu0 %v21325_v32  ;;  %v21120_v13 = vld [vmem:[%s33928_s3 + $0x15b8] sm:$0xff] }
 0x68a   :  { %24339 = vmatprep.subr.mxu1 %v21056_v29  ;;  %24655 = vmatprep.subr.mxu0 %v33989_v8  ;;  %v21104_v32 = vld [vmem:[%s33928_s3 + $0x1538] sm:$0xff]  ;;  %v21118_v29 = vld [vmem:[%s33928_s3 + $0x15a8] sm:$0xff] }
 0x68b   :  { %24340 = vmatpush3.msra.mxu1 %v21040_v62  ;;  %24656 = vmatpush3.msra.mxu0 %v21324_v28  ;;  %v21102_v62 = vld [vmem:[%s33928_s3 + $0x1528] sm:$0xff]  ;;  %v21117_v28 = vld [vmem:[%s33928_s3 + $0x15a0] sm:$0xff] }
 0x68c   :  { %24341 = vmatprep.subr.mxu1 %v21055_v52  ;;  %24657 = vmatprep.subr.mxu0 %v33989_v8  ;;  %v21100_v52 = vld [vmem:[%s33928_s3 + $0x1518] sm:$0xff] }
 0x68d   :  { %24342 = vmatpush3.msra.mxu1 %v21039_v6  ;;  %24658 = vmatpush3.msra.mxu0 %v21323_v44  ;;  %v21115_v44 = vld [vmem:[%s33928_s3 + $0x1590] sm:$0xff] }
 0x68e   :  { %24343 = vmatprep.subr.mxu1 %v21054_v53  ;;  %24659 = vmatprep.subr.mxu0 %v33989_v8  ;;  %v23935_v3 = vpop.f32.mrf.mxu1 }
 0x68f   :  { %24344 = vmatpush3.msra.mxu1 %v21038_v12  ;;  %24660 = vmatpush3.msra.mxu0 %v21322_v20  ;;  %v21114_v12 = vld [vmem:[%s33928_s3 + $0x1588] sm:$0xff] }
 0x690   :  { %24345 = vmatprep.subr.mxu1 %v21053_v0  ;;  %24661 = vmatprep.subr.mxu0 %v33989_v8  ;;  %v23936_v34 = vpop.f32.mrf.mxu1  ;;  %v21113_v0 = vld [vmem:[%s33928_s3 + $0x1580] sm:$0xff] }
 0x691   :  { %24346 = vmatpush3.msra.mxu1 %v21037_v48  ;;  %24662 = vmatpush3.msra.mxu0 %v21321_v15  ;;  %v23937_v43 = vadd.f32 %v23936_v34, %v23935_v3  ;;  %v21097_v15 = vld [vmem:[%s33928_s3 + $0x1500] sm:$0xff]  ;;  %v21192_v3 = vld [vmem:[%s33928_s3 + $0x17f8] sm:$0xff]  ;;  %v21191_v34 = vld [vmem:[%s33928_s3 + $0x17f0] sm:$0xff] }
 0x692   :  { %24663 = vmatprep.mubr.msk.f32.mxu0 %vm25054_vm5, %v33989_v8  ;;  %24347 = vmatprep.subr.mxu1 %v21052_v36 }
 0x693   :  { %24664 = vmatmul.mubr.msk.f32.vlgmr.msra.gmra.mxu0 %vm21336_vm4, %v33481_v35  ;;  %24348 = vmatpush3.msra.mxu1 %v21036_v4  ;;  %v21900_v22 = vadd.f32 %v23937_v43, %v21830_v42  ;;  %v21176_v4 = vld [vmem:[%s33928_s3 + $0x1778] sm:$0xff]  ;;  %v21174_v43 = vld [vmem:[%s33928_s3 + $0x1768] sm:$0xff] }
 0x694   :  { %24349 = vmatprep.subr.mxu1 %v21051_v1  ;;  %v21175_v1 = vld [vmem:[%s33928_s3 + $0x1770] sm:$0xff] }
 0x695   :  { %24350 = vmatpush3.msra.mxu1 %v21035_v24  ;;  %v33498_v55 = vadd.f32 %v32732_v57, %v21900_v22  ;;  %v21127_v57 = vld [vmem:[%s33928_s3 + $0x15f0] sm:$0xff]  ;;  %v21188_v22 = vld [vmem:[%s33928_s3 + $0x17d8] sm:$0xff] }
 0x696   :  { %24351 = vmatprep.subr.mxu1 %v21050_v10 }
 0x697   :  { %24352 = vmatpush3.msra.mxu1 %v21034_v54  ;;  %v21172_v54 = vld [vmem:[%s33928_s3 + $0x1758] sm:$0xff] }
 0x698   :  { %24353 = vmatprep.subr.mxu1 %v21049_v61  ;;  %v24250_v27 = vpop.f32.mrf.mxu0  ;;  %v21187_v61 = vld [vmem:[%s33928_s3 + $0x17d0] sm:$0xff] }
 0x699   :  { %24354 = vmatpush3.msra.mxu1 %v21033_v33  ;;  %v21186_v33 = vld [vmem:[%s33928_s3 + $0x17c8] sm:$0xff] }
 0x69a   :  { %22738 = vmatmul.mubr.f32.vlgmr.msra.gmra.mxu1 %v31725_v63  ;;  %24393 = vmatprep.subr.mxu1 %v21128_v23  ;;  %v24251_v8 = vpop.f32.mrf.mxu0  ;;  %v21110_v63 = vld [vmem:[%s33928_s3 + $0x1568] sm:$0xff] }
 0x69b   :  { %24394 = vmatpush3.msra.mxu1 %v21112_v2  ;;  %22877 = vmatprep.mubr.f32.mxu1 %v31849_v19  ;;  %v33520_v31 = vadd.f32 %v24251_v8, %v24250_v27  ;;  %v21109_v19 = vld [vmem:[%s33928_s3 + $0x1560] sm:$0xff]  ;;  %v21170_v23 = vld [vmem:[%s33928_s3 + $0x1748] sm:$0xff]  ;;  %v21183_v8 = vld [vmem:[%s33928_s3 + $0x17b0] sm:$0xff] }
 0x69c   :  { %24395 = vmatprep.subr.mxu1 %v21127_v57  ;;  %v21185_v2 = vld [vmem:[%s33928_s3 + $0x17c0] sm:$0xff]  ;;  %v21184_v57 = vld [vmem:[%s33928_s3 + $0x17b8] sm:$0xff] }
 0x69d   :  { %24396 = vmatpush3.msra.mxu1 %v21111_v46  ;;  %v21169_v27 = vld [vmem:[%s33928_s3 + $0x1740] sm:$0xff]  ;;  %v21168_v46 = vld [vmem:[%s33928_s3 + $0x1738] sm:$0xff] }
 0x69e   :  { %24397 = vmatprep.subr.mxu1 %v21126_v38  ;;  %v21167_v38 = vld [vmem:[%s33928_s3 + $0x1730] sm:$0xff] }
 0x69f   :  { %24398 = vmatpush3.msra.mxu1 %v21110_v63  ;;  %v21182_v63 = vld [vmem:[%s33928_s3 + $0x17a8] sm:$0xff] }
 0x6a0   :  { %24399 = vmatprep.subr.mxu1 %v21125_v26  ;;  %v21166_v26 = vld [vmem:[%s33928_s3 + $0x1728] sm:$0xff] }
 0x6a1   :  { %24400 = vmatpush3.msra.mxu1 %v21109_v19  ;;  %v21181_v19 = vld [vmem:[%s33928_s3 + $0x17a0] sm:$0xff] }
 0x6a2   :  { %24401 = vmatprep.subr.mxu1 %v21124_v59  ;;  %v21165_v59 = vld [vmem:[%s33928_s3 + $0x1720] sm:$0xff] }
 0x6a3   :  { %24402 = vmatpush3.msra.mxu1 %v21108_v17  ;;  %v21180_v17 = vld [vmem:[%s33928_s3 + $0x1798] sm:$0xff] }
 0x6a4   :  { %24403 = vmatprep.subr.mxu1 %v21123_v25  ;;  %v21164_v25 = vld [vmem:[%s33928_s3 + $0x1718] sm:$0xff] }
 0x6a5   :  { %24404 = vmatpush3.msra.mxu1 %v21107_v16  ;;  %v21179_v16 = vld [vmem:[%s33928_s3 + $0x1790] sm:$0xff] }
 0x6a6   :  { %24405 = vmatprep.subr.mxu1 %v21122_v14  ;;  %v21163_v14 = vld [vmem:[%s33928_s3 + $0x1710] sm:$0xff] }
 0x6a7   :  { %24406 = vmatpush3.msra.mxu1 %v21106_v47 }
 0x6a8   :  { %24407 = vmatprep.subr.mxu1 %v21121_v49  ;;  %v21178_v49 = vld [vmem:[%s33928_s3 + $0x1788] sm:$0xff] }
 0x6a9   :  { %24408 = vmatpush3.msra.mxu1 %v21105_v21  ;;  %v21162_v21 = vld [vmem:[%s33928_s3 + $0x1708] sm:$0xff] }
 0x6aa   :  { %24409 = vmatprep.subr.mxu1 %v21120_v13 }
 0x6ab   :  { %24410 = vmatpush3.msra.mxu1 %v21104_v32  ;;  %v21177_v32 = vld [vmem:[%s33928_s3 + $0x1780] sm:$0xff] }
 0x6ac   :  { %24411 = vmatprep.subr.mxu1 %v21119_v58 }
 0x6ad   :  { %24412 = vmatpush3.msra.mxu1 %v21103_v50  ;;  %v21161_v50 = vld [vmem:[%s33928_s3 + $0x1700] sm:$0xff] }
 0x6ae   :  { %24413 = vmatprep.subr.mxu1 %v21118_v29  ;;  %v21256_v29 = vld [vmem:[%s33928_s3 + $0x19f8] sm:$0xff] }
 0x6af   :  { %24414 = vmatpush3.msra.mxu1 %v21102_v62 }
 0x6b0   :  { %24415 = vmatprep.subr.mxu1 %v21117_v28  ;;  %v24005_v6 = vpop.f32.mrf.mxu1  ;;  %v21240_v28 = vld [vmem:[%s33928_s3 + $0x1978] sm:$0xff] }
 0x6b1   :  { %24416 = vmatpush3.msra.mxu1 %v21101_v37  ;;  %v21255_v37 = vld [vmem:[%s33928_s3 + $0x19f0] sm:$0xff] }
 0x6b2   :  { %24417 = vmatprep.subr.mxu1 %v21116_v60  ;;  %v24006_v53 = vpop.f32.mrf.mxu1 }
 0x6b3   :  { %24418 = vmatpush3.msra.mxu1 %v21100_v52  ;;  %v24007_v20 = vadd.f32 %v24006_v53, %v24005_v6  ;;  %v21239_v52 = vld [vmem:[%s33928_s3 + $0x1970] sm:$0xff]  ;;  %v21254_v6 = vld [vmem:[%s33928_s3 + $0x19e8] sm:$0xff]  ;;  %v21252_v53 = vld [vmem:[%s33928_s3 + $0x19d8] sm:$0xff] }
 0x6b4   :  { %24419 = vmatprep.subr.mxu1 %v21115_v44 }
 0x6b5   :  { %24420 = vmatpush3.msra.mxu1 %v21099_v11  ;;  %v22040_v48 = vadd.f32 %v24007_v20, %v33498_v55  ;;  %v21171_v55 = vld [vmem:[%s33928_s3 + $0x1750] sm:$0xff]  ;;  %v21236_v20 = vld [vmem:[%s33928_s3 + $0x1958] sm:$0xff] }
 0x6b6   :  { %24421 = vmatprep.subr.mxu1 %v21114_v12 }
 0x6b7   :  { %24422 = vmatpush3.msra.mxu1 %v21098_v5  ;;  %v33608_v36 = vadd.f32 %v32933_v45, %v22040_v48  ;;  %v21190_v45 = vld [vmem:[%s33928_s3 + $0x17e8] sm:$0xff]  ;;  %v21251_v5 = vld [vmem:[%s33928_s3 + $0x19d0] sm:$0xff] }
 0x6b8   :  { %24423 = vmatprep.subr.mxu1 %v21113_v0  ;;  %v21235_v0 = vld [vmem:[%s33928_s3 + $0x1950] sm:$0xff]  ;;  %v21250_v48 = vld [vmem:[%s33928_s3 + $0x19c8] sm:$0xff] }
 0x6b9   :  { %24424 = vmatpush3.msra.mxu1 %v21097_v15  ;;  %v21234_v15 = vld [vmem:[%s33928_s3 + $0x1948] sm:$0xff] }
 0x6ba   :  { %22878 = vmatmul.mubr.f32.vlgmr.msra.gmra.mxu1 %v31813_v30  ;;  %24463 = vmatprep.subr.mxu1 %v21192_v3  ;;  %v24320_v42 = vpop.f32.mrf.mxu0  ;;  %v21189_v30 = vld [vmem:[%s33928_s3 + $0x17e0] sm:$0xff] }
 0x6bb   :  { %24464 = vmatpush3.msra.mxu1 %v21176_v4  ;;  %23017 = vmatprep.mubr.f32.mxu1 %v31931_v7  ;;  %v21173_v7 = vld [vmem:[%s33928_s3 + $0x1760] sm:$0xff]  ;;  %v21248_v4 = vld [vmem:[%s33928_s3 + $0x19b8] sm:$0xff] }
 0x6bc   :  { %24465 = vmatprep.subr.mxu1 %v21191_v34  ;;  %v24321_v24 = vpop.f32.mrf.mxu0  ;;  %v21249_v3 = vld [vmem:[%s33928_s3 + $0x19c0] sm:$0xff]  ;;  %v21232_v34 = vld [vmem:[%s33928_s3 + $0x1938] sm:$0xff] }
 0x6bd   :  { %24466 = vmatpush3.msra.mxu1 %v21175_v1  ;;  %v33630_v10 = vadd.f32 %v24321_v24, %v24320_v42  ;;  %v21247_v1 = vld [vmem:[%s33928_s3 + $0x19b0] sm:$0xff]  ;;  %v21245_v24 = vld [vmem:[%s33928_s3 + $0x19a0] sm:$0xff] }
 0x6be   :  { %24467 = vmatprep.subr.mxu1 %v21190_v45  ;;  %v21231_v42 = vld [vmem:[%s33928_s3 + $0x1930] sm:$0xff]  ;;  %v21246_v45 = vld [vmem:[%s33928_s3 + $0x19a8] sm:$0xff] }
 0x6bf   :  { %24468 = vmatpush3.msra.mxu1 %v21174_v43  ;;  %v21230_v43 = vld [vmem:[%s33928_s3 + $0x1928] sm:$0xff] }
 0x6c0   :  { %24469 = vmatprep.subr.mxu1 %v21189_v30  ;;  %v21229_v30 = vld [vmem:[%s33928_s3 + $0x1920] sm:$0xff] }
 0x6c1   :  { %24470 = vmatpush3.msra.mxu1 %v21173_v7  ;;  %v21244_v7 = vld [vmem:[%s33928_s3 + $0x1998] sm:$0xff] }
 0x6c2   :  { %24471 = vmatprep.subr.mxu1 %v21188_v22  ;;  %v21228_v22 = vld [vmem:[%s33928_s3 + $0x1918] sm:$0xff] }
 0x6c3   :  { %24472 = vmatpush3.msra.mxu1 %v21172_v54  ;;  %v21243_v54 = vld [vmem:[%s33928_s3 + $0x1990] sm:$0xff] }
 0x6c4   :  { %24473 = vmatprep.subr.mxu1 %v21187_v61  ;;  %v21227_v61 = vld [vmem:[%s33928_s3 + $0x1910] sm:$0xff] }
 0x6c5   :  { %24474 = vmatpush3.msra.mxu1 %v21171_v55  ;;  %v21242_v55 = vld [vmem:[%s33928_s3 + $0x1988] sm:$0xff] }
 0x6c6   :  { %24475 = vmatprep.subr.mxu1 %v21186_v33  ;;  %v20238_v33 = vpop.permute.xlu1 %20237 }
 0x6c7   :  { %24476 = vmatpush3.msra.mxu1 %v21170_v23  ;;  %v21226_v23 = vld [vmem:[%s33928_s3 + $0x1908] sm:$0xff] }
 0x6c8   :  { %24477 = vmatprep.subr.mxu1 %v21185_v2 }
 0x6c9   :  { %24478 = vmatpush3.msra.mxu1 %v21169_v27  ;;  %v21241_v27 = vld [vmem:[%s33928_s3 + $0x1980] sm:$0xff] }
 0x6ca   :  { %24479 = vmatprep.subr.mxu1 %v21184_v57  ;;  %v21225_v57 = vld [vmem:[%s33928_s3 + $0x1900] sm:$0xff] }
 0x6cb   :  { %24480 = vmatpush3.msra.mxu1 %v21168_v46 }
 0x6cc   :  { %24481 = vmatprep.subr.mxu1 %v21183_v8  ;;  %v20422_v8 = vsel %vm20421_vm6, %v32058_v39, %v20238_v33 }
 0x6cd   :  { %24482 = vmatpush3.msra.mxu1 %v21167_v38  ;;  %v21320_v38 = vld [vmem:[%s33928_s3 + $0x1bf8] sm:$0xff]  ;;  %v20424_v39 = vsel %vm20423_vm7, %v20422_v8, %v33481_v35  ;;  %v21317_v35 = vld [vmem:[%s33928_s3 + $0x1be0] sm:$0xff] }
 0x6ce   :  { %24483 = vmatprep.subr.mxu1 %v21182_v63 }
 0x6cf   :  { %24484 = vmatpush3.msra.mxu1 %v21166_v26  ;;  %v21304_v26 = vld [vmem:[%s33928_s3 + $0x1b78] sm:$0xff] }
 0x6d0   :  { %24485 = vmatprep.subr.mxu1 %v21181_v19 }
 0x6d1   :  { %24486 = vmatpush3.msra.mxu1 %v21165_v59  ;;  %v21319_v59 = vld [vmem:[%s33928_s3 + $0x1bf0] sm:$0xff] }
 0x6d2   :  { %24487 = vmatprep.subr.mxu1 %v21180_v17  ;;  %v24075_v47 = vpop.f32.mrf.mxu1  ;;  %v21303_v17 = vld [vmem:[%s33928_s3 + $0x1b70] sm:$0xff] }
 0x6d3   :  { %24488 = vmatpush3.msra.mxu1 %v21164_v25  ;;  %v21318_v25 = vld [vmem:[%s33928_s3 + $0x1be8] sm:$0xff] }
 0x6d4   :  { %24489 = vmatprep.subr.mxu1 %v21179_v16  ;;  %v24076_v13 = vpop.f32.mrf.mxu1 }
 0x6d5   :  { %24490 = vmatpush3.msra.mxu1 %v21163_v14  ;;  %v24077_v58 = vadd.f32 %v24076_v13, %v24075_v47  ;;  %v21301_v14 = vld [vmem:[%s33928_s3 + $0x1b60] sm:$0xff] }
 0x6d6   :  { %24491 = vmatprep.subr.mxu1 %v21178_v49  ;;  %v21300_v49 = vld [vmem:[%s33928_s3 + $0x1b58] sm:$0xff] }
 0x6d7   :  { %24492 = vmatpush3.msra.mxu1 %v21162_v21  ;;  %v22180_v62 = vadd.f32 %v24077_v58, %v33608_v36  ;;  %v21233_v36 = vld [vmem:[%s33928_s3 + $0x1940] sm:$0xff]  ;;  %v21299_v58 = vld [vmem:[%s33928_s3 + $0x1b50] sm:$0xff] }
 0x6d8   :  { %24493 = vmatprep.subr.mxu1 %v21177_v32  ;;  %v21315_v32 = vld [vmem:[%s33928_s3 + $0x1bd0] sm:$0xff] }
 0x6d9   :  { %24494 = vmatpush3.msra.mxu1 %v21161_v50  ;;  %v33718_v60 = vadd.f32 %v33134_v51, %v22180_v62  ;;  %v21238_v51 = vld [vmem:[%s33928_s3 + $0x1968] sm:$0xff]  ;;  %v21313_v62 = vld [vmem:[%s33928_s3 + $0x1bc0] sm:$0xff] }
 0x6da   :  { %23018 = vmatmul.mubr.f32.vlgmr.msra.gmra.mxu1 %v31895_v56  ;;  %24533 = vmatprep.subr.mxu1 %v21256_v29  ;;  %v21253_v56 = vld [vmem:[%s33928_s3 + $0x19e0] sm:$0xff]  ;;  %v21314_v50 = vld [vmem:[%s33928_s3 + $0x1bc8] sm:$0xff] }
 0x6db   :  { %24534 = vmatpush3.msra.mxu1 %v21240_v28  ;;  %23157 = vmatprep.mubr.f32.mxu1 %v32016_v41  ;;  %v21237_v41 = vld [vmem:[%s33928_s3 + $0x1960] sm:$0xff]  ;;  %v21298_v29 = vld [vmem:[%s33928_s3 + $0x1b48] sm:$0xff] }
 0x6dc   :  { %24535 = vmatprep.subr.mxu1 %v21255_v37  ;;  %v24390_v44 = vpop.f32.mrf.mxu0  ;;  %v21297_v28 = vld [vmem:[%s33928_s3 + $0x1b40] sm:$0xff]  ;;  %v21312_v37 = vld [vmem:[%s33928_s3 + $0x1bb8] sm:$0xff] }
 0x6dd   :  { %24536 = vmatpush3.msra.mxu1 %v21239_v52  ;;  %v21311_v52 = vld [vmem:[%s33928_s3 + $0x1bb0] sm:$0xff] }
 0x6de   :  { %24537 = vmatprep.subr.mxu1 %v21254_v6  ;;  %v24391_v11 = vpop.f32.mrf.mxu0  ;;  %v21295_v6 = vld [vmem:[%s33928_s3 + $0x1b30] sm:$0xff] }
 0x6df   :  { %24538 = vmatpush3.msra.mxu1 %v21238_v51  ;;  %v33740_v12 = vadd.f32 %v24391_v11, %v24390_v44  ;;  %v21310_v51 = vld [vmem:[%s33928_s3 + $0x1ba8] sm:$0xff]  ;;  %v21308_v11 = vld [vmem:[%s33928_s3 + $0x1b98] sm:$0xff] }
 0x6e0   :  { %24539 = vmatprep.subr.mxu1 %v21253_v56  ;;  %v21294_v44 = vld [vmem:[%s33928_s3 + $0x1b28] sm:$0xff]  ;;  %v21309_v56 = vld [vmem:[%s33928_s3 + $0x1ba0] sm:$0xff] }
 0x6e1   :  { %24540 = vmatpush3.msra.mxu1 %v21237_v41  ;;  %v21293_v41 = vld [vmem:[%s33928_s3 + $0x1b20] sm:$0xff] }
 0x6e2   :  { %24541 = vmatprep.subr.mxu1 %v21252_v53  ;;  %v21292_v53 = vld [vmem:[%s33928_s3 + $0x1b18] sm:$0xff] }
 0x6e3   :  { %24542 = vmatpush3.msra.mxu1 %v21236_v20  ;;  %v21307_v20 = vld [vmem:[%s33928_s3 + $0x1b90] sm:$0xff] }
 0x6e4   :  { %24543 = vmatprep.subr.mxu1 %v21251_v5  ;;  %v21291_v5 = vld [vmem:[%s33928_s3 + $0x1b10] sm:$0xff] }
 0x6e5   :  { %24544 = vmatpush3.msra.mxu1 %v21235_v0  ;;  %v21306_v0 = vld [vmem:[%s33928_s3 + $0x1b88] sm:$0xff] }
 0x6e6   :  { %24545 = vmatprep.subr.mxu1 %v21250_v48  ;;  %v21290_v48 = vld [vmem:[%s33928_s3 + $0x1b08] sm:$0xff] }
 0x6e7   :  { %24546 = vmatpush3.msra.mxu1 %v21234_v15  ;;  %v21305_v15 = vld [vmem:[%s33928_s3 + $0x1b80] sm:$0xff] }
 0x6e8   :  { %24547 = vmatprep.subr.mxu1 %v21249_v3  ;;  %v21289_v3 = vld [vmem:[%s33928_s3 + $0x1b00] sm:$0xff] }
 0x6e9   :  { %24548 = vmatpush3.msra.mxu1 %v21233_v36 }
 0x6ea   :  { %24549 = vmatprep.subr.mxu1 %v21248_v4 }
 0x6eb   :  { %24550 = vmatpush3.msra.mxu1 %v21232_v34 }
 0x6ec   :  { %24551 = vmatprep.subr.mxu1 %v21247_v1 }
 0x6ed   :  { %24552 = vmatpush3.msra.mxu1 %v21231_v42 }
 0x6ee   :  { %24553 = vmatprep.subr.mxu1 %v21246_v45 }
 0x6ef   :  { %24554 = vmatpush3.msra.mxu1 %v21230_v43 }
 0x6f0   :  { %24555 = vmatprep.subr.mxu1 %v21245_v24 }
 0x6f1   :  { %24556 = vmatpush3.msra.mxu1 %v21229_v30 }
 0x6f2   :  { %24557 = vmatprep.subr.mxu1 %v21244_v7 }
 0x6f3   :  { %24558 = vmatpush3.msra.mxu1 %v21228_v22 }
 0x6f4   :  { %24559 = vmatprep.subr.mxu1 %v21243_v54  ;;  %v24145_v2 = vpop.f32.mrf.mxu1 }
 0x6f5   :  { %24560 = vmatpush3.msra.mxu1 %v21227_v61 }
 0x6f6   :  { %24561 = vmatprep.subr.mxu1 %v21242_v55  ;;  %v24146_v46 = vpop.f32.mrf.mxu1 }
 0x6f7   :  { %24562 = vmatpush3.msra.mxu1 %v21226_v23  ;;  %v24147_v63 = vadd.f32 %v24146_v46, %v24145_v2 }
 0x6f8   :  { %24563 = vmatprep.subr.mxu1 %v21241_v27 }
 0x6f9   :  { %24564 = vmatpush3.msra.mxu1 %v21225_v57  ;;  %v22320_v19 = vadd.f32 %v24147_v63, %v33718_v60  ;;  %v21296_v60 = vld [vmem:[%s33928_s3 + $0x1b38] sm:$0xff] }
 0x6fa   :  { %23158 = vmatmul.mubr.f32.vlgmr.msra.gmra.mxu1 %v31983_v18  ;;  %24603 = vmatprep.subr.mxu1 %v21320_v38  ;;  %v21302_v18 = vld [vmem:[%s33928_s3 + $0x1b68] sm:$0xff] }
 0x6fb   :  { %24604 = vmatpush3.msra.mxu1 %v21304_v26  ;;  %23297 = vmatprep.mubr.f32.mxu1 %v20424_v39  ;;  %v33831_v16 = vadd.f32 %v33349_v9, %v22320_v19  ;;  %v21316_v9 = vld [vmem:[%s33928_s3 + $0x1bd8] sm:$0xff]  ;;  %s25055_s3 = smov [#allocation2]  }
 0x6fc   :  { %24605 = vmatprep.subr.mxu1 %v21319_v59  ;;  %s23381_s25 = sshll.u32 %s25055_s3, 4  ;;  %s23382_s25 = int_to_ptr.vmem [resolvable:$true] %s23381_s25 }
 0x6fd   :  { %24606 = vmatpush3.msra.mxu1 %v21303_v17  ;;  %s24946_s26 = scalar_lea.vmem %s23382_s25, 32  ;;  %p24951_p1 = scmp.lt.s32.totalorder %s23382_s25, %s23382_s25 }
 0x6fe   :  { %24607 = vmatprep.subr.mxu1 %v21318_v25  ;;  %v24460_v47 = vpop.f32.mrf.mxu0  ;;  %p24947_p0 = scmp.ne.s32.totalorder %s23382_s25, %s24946_s26  ;;  %p24952_p2 = scmp.lt.s32.totalorder %s24946_s26, %s24946_s26 }
 0x6ff   :  { %24608 = vmatpush3.msra.mxu1 %v21302_v18 }
 0x700   :  { %24609 = vmatprep.subr.mxu1 %v21317_v35  ;;  %v24461_v21 = vpop.f32.mrf.mxu0  ;;  %p24953_p3 = por %p24952_p2, %p24951_p1 }
 0x701   :  { %24610 = vmatpush3.msra.mxu1 %v21301_v14  ;;  %v33848_v13 = vadd.f32 %v24461_v21, %v24460_v47 }
 0x702   :  { %24611 = vmatprep.subr.mxu1 %v21316_v9  ;;  %p24954_p4 = pnand %p24953_p3, %p24947_p0 }
 0x703   :  { %24612 = vmatpush3.msra.mxu1 %v21300_v49 }
 0x704   :  { %24613 = vmatprep.subr.mxu1 %v21315_v32 }
 0x705   :  { %24614 = vmatpush3.msra.mxu1 %v21299_v58 }
 0x706   :  { %24615 = vmatprep.subr.mxu1 %v21314_v50 }
 0x707   :  { %24616 = vmatpush3.msra.mxu1 %v21298_v29 }
 0x708   :  { %24617 = vmatprep.subr.mxu1 %v21313_v62 }
 0x709   :  { %24618 = vmatpush3.msra.mxu1 %v21297_v28 }
 0x70a   :  { %24619 = vmatprep.subr.mxu1 %v21312_v37 }
 0x70b   :  { %24620 = vmatpush3.msra.mxu1 %v21296_v60 }
 0x70c   :  { %24621 = vmatprep.subr.mxu1 %v21311_v52 }
 0x70d   :  { %24622 = vmatpush3.msra.mxu1 %v21295_v6 }
 0x70e   :  { %24623 = vmatprep.subr.mxu1 %v21310_v51 }
 0x70f   :  { %24624 = vmatpush3.msra.mxu1 %v21294_v44 }
 0x710   :  { %24625 = vmatprep.subr.mxu1 %v21309_v56 }
 0x711   :  { %24626 = vmatpush3.msra.mxu1 %v21293_v41 }
 0x712   :  { %24627 = vmatprep.subr.mxu1 %v21308_v11 }
 0x713   :  { %24628 = vmatpush3.msra.mxu1 %v21292_v53 }
 0x714   :  { %24629 = vmatprep.subr.mxu1 %v21307_v20 }
 0x715   :  { %24630 = vmatpush3.msra.mxu1 %v21291_v5 }
 0x716   :  { %24631 = vmatprep.subr.mxu1 %v21306_v0  ;;  %v24215_v36 = vpop.f32.mrf.mxu1 }
 0x717   :  { %24632 = vmatpush3.msra.mxu1 %v21290_v48 }
 0x718   :  { %24633 = vmatprep.subr.mxu1 %v21305_v15  ;;  %v24216_v4 = vpop.f32.mrf.mxu1 }
 0x719   :  { %24634 = vmatpush3.msra.mxu1 %v21289_v3  ;;  %v24217_v34 = vadd.f32 %v24216_v4, %v24215_v36 }
 0x71a   :  { %23298 = vmatmul.mubr.f32.vlgmr.msra.gmra.mxu1 %v32076_v40 }
 0x71b   :  { %v22460_v1 = vadd.f32 %v24217_v34, %v33831_v16 }
 0x71d   :  { %v22530_v42 = vadd.f32 %v33520_v31, %v22460_v1 }
 0x720   :  { %v24530_v45 = vpop.f32.mrf.mxu0 }
 0x722   :  { %v24531_v43 = vpop.f32.mrf.mxu0 }
 0x723   :  { %v24532_v24 = vadd.f32 %v24531_v43, %v24530_v45 }
 0x738   :  { %v24285_v30 = vpop.f32.mrf.mxu1 }
 0x73a   :  { %v24286_v7 = vpop.f32.mrf.mxu1 }
 0x73b   :  { %v24287_v22 = vadd.f32 %v24286_v7, %v24285_v30 }
 0x73d   :  { %v22600_v54 = vadd.f32 %v24287_v22, %v22530_v42 }
 0x73f   :  { %v22670_v61 = vadd.f32 %v33630_v10, %v22600_v54 }
 0x742   :  { %v24600_v55 = vpop.f32.mrf.mxu0 }
 0x744   :  { %v24601_v33 = vpop.f32.mrf.mxu0 }
 0x745   :  { %v24602_v23 = vadd.f32 %v24601_v33, %v24600_v55 }
 0x753   :  { %v23369_v2 = vpop.f32.mrf.mxu0 }
 0x755   :  { %v24665_v27 = vpop.f32.mrf.mxu0 }
 0x75a   :  { %v24355_v57 = vpop.f32.mrf.mxu1 }
 0x75c   :  { %v24356_v40 = vpop.f32.mrf.mxu1 }
 0x75d   :  { %v24357_v46 = vadd.f32 %v24356_v40, %v24355_v57 }
 0x75f   :  { %v22740_v8 = vadd.f32 %v24357_v46, %v22670_v61 }
 0x761   :  { %v22810_v31 = vadd.f32 %v33740_v12, %v22740_v8 }
 0x77a   :  { %v24425_v38 = vpop.f32.mrf.mxu1 }
 0x77c   :  { %v24426_v63 = vpop.f32.mrf.mxu1 }
 0x77d   :  { %v24427_v26 = vadd.f32 %v24426_v63, %v24425_v38 }
 0x77f   :  { %v22880_v19 = vadd.f32 %v24427_v26, %v22810_v31 }
 0x781   :  { %v22950_v59 = vadd.f32 %v33848_v13, %v22880_v19 }
 0x79a   :  { %v24495_v39 = vpop.f32.mrf.mxu1 }
 0x79c   :  { %v24496_v17 = vpop.f32.mrf.mxu1 }
 0x79d   :  { %v24497_v10 = vadd.f32 %v24496_v17, %v24495_v39 }
 0x79f   :  { %v23020_v25 = vadd.f32 %v24497_v10, %v22950_v59 }
 0x7a1   :  { %v23090_v16 = vadd.f32 %v24532_v24, %v23020_v25 }
 0x7ba   :  { %v24565_v18 = vpop.f32.mrf.mxu1 }
 0x7bc   :  { %v24566_v35 = vpop.f32.mrf.mxu1 }
 0x7bd   :  { %v24567_v14 = vadd.f32 %v24566_v35, %v24565_v18 }
 0x7bf   :  { %v23160_v47 = vadd.f32 %v24567_v14, %v23090_v16 }
 0x7c1   :  { %v23230_v9 = vadd.f32 %v24602_v23, %v23160_v47 }
 0x7da   :  { %v24635_v49 = vpop.f32.mrf.mxu1 }
 0x7dc   :  { %v24636_v21 = vpop.f32.mrf.mxu1 }
 0x7dd   :  { %v24637_v32 = vadd.f32 %v24636_v21, %v24635_v49 }
 0x7df   :  { %v23300_v12 = vadd.f32 %v24637_v32, %v23230_v9 }
 0x7e1   :  { %v23370_v58 = vadd.f32 %v23369_v2, %v23300_v12 }
 0x7e3   :  { %23374 = vst.msk [vmem:[#allocation2] sm:$0x3] %vm23373_vm8, %v23370_v58 }
 0x7e4   :  { %24957 = shalt.err (!%p24954_p4)
}
 0x7e5   :  { %23384 = dma.vmem_to_hbm [thread:$0]  %s23382_s25, 32, %s33930_s5, [#allocation3]  }
 0x7e6   :  { %24966 = dma.done.wait [#allocation3], 32  }
 0x7e7   :  { %24967 = vsyncadd [#allocation3], 4294967264 }
 0x7e8   :  { %23388 = vsyncpa [#allocation3], 1 }

</bundles_post_ra>
